<compile_context>
chip_gen: v5e
topology: v5e:2x2
jax: 0.10.0
libtpu: 0.0.40
codegen_flags: <defaults>
</compile_context>

<pallas_src>
import math

import jax
import jax.numpy as jnp
from jax.experimental import pallas as pl
from jax.experimental.pallas import tpu as pltpu

NEG_SLOPE = 0.01                   # nn.LeakyReLU default negative_slope
KSIZE = 5
DIL = 5
PAD = DIL * (KSIZE - 1) // 2       # = 10 each side ('same' padding)
L_IN = 512                         # input length implied by flattened_length=960

# Per-stage static config: (input length, Cin, Cout, use LeakyReLU?)
# Lengths: 512 -> 255 -> 127 -> 63 -> 31 -> 15 ; 15 * 64 = 960 = flattened_length.
STAGES = [
    (512, 1, 16, True),
    (255, 16, 32, True),
    (127, 32, 64, True),
    (63, 64, 64, True),
    (31, 64, 64, False),           # last conv block uses plain ReLU
]
L_FINAL = 15
C_FINAL = 64
FC_DIMS = [(960, 480), (480, 240), (240, 120), (120, 60), (60, 1)]


# ----------------------------------------------------------------------------
# Fully fused forward kernel: one grid step == one batch row.
# ----------------------------------------------------------------------------
def fused_kernel(x_ref,
                 w1_ref, b1_ref, w2_ref, b2_ref, w3_ref, b3_ref,
                 w4_ref, b4_ref, w5_ref, b5_ref,
                 fw1_ref, fb1_ref, fw2_ref, fb2_ref, fw3_ref, fb3_ref,
                 fw4_ref, fb4_ref, fw5_ref, fb5_ref,
                 o_ref,
                 xp_ref, yb_ref, xc_ref):
    conv_ws = [w1_ref, w2_ref, w3_ref, w4_ref, w5_ref]
    conv_bs = [b1_ref, b2_ref, b3_ref, b4_ref, b5_ref]

    # Stage-1 padded input: 'same' zero padding written in VMEM (cols 0:1).
    xp_ref[0:PAD, 0:1] = jnp.zeros((PAD, 1), jnp.float32)
    xp_ref[PAD:PAD + L_IN, 0:1] = x_ref[0]
    xp_ref[PAD + L_IN:L_IN + 2 * PAD, 0:1] = jnp.zeros((PAD, 1), jnp.float32)

    pooled = None
    for s, (L, cin, cout, leaky) in enumerate(STAGES):
        w_ref, b_ref = conv_ws[s], conv_bs[s]

        if cin == 1:
            # VPU path: (L,1) shifted column * (1,cout) tap weights (broadcast FMA).
            acc = jnp.zeros((L, cout), jnp.float32)
            for k in range(KSIZE):
                acc = acc + xp_ref[k * DIL:k * DIL + L, 0:1] * w_ref[k:k + 1, :]
        else:
            # im2col: pack the 5 dilated taps side by side in VMEM, then one
            # MXU matmul with contraction depth 5*cin.
            for k in range(KSIZE):
                xc_ref[0:L, k * cin:(k + 1) * cin] = \
                    xp_ref[k * DIL:k * DIL + L, 0:cin]
            acc = jnp.dot(xc_ref[0:L, 0:KSIZE * cin], w_ref[...],
                          preferred_element_type=jnp.float32)

        y = acc + b_ref[...]
        y = jnp.where(y > 0, y, NEG_SLOPE * y) if leaky else jnp.maximum(y, 0.0)

        # MaxPool1d(kernel=3, stride=2): three stride-2 sublane views of y.
        lout = (L - 3) // 2 + 1
        yb_ref[0:L, 0:cout] = y
        p0 = yb_ref[pl.ds(0, lout, stride=2), 0:cout]
        p1 = yb_ref[pl.ds(1, lout, stride=2), 0:cout]
        p2 = yb_ref[pl.ds(2, lout, stride=2), 0:cout]
        pooled = jnp.maximum(jnp.maximum(p0, p1), p2)           # (lout, cout)

        if s + 1 < len(STAGES):
            # Next stage's zero-padded input, kept resident in VMEM.
            xp_ref[0:PAD, 0:cout] = jnp.zeros((PAD, cout), jnp.float32)
            xp_ref[PAD:PAD + lout, 0:cout] = pooled
            xp_ref[PAD + lout:lout + 2 * PAD, 0:cout] = \
                jnp.zeros((PAD, cout), jnp.float32)

    # ---------------- MLP head ----------------
    # FC1 weight is pre-permuted on the host to (15, 64, 480) in PyTorch
    # NCL-flatten order (row = c*15 + l), so the (15, 64) activation is
    # contracted directly — no in-kernel transpose/flatten needed.
    h = fb1_ref[...]                                            # (1, 480)
    for l in range(L_FINAL):
        h = h + jnp.dot(pooled[l:l + 1, :], fw1_ref[l],
                        preferred_element_type=jnp.float32)
    h = jnp.maximum(h, 0.0)
    # TODO(synk): nn.Dropout(p=0.2) modeled as identity (eval/inference mode).
    h = jnp.maximum(jnp.dot(h, fw2_ref[...], preferred_element_type=jnp.float32)
                    + fb2_ref[...], 0.0)
    h = jnp.maximum(jnp.dot(h, fw3_ref[...], preferred_element_type=jnp.float32)
                    + fb3_ref[...], 0.0)
    h = jnp.maximum(jnp.dot(h, fw4_ref[...], preferred_element_type=jnp.float32)
                    + fb4_ref[...], 0.0)
    o_ref[0] = (jnp.dot(h, fw5_ref[...], preferred_element_type=jnp.float32)
                + fb5_ref[...])


def _full_spec(arr):
    ndim = arr.ndim
    return pl.BlockSpec(arr.shape, lambda b, _n=ndim: (0,) * _n)


@jax.jit
def temp_conv_network(x_ncl, conv_params, fc_params):
    """x_ncl: (B, 1, 512) float32 (PyTorch NCL layout) -> (B, 1)."""
    B = x_ncl.shape[0]
    x = jnp.transpose(x_ncl, (0, 2, 1))                        # (B, 512, 1) NLC

    args = [x]
    in_specs = [pl.BlockSpec((1, L_IN, 1), lambda b: (b, 0, 0))]
    for w, b in list(conv_params) + list(fc_params):
        args += [w, b]
        in_specs += [_full_spec(w), _full_spec(b)]

    out = pl.pallas_call(
        fused_kernel,
        out_shape=jax.ShapeDtypeStruct((B, 1, 1), jnp.float32),
        grid=(B,),
        in_specs=in_specs,
        out_specs=pl.BlockSpec((1, 1, 1), lambda b: (b, 0, 0)),
        scratch_shapes=[
            pltpu.VMEM((L_IN + 2 * PAD, C_FINAL), jnp.float32),  # padded stage input
            pltpu.VMEM((L_IN, C_FINAL), jnp.float32),            # pre-pool activation
            pltpu.VMEM((256, KSIZE * C_FINAL), jnp.float32),     # im2col buffer
        ],
        compiler_params=pltpu.CompilerParams(
            dimension_semantics=("parallel",),
            vmem_limit_bytes=32 * 1024 * 1024),
    )(*args)
    return out.reshape(B, 1)


# ----------------------------------------------------------------------------
# Deterministic synthetic parameters (shapes match the PyTorch module).
# ----------------------------------------------------------------------------
def init_params(key):
    keys = jax.random.split(key, 20)
    ki = 0
    convs = []
    for cin, cout in [(1, 16), (16, 32), (32, 64), (64, 64), (64, 64)]:
        scale = 1.0 / math.sqrt(cin * KSIZE)
        w = jax.random.normal(keys[ki], (KSIZE, cin, cout), jnp.float32) * scale
        ki += 1
        b = jax.random.normal(keys[ki], (1, cout), jnp.float32) * 0.01
        ki += 1
        # (K, Cin, Cout) -> (K*Cin, Cout); row order (k, c) matches the kernel's
        # im2col column order.
        convs.append((w.reshape(KSIZE * cin, cout), b))
    fcs = []
    for fin, fout in FC_DIMS:
        scale = 1.0 / math.sqrt(fin)
        w = jax.random.normal(keys[ki], (fin, fout), jnp.float32) * scale
        ki += 1
        b = jax.random.normal(keys[ki], (1, fout), jnp.float32) * 0.01
        ki += 1
        fcs.append((w, b))
    # Pre-permute FC1 weight from PyTorch NCL-flatten row order (row = c*15 + l)
    # to (l, c, out) so the kernel consumes the (15, 64) activation directly.
    w1, b1 = fcs[0]
    fcs[0] = (w1.reshape(C_FINAL, L_FINAL, FC_DIMS[0][1]).transpose(1, 0, 2), b1)
    return convs, fcs


# ----------------------------------------------------------------------------
# Pure-JAX (non-Pallas) reference of the same forward pass, for verification.
# ----------------------------------------------------------------------------
def reference_forward(x_ncl, conv_params, fc_params):
    hp = jax.lax.Precision.HIGHEST
    x = jnp.transpose(x_ncl, (0, 2, 1))                        # (B, L, 1)
    for (w2d, b), (_, cin, cout, leaky) in zip(conv_params, STAGES):
        bsz, L = x.shape[0], x.shape[1]
        w = w2d.reshape(KSIZE, cin, cout)
        xp = jnp.pad(x, ((0, 0), (PAD, PAD), (0, 0)))
        acc = jnp.zeros((bsz, L, cout), jnp.float32)
        for k in range(KSIZE):
            acc = acc + jnp.einsum('blc,co->blo',
                                   xp[:, k * DIL:k * DIL + L, :], w[k],
                                   precision=hp)
        y = acc + b
        y = jnp.where(y > 0, y, NEG_SLOPE * y) if leaky else jnp.maximum(y, 0.0)
        lout = (L - 3) // 2 + 1
        x = jnp.maximum(jnp.maximum(y[:, 0::2][:, :lout], y[:, 1::2][:, :lout]),
                        y[:, 2::2][:, :lout])
    w1, b1 = fc_params[0]                                      # (15, 64, 480)
    h = jnp.einsum('blc,lcf->bf', x, w1, precision=hp) + b1
    h = jnp.maximum(h, 0.0)
    for w, b in fc_params[1:-1]:
        h = jnp.maximum(jnp.dot(h, w, precision=hp) + b, 0.0)
    w, b = fc_params[-1]
    return jnp.dot(h, w, precision=hp) + b


if __name__ == "__main__":
    key = jax.random.PRNGKey(0)
    pkey, xkey = jax.random.split(key)
    conv_params, fc_params = init_params(pkey)
    # batch=2, 1 input channel, length=512 (the length implied by
    # flattened_length=960: 512 -> 255 -> 127 -> 63 -> 31 -> 15, 15*64 = 960).
    x = jax.random.normal(xkey, (2, 1, L_IN), jnp.float32)

    out = temp_conv_network(x, conv_params, fc_params)
    jax.block_until_ready(out)
    assert out.shape == (2, 1) and out.dtype == jnp.float32

    ref = reference_forward(x, conv_params, fc_params)
    assert bool(jnp.allclose(out, ref, rtol=2e-2, atol=2e-2)), (
        "kernel/reference mismatch: kernel=%s ref=%s" % (out, ref))
    print("KERNEL_OK")
</pallas_src>

<mosaic_0001>
module attributes {stable_mosaic.version = 11 : i64} {
  func.func @fused_kernel(%arg0: i32, %arg1: memref<1x512x1xf32, #tpu.memory_space<vmem>>, %arg2: memref<5x16xf32, #tpu.memory_space<vmem>>, %arg3: memref<1x16xf32, #tpu.memory_space<vmem>>, %arg4: memref<80x32xf32, #tpu.memory_space<vmem>>, %arg5: memref<1x32xf32, #tpu.memory_space<vmem>>, %arg6: memref<160x64xf32, #tpu.memory_space<vmem>>, %arg7: memref<1x64xf32, #tpu.memory_space<vmem>>, %arg8: memref<320x64xf32, #tpu.memory_space<vmem>>, %arg9: memref<1x64xf32, #tpu.memory_space<vmem>>, %arg10: memref<320x64xf32, #tpu.memory_space<vmem>>, %arg11: memref<1x64xf32, #tpu.memory_space<vmem>>, %arg12: memref<15x64x480xf32, #tpu.memory_space<vmem>>, %arg13: memref<1x480xf32, #tpu.memory_space<vmem>>, %arg14: memref<480x240xf32, #tpu.memory_space<vmem>>, %arg15: memref<1x240xf32, #tpu.memory_space<vmem>>, %arg16: memref<240x120xf32, #tpu.memory_space<vmem>>, %arg17: memref<1x120xf32, #tpu.memory_space<vmem>>, %arg18: memref<120x60xf32, #tpu.memory_space<vmem>>, %arg19: memref<1x60xf32, #tpu.memory_space<vmem>>, %arg20: memref<60x1xf32, #tpu.memory_space<vmem>>, %arg21: memref<1x1xf32, #tpu.memory_space<vmem>>, %arg22: memref<1x1x1xf32, #tpu.memory_space<vmem>>, %arg23: memref<532x64xf32, #tpu.memory_space<vmem>>, %arg24: memref<512x64xf32, #tpu.memory_space<vmem>>, %arg25: memref<256x320xf32, #tpu.memory_space<vmem>>) attributes {dimension_semantics = [#tpu.dimension_semantics<parallel>], iteration_bounds = array<i64: 2>, scalar_prefetch = 0 : i64, scratch_operands = 3 : i64, tpu.core_type = #tpu.core_type<tc>, window_params = [{transform_indices = @transform_0, window_bounds = array<i64: 1, 512, 1>}, {pipeline_mode = #tpu.pipeline_mode<synchronous>, transform_indices = @transform_1, window_bounds = array<i64: 5, 16>}, {pipeline_mode = #tpu.pipeline_mode<synchronous>, transform_indices = @transform_2, window_bounds = array<i64: 1, 16>}, {pipeline_mode = #tpu.pipeline_mode<synchronous>, transform_indices = @transform_3, window_bounds = array<i64: 80, 32>}, {pipeline_mode = #tpu.pipeline_mode<synchronous>, transform_indices = @transform_4, window_bounds = array<i64: 1, 32>}, {pipeline_mode = #tpu.pipeline_mode<synchronous>, transform_indices = @transform_5, window_bounds = array<i64: 160, 64>}, {pipeline_mode = #tpu.pipeline_mode<synchronous>, transform_indices = @transform_6, window_bounds = array<i64: 1, 64>}, {pipeline_mode = #tpu.pipeline_mode<synchronous>, transform_indices = @transform_7, window_bounds = array<i64: 320, 64>}, {pipeline_mode = #tpu.pipeline_mode<synchronous>, transform_indices = @transform_8, window_bounds = array<i64: 1, 64>}, {pipeline_mode = #tpu.pipeline_mode<synchronous>, transform_indices = @transform_9, window_bounds = array<i64: 320, 64>}, {pipeline_mode = #tpu.pipeline_mode<synchronous>, transform_indices = @transform_10, window_bounds = array<i64: 1, 64>}, {pipeline_mode = #tpu.pipeline_mode<synchronous>, transform_indices = @transform_11, window_bounds = array<i64: 15, 64, 480>}, {pipeline_mode = #tpu.pipeline_mode<synchronous>, transform_indices = @transform_12, window_bounds = array<i64: 1, 480>}, {pipeline_mode = #tpu.pipeline_mode<synchronous>, transform_indices = @transform_13, window_bounds = array<i64: 480, 240>}, {pipeline_mode = #tpu.pipeline_mode<synchronous>, transform_indices = @transform_14, window_bounds = array<i64: 1, 240>}, {pipeline_mode = #tpu.pipeline_mode<synchronous>, transform_indices = @transform_15, window_bounds = array<i64: 240, 120>}, {pipeline_mode = #tpu.pipeline_mode<synchronous>, transform_indices = @transform_16, window_bounds = array<i64: 1, 120>}, {pipeline_mode = #tpu.pipeline_mode<synchronous>, transform_indices = @transform_17, window_bounds = array<i64: 120, 60>}, {pipeline_mode = #tpu.pipeline_mode<synchronous>, transform_indices = @transform_18, window_bounds = array<i64: 1, 60>}, {pipeline_mode = #tpu.pipeline_mode<synchronous>, transform_indices = @transform_19, window_bounds = array<i64: 60, 1>}, {pipeline_mode = #tpu.pipeline_mode<synchronous>, transform_indices = @transform_20, window_bounds = array<i64: 1, 1>}, {transform_indices = @transform_21, window_bounds = array<i64: 1, 1, 1>}]} {
    %cst = arith.constant 0.000000e+00 : f32
    %0 = vector.broadcast %cst : f32 to vector<10x1xf32>
    %c0 = arith.constant 0 : index
    %c0_0 = arith.constant 0 : index
    %1 = vector.load %arg23[%c0, %c0_0] : memref<532x64xf32, #tpu.memory_space<vmem>>, vector<10x1xf32>
    tpu.vector_store %arg23[%c0, %c0_0], %0 {strides = array<i32>} : memref<532x64xf32, #tpu.memory_space<vmem>>, vector<10x1xf32>,
    %c0_1 = arith.constant 0 : index
    %c0_2 = arith.constant 0 : index
    %c0_3 = arith.constant 0 : index
    %2 = vector.load %arg1[%c0_1, %c0_2, %c0_3] : memref<1x512x1xf32, #tpu.memory_space<vmem>>, vector<1x512x1xf32>
    %3 = vector.shape_cast %2 : vector<1x512x1xf32> to vector<512x1xf32>
    %c10 = arith.constant 10 : index
    %c0_4 = arith.constant 0 : index
    %4 = vector.load %arg23[%c10, %c0_4] : memref<532x64xf32, #tpu.memory_space<vmem>>, vector<512x1xf32>
    tpu.vector_store %arg23[%c10, %c0_4], %3 {strides = array<i32>} : memref<532x64xf32, #tpu.memory_space<vmem>>, vector<512x1xf32>,
    %cst_5 = arith.constant 0.000000e+00 : f32
    %5 = vector.broadcast %cst_5 : f32 to vector<10x1xf32>
    %c522 = arith.constant 522 : index
    %c0_6 = arith.constant 0 : index
    %6 = vector.load %arg23[%c522, %c0_6] : memref<532x64xf32, #tpu.memory_space<vmem>>, vector<10x1xf32>
    tpu.vector_store %arg23[%c522, %c0_6], %5 {strides = array<i32>} : memref<532x64xf32, #tpu.memory_space<vmem>>, vector<10x1xf32>,
    %cst_7 = arith.constant 0.000000e+00 : f32
    %7 = vector.broadcast %cst_7 : f32 to vector<512x16xf32>
    %c0_8 = arith.constant 0 : index
    %c0_9 = arith.constant 0 : index
    %8 = vector.load %arg23[%c0_8, %c0_9] : memref<532x64xf32, #tpu.memory_space<vmem>>, vector<512x1xf32>
    %c0_10 = arith.constant 0 : index
    %c0_11 = arith.constant 0 : index
    %9 = vector.load %arg2[%c0_10, %c0_11] : memref<5x16xf32, #tpu.memory_space<vmem>>, vector<1x16xf32>
    %10 = vector.broadcast %8 : vector<512x1xf32> to vector<512x16xf32>
    %11 = vector.broadcast %9 : vector<1x16xf32> to vector<512x16xf32>
    %12 = arith.mulf %10, %11 : vector<512x16xf32>
    %13 = arith.addf %7, %12 : vector<512x16xf32>
    %c5 = arith.constant 5 : index
    %c0_12 = arith.constant 0 : index
    %14 = vector.load %arg23[%c5, %c0_12] : memref<532x64xf32, #tpu.memory_space<vmem>>, vector<512x1xf32>
    %c1 = arith.constant 1 : index
    %c0_13 = arith.constant 0 : index
    %15 = vector.load %arg2[%c1, %c0_13] : memref<5x16xf32, #tpu.memory_space<vmem>>, vector<1x16xf32>
    %16 = vector.broadcast %14 : vector<512x1xf32> to vector<512x16xf32>
    %17 = vector.broadcast %15 : vector<1x16xf32> to vector<512x16xf32>
    %18 = arith.mulf %16, %17 : vector<512x16xf32>
    %19 = arith.addf %13, %18 : vector<512x16xf32>
    %c10_14 = arith.constant 10 : index
    %c0_15 = arith.constant 0 : index
    %20 = vector.load %arg23[%c10_14, %c0_15] : memref<532x64xf32, #tpu.memory_space<vmem>>, vector<512x1xf32>
    %c2 = arith.constant 2 : index
    %c0_16 = arith.constant 0 : index
    %21 = vector.load %arg2[%c2, %c0_16] : memref<5x16xf32, #tpu.memory_space<vmem>>, vector<1x16xf32>
    %22 = vector.broadcast %20 : vector<512x1xf32> to vector<512x16xf32>
    %23 = vector.broadcast %21 : vector<1x16xf32> to vector<512x16xf32>
    %24 = arith.mulf %22, %23 : vector<512x16xf32>
    %25 = arith.addf %19, %24 : vector<512x16xf32>
    %c15 = arith.constant 15 : index
    %c0_17 = arith.constant 0 : index
    %26 = vector.load %arg23[%c15, %c0_17] : memref<532x64xf32, #tpu.memory_space<vmem>>, vector<512x1xf32>
    %c3 = arith.constant 3 : index
    %c0_18 = arith.constant 0 : index
    %27 = vector.load %arg2[%c3, %c0_18] : memref<5x16xf32, #tpu.memory_space<vmem>>, vector<1x16xf32>
    %28 = vector.broadcast %26 : vector<512x1xf32> to vector<512x16xf32>
    %29 = vector.broadcast %27 : vector<1x16xf32> to vector<512x16xf32>
    %30 = arith.mulf %28, %29 : vector<512x16xf32>
    %31 = arith.addf %25, %30 : vector<512x16xf32>
    %c20 = arith.constant 20 : index
    %c0_19 = arith.constant 0 : index
    %32 = vector.load %arg23[%c20, %c0_19] : memref<532x64xf32, #tpu.memory_space<vmem>>, vector<512x1xf32>
    %c4 = arith.constant 4 : index
    %c0_20 = arith.constant 0 : index
    %33 = vector.load %arg2[%c4, %c0_20] : memref<5x16xf32, #tpu.memory_space<vmem>>, vector<1x16xf32>
    %34 = vector.broadcast %32 : vector<512x1xf32> to vector<512x16xf32>
    %35 = vector.broadcast %33 : vector<1x16xf32> to vector<512x16xf32>
    %36 = arith.mulf %34, %35 : vector<512x16xf32>
    %37 = arith.addf %31, %36 : vector<512x16xf32>
    %c0_21 = arith.constant 0 : index
    %c0_22 = arith.constant 0 : index
    %38 = vector.load %arg3[%c0_21, %c0_22] : memref<1x16xf32, #tpu.memory_space<vmem>>, vector<1x16xf32>
    %39 = vector.broadcast %38 : vector<1x16xf32> to vector<512x16xf32>
    %40 = arith.addf %37, %39 : vector<512x16xf32>
    %cst_23 = arith.constant 0.000000e+00 : f32
    %41 = vector.broadcast %cst_23 : f32 to vector<512x16xf32>
    %42 = arith.cmpf ogt, %40, %41 : vector<512x16xf32>
    %cst_24 = arith.constant 0.00999999977 : f32
    %43 = vector.broadcast %cst_24 : f32 to vector<512x16xf32>
    %44 = arith.mulf %43, %40 : vector<512x16xf32>
    %45 = arith.select %42, %40, %44 : vector<512x16xi1>, vector<512x16xf32>
    %c0_25 = arith.constant 0 : index
    %c0_26 = arith.constant 0 : index
    %46 = vector.load %arg24[%c0_25, %c0_26] : memref<512x64xf32, #tpu.memory_space<vmem>>, vector<512x16xf32>
    tpu.vector_store %arg24[%c0_25, %c0_26], %45 {strides = array<i32>} : memref<512x64xf32, #tpu.memory_space<vmem>>, vector<512x16xf32>,
    %c0_27 = arith.constant 0 : index
    %c0_28 = arith.constant 0 : index
    %47 = tpu.strided_load %arg24[%c0_27, %c0_28] {strides = array<i32: 2, 1>} : memref<512x64xf32, #tpu.memory_space<vmem>>, vector<255x16xf32>
    %c1_29 = arith.constant 1 : index
    %c0_30 = arith.constant 0 : index
    %48 = tpu.strided_load %arg24[%c1_29, %c0_30] {strides = array<i32: 2, 1>} : memref<512x64xf32, #tpu.memory_space<vmem>>, vector<255x16xf32>
    %c2_31 = arith.constant 2 : index
    %c0_32 = arith.constant 0 : index
    %49 = tpu.strided_load %arg24[%c2_31, %c0_32] {strides = array<i32: 2, 1>} : memref<512x64xf32, #tpu.memory_space<vmem>>, vector<255x16xf32>
    %50 = arith.maximumf %47, %48 : vector<255x16xf32>
    %51 = arith.maximumf %50, %49 : vector<255x16xf32>
    %cst_33 = arith.constant 0.000000e+00 : f32
    %52 = vector.broadcast %cst_33 : f32 to vector<10x16xf32>
    %c0_34 = arith.constant 0 : index
    %c0_35 = arith.constant 0 : index
    %53 = vector.load %arg23[%c0_34, %c0_35] : memref<532x64xf32, #tpu.memory_space<vmem>>, vector<10x16xf32>
    tpu.vector_store %arg23[%c0_34, %c0_35], %52 {strides = array<i32>} : memref<532x64xf32, #tpu.memory_space<vmem>>, vector<10x16xf32>,
    %c10_36 = arith.constant 10 : index
    %c0_37 = arith.constant 0 : index
    %54 = vector.load %arg23[%c10_36, %c0_37] : memref<532x64xf32, #tpu.memory_space<vmem>>, vector<255x16xf32>
    tpu.vector_store %arg23[%c10_36, %c0_37], %51 {strides = array<i32>} : memref<532x64xf32, #tpu.memory_space<vmem>>, vector<255x16xf32>,
    %cst_38 = arith.constant 0.000000e+00 : f32
    %55 = vector.broadcast %cst_38 : f32 to vector<10x16xf32>
    %c265 = arith.constant 265 : index
    %c0_39 = arith.constant 0 : index
    %56 = vector.load %arg23[%c265, %c0_39] : memref<532x64xf32, #tpu.memory_space<vmem>>, vector<10x16xf32>
    tpu.vector_store %arg23[%c265, %c0_39], %55 {strides = array<i32>} : memref<532x64xf32, #tpu.memory_space<vmem>>, vector<10x16xf32>,
    %c0_40 = arith.constant 0 : index
    %c0_41 = arith.constant 0 : index
    %57 = vector.load %arg23[%c0_40, %c0_41] : memref<532x64xf32, #tpu.memory_space<vmem>>, vector<255x16xf32>
    %c0_42 = arith.constant 0 : index
    %c0_43 = arith.constant 0 : index
    %58 = vector.load %arg25[%c0_42, %c0_43] : memref<256x320xf32, #tpu.memory_space<vmem>>, vector<255x16xf32>
    tpu.vector_store %arg25[%c0_42, %c0_43], %57 {strides = array<i32>} : memref<256x320xf32, #tpu.memory_space<vmem>>, vector<255x16xf32>,
    %c5_44 = arith.constant 5 : index
    %c0_45 = arith.constant 0 : index
    %59 = vector.load %arg23[%c5_44, %c0_45] : memref<532x64xf32, #tpu.memory_space<vmem>>, vector<255x16xf32>
    %c0_46 = arith.constant 0 : index
    %c16 = arith.constant 16 : index
    %60 = vector.load %arg25[%c0_46, %c16] : memref<256x320xf32, #tpu.memory_space<vmem>>, vector<255x16xf32>
    tpu.vector_store %arg25[%c0_46, %c16], %59 {strides = array<i32>} : memref<256x320xf32, #tpu.memory_space<vmem>>, vector<255x16xf32>,
    %c10_47 = arith.constant 10 : index
    %c0_48 = arith.constant 0 : index
    %61 = vector.load %arg23[%c10_47, %c0_48] : memref<532x64xf32, #tpu.memory_space<vmem>>, vector<255x16xf32>
    %c0_49 = arith.constant 0 : index
    %c32 = arith.constant 32 : index
    %62 = vector.load %arg25[%c0_49, %c32] : memref<256x320xf32, #tpu.memory_space<vmem>>, vector<255x16xf32>
    tpu.vector_store %arg25[%c0_49, %c32], %61 {strides = array<i32>} : memref<256x320xf32, #tpu.memory_space<vmem>>, vector<255x16xf32>,
    %c15_50 = arith.constant 15 : index
    %c0_51 = arith.constant 0 : index
    %63 = vector.load %arg23[%c15_50, %c0_51] : memref<532x64xf32, #tpu.memory_space<vmem>>, vector<255x16xf32>
    %c0_52 = arith.constant 0 : index
    %c48 = arith.constant 48 : index
    %64 = vector.load %arg25[%c0_52, %c48] : memref<256x320xf32, #tpu.memory_space<vmem>>, vector<255x16xf32>
    tpu.vector_store %arg25[%c0_52, %c48], %63 {strides = array<i32>} : memref<256x320xf32, #tpu.memory_space<vmem>>, vector<255x16xf32>,
    %c20_53 = arith.constant 20 : index
    %c0_54 = arith.constant 0 : index
    %65 = vector.load %arg23[%c20_53, %c0_54] : memref<532x64xf32, #tpu.memory_space<vmem>>, vector<255x16xf32>
    %c0_55 = arith.constant 0 : index
    %c64 = arith.constant 64 : index
    %66 = vector.load %arg25[%c0_55, %c64] : memref<256x320xf32, #tpu.memory_space<vmem>>, vector<255x16xf32>
    tpu.vector_store %arg25[%c0_55, %c64], %65 {strides = array<i32>} : memref<256x320xf32, #tpu.memory_space<vmem>>, vector<255x16xf32>,
    %c0_56 = arith.constant 0 : index
    %c0_57 = arith.constant 0 : index
    %67 = vector.load %arg25[%c0_56, %c0_57] : memref<256x320xf32, #tpu.memory_space<vmem>>, vector<255x80xf32>
    %c0_58 = arith.constant 0 : index
    %c0_59 = arith.constant 0 : index
    %68 = vector.load %arg4[%c0_58, %c0_59] : memref<80x32xf32, #tpu.memory_space<vmem>>, vector<80x32xf32>
    %cst_60 = arith.constant dense<0.000000e+00> : vector<255x32xf32>
    %69 = tpu.matmul %67, %68, %cst_60 {dimension_numbers = #tpu.dot_dimension_numbers<[1], [0], [0], [1], [0, 0, 1, 1], [], []>} : vector<255x80xf32>, vector<80x32xf32>, vector<255x32xf32> -> vector<255x32xf32>
    %c0_61 = arith.constant 0 : index
    %c0_62 = arith.constant 0 : index
    %70 = vector.load %arg5[%c0_61, %c0_62] : memref<1x32xf32, #tpu.memory_space<vmem>>, vector<1x32xf32>
    %71 = vector.broadcast %70 : vector<1x32xf32> to vector<255x32xf32>
    %72 = arith.addf %69, %71 : vector<255x32xf32>
    %cst_63 = arith.constant 0.000000e+00 : f32
    %73 = vector.broadcast %cst_63 : f32 to vector<255x32xf32>
    %74 = arith.cmpf ogt, %72, %73 : vector<255x32xf32>
    %cst_64 = arith.constant 0.00999999977 : f32
    %75 = vector.broadcast %cst_64 : f32 to vector<255x32xf32>
    %76 = arith.mulf %75, %72 : vector<255x32xf32>
    %77 = arith.select %74, %72, %76 : vector<255x32xi1>, vector<255x32xf32>
    %c0_65 = arith.constant 0 : index
    %c0_66 = arith.constant 0 : index
    %78 = vector.load %arg24[%c0_65, %c0_66] : memref<512x64xf32, #tpu.memory_space<vmem>>, vector<255x32xf32>
    tpu.vector_store %arg24[%c0_65, %c0_66], %77 {strides = array<i32>} : memref<512x64xf32, #tpu.memory_space<vmem>>, vector<255x32xf32>,
    %c0_67 = arith.constant 0 : index
    %c0_68 = arith.constant 0 : index
    %79 = tpu.strided_load %arg24[%c0_67, %c0_68] {strides = array<i32: 2, 1>} : memref<512x64xf32, #tpu.memory_space<vmem>>, vector<127x32xf32>
    %c1_69 = arith.constant 1 : index
    %c0_70 = arith.constant 0 : index
    %80 = tpu.strided_load %arg24[%c1_69, %c0_70] {strides = array<i32: 2, 1>} : memref<512x64xf32, #tpu.memory_space<vmem>>, vector<127x32xf32>
    %c2_71 = arith.constant 2 : index
    %c0_72 = arith.constant 0 : index
    %81 = tpu.strided_load %arg24[%c2_71, %c0_72] {strides = array<i32: 2, 1>} : memref<512x64xf32, #tpu.memory_space<vmem>>, vector<127x32xf32>
    %82 = arith.maximumf %79, %80 : vector<127x32xf32>
    %83 = arith.maximumf %82, %81 : vector<127x32xf32>
    %cst_73 = arith.constant 0.000000e+00 : f32
    %84 = vector.broadcast %cst_73 : f32 to vector<10x32xf32>
    %c0_74 = arith.constant 0 : index
    %c0_75 = arith.constant 0 : index
    %85 = vector.load %arg23[%c0_74, %c0_75] : memref<532x64xf32, #tpu.memory_space<vmem>>, vector<10x32xf32>
    tpu.vector_store %arg23[%c0_74, %c0_75], %84 {strides = array<i32>} : memref<532x64xf32, #tpu.memory_space<vmem>>, vector<10x32xf32>,
    %c10_76 = arith.constant 10 : index
    %c0_77 = arith.constant 0 : index
    %86 = vector.load %arg23[%c10_76, %c0_77] : memref<532x64xf32, #tpu.memory_space<vmem>>, vector<127x32xf32>
    tpu.vector_store %arg23[%c10_76, %c0_77], %83 {strides = array<i32>} : memref<532x64xf32, #tpu.memory_space<vmem>>, vector<127x32xf32>,
    %cst_78 = arith.constant 0.000000e+00 : f32
    %87 = vector.broadcast %cst_78 : f32 to vector<10x32xf32>
    %c137 = arith.constant 137 : index
    %c0_79 = arith.constant 0 : index
    %88 = vector.load %arg23[%c137, %c0_79] : memref<532x64xf32, #tpu.memory_space<vmem>>, vector<10x32xf32>
    tpu.vector_store %arg23[%c137, %c0_79], %87 {strides = array<i32>} : memref<532x64xf32, #tpu.memory_space<vmem>>, vector<10x32xf32>,
    %c0_80 = arith.constant 0 : index
    %c0_81 = arith.constant 0 : index
    %89 = vector.load %arg23[%c0_80, %c0_81] : memref<532x64xf32, #tpu.memory_space<vmem>>, vector<127x32xf32>
    %c0_82 = arith.constant 0 : index
    %c0_83 = arith.constant 0 : index
    %90 = vector.load %arg25[%c0_82, %c0_83] : memref<256x320xf32, #tpu.memory_space<vmem>>, vector<127x32xf32>
    tpu.vector_store %arg25[%c0_82, %c0_83], %89 {strides = array<i32>} : memref<256x320xf32, #tpu.memory_space<vmem>>, vector<127x32xf32>,
    %c5_84 = arith.constant 5 : index
    %c0_85 = arith.constant 0 : index
    %91 = vector.load %arg23[%c5_84, %c0_85] : memref<532x64xf32, #tpu.memory_space<vmem>>, vector<127x32xf32>
    %c0_86 = arith.constant 0 : index
    %c32_87 = arith.constant 32 : index
    %92 = vector.load %arg25[%c0_86, %c32_87] : memref<256x320xf32, #tpu.memory_space<vmem>>, vector<127x32xf32>
    tpu.vector_store %arg25[%c0_86, %c32_87], %91 {strides = array<i32>} : memref<256x320xf32, #tpu.memory_space<vmem>>, vector<127x32xf32>,
    %c10_88 = arith.constant 10 : index
    %c0_89 = arith.constant 0 : index
    %93 = vector.load %arg23[%c10_88, %c0_89] : memref<532x64xf32, #tpu.memory_space<vmem>>, vector<127x32xf32>
    %c0_90 = arith.constant 0 : index
    %c64_91 = arith.constant 64 : index
    %94 = vector.load %arg25[%c0_90, %c64_91] : memref<256x320xf32, #tpu.memory_space<vmem>>, vector<127x32xf32>
    tpu.vector_store %arg25[%c0_90, %c64_91], %93 {strides = array<i32>} : memref<256x320xf32, #tpu.memory_space<vmem>>, vector<127x32xf32>,
    %c15_92 = arith.constant 15 : index
    %c0_93 = arith.constant 0 : index
    %95 = vector.load %arg23[%c15_92, %c0_93] : memref<532x64xf32, #tpu.memory_space<vmem>>, vector<127x32xf32>
    %c0_94 = arith.constant 0 : index
    %c96 = arith.constant 96 : index
    %96 = vector.load %arg25[%c0_94, %c96] : memref<256x320xf32, #tpu.memory_space<vmem>>, vector<127x32xf32>
    tpu.vector_store %arg25[%c0_94, %c96], %95 {strides = array<i32>} : memref<256x320xf32, #tpu.memory_space<vmem>>, vector<127x32xf32>,
    %c20_95 = arith.constant 20 : index
    %c0_96 = arith.constant 0 : index
    %97 = vector.load %arg23[%c20_95, %c0_96] : memref<532x64xf32, #tpu.memory_space<vmem>>, vector<127x32xf32>
    %c0_97 = arith.constant 0 : index
    %c128 = arith.constant 128 : index
    %98 = vector.load %arg25[%c0_97, %c128] : memref<256x320xf32, #tpu.memory_space<vmem>>, vector<127x32xf32>
    tpu.vector_store %arg25[%c0_97, %c128], %97 {strides = array<i32>} : memref<256x320xf32, #tpu.memory_space<vmem>>, vector<127x32xf32>,
    %c0_98 = arith.constant 0 : index
    %c0_99 = arith.constant 0 : index
    %99 = vector.load %arg25[%c0_98, %c0_99] : memref<256x320xf32, #tpu.memory_space<vmem>>, vector<127x160xf32>
    %c0_100 = arith.constant 0 : index
    %c0_101 = arith.constant 0 : index
    %100 = vector.load %arg6[%c0_100, %c0_101] : memref<160x64xf32, #tpu.memory_space<vmem>>, vector<160x64xf32>
    %cst_102 = arith.constant dense<0.000000e+00> : vector<127x64xf32>
    %101 = tpu.matmul %99, %100, %cst_102 {dimension_numbers = #tpu.dot_dimension_numbers<[1], [0], [0], [1], [0, 0, 1, 1], [], []>} : vector<127x160xf32>, vector<160x64xf32>, vector<127x64xf32> -> vector<127x64xf32>
    %c0_103 = arith.constant 0 : index
    %c0_104 = arith.constant 0 : index
    %102 = vector.load %arg7[%c0_103, %c0_104] : memref<1x64xf32, #tpu.memory_space<vmem>>, vector<1x64xf32>
    %103 = vector.broadcast %102 : vector<1x64xf32> to vector<127x64xf32>
    %104 = arith.addf %101, %103 : vector<127x64xf32>
    %cst_105 = arith.constant 0.000000e+00 : f32
    %105 = vector.broadcast %cst_105 : f32 to vector<127x64xf32>
    %106 = arith.cmpf ogt, %104, %105 : vector<127x64xf32>
    %cst_106 = arith.constant 0.00999999977 : f32
    %107 = vector.broadcast %cst_106 : f32 to vector<127x64xf32>
    %108 = arith.mulf %107, %104 : vector<127x64xf32>
    %109 = arith.select %106, %104, %108 : vector<127x64xi1>, vector<127x64xf32>
    %c0_107 = arith.constant 0 : index
    %c0_108 = arith.constant 0 : index
    %110 = vector.load %arg24[%c0_107, %c0_108] : memref<512x64xf32, #tpu.memory_space<vmem>>, vector<127x64xf32>
    tpu.vector_store %arg24[%c0_107, %c0_108], %109 {strides = array<i32>} : memref<512x64xf32, #tpu.memory_space<vmem>>, vector<127x64xf32>,
    %c0_109 = arith.constant 0 : index
    %c0_110 = arith.constant 0 : index
    %111 = tpu.strided_load %arg24[%c0_109, %c0_110] {strides = array<i32: 2, 1>} : memref<512x64xf32, #tpu.memory_space<vmem>>, vector<63x64xf32>
    %c1_111 = arith.constant 1 : index
    %c0_112 = arith.constant 0 : index
    %112 = tpu.strided_load %arg24[%c1_111, %c0_112] {strides = array<i32: 2, 1>} : memref<512x64xf32, #tpu.memory_space<vmem>>, vector<63x64xf32>
    %c2_113 = arith.constant 2 : index
    %c0_114 = arith.constant 0 : index
    %113 = tpu.strided_load %arg24[%c2_113, %c0_114] {strides = array<i32: 2, 1>} : memref<512x64xf32, #tpu.memory_space<vmem>>, vector<63x64xf32>
    %114 = arith.maximumf %111, %112 : vector<63x64xf32>
    %115 = arith.maximumf %114, %113 : vector<63x64xf32>
    %cst_115 = arith.constant 0.000000e+00 : f32
    %116 = vector.broadcast %cst_115 : f32 to vector<10x64xf32>
    %c0_116 = arith.constant 0 : index
    %c0_117 = arith.constant 0 : index
    %117 = vector.load %arg23[%c0_116, %c0_117] : memref<532x64xf32, #tpu.memory_space<vmem>>, vector<10x64xf32>
    tpu.vector_store %arg23[%c0_116, %c0_117], %116 {strides = array<i32>} : memref<532x64xf32, #tpu.memory_space<vmem>>, vector<10x64xf32>,
    %c10_118 = arith.constant 10 : index
    %c0_119 = arith.constant 0 : index
    %118 = vector.load %arg23[%c10_118, %c0_119] : memref<532x64xf32, #tpu.memory_space<vmem>>, vector<63x64xf32>
    tpu.vector_store %arg23[%c10_118, %c0_119], %115 {strides = array<i32>} : memref<532x64xf32, #tpu.memory_space<vmem>>, vector<63x64xf32>,
    %cst_120 = arith.constant 0.000000e+00 : f32
    %119 = vector.broadcast %cst_120 : f32 to vector<10x64xf32>
    %c73 = arith.constant 73 : index
    %c0_121 = arith.constant 0 : index
    %120 = vector.load %arg23[%c73, %c0_121] : memref<532x64xf32, #tpu.memory_space<vmem>>, vector<10x64xf32>
    tpu.vector_store %arg23[%c73, %c0_121], %119 {strides = array<i32>} : memref<532x64xf32, #tpu.memory_space<vmem>>, vector<10x64xf32>,
    %c0_122 = arith.constant 0 : index
    %c0_123 = arith.constant 0 : index
    %121 = vector.load %arg23[%c0_122, %c0_123] : memref<532x64xf32, #tpu.memory_space<vmem>>, vector<63x64xf32>
    %c0_124 = arith.constant 0 : index
    %c0_125 = arith.constant 0 : index
    %122 = vector.load %arg25[%c0_124, %c0_125] : memref<256x320xf32, #tpu.memory_space<vmem>>, vector<63x64xf32>
    tpu.vector_store %arg25[%c0_124, %c0_125], %121 {strides = array<i32>} : memref<256x320xf32, #tpu.memory_space<vmem>>, vector<63x64xf32>,
    %c5_126 = arith.constant 5 : index
    %c0_127 = arith.constant 0 : index
    %123 = vector.load %arg23[%c5_126, %c0_127] : memref<532x64xf32, #tpu.memory_space<vmem>>, vector<63x64xf32>
    %c0_128 = arith.constant 0 : index
    %c64_129 = arith.constant 64 : index
    %124 = vector.load %arg25[%c0_128, %c64_129] : memref<256x320xf32, #tpu.memory_space<vmem>>, vector<63x64xf32>
    tpu.vector_store %arg25[%c0_128, %c64_129], %123 {strides = array<i32>} : memref<256x320xf32, #tpu.memory_space<vmem>>, vector<63x64xf32>,
    %c10_130 = arith.constant 10 : index
    %c0_131 = arith.constant 0 : index
    %125 = vector.load %arg23[%c10_130, %c0_131] : memref<532x64xf32, #tpu.memory_space<vmem>>, vector<63x64xf32>
    %c0_132 = arith.constant 0 : index
    %c128_133 = arith.constant 128 : index
    %126 = vector.load %arg25[%c0_132, %c128_133] : memref<256x320xf32, #tpu.memory_space<vmem>>, vector<63x64xf32>
    tpu.vector_store %arg25[%c0_132, %c128_133], %125 {strides = array<i32>} : memref<256x320xf32, #tpu.memory_space<vmem>>, vector<63x64xf32>,
    %c15_134 = arith.constant 15 : index
    %c0_135 = arith.constant 0 : index
    %127 = vector.load %arg23[%c15_134, %c0_135] : memref<532x64xf32, #tpu.memory_space<vmem>>, vector<63x64xf32>
    %c0_136 = arith.constant 0 : index
    %c192 = arith.constant 192 : index
    %128 = vector.load %arg25[%c0_136, %c192] : memref<256x320xf32, #tpu.memory_space<vmem>>, vector<63x64xf32>
    tpu.vector_store %arg25[%c0_136, %c192], %127 {strides = array<i32>} : memref<256x320xf32, #tpu.memory_space<vmem>>, vector<63x64xf32>,
    %c20_137 = arith.constant 20 : index
    %c0_138 = arith.constant 0 : index
    %129 = vector.load %arg23[%c20_137, %c0_138] : memref<532x64xf32, #tpu.memory_space<vmem>>, vector<63x64xf32>
    %c0_139 = arith.constant 0 : index
    %c256 = arith.constant 256 : index
    %130 = vector.load %arg25[%c0_139, %c256] : memref<256x320xf32, #tpu.memory_space<vmem>>, vector<63x64xf32>
    tpu.vector_store %arg25[%c0_139, %c256], %129 {strides = array<i32>} : memref<256x320xf32, #tpu.memory_space<vmem>>, vector<63x64xf32>,
    %c0_140 = arith.constant 0 : index
    %c0_141 = arith.constant 0 : index
    %131 = vector.load %arg25[%c0_140, %c0_141] : memref<256x320xf32, #tpu.memory_space<vmem>>, vector<63x320xf32>
    %c0_142 = arith.constant 0 : index
    %c0_143 = arith.constant 0 : index
    %132 = vector.load %arg8[%c0_142, %c0_143] : memref<320x64xf32, #tpu.memory_space<vmem>>, vector<320x64xf32>
    %cst_144 = arith.constant dense<0.000000e+00> : vector<63x64xf32>
    %133 = tpu.matmul %131, %132, %cst_144 {dimension_numbers = #tpu.dot_dimension_numbers<[1], [0], [0], [1], [0, 0, 1, 1], [], []>} : vector<63x320xf32>, vector<320x64xf32>, vector<63x64xf32> -> vector<63x64xf32>
    %c0_145 = arith.constant 0 : index
    %c0_146 = arith.constant 0 : index
    %134 = vector.load %arg9[%c0_145, %c0_146] : memref<1x64xf32, #tpu.memory_space<vmem>>, vector<1x64xf32>
    %135 = vector.broadcast %134 : vector<1x64xf32> to vector<63x64xf32>
    %136 = arith.addf %133, %135 : vector<63x64xf32>
    %cst_147 = arith.constant 0.000000e+00 : f32
    %137 = vector.broadcast %cst_147 : f32 to vector<63x64xf32>
    %138 = arith.cmpf ogt, %136, %137 : vector<63x64xf32>
    %cst_148 = arith.constant 0.00999999977 : f32
    %139 = vector.broadcast %cst_148 : f32 to vector<63x64xf32>
    %140 = arith.mulf %139, %136 : vector<63x64xf32>
    %141 = arith.select %138, %136, %140 : vector<63x64xi1>, vector<63x64xf32>
    %c0_149 = arith.constant 0 : index
    %c0_150 = arith.constant 0 : index
    %142 = vector.load %arg24[%c0_149, %c0_150] : memref<512x64xf32, #tpu.memory_space<vmem>>, vector<63x64xf32>
    tpu.vector_store %arg24[%c0_149, %c0_150], %141 {strides = array<i32>} : memref<512x64xf32, #tpu.memory_space<vmem>>, vector<63x64xf32>,
    %c0_151 = arith.constant 0 : index
    %c0_152 = arith.constant 0 : index
    %143 = tpu.strided_load %arg24[%c0_151, %c0_152] {strides = array<i32: 2, 1>} : memref<512x64xf32, #tpu.memory_space<vmem>>, vector<31x64xf32>
    %c1_153 = arith.constant 1 : index
    %c0_154 = arith.constant 0 : index
    %144 = tpu.strided_load %arg24[%c1_153, %c0_154] {strides = array<i32: 2, 1>} : memref<512x64xf32, #tpu.memory_space<vmem>>, vector<31x64xf32>
    %c2_155 = arith.constant 2 : index
    %c0_156 = arith.constant 0 : index
    %145 = tpu.strided_load %arg24[%c2_155, %c0_156] {strides = array<i32: 2, 1>} : memref<512x64xf32, #tpu.memory_space<vmem>>, vector<31x64xf32>
    %146 = arith.maximumf %143, %144 : vector<31x64xf32>
    %147 = arith.maximumf %146, %145 : vector<31x64xf32>
    %cst_157 = arith.constant 0.000000e+00 : f32
    %148 = vector.broadcast %cst_157 : f32 to vector<10x64xf32>
    %c0_158 = arith.constant 0 : index
    %c0_159 = arith.constant 0 : index
    %149 = vector.load %arg23[%c0_158, %c0_159] : memref<532x64xf32, #tpu.memory_space<vmem>>, vector<10x64xf32>
    tpu.vector_store %arg23[%c0_158, %c0_159], %148 {strides = array<i32>} : memref<532x64xf32, #tpu.memory_space<vmem>>, vector<10x64xf32>,
    %c10_160 = arith.constant 10 : index
    %c0_161 = arith.constant 0 : index
    %150 = vector.load %arg23[%c10_160, %c0_161] : memref<532x64xf32, #tpu.memory_space<vmem>>, vector<31x64xf32>
    tpu.vector_store %arg23[%c10_160, %c0_161], %147 {strides = array<i32>} : memref<532x64xf32, #tpu.memory_space<vmem>>, vector<31x64xf32>,
    %cst_162 = arith.constant 0.000000e+00 : f32
    %151 = vector.broadcast %cst_162 : f32 to vector<10x64xf32>
    %c41 = arith.constant 41 : index
    %c0_163 = arith.constant 0 : index
    %152 = vector.load %arg23[%c41, %c0_163] : memref<532x64xf32, #tpu.memory_space<vmem>>, vector<10x64xf32>
    tpu.vector_store %arg23[%c41, %c0_163], %151 {strides = array<i32>} : memref<532x64xf32, #tpu.memory_space<vmem>>, vector<10x64xf32>,
    %c0_164 = arith.constant 0 : index
    %c0_165 = arith.constant 0 : index
    %153 = vector.load %arg23[%c0_164, %c0_165] : memref<532x64xf32, #tpu.memory_space<vmem>>, vector<31x64xf32>
    %c0_166 = arith.constant 0 : index
    %c0_167 = arith.constant 0 : index
    %154 = vector.load %arg25[%c0_166, %c0_167] : memref<256x320xf32, #tpu.memory_space<vmem>>, vector<31x64xf32>
    tpu.vector_store %arg25[%c0_166, %c0_167], %153 {strides = array<i32>} : memref<256x320xf32, #tpu.memory_space<vmem>>, vector<31x64xf32>,
    %c5_168 = arith.constant 5 : index
    %c0_169 = arith.constant 0 : index
    %155 = vector.load %arg23[%c5_168, %c0_169] : memref<532x64xf32, #tpu.memory_space<vmem>>, vector<31x64xf32>
    %c0_170 = arith.constant 0 : index
    %c64_171 = arith.constant 64 : index
    %156 = vector.load %arg25[%c0_170, %c64_171] : memref<256x320xf32, #tpu.memory_space<vmem>>, vector<31x64xf32>
    tpu.vector_store %arg25[%c0_170, %c64_171], %155 {strides = array<i32>} : memref<256x320xf32, #tpu.memory_space<vmem>>, vector<31x64xf32>,
    %c10_172 = arith.constant 10 : index
    %c0_173 = arith.constant 0 : index
    %157 = vector.load %arg23[%c10_172, %c0_173] : memref<532x64xf32, #tpu.memory_space<vmem>>, vector<31x64xf32>
    %c0_174 = arith.constant 0 : index
    %c128_175 = arith.constant 128 : index
    %158 = vector.load %arg25[%c0_174, %c128_175] : memref<256x320xf32, #tpu.memory_space<vmem>>, vector<31x64xf32>
    tpu.vector_store %arg25[%c0_174, %c128_175], %157 {strides = array<i32>} : memref<256x320xf32, #tpu.memory_space<vmem>>, vector<31x64xf32>,
    %c15_176 = arith.constant 15 : index
    %c0_177 = arith.constant 0 : index
    %159 = vector.load %arg23[%c15_176, %c0_177] : memref<532x64xf32, #tpu.memory_space<vmem>>, vector<31x64xf32>
    %c0_178 = arith.constant 0 : index
    %c192_179 = arith.constant 192 : index
    %160 = vector.load %arg25[%c0_178, %c192_179] : memref<256x320xf32, #tpu.memory_space<vmem>>, vector<31x64xf32>
    tpu.vector_store %arg25[%c0_178, %c192_179], %159 {strides = array<i32>} : memref<256x320xf32, #tpu.memory_space<vmem>>, vector<31x64xf32>,
    %c20_180 = arith.constant 20 : index
    %c0_181 = arith.constant 0 : index
    %161 = vector.load %arg23[%c20_180, %c0_181] : memref<532x64xf32, #tpu.memory_space<vmem>>, vector<31x64xf32>
    %c0_182 = arith.constant 0 : index
    %c256_183 = arith.constant 256 : index
    %162 = vector.load %arg25[%c0_182, %c256_183] : memref<256x320xf32, #tpu.memory_space<vmem>>, vector<31x64xf32>
    tpu.vector_store %arg25[%c0_182, %c256_183], %161 {strides = array<i32>} : memref<256x320xf32, #tpu.memory_space<vmem>>, vector<31x64xf32>,
    %c0_184 = arith.constant 0 : index
    %c0_185 = arith.constant 0 : index
    %163 = vector.load %arg25[%c0_184, %c0_185] : memref<256x320xf32, #tpu.memory_space<vmem>>, vector<31x320xf32>
    %c0_186 = arith.constant 0 : index
    %c0_187 = arith.constant 0 : index
    %164 = vector.load %arg10[%c0_186, %c0_187] : memref<320x64xf32, #tpu.memory_space<vmem>>, vector<320x64xf32>
    %cst_188 = arith.constant dense<0.000000e+00> : vector<31x64xf32>
    %165 = tpu.matmul %163, %164, %cst_188 {dimension_numbers = #tpu.dot_dimension_numbers<[1], [0], [0], [1], [0, 0, 1, 1], [], []>} : vector<31x320xf32>, vector<320x64xf32>, vector<31x64xf32> -> vector<31x64xf32>
    %c0_189 = arith.constant 0 : index
    %c0_190 = arith.constant 0 : index
    %166 = vector.load %arg11[%c0_189, %c0_190] : memref<1x64xf32, #tpu.memory_space<vmem>>, vector<1x64xf32>
    %167 = vector.broadcast %166 : vector<1x64xf32> to vector<31x64xf32>
    %168 = arith.addf %165, %167 : vector<31x64xf32>
    %cst_191 = arith.constant 0.000000e+00 : f32
    %169 = vector.broadcast %cst_191 : f32 to vector<31x64xf32>
    %170 = arith.maximumf %168, %169 : vector<31x64xf32>
    %c0_192 = arith.constant 0 : index
    %c0_193 = arith.constant 0 : index
    %171 = vector.load %arg24[%c0_192, %c0_193] : memref<512x64xf32, #tpu.memory_space<vmem>>, vector<31x64xf32>
    tpu.vector_store %arg24[%c0_192, %c0_193], %170 {strides = array<i32>} : memref<512x64xf32, #tpu.memory_space<vmem>>, vector<31x64xf32>,
    %c0_194 = arith.constant 0 : index
    %c0_195 = arith.constant 0 : index
    %172 = tpu.strided_load %arg24[%c0_194, %c0_195] {strides = array<i32: 2, 1>} : memref<512x64xf32, #tpu.memory_space<vmem>>, vector<15x64xf32>
    %c1_196 = arith.constant 1 : index
    %c0_197 = arith.constant 0 : index
    %173 = tpu.strided_load %arg24[%c1_196, %c0_197] {strides = array<i32: 2, 1>} : memref<512x64xf32, #tpu.memory_space<vmem>>, vector<15x64xf32>
    %c2_198 = arith.constant 2 : index
    %c0_199 = arith.constant 0 : index
    %174 = tpu.strided_load %arg24[%c2_198, %c0_199] {strides = array<i32: 2, 1>} : memref<512x64xf32, #tpu.memory_space<vmem>>, vector<15x64xf32>
    %175 = arith.maximumf %172, %173 : vector<15x64xf32>
    %176 = arith.maximumf %175, %174 : vector<15x64xf32>
    %c0_200 = arith.constant 0 : index
    %c0_201 = arith.constant 0 : index
    %177 = vector.load %arg13[%c0_200, %c0_201] : memref<1x480xf32, #tpu.memory_space<vmem>>, vector<1x480xf32>
    %178 = vector.extract_strided_slice %176 {offsets = [0, 0], sizes = [1, 64], strides = [1, 1]} : vector<15x64xf32> to vector<1x64xf32>
    %c0_202 = arith.constant 0 : index
    %c0_203 = arith.constant 0 : index
    %c0_204 = arith.constant 0 : index
    %179 = vector.load %arg12[%c0_202, %c0_203, %c0_204] : memref<15x64x480xf32, #tpu.memory_space<vmem>>, vector<1x64x480xf32>
    %180 = vector.shape_cast %179 : vector<1x64x480xf32> to vector<64x480xf32>
    %cst_205 = arith.constant dense<0.000000e+00> : vector<1x480xf32>
    %181 = tpu.matmul %178, %180, %cst_205 {dimension_numbers = #tpu.dot_dimension_numbers<[1], [0], [0], [1], [0, 0, 1, 1], [], []>} : vector<1x64xf32>, vector<64x480xf32>, vector<1x480xf32> -> vector<1x480xf32>
    %182 = arith.addf %177, %181 : vector<1x480xf32>
    %183 = vector.extract_strided_slice %176 {offsets = [1, 0], sizes = [1, 64], strides = [1, 1]} : vector<15x64xf32> to vector<1x64xf32>
    %c1_206 = arith.constant 1 : index
    %c0_207 = arith.constant 0 : index
    %c0_208 = arith.constant 0 : index
    %184 = vector.load %arg12[%c1_206, %c0_207, %c0_208] : memref<15x64x480xf32, #tpu.memory_space<vmem>>, vector<1x64x480xf32>
    %185 = vector.shape_cast %184 : vector<1x64x480xf32> to vector<64x480xf32>
    %cst_209 = arith.constant dense<0.000000e+00> : vector<1x480xf32>
    %186 = tpu.matmul %183, %185, %cst_209 {dimension_numbers = #tpu.dot_dimension_numbers<[1], [0], [0], [1], [0, 0, 1, 1], [], []>} : vector<1x64xf32>, vector<64x480xf32>, vector<1x480xf32> -> vector<1x480xf32>
    %187 = arith.addf %182, %186 : vector<1x480xf32>
    %188 = vector.extract_strided_slice %176 {offsets = [2, 0], sizes = [1, 64], strides = [1, 1]} : vector<15x64xf32> to vector<1x64xf32>
    %c2_210 = arith.constant 2 : index
    %c0_211 = arith.constant 0 : index
    %c0_212 = arith.constant 0 : index
    %189 = vector.load %arg12[%c2_210, %c0_211, %c0_212] : memref<15x64x480xf32, #tpu.memory_space<vmem>>, vector<1x64x480xf32>
    %190 = vector.shape_cast %189 : vector<1x64x480xf32> to vector<64x480xf32>
    %cst_213 = arith.constant dense<0.000000e+00> : vector<1x480xf32>
    %191 = tpu.matmul %188, %190, %cst_213 {dimension_numbers = #tpu.dot_dimension_numbers<[1], [0], [0], [1], [0, 0, 1, 1], [], []>} : vector<1x64xf32>, vector<64x480xf32>, vector<1x480xf32> -> vector<1x480xf32>
    %192 = arith.addf %187, %191 : vector<1x480xf32>
    %193 = vector.extract_strided_slice %176 {offsets = [3, 0], sizes = [1, 64], strides = [1, 1]} : vector<15x64xf32> to vector<1x64xf32>
    %c3_214 = arith.constant 3 : index
    %c0_215 = arith.constant 0 : index
    %c0_216 = arith.constant 0 : index
    %194 = vector.load %arg12[%c3_214, %c0_215, %c0_216] : memref<15x64x480xf32, #tpu.memory_space<vmem>>, vector<1x64x480xf32>
    %195 = vector.shape_cast %194 : vector<1x64x480xf32> to vector<64x480xf32>
    %cst_217 = arith.constant dense<0.000000e+00> : vector<1x480xf32>
    %196 = tpu.matmul %193, %195, %cst_217 {dimension_numbers = #tpu.dot_dimension_numbers<[1], [0], [0], [1], [0, 0, 1, 1], [], []>} : vector<1x64xf32>, vector<64x480xf32>, vector<1x480xf32> -> vector<1x480xf32>
    %197 = arith.addf %192, %196 : vector<1x480xf32>
    %198 = vector.extract_strided_slice %176 {offsets = [4, 0], sizes = [1, 64], strides = [1, 1]} : vector<15x64xf32> to vector<1x64xf32>
    %c4_218 = arith.constant 4 : index
    %c0_219 = arith.constant 0 : index
    %c0_220 = arith.constant 0 : index
    %199 = vector.load %arg12[%c4_218, %c0_219, %c0_220] : memref<15x64x480xf32, #tpu.memory_space<vmem>>, vector<1x64x480xf32>
    %200 = vector.shape_cast %199 : vector<1x64x480xf32> to vector<64x480xf32>
    %cst_221 = arith.constant dense<0.000000e+00> : vector<1x480xf32>
    %201 = tpu.matmul %198, %200, %cst_221 {dimension_numbers = #tpu.dot_dimension_numbers<[1], [0], [0], [1], [0, 0, 1, 1], [], []>} : vector<1x64xf32>, vector<64x480xf32>, vector<1x480xf32> -> vector<1x480xf32>
    %202 = arith.addf %197, %201 : vector<1x480xf32>
    %203 = vector.extract_strided_slice %176 {offsets = [5, 0], sizes = [1, 64], strides = [1, 1]} : vector<15x64xf32> to vector<1x64xf32>
    %c5_222 = arith.constant 5 : index
    %c0_223 = arith.constant 0 : index
    %c0_224 = arith.constant 0 : index
    %204 = vector.load %arg12[%c5_222, %c0_223, %c0_224] : memref<15x64x480xf32, #tpu.memory_space<vmem>>, vector<1x64x480xf32>
    %205 = vector.shape_cast %204 : vector<1x64x480xf32> to vector<64x480xf32>
    %cst_225 = arith.constant dense<0.000000e+00> : vector<1x480xf32>
    %206 = tpu.matmul %203, %205, %cst_225 {dimension_numbers = #tpu.dot_dimension_numbers<[1], [0], [0], [1], [0, 0, 1, 1], [], []>} : vector<1x64xf32>, vector<64x480xf32>, vector<1x480xf32> -> vector<1x480xf32>
    %207 = arith.addf %202, %206 : vector<1x480xf32>
    %208 = vector.extract_strided_slice %176 {offsets = [6, 0], sizes = [1, 64], strides = [1, 1]} : vector<15x64xf32> to vector<1x64xf32>
    %c6 = arith.constant 6 : index
    %c0_226 = arith.constant 0 : index
    %c0_227 = arith.constant 0 : index
    %209 = vector.load %arg12[%c6, %c0_226, %c0_227] : memref<15x64x480xf32, #tpu.memory_space<vmem>>, vector<1x64x480xf32>
    %210 = vector.shape_cast %209 : vector<1x64x480xf32> to vector<64x480xf32>
    %cst_228 = arith.constant dense<0.000000e+00> : vector<1x480xf32>
    %211 = tpu.matmul %208, %210, %cst_228 {dimension_numbers = #tpu.dot_dimension_numbers<[1], [0], [0], [1], [0, 0, 1, 1], [], []>} : vector<1x64xf32>, vector<64x480xf32>, vector<1x480xf32> -> vector<1x480xf32>
    %212 = arith.addf %207, %211 : vector<1x480xf32>
    %213 = vector.extract_strided_slice %176 {offsets = [7, 0], sizes = [1, 64], strides = [1, 1]} : vector<15x64xf32> to vector<1x64xf32>
    %c7 = arith.constant 7 : index
    %c0_229 = arith.constant 0 : index
    %c0_230 = arith.constant 0 : index
    %214 = vector.load %arg12[%c7, %c0_229, %c0_230] : memref<15x64x480xf32, #tpu.memory_space<vmem>>, vector<1x64x480xf32>
    %215 = vector.shape_cast %214 : vector<1x64x480xf32> to vector<64x480xf32>
    %cst_231 = arith.constant dense<0.000000e+00> : vector<1x480xf32>
    %216 = tpu.matmul %213, %215, %cst_231 {dimension_numbers = #tpu.dot_dimension_numbers<[1], [0], [0], [1], [0, 0, 1, 1], [], []>} : vector<1x64xf32>, vector<64x480xf32>, vector<1x480xf32> -> vector<1x480xf32>
    %217 = arith.addf %212, %216 : vector<1x480xf32>
    %218 = vector.extract_strided_slice %176 {offsets = [8, 0], sizes = [1, 64], strides = [1, 1]} : vector<15x64xf32> to vector<1x64xf32>
    %c8 = arith.constant 8 : index
    %c0_232 = arith.constant 0 : index
    %c0_233 = arith.constant 0 : index
    %219 = vector.load %arg12[%c8, %c0_232, %c0_233] : memref<15x64x480xf32, #tpu.memory_space<vmem>>, vector<1x64x480xf32>
    %220 = vector.shape_cast %219 : vector<1x64x480xf32> to vector<64x480xf32>
    %cst_234 = arith.constant dense<0.000000e+00> : vector<1x480xf32>
    %221 = tpu.matmul %218, %220, %cst_234 {dimension_numbers = #tpu.dot_dimension_numbers<[1], [0], [0], [1], [0, 0, 1, 1], [], []>} : vector<1x64xf32>, vector<64x480xf32>, vector<1x480xf32> -> vector<1x480xf32>
    %222 = arith.addf %217, %221 : vector<1x480xf32>
    %223 = vector.extract_strided_slice %176 {offsets = [9, 0], sizes = [1, 64], strides = [1, 1]} : vector<15x64xf32> to vector<1x64xf32>
    %c9 = arith.constant 9 : index
    %c0_235 = arith.constant 0 : index
    %c0_236 = arith.constant 0 : index
    %224 = vector.load %arg12[%c9, %c0_235, %c0_236] : memref<15x64x480xf32, #tpu.memory_space<vmem>>, vector<1x64x480xf32>
    %225 = vector.shape_cast %224 : vector<1x64x480xf32> to vector<64x480xf32>
    %cst_237 = arith.constant dense<0.000000e+00> : vector<1x480xf32>
    %226 = tpu.matmul %223, %225, %cst_237 {dimension_numbers = #tpu.dot_dimension_numbers<[1], [0], [0], [1], [0, 0, 1, 1], [], []>} : vector<1x64xf32>, vector<64x480xf32>, vector<1x480xf32> -> vector<1x480xf32>
    %227 = arith.addf %222, %226 : vector<1x480xf32>
    %228 = vector.extract_strided_slice %176 {offsets = [10, 0], sizes = [1, 64], strides = [1, 1]} : vector<15x64xf32> to vector<1x64xf32>
    %c10_238 = arith.constant 10 : index
    %c0_239 = arith.constant 0 : index
    %c0_240 = arith.constant 0 : index
    %229 = vector.load %arg12[%c10_238, %c0_239, %c0_240] : memref<15x64x480xf32, #tpu.memory_space<vmem>>, vector<1x64x480xf32>
    %230 = vector.shape_cast %229 : vector<1x64x480xf32> to vector<64x480xf32>
    %cst_241 = arith.constant dense<0.000000e+00> : vector<1x480xf32>
    %231 = tpu.matmul %228, %230, %cst_241 {dimension_numbers = #tpu.dot_dimension_numbers<[1], [0], [0], [1], [0, 0, 1, 1], [], []>} : vector<1x64xf32>, vector<64x480xf32>, vector<1x480xf32> -> vector<1x480xf32>
    %232 = arith.addf %227, %231 : vector<1x480xf32>
    %233 = vector.extract_strided_slice %176 {offsets = [11, 0], sizes = [1, 64], strides = [1, 1]} : vector<15x64xf32> to vector<1x64xf32>
    %c11 = arith.constant 11 : index
    %c0_242 = arith.constant 0 : index
    %c0_243 = arith.constant 0 : index
    %234 = vector.load %arg12[%c11, %c0_242, %c0_243] : memref<15x64x480xf32, #tpu.memory_space<vmem>>, vector<1x64x480xf32>
    %235 = vector.shape_cast %234 : vector<1x64x480xf32> to vector<64x480xf32>
    %cst_244 = arith.constant dense<0.000000e+00> : vector<1x480xf32>
    %236 = tpu.matmul %233, %235, %cst_244 {dimension_numbers = #tpu.dot_dimension_numbers<[1], [0], [0], [1], [0, 0, 1, 1], [], []>} : vector<1x64xf32>, vector<64x480xf32>, vector<1x480xf32> -> vector<1x480xf32>
    %237 = arith.addf %232, %236 : vector<1x480xf32>
    %238 = vector.extract_strided_slice %176 {offsets = [12, 0], sizes = [1, 64], strides = [1, 1]} : vector<15x64xf32> to vector<1x64xf32>
    %c12 = arith.constant 12 : index
    %c0_245 = arith.constant 0 : index
    %c0_246 = arith.constant 0 : index
    %239 = vector.load %arg12[%c12, %c0_245, %c0_246] : memref<15x64x480xf32, #tpu.memory_space<vmem>>, vector<1x64x480xf32>
    %240 = vector.shape_cast %239 : vector<1x64x480xf32> to vector<64x480xf32>
    %cst_247 = arith.constant dense<0.000000e+00> : vector<1x480xf32>
    %241 = tpu.matmul %238, %240, %cst_247 {dimension_numbers = #tpu.dot_dimension_numbers<[1], [0], [0], [1], [0, 0, 1, 1], [], []>} : vector<1x64xf32>, vector<64x480xf32>, vector<1x480xf32> -> vector<1x480xf32>
    %242 = arith.addf %237, %241 : vector<1x480xf32>
    %243 = vector.extract_strided_slice %176 {offsets = [13, 0], sizes = [1, 64], strides = [1, 1]} : vector<15x64xf32> to vector<1x64xf32>
    %c13 = arith.constant 13 : index
    %c0_248 = arith.constant 0 : index
    %c0_249 = arith.constant 0 : index
    %244 = vector.load %arg12[%c13, %c0_248, %c0_249] : memref<15x64x480xf32, #tpu.memory_space<vmem>>, vector<1x64x480xf32>
    %245 = vector.shape_cast %244 : vector<1x64x480xf32> to vector<64x480xf32>
    %cst_250 = arith.constant dense<0.000000e+00> : vector<1x480xf32>
    %246 = tpu.matmul %243, %245, %cst_250 {dimension_numbers = #tpu.dot_dimension_numbers<[1], [0], [0], [1], [0, 0, 1, 1], [], []>} : vector<1x64xf32>, vector<64x480xf32>, vector<1x480xf32> -> vector<1x480xf32>
    %247 = arith.addf %242, %246 : vector<1x480xf32>
    %248 = vector.extract_strided_slice %176 {offsets = [14, 0], sizes = [1, 64], strides = [1, 1]} : vector<15x64xf32> to vector<1x64xf32>
    %c14 = arith.constant 14 : index
    %c0_251 = arith.constant 0 : index
    %c0_252 = arith.constant 0 : index
    %249 = vector.load %arg12[%c14, %c0_251, %c0_252] : memref<15x64x480xf32, #tpu.memory_space<vmem>>, vector<1x64x480xf32>
    %250 = vector.shape_cast %249 : vector<1x64x480xf32> to vector<64x480xf32>
    %cst_253 = arith.constant dense<0.000000e+00> : vector<1x480xf32>
    %251 = tpu.matmul %248, %250, %cst_253 {dimension_numbers = #tpu.dot_dimension_numbers<[1], [0], [0], [1], [0, 0, 1, 1], [], []>} : vector<1x64xf32>, vector<64x480xf32>, vector<1x480xf32> -> vector<1x480xf32>
    %252 = arith.addf %247, %251 : vector<1x480xf32>
    %cst_254 = arith.constant 0.000000e+00 : f32
    %253 = vector.broadcast %cst_254 : f32 to vector<1x480xf32>
    %254 = arith.maximumf %252, %253 : vector<1x480xf32>
    %c0_255 = arith.constant 0 : index
    %c0_256 = arith.constant 0 : index
    %255 = vector.load %arg14[%c0_255, %c0_256] : memref<480x240xf32, #tpu.memory_space<vmem>>, vector<480x240xf32>
    %cst_257 = arith.constant dense<0.000000e+00> : vector<1x240xf32>
    %256 = tpu.matmul %254, %255, %cst_257 {dimension_numbers = #tpu.dot_dimension_numbers<[1], [0], [0], [1], [0, 0, 1, 1], [], []>} : vector<1x480xf32>, vector<480x240xf32>, vector<1x240xf32> -> vector<1x240xf32>
    %c0_258 = arith.constant 0 : index
    %c0_259 = arith.constant 0 : index
    %257 = vector.load %arg15[%c0_258, %c0_259] : memref<1x240xf32, #tpu.memory_space<vmem>>, vector<1x240xf32>
    %258 = arith.addf %256, %257 : vector<1x240xf32>
    %cst_260 = arith.constant 0.000000e+00 : f32
    %259 = vector.broadcast %cst_260 : f32 to vector<1x240xf32>
    %260 = arith.maximumf %258, %259 : vector<1x240xf32>
    %c0_261 = arith.constant 0 : index
    %c0_262 = arith.constant 0 : index
    %261 = vector.load %arg16[%c0_261, %c0_262] : memref<240x120xf32, #tpu.memory_space<vmem>>, vector<240x120xf32>
    %cst_263 = arith.constant dense<0.000000e+00> : vector<1x120xf32>
    %262 = tpu.matmul %260, %261, %cst_263 {dimension_numbers = #tpu.dot_dimension_numbers<[1], [0], [0], [1], [0, 0, 1, 1], [], []>} : vector<1x240xf32>, vector<240x120xf32>, vector<1x120xf32> -> vector<1x120xf32>
    %c0_264 = arith.constant 0 : index
    %c0_265 = arith.constant 0 : index
    %263 = vector.load %arg17[%c0_264, %c0_265] : memref<1x120xf32, #tpu.memory_space<vmem>>, vector<1x120xf32>
    %264 = arith.addf %262, %263 : vector<1x120xf32>
    %cst_266 = arith.constant 0.000000e+00 : f32
    %265 = vector.broadcast %cst_266 : f32 to vector<1x120xf32>
    %266 = arith.maximumf %264, %265 : vector<1x120xf32>
    %c0_267 = arith.constant 0 : index
    %c0_268 = arith.constant 0 : index
    %267 = vector.load %arg18[%c0_267, %c0_268] : memref<120x60xf32, #tpu.memory_space<vmem>>, vector<120x60xf32>
    %cst_269 = arith.constant dense<0.000000e+00> : vector<1x60xf32>
    %268 = tpu.matmul %266, %267, %cst_269 {dimension_numbers = #tpu.dot_dimension_numbers<[1], [0], [0], [1], [0, 0, 1, 1], [], []>} : vector<1x120xf32>, vector<120x60xf32>, vector<1x60xf32> -> vector<1x60xf32>
    %c0_270 = arith.constant 0 : index
    %c0_271 = arith.constant 0 : index
    %269 = vector.load %arg19[%c0_270, %c0_271] : memref<1x60xf32, #tpu.memory_space<vmem>>, vector<1x60xf32>
    %270 = arith.addf %268, %269 : vector<1x60xf32>
    %cst_272 = arith.constant 0.000000e+00 : f32
    %271 = vector.broadcast %cst_272 : f32 to vector<1x60xf32>
    %272 = arith.maximumf %270, %271 : vector<1x60xf32>
    %c0_273 = arith.constant 0 : index
    %c0_274 = arith.constant 0 : index
    %273 = vector.load %arg20[%c0_273, %c0_274] : memref<60x1xf32, #tpu.memory_space<vmem>>, vector<60x1xf32>
    %cst_275 = arith.constant dense<0.000000e+00> : vector<1x1xf32>
    %274 = tpu.matmul %272, %273, %cst_275 {dimension_numbers = #tpu.dot_dimension_numbers<[1], [0], [0], [1], [0, 0, 1, 1], [], []>} : vector<1x60xf32>, vector<60x1xf32>, vector<1x1xf32> -> vector<1x1xf32>
    %c0_276 = arith.constant 0 : index
    %c0_277 = arith.constant 0 : index
    %275 = vector.load %arg21[%c0_276, %c0_277] : memref<1x1xf32, #tpu.memory_space<vmem>>, vector<1x1xf32>
    %276 = arith.addf %274, %275 : vector<1x1xf32>
    %c0_278 = arith.constant 0 : index
    %c0_279 = arith.constant 0 : index
    %c0_280 = arith.constant 0 : index
    %277 = vector.load %arg22[%c0_278, %c0_279, %c0_280] : memref<1x1x1xf32, #tpu.memory_space<vmem>>, vector<1x1x1xf32>
    %278 = vector.shape_cast %277 : vector<1x1x1xf32> to vector<1x1xf32>
    %279 = vector.shape_cast %276 : vector<1x1xf32> to vector<1x1x1xf32>
    tpu.vector_store %arg22[%c0_278, %c0_279, %c0_280], %279 {strides = array<i32>} : memref<1x1x1xf32, #tpu.memory_space<vmem>>, vector<1x1x1xf32>,
    return
  }
  func.func @transform_0(%arg0: i32) -> (i32, i32, i32) {
    %c0_i32 = arith.constant 0 : i32
    %c0_i32_0 = arith.constant 0 : i32
    %c0_i32_1 = arith.constant 0 : i32
    return %arg0, %c0_i32, %c0_i32_0 : i32, i32, i32
  }
  func.func @transform_1(%arg0: i32) -> (i32, i32) {
    %c0_i32 = arith.constant 0 : i32
    %c0_i32_0 = arith.constant 0 : i32
    %c0_i32_1 = arith.constant 0 : i32
    return %c0_i32, %c0_i32_0 : i32, i32
  }
  func.func @transform_2(%arg0: i32) -> (i32, i32) {
    %c0_i32 = arith.constant 0 : i32
    %c0_i32_0 = arith.constant 0 : i32
    %c0_i32_1 = arith.constant 0 : i32
    return %c0_i32, %c0_i32_0 : i32, i32
  }
  func.func @transform_3(%arg0: i32) -> (i32, i32) {
    %c0_i32 = arith.constant 0 : i32
    %c0_i32_0 = arith.constant 0 : i32
    %c0_i32_1 = arith.constant 0 : i32
    return %c0_i32, %c0_i32_0 : i32, i32
  }
  func.func @transform_4(%arg0: i32) -> (i32, i32) {
    %c0_i32 = arith.constant 0 : i32
    %c0_i32_0 = arith.constant 0 : i32
    %c0_i32_1 = arith.constant 0 : i32
    return %c0_i32, %c0_i32_0 : i32, i32
  }
  func.func @transform_5(%arg0: i32) -> (i32, i32) {
    %c0_i32 = arith.constant 0 : i32
    %c0_i32_0 = arith.constant 0 : i32
    %c0_i32_1 = arith.constant 0 : i32
    return %c0_i32, %c0_i32_0 : i32, i32
  }
  func.func @transform_6(%arg0: i32) -> (i32, i32) {
    %c0_i32 = arith.constant 0 : i32
    %c0_i32_0 = arith.constant 0 : i32
    %c0_i32_1 = arith.constant 0 : i32
    return %c0_i32, %c0_i32_0 : i32, i32
  }
  func.func @transform_7(%arg0: i32) -> (i32, i32) {
    %c0_i32 = arith.constant 0 : i32
    %c0_i32_0 = arith.constant 0 : i32
    %c0_i32_1 = arith.constant 0 : i32
    return %c0_i32, %c0_i32_0 : i32, i32
  }
  func.func @transform_8(%arg0: i32) -> (i32, i32) {
    %c0_i32 = arith.constant 0 : i32
    %c0_i32_0 = arith.constant 0 : i32
    %c0_i32_1 = arith.constant 0 : i32
    return %c0_i32, %c0_i32_0 : i32, i32
  }
  func.func @transform_9(%arg0: i32) -> (i32, i32) {
    %c0_i32 = arith.constant 0 : i32
    %c0_i32_0 = arith.constant 0 : i32
    %c0_i32_1 = arith.constant 0 : i32
    return %c0_i32, %c0_i32_0 : i32, i32
  }
  func.func @transform_10(%arg0: i32) -> (i32, i32) {
    %c0_i32 = arith.constant 0 : i32
    %c0_i32_0 = arith.constant 0 : i32
    %c0_i32_1 = arith.constant 0 : i32
    return %c0_i32, %c0_i32_0 : i32, i32
  }
  func.func @transform_11(%arg0: i32) -> (i32, i32, i32) {
    %c0_i32 = arith.constant 0 : i32
    %c0_i32_0 = arith.constant 0 : i32
    %c0_i32_1 = arith.constant 0 : i32
    %c0_i32_2 = arith.constant 0 : i32
    return %c0_i32, %c0_i32_0, %c0_i32_1 : i32, i32, i32
  }
  func.func @transform_12(%arg0: i32) -> (i32, i32) {
    %c0_i32 = arith.constant 0 : i32
    %c0_i32_0 = arith.constant 0 : i32
    %c0_i32_1 = arith.constant 0 : i32
    return %c0_i32, %c0_i32_0 : i32, i32
  }
  func.func @transform_13(%arg0: i32) -> (i32, i32) {
    %c0_i32 = arith.constant 0 : i32
    %c0_i32_0 = arith.constant 0 : i32
    %c0_i32_1 = arith.constant 0 : i32
    return %c0_i32, %c0_i32_0 : i32, i32
  }
  func.func @transform_14(%arg0: i32) -> (i32, i32) {
    %c0_i32 = arith.constant 0 : i32
    %c0_i32_0 = arith.constant 0 : i32
    %c0_i32_1 = arith.constant 0 : i32
    return %c0_i32, %c0_i32_0 : i32, i32
  }
  func.func @transform_15(%arg0: i32) -> (i32, i32) {
    %c0_i32 = arith.constant 0 : i32
    %c0_i32_0 = arith.constant 0 : i32
    %c0_i32_1 = arith.constant 0 : i32
    return %c0_i32, %c0_i32_0 : i32, i32
  }
  func.func @transform_16(%arg0: i32) -> (i32, i32) {
    %c0_i32 = arith.constant 0 : i32
    %c0_i32_0 = arith.constant 0 : i32
    %c0_i32_1 = arith.constant 0 : i32
    return %c0_i32, %c0_i32_0 : i32, i32
  }
  func.func @transform_17(%arg0: i32) -> (i32, i32) {
    %c0_i32 = arith.constant 0 : i32
    %c0_i32_0 = arith.constant 0 : i32
    %c0_i32_1 = arith.constant 0 : i32
    return %c0_i32, %c0_i32_0 : i32, i32
  }
  func.func @transform_18(%arg0: i32) -> (i32, i32) {
    %c0_i32 = arith.constant 0 : i32
    %c0_i32_0 = arith.constant 0 : i32
    %c0_i32_1 = arith.constant 0 : i32
    return %c0_i32, %c0_i32_0 : i32, i32
  }
  func.func @transform_19(%arg0: i32) -> (i32, i32) {
    %c0_i32 = arith.constant 0 : i32
    %c0_i32_0 = arith.constant 0 : i32
    %c0_i32_1 = arith.constant 0 : i32
    return %c0_i32, %c0_i32_0 : i32, i32
  }
  func.func @transform_20(%arg0: i32) -> (i32, i32) {
    %c0_i32 = arith.constant 0 : i32
    %c0_i32_0 = arith.constant 0 : i32
    %c0_i32_1 = arith.constant 0 : i32
    return %c0_i32, %c0_i32_0 : i32, i32
  }
  func.func @transform_21(%arg0: i32) -> (i32, i32, i32) {
    %c0_i32 = arith.constant 0 : i32
    %c0_i32_0 = arith.constant 0 : i32
    %c0_i32_1 = arith.constant 0 : i32
    return %arg0, %c0_i32, %c0_i32_0 : i32, i32, i32
  }
}

</mosaic_0001>

<bundles_post_ra>
// kernel: temp_conv_network.1
= control target key start
LH: loop header
LB: loop body
LE: loop exit
PB: predicated region body
PF: predicated region fallthrough
CT: control target
= control target key end

     0   :  { %s13154_s0 = inlined_call_operand.vmem [shape: f32[2,512,1], index: 0, kind: input, shape index: {}]   ;;  %s13155_s1 = inlined_call_operand.hbm [shape: f32[5,16], index: 1, kind: input, shape index: {}]   ;;  %s13156_s2 = inlined_call_operand.hbm [shape: f32[1,16], index: 2, kind: input, shape index: {}]   ;;  %s13157_s3 = inlined_call_operand.vmem [shape: f32[80,32], index: 3, kind: input, shape index: {}]   ;;  %s13158_s4 = inlined_call_operand.hbm [shape: f32[1,32], index: 4, kind: input, shape index: {}]   ;;  %s13159_s5 = inlined_call_operand.vmem [shape: f32[160,64], index: 5, kind: input, shape index: {}]   ;;  %s13160_s6 = inlined_call_operand.hbm [shape: f32[1,64], index: 6, kind: input, shape index: {}]   ;;  %s13161_s7 = inlined_call_operand.vmem [shape: f32[320,64], index: 7, kind: input, shape index: {}]   ;;  %s13162_s8 = inlined_call_operand.hbm [shape: f32[1,64], index: 8, kind: input, shape index: {}]   ;;  %s13163_s9 = inlined_call_operand.vmem [shape: f32[320,64], index: 9, kind: input, shape index: {}]   ;;  %s13164_s10 = inlined_call_operand.hbm [shape: f32[1,64], index: 10, kind: input, shape index: {}]   ;;  %s13165_s11 = inlined_call_operand.hbm [shape: f32[15,64,480], index: 11, kind: input, shape index: {}]   ;;  %s13166_s12 = inlined_call_operand.hbm [shape: f32[1,480], index: 12, kind: input, shape index: {}]   ;;  %s13167_s13 = inlined_call_operand.hbm [shape: f32[480,240], index: 13, kind: input, shape index: {}]   ;;  %s13168_s14 = inlined_call_operand.hbm [shape: f32[1,240], index: 14, kind: input, shape index: {}]   ;;  %s13169_s15 = inlined_call_operand.hbm [shape: f32[240,120], index: 15, kind: input, shape index: {}]   ;;  %s13170_s16 = inlined_call_operand.hbm [shape: f32[1,120], index: 16, kind: input, shape index: {}]   ;;  %s13171_s17 = inlined_call_operand.vmem [shape: f32[120,60], index: 17, kind: input, shape index: {}]   ;;  %s13172_s18 = inlined_call_operand.hbm [shape: f32[1,60], index: 18, kind: input, shape index: {}]   ;;  %s13173_s19 = inlined_call_operand.vmem [shape: f32[60,1], index: 19, kind: input, shape index: {}]   ;;  %s13174_s20 = inlined_call_operand.<no memory space> [shape: f32[1,1], index: 20, kind: input, shape index: {}]   ;;  %s13175_s21 = inlined_call_operand.vmem [shape: f32[2,1,1], index: 21, kind: output, shape index: {}]  }
   0x1   :  { %13180 = sst [smem:[#allocation81_spill]] %s13154_s0  ;;  %v26_v0 = vstv %s13174_s20 }
   0x2   :  { %13181 = sst [smem:[#allocation82_spill]] %s13155_s1  ;;  %27 = vst [vmem:[#allocation5] sm:$0x1] %v26_v0 }
   0x3   :  { %13182 = sst [smem:[#allocation83_spill]] %s13156_s2 }
   0x4   :  { %13183 = sst [smem:[#allocation84_spill]] %s13157_s3 }
   0x5   :  { %13184 = sst [smem:[#allocation85_spill]] %s13158_s4 }
   0x6   :  { %13185 = sst [smem:[#allocation86_spill]] %s13159_s5 }
   0x7   :  { %13186 = sst [smem:[#allocation87_spill]] %s13160_s6 }
   0x8   :  { %13187 = sst [smem:[#allocation88_spill]] %s13162_s8 }
   0x9   :  { %13188 = sst [smem:[#allocation89_spill]] %s13164_s10 }
   0xa   :  { %13189 = sst [smem:[#allocation90_spill]] %s13166_s12 }
   0xb   :  { %28 = vsyncpa [#allocation7], 0 }
   0xc   :  { %29 = vsyncpa [#allocation9], 0 }
   0xd   :  { %30 = vsyncpa [#allocation12], 0 }
   0xe   :  { %31 = vsyncpa [#allocation15], 0 }
   0xf   :  { %32 = vsyncpa [#allocation18], 0 }
  0x10   :  { %33 = vsyncpa [#allocation21], 0 }
  0x11   :  { %34 = vsyncpa [#allocation24], 0  ;;  %s10347_s26 = smov 0  }
  0x12 LB: > { %s13190_s28 = sld [smem:[#allocation83_spill]]  ;;  %s10356_s29 = sadd.s32 4294967295, %s10206_s26   ;;  %s10206_s26 = sphi %s10347_s26, %s40_s26  }
  0x13   : > { %p9430_p0 = scmp.ge.s32.totalorder %s10206_s26, 1  ;;  %p517_p1 = scmp.lt.s32.totalorder %s10206_s26, 3 }
  0x14   : > { %p9682_p2 = scmp.eq.s32.totalorder %s10356_s29, 0  ;;  %s10208_s4 = smov [#allocation8]  }
  0x15   : > { %p10361_p3 = pnand %p9430_p0, %p517_p1  ;;  %s543_s30 = sshll.u32 %s10208_s4, 4  ;;  %s544_s30 = int_to_ptr.vmem [resolvable:$true] %s543_s30 }
  0x16   : > { %s13192_s6 = sld [smem:[#allocation87_spill]]  ;;  %s10209_s27 = smov [#allocation11]  }
  0x17   : > { %p9642_p4 = pneg %p10361_p3  ;;  %s13193_s10 = sld [smem:[#allocation89_spill]] }
  0x18   : > { %s541_s20 = sshll.u32 %s13190_s28, 4  ;;  %s573_s3 = sshll.u32 %s10209_s27, 4  ;;  %s542_s20 = int_to_ptr.hbm [resolvable:$true] %s541_s20  ;;  %s574_s3 = int_to_ptr.vmem [resolvable:$true] %s573_s3 }
  0x19   : > { %p10375_p5 = pnand %p9682_p2, %p9642_p4  ;;  %s10210_s28 = smov [#allocation14]  }
  0x1a   : > { %s603_s4 = sshll.u32 %s10210_s28, 4  ;;  %s13195_s12 = sld [smem:[#allocation90_spill]]  ;;  %s604_s4 = int_to_ptr.vmem [resolvable:$true] %s603_s4 }
  0x1b   : > { %9648 = dma.hbm_to_vmem [thread:$0]  (!%p10375_p5), %s542_s20, 16, %s544_s30, [#allocation9]  }
  0x1c   : > { %s571_s23 = sshll.u32 %s13192_s6, 4  ;;  %s653_s6 = sshll.u32 %s13168_s14, 4  ;;  %s572_s23 = int_to_ptr.hbm [resolvable:$true] %s571_s23  ;;  %s654_s6 = int_to_ptr.hbm [resolvable:$true] %s653_s6 }
  0x1d   : > { %s601_s2 = sshll.u32 %s13193_s10, 4  ;;  %s10211_s10 = smov [#allocation17]   ;;  %s602_s2 = int_to_ptr.hbm [resolvable:$true] %s601_s2 }
  0x1e   : > { %9654 = dma.hbm_to_vmem [thread:$0]  (!%p10375_p5), %s572_s23, 16, %s574_s3, [#allocation12]  }
  0x1f   : > { %9660 = dma.hbm_to_vmem [thread:$0]  (!%p10375_p5), %s602_s2, 16, %s604_s4, [#allocation15]  }
  0x20   : > { %s627_s1 = sshll.u32 %s13195_s12, 4  ;;  %s629_s20 = sshll.u32 %s10211_s10, 4  ;;  %s628_s1 = int_to_ptr.hbm [resolvable:$true] %s627_s1  ;;  %s630_s20 = int_to_ptr.vmem [resolvable:$true] %s629_s20 }
  0x21   : > { %9666 = dma.hbm_to_vmem [thread:$0]  (!%p10375_p5), %s628_s1, 64, %s630_s20, [#allocation18]  }
  0x22   : > { %s10212_s30 = smov [#allocation20]   ;;  %s679_s5 = sshll.u32 %s13170_s16, 4  ;;  %s680_s5 = int_to_ptr.hbm [resolvable:$true] %s679_s5 }
  0x23   : > { %s655_s23 = sshll.u32 %s10212_s30, 4  ;;  %s13196_s22 = sld [smem:[#allocation82_spill]]  ;;  %s656_s23 = int_to_ptr.vmem [resolvable:$true] %s655_s23 }
  0x24   : > { %9672 = dma.hbm_to_vmem [thread:$0]  (!%p10375_p5), %s654_s6, 32, %s656_s23, [#allocation21]  }
  0x25   : > { %s10213_s10 = smov [#allocation23]   ;;  %s10214_s1 = smov [#allocation6]  }
  0x26   : > { %s681_s27 = sshll.u32 %s10213_s10, 4  ;;  %s531_s20 = sshll.u32 %s10214_s1, 4  ;;  %s682_s27 = int_to_ptr.vmem [resolvable:$true] %s681_s27  ;;  %s532_s20 = int_to_ptr.vmem [resolvable:$true] %s531_s20 }
  0x27   : > { %9678 = dma.hbm_to_vmem [thread:$0]  (!%p10375_p5), %s680_s5, 16, %s682_s27, [#allocation24]  }
  0x28   : > { %s13197_s28 = sld [smem:[#allocation85_spill]]  ;;  %s10215_s4 = smov [#allocation10]  }
  0x29   : > { %s529_s24 = sshll.u32 %s13196_s22, 4  ;;  %s13198_s8 = sld [smem:[#allocation88_spill]]  ;;  %s530_s24 = int_to_ptr.hbm [resolvable:$true] %s529_s24 }
  0x2a   : > { %9645 = dma.hbm_to_vmem [thread:$0]  (!%p10375_p5), %s530_s24, 128, %s532_s20, [#allocation7]  }
  0x2b   : > { %s558_s22 = sshll.u32 %s10215_s4, 4  ;;  %s10216_s5 = smov [#allocation13]   ;;  %s559_s22 = int_to_ptr.vmem [resolvable:$true] %s558_s22 }
  0x2c   : > { %s588_s10 = sshll.u32 %s10216_s5, 4  ;;  %s612_s30 = sshll.u32 %s13165_s11, 4  ;;  %s589_s10 = int_to_ptr.vmem [resolvable:$true] %s588_s10  ;;  %s613_s30 = int_to_ptr.hbm [resolvable:$true] %s612_s30 }
  0x2d   : > { %s10217_s24 = smov [#allocation16]   ;;  %s638_s6 = sshll.u32 %s13167_s13, 4  ;;  %s639_s6 = int_to_ptr.hbm [resolvable:$true] %s638_s6 }
  0x2e   : > { %s556_s12 = sshll.u32 %s13197_s28, 4  ;;  %s614_s20 = sshll.u32 %s10217_s24, 4  ;;  %s557_s12 = int_to_ptr.hbm [resolvable:$true] %s556_s12  ;;  %s615_s20 = int_to_ptr.vmem [resolvable:$true] %s614_s20 }
  0x2f   : > { %s586_s2 = sshll.u32 %s13198_s8, 4  ;;  %s10218_s23 = smov 512   ;;  %s587_s2 = int_to_ptr.hbm [resolvable:$true] %s586_s2 }
  0x30   : > { %9651 = dma.hbm_to_vmem [thread:$0]  (!%p10375_p5), %s557_s12, 16, %s559_s22, [#allocation9]  }
  0x31   : > { %9657 = dma.hbm_to_vmem [thread:$0]  (!%p10375_p5), %s587_s2, 16, %s589_s10, [#allocation12]  }
  0x32   : > { %s10219_s12 = smov 32   ;;  %s10220_s4 = smov [#allocation19]  }
  0x33   : > { %9663 = dma.hbm_to_vmem [thread:$0]  (!%p10375_p5), %s613_s30, 61440, %s615_s20, [#allocation15], %s10218_s23, %s10218_s23, %s10219_s12  }
  0x34   : > { %s640_s22 = sshll.u32 %s10220_s4, 4  ;;  %s10221_s5 = smov 256   ;;  %s641_s22 = int_to_ptr.vmem [resolvable:$true] %s640_s22 }
  0x35   : > { %s10222_s27 = smov 16   ;;  %s664_s1 = sshll.u32 %s13169_s15, 4  ;;  %s665_s1 = int_to_ptr.hbm [resolvable:$true] %s664_s1 }
  0x36   : > { %9669 = dma.hbm_to_vmem [thread:$0]  (!%p10375_p5), %s639_s6, 15360, %s641_s22, [#allocation18], %s10221_s5, %s10221_s5, %s10222_s27  }
  0x37   : > { %s10223_s24 = smov [#allocation22]   ;;  %s694_s20 = sshll.u32 %s13172_s18, 4  ;;  %s695_s20 = int_to_ptr.hbm [resolvable:$true] %s694_s20 }
  0x38   : > { %s666_s3 = sshll.u32 %s10223_s24, 4  ;;  %s10224_s23 = smov 128   ;;  %s667_s3 = int_to_ptr.vmem [resolvable:$true] %s666_s3 }
  0x39   : > { %s10225_s12 = smov 8   ;;  %s10226_s4 = smov [#allocation25]  }
  0x3a   : > { %9675 = dma.hbm_to_vmem [thread:$0]  (!%p10375_p5), %s665_s1, 3840, %s667_s3, [#allocation21], %s10224_s23, %s10224_s23, %s10225_s12  }
  0x3b   : > { %s696_s8 = sshll.u32 %s10226_s4, 4  ;;  %723 = sbr.rel (%p10361_p3) target bundleno = 3470 (0xd8e), region = 104  ;;  %s697_s8 = int_to_ptr.vmem [resolvable:$true] %s696_s8 }
  0x3c   : > { %9681 = dma.hbm_to_vmem [thread:$0]  (!%p10375_p5), %s695_s20, 16, %s697_s8, [#allocation24]  }
  0x40   : > { %10177 = dma.done.wait (%p9682_p2), [#allocation7], 128  }
  0x41   : > { %10179 = vsyncadd (%p9682_p2), [#allocation7], 4294967168 }
  0x42   : > { %10181 = dma.done.wait (%p9682_p2), [#allocation9], 32  }
  0x43   : > { %10183 = vsyncadd (%p9682_p2), [#allocation9], 4294967264 }
  0x44   : > { %10185 = dma.done.wait (%p9682_p2), [#allocation12], 32  }
  0x45   : > { %10187 = vsyncadd (%p9682_p2), [#allocation12], 4294967264 }
  0x46   : > { %10189 = dma.done.wait (%p9682_p2), [#allocation15], 61456  }
  0x47   : > { %10191 = vsyncadd (%p9682_p2), [#allocation15], 4294905840 }
  0x48   : > { %10193 = dma.done.wait (%p9682_p2), [#allocation18], 15424  }
  0x49   : > { %10195 = vsyncadd (%p9682_p2), [#allocation18], 4294951872 }
  0x4a   : > { %10197 = dma.done.wait (%p9682_p2), [#allocation21], 3872  }
  0x4b   : > { %10199 = vsyncadd (%p9682_p2), [#allocation21], 4294963424 }
  0x4c   : > { %10201 = dma.done.wait (%p9682_p2), [#allocation24], 32  }
  0x4d   : > { %10203 = vsyncadd (%p9682_p2), [#allocation24], 4294967264  ;;  %p842_p6 = scmp.lt.s32.totalorder %s10356_s29, 1  ;;  %vm850_vm0 = vcmask 7168   ;;  %v10227_v1 = vmov 0   ;;  %v13178_v2 = vmov 0.0  }
  0x4e   : > { %9742 = vset.pattern.permute.xlu0 %v10227_v1  ;;  %851 = vst.msk [vmem:[#allocation2] sm:$0xff] %vm850_vm0, %v13178_v2  ;;  %vm852_vm1 = vcmask 1024   ;;  %9744 = vset.pattern.permute.xlu2 %v10227_v1  ;;  %s13199_s6 = sld [smem:[#allocation81_spill]]  ;;  %vm4135_vm2 = vcmask 123904   ;;  %vm3814_vm3 = vcmask 130048   ;;  %s10229_s5 = smov 16  }
  0x4f   : > { %s13300_s29 = smov (!%p842_p6, %s10356_s29), 1  ;;  %853 = vst.msk [vmem:[#allocation2 + $0x8] sm:$0x3] %vm852_vm1, %v13178_v2  ;;  %9743 = vset.pattern.permute.xlu1 %v10227_v1  ;;  %s10230_s27 = smov 48  }
  0x50   : > { %982 = vst.msk [vmem:[#allocation2 + $0x20a] sm:$0xff] %vm850_vm0, %v13178_v2  ;;  %s9589_s8 = sshll.u32 %s13300_s29, 9  ;;  %s10231_s2 = smov 32  }
  0x51   : > { %983 = vst.msk [vmem:[#allocation2 + $0x212] sm:$0x3] %vm852_vm1, %v13178_v2  ;;  %s10232_s10 = smov 64   ;;  %s13253_s3 = sld [smem:[#allocation84_spill]] }
  0x52   : > { %s13277_s25 = sld [smem:[#allocation86_spill]] }
  0x54   : > { %s10479_s22 = scalar_lea.vmem %s13199_s6, %s9589_s8 }
  0x55   : > { %v854_v3 = vld [vmem:[%s10479_s22] sm:$0xff]  ;;  %v856_v4 = vld [vmem:[%s10479_s22 + $0x10] sm:$0xff]  ;;  %v857_v5 = vld [vmem:[%s10479_s22 + $0x18] sm:$0xff] }
  0x56   : > { %918 = vst.msk [vmem:[#allocation2 + $0xa] sm:$0xff] %vm850_vm0, %v854_v3  ;;  %v984_v6 = vld [vmem:[#allocation2] sm:$0xff]  ;;  %v855_v7 = vld [vmem:[%s10479_s22 + $0x8] sm:$0xff]  ;;  %v860_v10 = vld [vmem:[%s10479_s22 + $0x30] sm:$0xff] }
  0x57   : > { %1051 = vperm.xlu0 %9742, %v984_v6   ;;  %920 = vst.msk [vmem:[#allocation2 + $0x1a] sm:$0xff] %vm850_vm0, %v856_v4  ;;  %v858_v8 = vld [vmem:[%s10479_s22 + $0x20] sm:$0xff]  ;;  %v859_v9 = vld [vmem:[%s10479_s22 + $0x28] sm:$0xff]  ;;  %v861_v11 = vld [vmem:[%s10479_s22 + $0x38] sm:$0xff] }
  0x58   : > { %921 = vst.msk [vmem:[#allocation2 + $0x22] sm:$0xff] %vm850_vm0, %v857_v5  ;;  %v862_v12 = vld [vmem:[%s10479_s22 + $0x40] sm:$0xff]  ;;  %v863_v15 = vld [vmem:[%s10479_s22 + $0x48] sm:$0xff]  ;;  %v864_v17 = vld [vmem:[%s10479_s22 + $0x50] sm:$0xff] }
  0x59   : > { %919 = vst.msk [vmem:[#allocation2 + $0x12] sm:$0xff] %vm850_vm0, %v855_v7  ;;  %v865_v19 = vld [vmem:[%s10479_s22 + $0x58] sm:$0xff]  ;;  %v866_v20 = vld [vmem:[%s10479_s22 + $0x60] sm:$0xff]  ;;  %v867_v21 = vld [vmem:[%s10479_s22 + $0x68] sm:$0xff] }
  0x5a   : > { %922 = vst.msk [vmem:[#allocation2 + $0x2a] sm:$0xff] %vm850_vm0, %v858_v8  ;;  %v868_v22 = vld [vmem:[%s10479_s22 + $0x70] sm:$0xff]  ;;  %v869_v24 = vld [vmem:[%s10479_s22 + $0x78] sm:$0xff]  ;;  %v870_v26 = vld [vmem:[%s10479_s22 + $0x80] sm:$0xff] }
  0x5b   : > { %923 = vst.msk [vmem:[#allocation2 + $0x32] sm:$0xff] %vm850_vm0, %v859_v9  ;;  %v871_v28 = vld [vmem:[%s10479_s22 + $0x88] sm:$0xff]  ;;  %v872_v29 = vld [vmem:[%s10479_s22 + $0x90] sm:$0xff]  ;;  %v873_v30 = vld [vmem:[%s10479_s22 + $0x98] sm:$0xff] }
  0x5c   : > { %924 = vst.msk [vmem:[#allocation2 + $0x3a] sm:$0xff] %vm850_vm0, %v860_v10  ;;  %v874_v31 = vld [vmem:[%s10479_s22 + $0xa0] sm:$0xff]  ;;  %v875_v35 = vld [vmem:[%s10479_s22 + $0xa8] sm:$0xff]  ;;  %v876_v36 = vld [vmem:[%s10479_s22 + $0xb0] sm:$0xff] }
  0x5d   : > { %v10497_v13 = vld [vmem:[#allocation2 + $0x5] sm:$0xff]  ;;  %925 = vst.msk [vmem:[#allocation2 + $0x42] sm:$0xff] %vm850_vm0, %v861_v11  ;;  %v877_v37 = vld [vmem:[%s10479_s22 + $0xb8] sm:$0xff]  ;;  %v880_v43 = vld [vmem:[%s10479_s22 + $0xd0] sm:$0xff] }
  0x5e   : > { %v985_v14 = vld [vmem:[#allocation2 + $0x8] sm:$0xff]  ;;  %4134 = vst.msk [vmem:[#allocation2] sm:$0xff] %vm3814_vm3, %v13178_v2  ;;  %v878_v41 = vld [vmem:[%s10479_s22 + $0xc0] sm:$0xff]  ;;  %v881_v47 = vld [vmem:[%s10479_s22 + $0xd8] sm:$0xff] }
  0x5f   : > { %v988_v16 = vld [vmem:[#allocation2 + $0x20] sm:$0xff]  ;;  %4136 = vst.msk [vmem:[#allocation2 + $0x8] sm:$0x3] %vm4135_vm2, %v13178_v2  ;;  %1056 = vperm.xlu0 %9742, %v985_v14   ;;  %v879_v42 = vld [vmem:[%s10479_s22 + $0xc8] sm:$0xff]  ;;  %v884_v53 = vld [vmem:[%s10479_s22 + $0xf0] sm:$0xff] }
  0x60   : > { %1071 = vperm.xlu2 %9744, %v988_v16   ;;  %v986_v18 = vld [vmem:[#allocation2 + $0x10] sm:$0xff]  ;;  %926 = vst.msk [vmem:[#allocation2 + $0x4a] sm:$0xff] %vm850_vm0, %v862_v12  ;;  %v987_v27 = vld [vmem:[#allocation2 + $0x18] sm:$0xff]  ;;  %v882_v48 = vld [vmem:[%s10479_s22 + $0xe0] sm:$0xff] }
  0x61   : > { %1061 = vperm.xlu1 %9743, %v986_v18   ;;  %927 = vst.msk [vmem:[#allocation2 + $0x52] sm:$0xff] %vm850_vm0, %v863_v15  ;;  %v989_v25 = vld [vmem:[#allocation2 + $0x28] sm:$0xff]  ;;  %v885_v54 = vld [vmem:[%s10479_s22 + $0xf8] sm:$0xff]  ;;  %v886_v55 = vld [vmem:[%s10479_s22 + $0x100] sm:$0xff] }
  0x62   : > { %928 = vst.msk [vmem:[#allocation2 + $0x5a] sm:$0xff] %vm850_vm0, %v864_v17  ;;  %v990_v23 = vld [vmem:[#allocation2 + $0x30] sm:$0xff]  ;;  %v883_v49 = vld [vmem:[%s10479_s22 + $0xe8] sm:$0xff]  ;;  %v889_v61 = vld [vmem:[%s10479_s22 + $0x118] sm:$0xff] }
  0x63   : > { %929 = vst.msk [vmem:[#allocation2 + $0x62] sm:$0xff] %vm850_vm0, %v865_v19  ;;  %v991_v34 = vld [vmem:[#allocation2 + $0x38] sm:$0xff]  ;;  %v887_v59 = vld [vmem:[%s10479_s22 + $0x108] sm:$0xff]  ;;  %v888_v60 = vld [vmem:[%s10479_s22 + $0x110] sm:$0xff] }
  0x64   : > { %930 = vst.msk [vmem:[#allocation2 + $0x6a] sm:$0xff] %vm850_vm0, %v866_v20  ;;  %v992_v33 = vld [vmem:[#allocation2 + $0x40] sm:$0xff]  ;;  %v891_v3 = vld [vmem:[%s10479_s22 + $0x128] sm:$0xff]  ;;  %v892_v4 = vld [vmem:[%s10479_s22 + $0x130] sm:$0xff] }
  0x65   : > { %931 = vst.msk [vmem:[#allocation2 + $0x72] sm:$0xff] %vm850_vm0, %v867_v21  ;;  %v890_v1 = vld [vmem:[%s10479_s22 + $0x120] sm:$0xff]  ;;  %v893_v8 = vld [vmem:[%s10479_s22 + $0x138] sm:$0xff]  ;;  %v895_v10 = vld [vmem:[%s10479_s22 + $0x148] sm:$0xff] }
  0x66   : > { %932 = vst.msk [vmem:[#allocation2 + $0x7a] sm:$0xff] %vm850_vm0, %v868_v22  ;;  %v894_v9 = vld [vmem:[%s10479_s22 + $0x140] sm:$0xff]  ;;  %v896_v15 = vld [vmem:[%s10479_s22 + $0x150] sm:$0xff]  ;;  %v897_v16 = vld [vmem:[%s10479_s22 + $0x158] sm:$0xff] }
  0x67   : > { %1081 = vperm.xlu0 %9742, %v990_v23   ;;  %933 = vst.msk [vmem:[#allocation2 + $0x82] sm:$0xff] %vm850_vm0, %v869_v24  ;;  %v993_v32 = vld [vmem:[#allocation2 + $0x48] sm:$0xff]  ;;  %v898_v17 = vld [vmem:[%s10479_s22 + $0x160] sm:$0xff]  ;;  %v900_v22 = vld [vmem:[%s10479_s22 + $0x170] sm:$0xff] }
  0x68   : > { %1076 = vperm.xlu2 %9744, %v989_v25   ;;  %934 = vst.msk [vmem:[#allocation2 + $0x8a] sm:$0xff] %vm850_vm0, %v870_v26  ;;  %v994_v40 = vld [vmem:[#allocation2 + $0x50] sm:$0xff]  ;;  %v899_v21 = vld [vmem:[%s10479_s22 + $0x168] sm:$0xff]  ;;  %v901_v23 = vld [vmem:[%s10479_s22 + $0x178] sm:$0xff] }
  0x69   : > { %1066 = vperm.xlu1 %9743, %v987_v27   ;;  %935 = vst.msk [vmem:[#allocation2 + $0x92] sm:$0xff] %vm850_vm0, %v871_v28  ;;  %v995_v39 = vld [vmem:[#allocation2 + $0x58] sm:$0xff]  ;;  %v902_v27 = vld [vmem:[%s10479_s22 + $0x180] sm:$0xff]  ;;  %v903_v28 = vld [vmem:[%s10479_s22 + $0x188] sm:$0xff] }
  0x6a   : > { %936 = vst.msk [vmem:[#allocation2 + $0x9a] sm:$0xff] %vm850_vm0, %v872_v29  ;;  %v996_v38 = vld [vmem:[#allocation2 + $0x60] sm:$0xff]  ;;  %v904_v29 = vld [vmem:[%s10479_s22 + $0x190] sm:$0xff] }
  0x6b   : > { %937 = vst.msk [vmem:[#allocation2 + $0xa2] sm:$0xff] %vm850_vm0, %v873_v30  ;;  %v997_v46 = vld [vmem:[#allocation2 + $0x68] sm:$0xff] }
  0x6c   : > { %938 = vst.msk [vmem:[#allocation2 + $0xaa] sm:$0xff] %vm850_vm0, %v874_v31  ;;  %v998_v45 = vld [vmem:[#allocation2 + $0x70] sm:$0xff] }
  0x6d   : > { %939 = vst.msk [vmem:[#allocation2 + $0xb2] sm:$0xff] %vm850_vm0, %v875_v35  ;;  %v999_v44 = vld [vmem:[#allocation2 + $0x78] sm:$0xff]  ;;  %v906_v35 = vld [vmem:[%s10479_s22 + $0x1a0] sm:$0xff] }
  0x6e   : > { %940 = vst.msk [vmem:[#allocation2 + $0xba] sm:$0xff] %vm850_vm0, %v876_v36  ;;  %v1000_v52 = vld [vmem:[#allocation2 + $0x80] sm:$0xff]  ;;  %v907_v36 = vld [vmem:[%s10479_s22 + $0x1a8] sm:$0xff] }
  0x6f   : > { %1096 = vperm.xlu0 %9742, %v993_v32   ;;  %941 = vst.msk [vmem:[#allocation2 + $0xc2] sm:$0xff] %vm850_vm0, %v877_v37  ;;  %v1001_v51 = vld [vmem:[#allocation2 + $0x88] sm:$0xff] }
  0x70   : > { %1091 = vperm.xlu2 %9744, %v992_v33   ;;  %942 = vst.msk [vmem:[#allocation2 + $0xca] sm:$0xff] %vm850_vm0, %v878_v41  ;;  %v1002_v50 = vld [vmem:[#allocation2 + $0x90] sm:$0xff] }
  0x71   : > { %1086 = vperm.xlu1 %9743, %v991_v34   ;;  %943 = vst.msk [vmem:[#allocation2 + $0xd2] sm:$0xff] %vm850_vm0, %v879_v42  ;;  %v1003_v58 = vld [vmem:[#allocation2 + $0x98] sm:$0xff]  ;;  %v908_v41 = vld [vmem:[%s10479_s22 + $0x1b0] sm:$0xff] }
  0x72   : > { %944 = vst.msk [vmem:[#allocation2 + $0xda] sm:$0xff] %vm850_vm0, %v880_v43  ;;  %v1004_v57 = vld [vmem:[#allocation2 + $0xa0] sm:$0xff]  ;;  %v905_v34 = vld [vmem:[%s10479_s22 + $0x198] sm:$0xff] }
  0x73   : > { %945 = vst.msk [vmem:[#allocation2 + $0xe2] sm:$0xff] %vm850_vm0, %v881_v47  ;;  %v1005_v56 = vld [vmem:[#allocation2 + $0xa8] sm:$0xff]  ;;  %v909_v42 = vld [vmem:[%s10479_s22 + $0x1b8] sm:$0xff] }
  0x74   : > { %946 = vst.msk [vmem:[#allocation2 + $0xea] sm:$0xff] %vm850_vm0, %v882_v48  ;;  %v1006_v0 = vld [vmem:[#allocation2 + $0xb0] sm:$0xff] }
  0x75   : > { %947 = vst.msk [vmem:[#allocation2 + $0xf2] sm:$0xff] %vm850_vm0, %v883_v49  ;;  %v1007_v63 = vld [vmem:[#allocation2 + $0xb8] sm:$0xff]  ;;  %v911_v49 = vld [vmem:[%s10479_s22 + $0x1c8] sm:$0xff] }
  0x76   : > { %948 = vst.msk [vmem:[#allocation2 + $0xfa] sm:$0xff] %vm850_vm0, %v884_v53  ;;  %v1008_v62 = vld [vmem:[#allocation2 + $0xc0] sm:$0xff] }
  0x77   : > { %1111 = vperm.xlu0 %9742, %v996_v38   ;;  %949 = vst.msk [vmem:[#allocation2 + $0x102] sm:$0xff] %vm850_vm0, %v885_v54  ;;  %v1009_v7 = vld [vmem:[#allocation2 + $0xc8] sm:$0xff] }
  0x78   : > { %1106 = vperm.xlu2 %9744, %v995_v39   ;;  %950 = vst.msk [vmem:[#allocation2 + $0x10a] sm:$0xff] %vm850_vm0, %v886_v55  ;;  %v1010_v6 = vld [vmem:[#allocation2 + $0xd0] sm:$0xff] }
  0x79   : > { %1101 = vperm.xlu1 %9743, %v994_v40   ;;  %951 = vst.msk [vmem:[#allocation2 + $0x112] sm:$0xff] %vm850_vm0, %v887_v59  ;;  %v1011_v5 = vld [vmem:[#allocation2 + $0xd8] sm:$0xff]  ;;  %v915_v59 = vld [vmem:[%s10479_s22 + $0x1e8] sm:$0xff] }
  0x7a   : > { %952 = vst.msk [vmem:[#allocation2 + $0x11a] sm:$0xff] %vm850_vm0, %v888_v60  ;;  %v1012_v14 = vld [vmem:[#allocation2 + $0xe0] sm:$0xff] }
  0x7b   : > { %953 = vst.msk [vmem:[#allocation2 + $0x122] sm:$0xff] %vm850_vm0, %v889_v61  ;;  %v1013_v12 = vld [vmem:[#allocation2 + $0xe8] sm:$0xff]  ;;  %v916_v61 = vld [vmem:[%s10479_s22 + $0x1f0] sm:$0xff] }
  0x7c   : > { %954 = vst.msk [vmem:[#allocation2 + $0x12a] sm:$0xff] %vm850_vm0, %v890_v1  ;;  %v1014_v11 = vld [vmem:[#allocation2 + $0xf0] sm:$0xff] }
  0x7d   : > { %955 = vst.msk [vmem:[#allocation2 + $0x132] sm:$0xff] %vm850_vm0, %v891_v3  ;;  %v1015_v20 = vld [vmem:[#allocation2 + $0xf8] sm:$0xff] }
  0x7e   : > { %956 = vst.msk [vmem:[#allocation2 + $0x13a] sm:$0xff] %vm850_vm0, %v892_v4  ;;  %v1016_v19 = vld [vmem:[#allocation2 + $0x100] sm:$0xff] }
  0x7f   : > { %1126 = vperm.xlu0 %9742, %v999_v44   ;;  %957 = vst.msk [vmem:[#allocation2 + $0x142] sm:$0xff] %vm850_vm0, %v893_v8  ;;  %v1017_v18 = vld [vmem:[#allocation2 + $0x108] sm:$0xff]  ;;  %v910_v44 = vld [vmem:[%s10479_s22 + $0x1c0] sm:$0xff] }
  0x80   : > { %1121 = vperm.xlu2 %9744, %v998_v45   ;;  %958 = vst.msk [vmem:[#allocation2 + $0x14a] sm:$0xff] %vm850_vm0, %v894_v9  ;;  %v1018_v26 = vld [vmem:[#allocation2 + $0x110] sm:$0xff] }
  0x81   : > { %1116 = vperm.xlu1 %9743, %v997_v46   ;;  %959 = vst.msk [vmem:[#allocation2 + $0x152] sm:$0xff] %vm850_vm0, %v895_v10  ;;  %v1019_v25 = vld [vmem:[#allocation2 + $0x118] sm:$0xff] }
  0x82   : > { %960 = vst.msk [vmem:[#allocation2 + $0x15a] sm:$0xff] %vm850_vm0, %v896_v15  ;;  %v1020_v24 = vld [vmem:[#allocation2 + $0x120] sm:$0xff] }
  0x83   : > { %961 = vst.msk [vmem:[#allocation2 + $0x162] sm:$0xff] %vm850_vm0, %v897_v16  ;;  %v1021_v33 = vld [vmem:[#allocation2 + $0x128] sm:$0xff] }
  0x84   : > { %962 = vst.msk [vmem:[#allocation2 + $0x16a] sm:$0xff] %vm850_vm0, %v898_v17  ;;  %v1022_v32 = vld [vmem:[#allocation2 + $0x130] sm:$0xff] }
  0x85   : > { %963 = vst.msk [vmem:[#allocation2 + $0x172] sm:$0xff] %vm850_vm0, %v899_v21  ;;  %v1023_v31 = vld [vmem:[#allocation2 + $0x138] sm:$0xff] }
  0x86   : > { %964 = vst.msk [vmem:[#allocation2 + $0x17a] sm:$0xff] %vm850_vm0, %v900_v22  ;;  %v1024_v40 = vld [vmem:[#allocation2 + $0x140] sm:$0xff] }
  0x87   : > { %1141 = vperm.xlu0 %9742, %v1002_v50   ;;  %965 = vst.msk [vmem:[#allocation2 + $0x182] sm:$0xff] %vm850_vm0, %v901_v23  ;;  %v1025_v39 = vld [vmem:[#allocation2 + $0x148] sm:$0xff]  ;;  %v912_v50 = vld [vmem:[%s10479_s22 + $0x1d0] sm:$0xff] }
  0x88   : > { %1136 = vperm.xlu2 %9744, %v1001_v51   ;;  %966 = vst.msk [vmem:[#allocation2 + $0x18a] sm:$0xff] %vm850_vm0, %v902_v27  ;;  %v1026_v38 = vld [vmem:[#allocation2 + $0x150] sm:$0xff] }
  0x89   : > { %1131 = vperm.xlu1 %9743, %v1000_v52   ;;  %967 = vst.msk [vmem:[#allocation2 + $0x192] sm:$0xff] %vm850_vm0, %v903_v28  ;;  %v1027_v48 = vld [vmem:[#allocation2 + $0x158] sm:$0xff] }
  0x8a   : > { %968 = vst.msk [vmem:[#allocation2 + $0x19a] sm:$0xff] %vm850_vm0, %v904_v29  ;;  %v1028_v47 = vld [vmem:[#allocation2 + $0x160] sm:$0xff]  ;;  %v913_v52 = vld [vmem:[%s10479_s22 + $0x1d8] sm:$0xff] }
  0x8b   : > { %969 = vst.msk [vmem:[#allocation2 + $0x1a2] sm:$0xff] %vm850_vm0, %v905_v34  ;;  %v1029_v46 = vld [vmem:[#allocation2 + $0x168] sm:$0xff] }
  0x8c   : > { %970 = vst.msk [vmem:[#allocation2 + $0x1aa] sm:$0xff] %vm850_vm0, %v906_v35  ;;  %v1499_v34 = vld [vmem:[#allocation2 + $0xd] sm:$0xff] }
  0x8d   : > { %971 = vst.msk [vmem:[#allocation2 + $0x1b2] sm:$0xff] %vm850_vm0, %v907_v36 }
  0x8e   : > { %972 = vst.msk [vmem:[#allocation2 + $0x1ba] sm:$0xff] %vm850_vm0, %v908_v41  ;;  %v1032_v55 = vld [vmem:[#allocation2 + $0x180] sm:$0xff] }
  0x8f   : > { %1156 = vperm.xlu0 %9742, %v1005_v56   ;;  %973 = vst.msk [vmem:[#allocation2 + $0x1c2] sm:$0xff] %vm850_vm0, %v909_v42  ;;  %v1031_v56 = vld [vmem:[#allocation2 + $0x178] sm:$0xff]  ;;  %v1033_v3 = vld [vmem:[#allocation2 + $0x188] sm:$0xff] }
  0x90   : > { %1151 = vperm.xlu2 %9744, %v1004_v57   ;;  %974 = vst.msk [vmem:[#allocation2 + $0x1ca] sm:$0xff] %vm850_vm0, %v910_v44  ;;  %v1030_v57 = vld [vmem:[#allocation2 + $0x170] sm:$0xff]  ;;  %v1501_v41 = vld [vmem:[#allocation2 + $0x1d] sm:$0xff] }
  0x91   : > { %1146 = vperm.xlu1 %9743, %v1003_v58   ;;  %975 = vst.msk [vmem:[#allocation2 + $0x1d2] sm:$0xff] %vm850_vm0, %v911_v49  ;;  %v914_v58 = vld [vmem:[%s10479_s22 + $0x1e0] sm:$0xff]  ;;  %v1034_v1 = vld [vmem:[#allocation2 + $0x190] sm:$0xff] }
  0x92   : > { %976 = vst.msk [vmem:[#allocation2 + $0x1da] sm:$0xff] %vm850_vm0, %v912_v50  ;;  %v1036_v9 = vld [vmem:[#allocation2 + $0x1a0] sm:$0xff] }
  0x93   : > { %977 = vst.msk [vmem:[#allocation2 + $0x1e2] sm:$0xff] %vm850_vm0, %v913_v52  ;;  %v1037_v8 = vld [vmem:[#allocation2 + $0x1a8] sm:$0xff] }
  0x94   : > { %978 = vst.msk [vmem:[#allocation2 + $0x1ea] sm:$0xff] %vm850_vm0, %v914_v58 }
  0x95   : > { %979 = vst.msk [vmem:[#allocation2 + $0x1f2] sm:$0xff] %vm850_vm0, %v915_v59  ;;  %v1039_v16 = vld [vmem:[#allocation2 + $0x1b8] sm:$0xff] }
  0x96   : > { %980 = vst.msk [vmem:[#allocation2 + $0x1fa] sm:$0xff] %vm850_vm0, %v916_v61  ;;  %v1040_v15 = vld [vmem:[#allocation2 + $0x1c0] sm:$0xff] }
  0x97   : > { %1171 = vperm.xlu0 %9742, %v1008_v62  }
  0x98   : > { %1166 = vperm.xlu2 %9744, %v1007_v63   ;;  %v1042_v22 = vld [vmem:[#allocation2 + $0x1d0] sm:$0xff] }
  0x99   : > { %1161 = vperm.xlu1 %9743, %v1006_v0   ;;  %v1035_v0 = vld [vmem:[#allocation2 + $0x198] sm:$0xff] }
  0x9a   : > { %v1043_v21 = vld [vmem:[#allocation2 + $0x1d8] sm:$0xff] }
  0x9b   : > { %v1045_v28 = vld [vmem:[#allocation2 + $0x1e8] sm:$0xff] }
  0x9c   : > { %v1046_v27 = vld [vmem:[#allocation2 + $0x1f0] sm:$0xff] }
  0x9f   : > { %1186 = vperm.xlu0 %9742, %v1011_v5  }
  0xa0   : > { %1181 = vperm.xlu2 %9744, %v1010_v6  }
  0xa1   : > { %1176 = vperm.xlu1 %9743, %v1009_v7   ;;  %v1038_v7 = vld [vmem:[#allocation2 + $0x1b0] sm:$0xff] }
  0xa7   : > { %1201 = vperm.xlu0 %9742, %v1014_v11  }
  0xa8   : > { %1196 = vperm.xlu2 %9744, %v1013_v12  }
  0xa9   : > { %1191 = vperm.xlu1 %9743, %v1012_v14   ;;  %v1041_v14 = vld [vmem:[#allocation2 + $0x1c8] sm:$0xff] }
  0xaf   : > { %1216 = vperm.xlu0 %9742, %v1017_v18  }
  0xb0   : > { %1211 = vperm.xlu2 %9744, %v1016_v19  }
  0xb1   : > { %1206 = vperm.xlu1 %9743, %v1015_v20   ;;  %v1044_v20 = vld [vmem:[#allocation2 + $0x1e0] sm:$0xff] }
  0xb7   : > { %1231 = vperm.xlu0 %9742, %v1020_v24  }
  0xb8   : > { %1226 = vperm.xlu2 %9744, %v1019_v25  }
  0xb9   : > { %1221 = vperm.xlu1 %9743, %v1018_v26   ;;  %v1047_v26 = vld [vmem:[#allocation2 + $0x1f8] sm:$0xff] }
  0xba   : > { %v10587_v30 = vpop.permute.xlu2 %1071 }
  0xbf   : > { %1246 = vperm.xlu0 %9742, %v1023_v31  }
  0xc0   : > { %1241 = vperm.xlu2 %9744, %v1022_v32  }
  0xc1   : > { %1236 = vperm.xlu1 %9743, %v1021_v33   ;;  %v1500_v33 = vld [vmem:[#allocation2 + $0x15] sm:$0xff] }
  0xc2   : > { %v10595_v37 = vpop.permute.xlu2 %1076 }
  0xc7   : > { %1261 = vperm.xlu0 %9742, %v1026_v38  }
  0xc8   : > { %1256 = vperm.xlu2 %9744, %v1025_v39   ;;  %v1503_v39 = vld [vmem:[#allocation2 + $0x2d] sm:$0xff] }
  0xc9   : > { %1251 = vperm.xlu1 %9743, %v1024_v40   ;;  %v10601_v43 = vpop.permute.xlu0 %1051  ;;  %v1502_v40 = vld [vmem:[#allocation2 + $0x25] sm:$0xff] }
  0xca   : > { %v10605_v45 = vpop.permute.xlu2 %1091 }
  0xcf   : > { %1276 = vperm.xlu0 %9742, %v1029_v46  }
  0xd0   : > { %1271 = vperm.xlu2 %9744, %v1028_v47   ;;  %v1506_v47 = vld [vmem:[#allocation2 + $0x45] sm:$0xff] }
  0xd1   : > { %1266 = vperm.xlu1 %9743, %v1027_v48   ;;  %v10611_v51 = vpop.permute.xlu0 %1056  ;;  %v1504_v48 = vld [vmem:[#allocation2 + $0x35] sm:$0xff] }
  0xd2   : > { %v10615_v53 = vpop.permute.xlu2 %1106 }
  0xd3   : > { %v10618_v54 = vpop.permute.xlu1 %1061 }
  0xd7   : > { %1291 = vperm.xlu0 %9742, %v1032_v55   ;;  %v1509_v55 = vld [vmem:[#allocation2 + $0x5d] sm:$0xff] }
  0xd8   : > { %1286 = vperm.xlu2 %9744, %v1031_v56   ;;  %v1508_v56 = vld [vmem:[#allocation2 + $0x55] sm:$0xff] }
  0xd9   : > { %1281 = vperm.xlu1 %9743, %v1030_v57   ;;  %v10623_v60 = vpop.permute.xlu0 %1081  ;;  %v1507_v57 = vld [vmem:[#allocation2 + $0x4d] sm:$0xff] }
  0xda   : > { %v10627_v62 = vpop.permute.xlu2 %1121 }
  0xdb   : > { %v10630_v63 = vpop.permute.xlu1 %1066 }
  0xdf   : > { %1306 = vperm.xlu0 %9742, %v1035_v0   ;;  %v1512_v0 = vld [vmem:[#allocation2 + $0x75] sm:$0xff] }
  0xe0   : > { %1301 = vperm.xlu2 %9744, %v1034_v1   ;;  %v1511_v1 = vld [vmem:[#allocation2 + $0x6d] sm:$0xff] }
  0xe1   : > { %1296 = vperm.xlu1 %9743, %v1033_v3   ;;  %v10633_v4 = vpop.permute.xlu0 %1096  ;;  %v1510_v3 = vld [vmem:[#allocation2 + $0x65] sm:$0xff] }
  0xe2   : > { %v10635_v5 = vpop.permute.xlu2 %1136 }
  0xe3   : > { %13200 = vst [vmem:[#allocation33_spill] sm:$0xff] %v10635_v5  ;;  %v10637_v6 = vpop.permute.xlu1 %1086 }
  0xe7   : > { %1321 = vperm.xlu0 %9742, %v1038_v7  }
  0xe8   : > { %1316 = vperm.xlu2 %9744, %v1037_v8  }
  0xe9   : > { %1311 = vperm.xlu1 %9743, %v1036_v9   ;;  %v10639_v10 = vpop.permute.xlu0 %1111 }
  0xea   : > { %v10641_v11 = vpop.permute.xlu2 %1151 }
  0xeb   : > { %13201 = vst [vmem:[#allocation34_spill] sm:$0xff] %v10641_v11  ;;  %v10643_v12 = vpop.permute.xlu1 %1101 }
  0xef   : > { %1336 = vperm.xlu0 %9742, %v1041_v14   ;;  %v1515_v14 = vld [vmem:[#allocation2 + $0x8d] sm:$0xff] }
  0xf0   : > { %1331 = vperm.xlu2 %9744, %v1040_v15   ;;  %v1514_v15 = vld [vmem:[#allocation2 + $0x85] sm:$0xff] }
  0xf1   : > { %1326 = vperm.xlu1 %9743, %v1039_v16   ;;  %v10645_v17 = vpop.permute.xlu0 %1126  ;;  %v1513_v16 = vld [vmem:[#allocation2 + $0x7d] sm:$0xff] }
  0xf2   : > { %v10647_v18 = vpop.permute.xlu2 %1166 }
  0xf3   : > { %13202 = vst [vmem:[#allocation35_spill] sm:$0xff] %v10647_v18  ;;  %v10649_v19 = vpop.permute.xlu1 %1116  ;;  %v2029_v18 = vld [vmem:[#allocation2 + $0x92] sm:$0xff] }
  0xf7   : > { %1351 = vperm.xlu0 %9742, %v1044_v20  }
  0xf8   : > { %1346 = vperm.xlu2 %9744, %v1043_v21  }
  0xf9   : > { %1341 = vperm.xlu1 %9743, %v1042_v22   ;;  %v10651_v23 = vpop.permute.xlu0 %1141 }
  0xfa   : > { %13203 = vst [vmem:[#allocation36_spill] sm:$0xff] %v10651_v23  ;;  %v10653_v24 = vpop.permute.xlu2 %1181 }
  0xfb   : > { %13204 = vst [vmem:[#allocation37_spill] sm:$0xff] %v10653_v24  ;;  %v10655_v25 = vpop.permute.xlu1 %1131 }
  0xff   : > { %1366 = vperm.xlu0 %9742, %v1047_v26   ;;  %v2013_v26 = vld [vmem:[#allocation2 + $0x12] sm:$0xff] }
 0x100   : > { %1361 = vperm.xlu2 %9744, %v1046_v27   ;;  %v2012_v27 = vld [vmem:[#allocation2 + $0xa] sm:$0xff] }
 0x101   : > { %1356 = vperm.xlu1 %9743, %v1045_v28   ;;  %v10657_v29 = vpop.permute.xlu0 %1156  ;;  %v1516_v28 = vld [vmem:[#allocation2 + $0x95] sm:$0xff] }
 0x102   : > { %13205 = vst [vmem:[#allocation38_spill] sm:$0xff] %v10657_v29  ;;  %v10659_v31 = vpop.permute.xlu2 %1196  ;;  %v3056_v29 = vld [vmem:[#allocation2 + $0x94] sm:$0xff] }
 0x103   : > { %13206 = vst [vmem:[#allocation39_spill] sm:$0xff] %v10659_v31  ;;  %v10661_v32 = vpop.permute.xlu1 %1146  ;;  %v2542_v31 = vld [vmem:[#allocation2 + $0x8f] sm:$0xff] }
 0x104   : > { %13207 = vst [vmem:[#allocation40_spill] sm:$0xff] %v10661_v32  ;;  %v10809_v32 = vld [vmem:[#allocation6 + $0x4] ss:$0 sm:$0xff] }
 0x107   : > { %1575 = vperm.xlu0 %9742, %v1500_v33  }
 0x108   : > { %1570 = vperm.xlu2 %9744, %v1499_v34  }
 0x109   : > { %1565 = vperm.xlu1 %9743, %v10497_v13   ;;  %v10664_v35 = vpop.permute.xlu0 %1171  ;;  %v1505_v13 = vld [vmem:[#allocation2 + $0x3d] sm:$0xff] }
 0x10a   : > { %13208 = vst [vmem:[#allocation41_spill] sm:$0xff] %v10664_v35  ;;  %v10666_v36 = vpop.permute.xlu2 %1211  ;;  %v2030_v35 = vld [vmem:[#allocation2 + $0x9a] sm:$0xff] }
 0x10b   : > { %13209 = vst [vmem:[#allocation42_spill] sm:$0xff] %v10666_v36  ;;  %v10668_v38 = vpop.permute.xlu1 %1161 }
 0x10c   : > { %13210 = vst [vmem:[#allocation43_spill] sm:$0xff] %v10668_v38 }
 0x10f   : > { %1590 = vperm.xlu0 %9742, %v1503_v39  }
 0x110   : > { %1585 = vperm.xlu2 %9744, %v1502_v40   ;;  %v2526_v40 = vld [vmem:[#allocation2 + $0xf] sm:$0xff] }
 0x111   : > { %1580 = vperm.xlu1 %9743, %v1501_v41   ;;  %v10670_v42 = vpop.permute.xlu0 %1186  ;;  %v2015_v41 = vld [vmem:[#allocation2 + $0x22] sm:$0xff] }
 0x112   : > { %13211 = vst [vmem:[#allocation44_spill] sm:$0xff] %v10670_v42  ;;  %v10672_v44 = vpop.permute.xlu2 %1226 }
 0x113   : > { %13212 = vst [vmem:[#allocation45_spill] sm:$0xff] %v10672_v44  ;;  %v10674_v46 = vpop.permute.xlu1 %1176 }
 0x114   : > { %13213 = vst [vmem:[#allocation46_spill] sm:$0xff] %v10674_v46  ;;  %v10801_v46 = vld [vmem:[#allocation6 + $0x3] ss:$0 sm:$0xff] }
 0x117   : > { %1605 = vperm.xlu0 %9742, %v1506_v47   ;;  %v2014_v47 = vld [vmem:[#allocation2 + $0x1a] sm:$0xff] }
 0x118   : > { %1600 = vperm.xlu2 %9744, %v1505_v13  }
 0x119   : > { %1595 = vperm.xlu1 %9743, %v1504_v48   ;;  %v10676_v49 = vpop.permute.xlu0 %1201 }
 0x11a   : > { %13214 = vst [vmem:[#allocation47_spill] sm:$0xff] %v10676_v49  ;;  %v10678_v50 = vpop.permute.xlu2 %1241  ;;  %v3055_v49 = vld [vmem:[#allocation2 + $0x8c] sm:$0xff] }
 0x11b   : > { %13215 = vst [vmem:[#allocation48_spill] sm:$0xff] %v10678_v50  ;;  %v10680_v52 = vpop.permute.xlu1 %1191 }
 0x11c   : > { %13216 = vst [vmem:[#allocation49_spill] sm:$0xff] %v10680_v52  ;;  %v10792_v52 = vld [vmem:[#allocation6 + $0x2] ss:$0 sm:$0xff] }
 0x11f   : > { %1620 = vperm.xlu0 %9742, %v1509_v55  }
 0x120   : > { %1615 = vperm.xlu2 %9744, %v1508_v56   ;;  %v2017_v56 = vld [vmem:[#allocation2 + $0x32] sm:$0xff] }
 0x121   : > { %1610 = vperm.xlu1 %9743, %v1507_v57   ;;  %v10682_v58 = vpop.permute.xlu0 %1216  ;;  %v2016_v57 = vld [vmem:[#allocation2 + $0x2a] sm:$0xff] }
 0x122   : > { %13217 = vst [vmem:[#allocation50_spill] sm:$0xff] %v10682_v58  ;;  %v10684_v59 = vpop.permute.xlu2 %1256 }
 0x123   : > { %13218 = vst [vmem:[#allocation51_spill] sm:$0xff] %v10684_v59  ;;  %v10686_v61 = vpop.permute.xlu1 %1206 }
 0x124   : > { %13219 = vst [vmem:[#allocation52_spill] sm:$0xff] %v10686_v61 }
 0x127   : > { %1635 = vperm.xlu0 %9742, %v1512_v0   ;;  %v2527_v0 = vld [vmem:[#allocation2 + $0x17] sm:$0xff] }
 0x128   : > { %1630 = vperm.xlu2 %9744, %v1511_v1  }
 0x129   : > { %1625 = vperm.xlu1 %9743, %v1510_v3   ;;  %v10688_v7 = vpop.permute.xlu0 %1231 }
 0x12a   : > { %13220 = vst [vmem:[#allocation53_spill] sm:$0xff] %v10688_v7  ;;  %v10690_v8 = vpop.permute.xlu2 %1271 }
 0x12b   : > { %13221 = vst [vmem:[#allocation54_spill] sm:$0xff] %v10690_v8  ;;  %v10692_v9 = vpop.permute.xlu1 %1221 }
 0x12c   : > { %13222 = vst [vmem:[#allocation55_spill] sm:$0xff] %v10692_v9 }
 0x12f   : > { %1650 = vperm.xlu0 %9742, %v1515_v14  }
 0x130   : > { %1645 = vperm.xlu2 %9744, %v1514_v15   ;;  %v3040_v15 = vld [vmem:[#allocation2 + $0x14] sm:$0xff] }
 0x131   : > { %1640 = vperm.xlu1 %9743, %v1513_v16   ;;  %v10694_v20 = vpop.permute.xlu0 %1246  ;;  %v2529_v16 = vld [vmem:[#allocation2 + $0x27] sm:$0xff] }
 0x132   : > { %13223 = vst [vmem:[#allocation56_spill] sm:$0xff] %v10694_v20  ;;  %v10696_v21 = vpop.permute.xlu2 %1286 }
 0x133   : > { %13224 = vst [vmem:[#allocation57_spill] sm:$0xff] %v10696_v21  ;;  %v10698_v22 = vpop.permute.xlu1 %1236 }
 0x134   : > { %13225 = vst [vmem:[#allocation58_spill] sm:$0xff] %v10698_v22 }
 0x137   : > { %2084 = vperm.xlu0 %9742, %v2013_v26   ;;  %v2528_v26 = vld [vmem:[#allocation2 + $0x1f] sm:$0xff] }
 0x138   : > { %2079 = vperm.xlu2 %9744, %v2012_v27  }
 0x139   : > { %1655 = vperm.xlu1 %9743, %v1516_v28   ;;  %v10700_v33 = vpop.permute.xlu0 %1261 }
 0x13a   : > { %13226 = vst [vmem:[#allocation59_spill] sm:$0xff] %v10700_v33  ;;  %v10702_v34 = vpop.permute.xlu2 %1301 }
 0x13b   : > { %13227 = vst [vmem:[#allocation60_spill] sm:$0xff] %v10702_v34  ;;  %v10704_v39 = vpop.permute.xlu1 %1251 }
 0x13c   : > { %13228 = vst [vmem:[#allocation61_spill] sm:$0xff] %v10704_v39 }
 0x13f   : > { %2593 = vperm.xlu0 %9742, %v2526_v40  }
 0x140   : > { %2094 = vperm.xlu2 %9744, %v2015_v41   ;;  %v2530_v41 = vld [vmem:[#allocation2 + $0x2f] sm:$0xff] }
 0x141   : > { %2089 = vperm.xlu1 %9743, %v2014_v47   ;;  %v10706_v13 = vpop.permute.xlu0 %1276  ;;  %v2018_v47 = vld [vmem:[#allocation2 + $0x3a] sm:$0xff] }
 0x142   : > { %13229 = vst [vmem:[#allocation62_spill] sm:$0xff] %v10706_v13  ;;  %v10708_v48 = vpop.permute.xlu2 %1316 }
 0x143   : > { %13230 = vst [vmem:[#allocation63_spill] sm:$0xff] %v10708_v48  ;;  %v10710_v55 = vpop.permute.xlu1 %1266 }
 0x144   : > { %13231 = vst [vmem:[#allocation64_spill] sm:$0xff] %v10710_v55 }
 0x147   : > { %2104 = vperm.xlu0 %9742, %v2017_v56   ;;  %v3041_v56 = vld [vmem:[#allocation2 + $0x1c] sm:$0xff] }
 0x148   : > { %2099 = vperm.xlu2 %9744, %v2016_v57  }
 0x149   : > { %2598 = vperm.xlu1 %9743, %v2527_v0   ;;  %v10712_v1 = vpop.permute.xlu0 %1291 }
 0x14a   : > { %13232 = vst [vmem:[#allocation65_spill] sm:$0xff] %v10712_v1  ;;  %v10714_v3 = vpop.permute.xlu2 %1331 }
 0x14b   : > { %13233 = vst [vmem:[#allocation66_spill] sm:$0xff] %v10714_v3  ;;  %v10716_v14 = vpop.permute.xlu1 %1281 }
 0x14c   : > { %13234 = vst [vmem:[#allocation67_spill] sm:$0xff] %v10716_v14 }
 0x14f   : > { %3107 = vperm.xlu0 %9742, %v3040_v15   ;;  %v3043_v15 = vld [vmem:[#allocation2 + $0x2c] sm:$0xff] }
 0x150   : > { %2608 = vperm.xlu2 %9744, %v2529_v16   ;;  %v3042_v16 = vld [vmem:[#allocation2 + $0x24] sm:$0xff] }
 0x151   : > { %2603 = vperm.xlu1 %9743, %v2528_v26   ;;  %v10718_v27 = vpop.permute.xlu0 %1306  ;;  %v2531_v26 = vld [vmem:[#allocation2 + $0x37] sm:$0xff] }
 0x152   : > { %13235 = vst [vmem:[#allocation68_spill] sm:$0xff] %v10718_v27  ;;  %v10720_v28 = vpop.permute.xlu2 %1346 }
 0x153   : > { %13236 = vst [vmem:[#allocation69_spill] sm:$0xff] %v10720_v28  ;;  %v10722_v40 = vpop.permute.xlu1 %1296 }
 0x154   : > { %13237 = vst [vmem:[#allocation70_spill] sm:$0xff] %v10722_v40 }
 0x157   : > { %2613 = vperm.xlu0 %9742, %v2530_v41   ;;  %v3045_v41 = vld [vmem:[#allocation2 + $0x3c] sm:$0xff] }
 0x158   : > { %2109 = vperm.xlu2 %9744, %v2018_v47   ;;  %v3044_v47 = vld [vmem:[#allocation2 + $0x34] sm:$0xff] }
 0x159   : > { %3112 = vperm.xlu1 %9743, %v3041_v56   ;;  %v10724_v57 = vpop.permute.xlu0 %1321  ;;  %v2532_v56 = vld [vmem:[#allocation2 + $0x3f] sm:$0xff] }
 0x15a   : > { %13238 = vst [vmem:[#allocation71_spill] sm:$0xff] %v10724_v57  ;;  %v10726_v0 = vpop.permute.xlu2 %1361 }
 0x15b   : > { %13239 = vst [vmem:[#allocation72_spill] sm:$0xff] %v10726_v0  ;;  %v10728_v2 = vpop.permute.xlu1 %1311 }
 0x15c   : > { %13240 = vst [vmem:[#allocation73_spill] sm:$0xff] %v10728_v2 }
 0x15f   : > { %3122 = vperm.xlu0 %9742, %v3043_v15   ;;  %v2020_v15 = vld [vmem:[#allocation2 + $0x4a] sm:$0xff] }
 0x160   : > { %3117 = vperm.xlu2 %9744, %v3042_v16   ;;  %v2019_v16 = vld [vmem:[#allocation2 + $0x42] sm:$0xff] }
 0x161   : > { %2618 = vperm.xlu1 %9743, %v2531_v26   ;;  %v10730_v28 = vpop.permute.xlu0 %1336  ;;  %v3046_v26 = vld [vmem:[#allocation2 + $0x44] sm:$0xff] }
 0x162   : > { %13241 = vst [vmem:[#allocation74_spill] sm:$0xff] %v10730_v28  ;;  %v10732_v3 = vpop.permute.xlu2 %1570 }
 0x163   : > { %v10734_v48 = vpop.permute.xlu1 %1326 }
 0x164   : > { %13242 = vst [vmem:[#allocation75_spill] sm:$0xff] %v10734_v48 }
 0x167   : > { %3132 = vperm.xlu0 %9742, %v3045_v41   ;;  %v3047_v41 = vld [vmem:[#allocation2 + $0x4c] sm:$0xff] }
 0x168   : > { %3127 = vperm.xlu2 %9744, %v3044_v47   ;;  %v2534_v47 = vld [vmem:[#allocation2 + $0x4f] sm:$0xff] }
 0x169   : > { %2623 = vperm.xlu1 %9743, %v2532_v56   ;;  %v10736_v0 = vpop.permute.xlu0 %1351  ;;  %v2533_v56 = vld [vmem:[#allocation2 + $0x47] sm:$0xff] }
 0x16a   : > { %13243 = vst [vmem:[#allocation76_spill] sm:$0xff] %v10736_v0  ;;  %v10738_v57 = vpop.permute.xlu2 %1585 }
 0x16b   : > { %v10740_v2 = vpop.permute.xlu1 %1341 }
 0x16c   : > { %13244 = vst [vmem:[#allocation77_spill] sm:$0xff] %v10740_v2 }
 0x16f   : > { %2119 = vperm.xlu0 %9742, %v2020_v15   ;;  %v2022_v15 = vld [vmem:[#allocation2 + $0x5a] sm:$0xff] }
 0x170   : > { %2114 = vperm.xlu2 %9744, %v2019_v16   ;;  %v2021_v16 = vld [vmem:[#allocation2 + $0x52] sm:$0xff] }
 0x171   : > { %3137 = vperm.xlu1 %9743, %v3046_v26   ;;  %v10742_v28 = vpop.permute.xlu0 %1366  ;;  %v3048_v26 = vld [vmem:[#allocation2 + $0x54] sm:$0xff] }
 0x172   : > { %13245 = vst [vmem:[#allocation78_spill] sm:$0xff] %v10742_v28  ;;  %v10744_v48 = vpop.permute.xlu2 %1600 }
 0x173   : > { %v10746_v27 = vpop.permute.xlu1 %1356 }
 0x174   : > { %13246 = vst [vmem:[#allocation79_spill] sm:$0xff] %v10746_v27 }
 0x177   : > { %3142 = vperm.xlu0 %9742, %v3047_v41   ;;  %v3049_v41 = vld [vmem:[#allocation2 + $0x5c] sm:$0xff] }
 0x178   : > { %2633 = vperm.xlu2 %9744, %v2534_v47   ;;  %v2536_v47 = vld [vmem:[#allocation2 + $0x5f] sm:$0xff] }
 0x179   : > { %2628 = vperm.xlu1 %9743, %v2533_v56   ;;  %v10748_v0 = vpop.permute.xlu0 %1575  ;;  %v2535_v56 = vld [vmem:[#allocation2 + $0x57] sm:$0xff] }
 0x17a   : > { %v10750_v2 = vpop.permute.xlu2 %1615 }
 0x17b   : > { %v10752_v34 = vpop.permute.xlu1 %1565 }
 0x17f   : > { %2129 = vperm.xlu0 %9742, %v2022_v15   ;;  %v2024_v15 = vld [vmem:[#allocation2 + $0x6a] sm:$0xff] }
 0x180   : > { %2124 = vperm.xlu2 %9744, %v2021_v16   ;;  %v2023_v16 = vld [vmem:[#allocation2 + $0x62] sm:$0xff] }
 0x181   : > { %3147 = vperm.xlu1 %9743, %v3048_v26   ;;  %v10754_v28 = vpop.permute.xlu0 %1590  ;;  %v3050_v26 = vld [vmem:[#allocation2 + $0x64] sm:$0xff] }
 0x182   : > { %v10756_v27 = vpop.permute.xlu2 %1630 }
 0x183   : > { %v10758_v40 = vpop.permute.xlu1 %1580 }
 0x187   : > { %3152 = vperm.xlu0 %9742, %v3049_v41   ;;  %v3051_v41 = vld [vmem:[#allocation2 + $0x6c] sm:$0xff] }
 0x188   : > { %2643 = vperm.xlu2 %9744, %v2536_v47   ;;  %v2538_v47 = vld [vmem:[#allocation2 + $0x6f] sm:$0xff] }
 0x189   : > { %2638 = vperm.xlu1 %9743, %v2535_v56   ;;  %v10760_v1 = vpop.permute.xlu0 %1605  ;;  %v2537_v56 = vld [vmem:[#allocation2 + $0x67] sm:$0xff] }
 0x18a   : > { %v10762_v21 = vpop.permute.xlu2 %1645 }
 0x18b   : > { %v10764_v14 = vpop.permute.xlu1 %1595 }
 0x18f   : > { %2139 = vperm.xlu0 %9742, %v2024_v15   ;;  %v2026_v15 = vld [vmem:[#allocation2 + $0x7a] sm:$0xff] }
 0x190   : > { %2134 = vperm.xlu2 %9744, %v2023_v16   ;;  %v2025_v16 = vld [vmem:[#allocation2 + $0x72] sm:$0xff] }
 0x191   : > { %3157 = vperm.xlu1 %9743, %v3050_v26   ;;  %v10766_v13 = vpop.permute.xlu0 %1620  ;;  %v3052_v26 = vld [vmem:[#allocation2 + $0x74] sm:$0xff] }
 0x192   : > { %v2080_v8 = vpop.permute.xlu2 %2079 }
 0x193   : > { %v10768_v55 = vpop.permute.xlu1 %1610 }
 0x197   : > { %3162 = vperm.xlu0 %9742, %v3051_v41   ;;  %v3053_v41 = vld [vmem:[#allocation2 + $0x7c] sm:$0xff] }
 0x198   : > { %2653 = vperm.xlu2 %9744, %v2538_v47   ;;  %v2540_v47 = vld [vmem:[#allocation2 + $0x7f] sm:$0xff] }
 0x199   : > { %2648 = vperm.xlu1 %9743, %v2537_v56   ;;  %v10770_v33 = vpop.permute.xlu0 %1635  ;;  %v2539_v56 = vld [vmem:[#allocation2 + $0x77] sm:$0xff] }
 0x19a   : > { %v10772_v59 = vpop.permute.xlu2 %2094 }
 0x19b   : > { %v10774_v39 = vpop.permute.xlu1 %1625 }
 0x19f   : > { %2149 = vperm.xlu0 %9742, %v2026_v15   ;;  %v2028_v15 = vld [vmem:[#allocation2 + $0x8a] sm:$0xff] }
 0x1a0   : > { %2144 = vperm.xlu2 %9744, %v2025_v16   ;;  %v2027_v16 = vld [vmem:[#allocation2 + $0x82] sm:$0xff] }
 0x1a1   : > { %3167 = vperm.xlu1 %9743, %v3052_v26   ;;  %v10776_v20 = vpop.permute.xlu0 %1650  ;;  %v3054_v26 = vld [vmem:[#allocation2 + $0x84] sm:$0xff] }
 0x1a2   : > { %13247 = vst [vmem:[#allocation80_spill] sm:$0xff] %v10776_v20  ;;  %v10778_v50 = vpop.permute.xlu2 %2099  ;;  %v10811_v20 = vld [vmem:[#allocation8] ss:$0 sm:$0xff] }
 0x1a3   : > { %v10780_v22 = vpop.permute.xlu1 %1640 }
 0x1a7   : > { %3172 = vperm.xlu0 %9742, %v3053_v41   ;;  %v2541_v41 = vld [vmem:[#allocation2 + $0x87] sm:$0xff] }
 0x1a8   : > { %2663 = vperm.xlu2 %9744, %v2540_v47   ;;  %v10788_v47 = vld [vmem:[#allocation6] ss:$0 sm:$0xff] }
 0x1a9   : > { %2658 = vperm.xlu1 %9743, %v2539_v56   ;;  %v2085_v7 = vpop.permute.xlu0 %2084  ;;  %v10790_v56 = vld [vmem:[#allocation6 + $0x1] ss:$0 sm:$0xff]  ;;  %v1370_v24 = vmul.f32 %v10788_v47, %v10601_v43 }
 0x1aa   : > { %v10782_v44 = vpop.permute.xlu2 %2608 }
 0x1ab   : > { %v10784_v9 = vpop.permute.xlu1 %1655 }
 0x1af   : > { %2159 = vperm.xlu0 %9742, %v2028_v15   ;;  %v1884_v15 = vmul.f32 %v10790_v56, %v10752_v34  ;;  %v1372_v34 = vmul.f32 %v10788_v47, %v10618_v54  ;;  %v1888_v54 = vmul.f32 %v10790_v56, %v10738_v57 }
 0x1b0   : > { %2154 = vperm.xlu2 %9744, %v2027_v16  }
 0x1b1   : > { %3177 = vperm.xlu1 %9743, %v3054_v26   ;;  %v2594_v58 = vpop.permute.xlu0 %2593  ;;  %v1948_v38 = vadd.f32 %v1884_v15, %v1370_v24 }
 0x1b2   : > { %v10786_v36 = vpop.permute.xlu2 %2109 }
 0x1b3   : > { %v2090_v61 = vpop.permute.xlu1 %2089 }
 0x1b4   : > { %v2400_v43 = vmul.f32 %v10792_v52, %v2090_v61 }
 0x1b7   : > { %3182 = vperm.xlu0 %9742, %v3055_v49   ;;  %v2398_v49 = vmul.f32 %v10792_v52, %v2080_v8 }
 0x1b8   : > { %2673 = vperm.xlu2 %9744, %v2542_v31   ;;  %v1886_v31 = vmul.f32 %v10790_v56, %v10748_v0 }
 0x1b9   : > { %2668 = vperm.xlu1 %9743, %v2541_v41   ;;  %v10794_v42 = vpop.permute.xlu0 %2104  ;;  %v2912_v41 = vmul.f32 %v10801_v46, %v2594_v58  ;;  %v2462_v11 = vadd.f32 %v2398_v49, %v1948_v38  ;;  %v1371_v49 = vmul.f32 %v10788_v47, %v10611_v51 }
 0x1ba   : > { %v3118_v16 = vpop.permute.xlu2 %3117  ;;  %v1950_v5 = vadd.f32 %v1886_v31, %v1372_v34  ;;  %v2399_v31 = vmul.f32 %v10792_v52, %v2085_v7 }
 0x1bb   : > { %v2599_v26 = vpop.permute.xlu1 %2598  ;;  %v2976_v24 = vadd.f32 %v2912_v41, %v2462_v11  ;;  %v1374_v11 = vmul.f32 %v10788_v47, %v10587_v30  ;;  %v2544_v41 = vld [vmem:[#allocation2 + $0x9f] sm:$0xff]  ;;  %v3428_v34 = vmul.f32 %v10809_v32, %v3118_v16 }
 0x1bc   : > { %v2464_v38 = vadd.f32 %v2400_v43, %v1950_v5  ;;  %v2543_v43 = vld [vmem:[#allocation2 + $0x97] sm:$0xff] }
 0x1bd   : > { %v1952_v30 = vadd.f32 %v1888_v54, %v1374_v11 }
 0x1bf   : > { %2169 = vperm.xlu0 %9742, %v2030_v35   ;;  %v1885_v35 = vmul.f32 %v10790_v56, %v10732_v3  ;;  %v2402_v3 = vmul.f32 %v10792_v52, %v10778_v50 }
 0x1c0   : > { %2164 = vperm.xlu2 %9744, %v2029_v18  }
 0x1c1   : > { %3187 = vperm.xlu1 %9743, %v3056_v29   ;;  %v3108_v8 = vpop.permute.xlu0 %3107  ;;  %v3057_v29 = vld [vmem:[#allocation2 + $0x9c] sm:$0xff]  ;;  %v2466_v23 = vadd.f32 %v2402_v3, %v1952_v30  ;;  %v2401_v3 = vmul.f32 %v10792_v52, %v10772_v59 }
 0x1c2   : > { %v3128_v15 = vpop.permute.xlu2 %3127  ;;  %v3426_v58 = vmul.f32 %v10809_v32, %v3108_v8  ;;  %v1949_v8 = vadd.f32 %v1885_v35, %v1371_v49 }
 0x1c3   : > { %v2604_v0 = vpop.permute.xlu1 %2603  ;;  %v3430_v54 = vmul.f32 %v10809_v32, %v3128_v15  ;;  %v1517_v15 = vld [vmem:[#allocation2 + $0x9d] sm:$0xff] }
 0x1c4   : > { %v2914_v61 = vmul.f32 %v10801_v46, %v2604_v0  ;;  %v3490_v18 = vadd.f32 %v3426_v58, %v2976_v24  ;;  %v2913_v24 = vmul.f32 %v10801_v46, %v2599_v26  ;;  %v2463_v7 = vadd.f32 %v2399_v31, %v1949_v8  ;;  %v1518_v31 = vld [vmem:[#allocation2 + $0xa5] sm:$0xff] }
 0x1c5   : > { %v1887_v26 = vmul.f32 %v10790_v56, %v10758_v40  ;;  %v2915_v8 = vmul.f32 %v10801_v46, %v10782_v44 }
 0x1c6   : > { %v2978_v57 = vadd.f32 %v2914_v61, %v2464_v38  ;;  %v3558_v5 = vadd.f32 %v10811_v20, %v3490_v18  ;;  %v2977_v35 = vadd.f32 %v2913_v24, %v2463_v7 }
 0x1c7   : > { %3192 = vperm.xlu0 %9742, %v3057_v29  }
 0x1c8   : > { %v3492_v58 = vadd.f32 %v3428_v34, %v2978_v57  ;;  %vm3622_vm4 = vcmp.gt.f32.partialorder %v3558_v5, 0.0  ;;  %v3686_v51 = vmul.f32 0.01, %v3558_v5  ;;  %2683 = vperm.xlu2 %9744, %v2544_v41   ;;  %v1373_v41 = vmul.f32 %v10788_v47, %v10630_v63  ;;  %v3058_v34 = vld [vmem:[#allocation2 + $0xa4] sm:$0xff] }
 0x1c9   : > { %2678 = vperm.xlu1 %9743, %v2543_v43   ;;  %v2614_v0 = vpop.permute.xlu0 %2613  ;;  %v1889_v63 = vmul.f32 %v10790_v56, %v10754_v28 }
 0x1ca   : > { %v3560_v50 = vadd.f32 %v10811_v20, %v3492_v58  ;;  %v3750_v16 = vsel %vm3622_vm4, %v3558_v5, %v3686_v51  ;;  %v10830_v38 = vpop.permute.xlu2 %2114  ;;  %v2916_v61 = vmul.f32 %v10801_v46, %v2614_v0  ;;  %v1951_v43 = vadd.f32 %v1887_v26, %v1373_v41 }
 0x1cb   : > { %3815 = vst.msk [vmem:[#allocation3] sm:$0xff] %vm3814_vm3, %v3750_v16  ;;  %v3113_v18 = vpop.permute.xlu1 %3112  ;;  %v1375_v16 = vmul.f32 %v10788_v47, %v10595_v37 }
 0x1cc   : > { %vm3624_vm5 = vcmp.gt.f32.partialorder %v3560_v50, 0.0  ;;  %v3688_v29 = vmul.f32 0.01, %v3560_v50  ;;  %v3427_v11 = vmul.f32 %v10809_v32, %v3113_v18  ;;  %v2980_v49 = vadd.f32 %v2916_v61, %v2466_v23  ;;  %v2032_v18 = vld [vmem:[#allocation2 + $0xaa] sm:$0xff] }
 0x1cd   : > { %v2465_v59 = vadd.f32 %v2401_v3, %v1951_v43  ;;  %v2403_v61 = vmul.f32 %v10792_v52, %v10794_v42 }
 0x1ce   : > { %v3752_v40 = vsel %vm3624_vm5, %v3560_v50, %v3688_v29  ;;  %v3491_v57 = vadd.f32 %v3427_v11, %v2977_v35  ;;  %v3494_v5 = vadd.f32 %v3430_v54, %v2980_v49  ;;  %v2545_v35 = vld [vmem:[#allocation2 + $0xa7] sm:$0xff]  ;;  %v1953_v29 = vadd.f32 %v1889_v63, %v1375_v16 }
 0x1cf   : > { %3817 = vst.msk [vmem:[#allocation3 + $0x10] sm:$0xff] %vm3814_vm3, %v3752_v40  ;;  %1665 = vperm.xlu0 %9742, %v1518_v31   ;;  %v2979_v44 = vadd.f32 %v2915_v8, %v2465_v59  ;;  %v2031_v49 = vld [vmem:[#allocation2 + $0xa2] sm:$0xff]  ;;  %v3059_v59 = vld [vmem:[#allocation2 + $0xac] sm:$0xff] }
 0x1d0   : > { %v3559_v23 = vadd.f32 %v10811_v20, %v3491_v57  ;;  %v3562_v24 = vadd.f32 %v10811_v20, %v3494_v5  ;;  %3197 = vperm.xlu2 %9744, %v3058_v34   ;;  %v2467_v37 = vadd.f32 %v2403_v61, %v1953_v29 }
 0x1d1   : > { %1660 = vperm.xlu1 %9743, %v1517_v15   ;;  %v3123_v30 = vpop.permute.xlu0 %3122  ;;  %v1890_v15 = vmul.f32 %v10790_v56, %v10764_v14 }
 0x1d2   : > { %vm3623_vm6 = vcmp.gt.f32.partialorder %v3559_v23, 0.0  ;;  %v3687_v58 = vmul.f32 0.01, %v3559_v23  ;;  %vm3626_vm7 = vcmp.gt.f32.partialorder %v3562_v24, 0.0  ;;  %v3690_v51 = vmul.f32 0.01, %v3562_v24  ;;  %v10849_v7 = vpop.permute.xlu2 %2633 }
 0x1d3   : > { %v2619_v0 = vpop.permute.xlu1 %2618  ;;  %v3429_v50 = vmul.f32 %v10809_v32, %v3123_v30  ;;  %v1376_v30 = vmul.f32 %v10788_v47, %v10623_v60 }
 0x1d4   : > { %v3751_v28 = vsel %vm3623_vm6, %v3559_v23, %v3687_v58  ;;  %v3754_v26 = vsel %vm3626_vm7, %v3562_v24, %v3690_v51  ;;  %v2917_v11 = vmul.f32 %v10801_v46, %v2619_v0  ;;  %v1519_v24 = vld [vmem:[#allocation2 + $0xad] sm:$0xff]  ;;  %v2404_v58 = vmul.f32 %v10792_v52, %v10786_v36 }
 0x1d5   : > { %3816 = vst.msk [vmem:[#allocation3 + $0x8] sm:$0xff] %vm3814_vm3, %v3751_v28  ;;  %v3493_v54 = vadd.f32 %v3429_v50, %v2979_v44  ;;  %v2546_v0 = vld [vmem:[#allocation2 + $0xaf] sm:$0xff]  ;;  %v1954_v14 = vadd.f32 %v1890_v15, %v1376_v30  ;;  %v2405_v15 = vmul.f32 %v10792_v52, %v10830_v38 }
 0x1d6   : > { %3819 = vst.msk [vmem:[#allocation3 + $0x20] sm:$0xff] %vm3814_vm3, %v3754_v26  ;;  %v2981_v3 = vadd.f32 %v2917_v11, %v2467_v37  ;;  %v1520_v37 = vld [vmem:[#allocation2 + $0xb5] sm:$0xff] }
 0x1d7   : > { %v3561_v31 = vadd.f32 %v10811_v20, %v3493_v54  ;;  %2688 = vperm.xlu0 %9742, %v2545_v35   ;;  %v2468_v60 = vadd.f32 %v2404_v58, %v1954_v14  ;;  %v2547_v14 = vld [vmem:[#allocation2 + $0xb7] sm:$0xff] }
 0x1d8   : > { %2179 = vperm.xlu2 %9744, %v2032_v18  }
 0x1d9   : > { %vm3625_vm8 = vcmp.gt.f32.partialorder %v3561_v31, 0.0  ;;  %v3689_v42 = vmul.f32 0.01, %v3561_v31  ;;  %2174 = vperm.xlu1 %9743, %v2031_v49   ;;  %v3133_v41 = vpop.permute.xlu0 %3132  ;;  %v2033_v49 = vld [vmem:[#allocation2 + $0xb2] sm:$0xff] }
 0x1da   : > { %v10860_v34 = vpop.permute.xlu2 %2124  ;;  %v3431_v40 = vmul.f32 %v10809_v32, %v3133_v41 }
 0x1db   : > { %v3753_v57 = vsel %vm3625_vm8, %v3561_v31, %v3689_v42  ;;  %v2624_v5 = vpop.permute.xlu1 %2623  ;;  %v1891_v42 = vmul.f32 %v10790_v56, %v10744_v48 }
 0x1dc   : > { %v3879_v43 = vld [vmem:[#allocation3] ss:$2 sm:$0xff]  ;;  %v3943_v8 = vld [vmem:[#allocation3 + $0x1] ss:$2 sm:$0xff]  ;;  %v3495_v23 = vadd.f32 %v3431_v40, %v2981_v3  ;;  %3818 = vst.msk [vmem:[#allocation3 + $0x18] sm:$0xff] %vm3814_vm3, %v3753_v57  ;;  %v2918_v16 = vmul.f32 %v10801_v46, %v2624_v5  ;;  %v1377_v5 = vmul.f32 %v10788_v47, %v10637_v6  ;;  %v1378_v6 = vmul.f32 %v10788_v47, %v10605_v45 }
 0x1dd   : > { %v4070_v63 = vmax.f32 %v3879_v43, %v3943_v8  ;;  %v4007_v51 = vld [vmem:[#allocation3 + $0x2] ss:$2 sm:$0xff] }
 0x1de   : > { %v3563_v44 = vadd.f32 %v10811_v20, %v3495_v23  ;;  %v2982_v29 = vadd.f32 %v2918_v16, %v2468_v60  ;;  %v3060_v40 = vld [vmem:[#allocation2 + $0xb4] sm:$0xff]  ;;  %v1892_v23 = vmul.f32 %v10790_v56, %v10760_v1 }
 0x1df   : > { %v4102_v50 = vmax.f32 %v4070_v63, %v4007_v51  ;;  %1670 = vperm.xlu0 %9742, %v1519_v24   ;;  %v1955_v24 = vadd.f32 %v1891_v42, %v1377_v5 }
 0x1e0   : > { %vm3627_vm9 = vcmp.gt.f32.partialorder %v3563_v44, 0.0  ;;  %v3691_v61 = vmul.f32 0.01, %v3563_v44  ;;  %3202 = vperm.xlu2 %9744, %v3059_v59  }
 0x1e1   : > { %4137 = vst.msk [vmem:[#allocation2 + $0xa] sm:$0xff] %vm3814_vm3, %v4102_v50  ;;  %2693 = vperm.xlu1 %9743, %v2546_v0   ;;  %v2120_v28 = vpop.permute.xlu0 %2119  ;;  %v2469_v58 = vadd.f32 %v2405_v15, %v1955_v24  ;;  %v1956_v0 = vadd.f32 %v1892_v23, %v1378_v6  ;;  %v2407_v23 = vmul.f32 %v10792_v52, %v10860_v34 }
 0x1e2   : > { %v3755_v26 = vsel %vm3627_vm9, %v3563_v44, %v3691_v61  ;;  %v10873_v35 = vpop.permute.xlu2 %2643  ;;  %v2406_v59 = vmul.f32 %v10792_v52, %v2120_v28  ;;  %v2548_v44 = vld [vmem:[#allocation2 + $0xbf] sm:$0xff]  ;;  %v2920_v28 = vmul.f32 %v10801_v46, %v10849_v7  ;;  %v1893_v7 = vmul.f32 %v10790_v56, %v10768_v55 }
 0x1e3   : > { %3820 = vst.msk [vmem:[#allocation3 + $0x28] sm:$0xff] %vm3814_vm3, %v3755_v26  ;;  %v3138_v36 = vpop.permute.xlu1 %3137  ;;  %v3881_v54 = vld [vmem:[#allocation3 + $0x10] ss:$2 sm:$0xff]  ;;  %v3945_v18 = vld [vmem:[#allocation3 + $0x11] ss:$2 sm:$0xff]  ;;  %v2034_v61 = vld [vmem:[#allocation2 + $0xba] sm:$0xff] }
 0x1e4   : > { %v3432_v11 = vmul.f32 %v10809_v32, %v3138_v36  ;;  %v4071_v31 = vmax.f32 %v3881_v54, %v3945_v18  ;;  %v4009_v41 = vld [vmem:[#allocation3 + $0x12] ss:$2 sm:$0xff]  ;;  %v2470_v60 = vadd.f32 %v2406_v59, %v1956_v0  ;;  %v1380_v59 = vmul.f32 %v10788_v47, %v10643_v12 }
 0x1e5   : > { %vm5364_vm9 = vcmask 261120  }
 0x1e6   : > { %v3496_v3 = vadd.f32 %v3432_v11, %v2982_v29  ;;  %v4103_v57 = vmax.f32 %v4071_v31, %v4009_v41  ;;  %v2984_v31 = vadd.f32 %v2920_v28, %v2470_v60 }
 0x1e7   : > { %2184 = vperm.xlu0 %9742, %v2033_v49  }
 0x1e8   : > { %v3564_v43 = vadd.f32 %v10811_v20, %v3496_v3  ;;  %1675 = vperm.xlu2 %9744, %v1520_v37   ;;  %v4173_v8 = vld [vmem:[#allocation2 + $0x8] sm:$0xff]  ;;  %4138 = vst.msk [vmem:[#allocation2 + $0x12] sm:$0xff] %vm3814_vm3, %v4103_v57  ;;  %v1521_v3 = vld [vmem:[#allocation2 + $0xbd] sm:$0xff] }
 0x1e9   : > { %3207 = vperm.xlu1 %9743, %v3060_v40   ;;  %v3143_v48 = vpop.permute.xlu0 %3142  ;;  %4205 = vst.msk [vmem:[#allocation4 + $0x18] sm:$0xff] %vm3814_vm3, %v4173_v8  ;;  %v1379_v8 = vmul.f32 %v10788_v47, %v10633_v4  ;;  %v1894_v4 = vmul.f32 %v10790_v56, %v10750_v2 }
 0x1ea   : > { %vm3628_vm10 = vcmp.gt.f32.partialorder %v3564_v43, 0.0  ;;  %v10887_v63 = vpop.permute.xlu2 %2134  ;;  %v3692_v38 = vmul.f32 0.01, %v3564_v43  ;;  %v3433_v51 = vmul.f32 %v10809_v32, %v3143_v48  ;;  %v3883_v26 = vld [vmem:[#allocation3 + $0x20] ss:$2 sm:$0xff] }
 0x1eb   : > { %v2629_v30 = vpop.permute.xlu1 %2628  ;;  %v3947_v36 = vld [vmem:[#allocation3 + $0x21] ss:$2 sm:$0xff]  ;;  %v1957_v55 = vadd.f32 %v1893_v7, %v1379_v8  ;;  %v1895_v7 = vmul.f32 %v10790_v56, %v10766_v13  ;;  %v1381_v8 = vmul.f32 %v10788_v47, %v10615_v53 }
 0x1ec   : > { %v2919_v1 = vmul.f32 %v10801_v46, %v2629_v30  ;;  %v3756_v50 = vsel %vm3628_vm10, %v3564_v43, %v3692_v38  ;;  %v4072_v37 = vmax.f32 %v3883_v26, %v3947_v36  ;;  %v3061_v43 = vld [vmem:[#allocation2 + $0xbc] sm:$0xff]  ;;  %v4236_v48 = vld [vmem:[#allocation2 + $0x5] sm:$0xff] }
 0x1ed   : > { %3821 = vst.msk [vmem:[#allocation3 + $0x30] sm:$0xff] %vm3814_vm3, %v3756_v50  ;;  %v2471_v30 = vadd.f32 %v2407_v23, %v1957_v55  ;;  %v1958_v50 = vadd.f32 %v1894_v4, %v1380_v59  ;;  %v2409_v23 = vmul.f32 %v10792_v52, %v10887_v63  ;;  %v1896_v55 = vmul.f32 %v10790_v56, %v10774_v39  ;;  %v2549_v39 = vld [vmem:[#allocation2 + $0xc7] sm:$0xff] }
 0x1ee   : > { %v2983_v16 = vadd.f32 %v2919_v1, %v2469_v58  ;;  %v1382_v63 = vmul.f32 %v10788_v47, %v10639_v10 }
 0x1ef   : > { %2703 = vperm.xlu0 %9742, %v2548_v44   ;;  %v4174_v18 = vld [vmem:[#allocation2 + $0x10] sm:$0xff] }
 0x1f0   : > { %v3497_v45 = vadd.f32 %v3433_v51, %v2983_v16  ;;  %2698 = vperm.xlu2 %9744, %v2547_v14   ;;  %4206 = vst.msk [vmem:[#allocation4 + $0x30] sm:$0xff] %vm3814_vm3, %v4174_v18  ;;  %v3062_v14 = vld [vmem:[#allocation2 + $0xc4] sm:$0xff]  ;;  %v4624_v16 = vld [vmem:[#allocation2 + $0xf] sm:$0xff] }
 0x1f1   : > { %2189 = vperm.xlu1 %9743, %v2034_v61   ;;  %v2130_v54 = vpop.permute.xlu0 %2129  ;;  %v4430_v61 = vld [vmem:[#allocation2 + $0xa] sm:$0xff] }
 0x1f2   : > { %v3565_v29 = vadd.f32 %v10811_v20, %v3497_v45  ;;  %v10899_v11 = vpop.permute.xlu2 %2653  ;;  %v2408_v51 = vmul.f32 %v10792_v52, %v2130_v54  ;;  %v2922_v54 = vmul.f32 %v10801_v46, %v10873_v35  ;;  %v1522_v35 = vld [vmem:[#allocation2 + $0xc5] sm:$0xff] }
 0x1f3   : > { %v3148_v49 = vpop.permute.xlu1 %3147 }
 0x1f4   : > { %vm3629_vm11 = vcmp.gt.f32.partialorder %v3565_v29, 0.0  ;;  %v3693_v42 = vmul.f32 0.01, %v3565_v29  ;;  %v3434_v41 = vmul.f32 %v10809_v32, %v3148_v49  ;;  %v4011_v40 = vld [vmem:[#allocation3 + $0x22] ss:$2 sm:$0xff]  ;;  %v2472_v45 = vadd.f32 %v2408_v51, %v1958_v50  ;;  %v2550_v51 = vld [vmem:[#allocation2 + $0xcf] sm:$0xff] }
 0x1f5   : > { %v4104_v57 = vmax.f32 %v4072_v37, %v4011_v40  ;;  %v2036_v50 = vld [vmem:[#allocation2 + $0xca] sm:$0xff] }
 0x1f6   : > { %v3757_v5 = vsel %vm3629_vm11, %v3565_v29, %v3693_v42  ;;  %v3498_v15 = vadd.f32 %v3434_v41, %v2984_v31  ;;  %v2986_v41 = vadd.f32 %v2922_v54, %v2472_v45  ;;  %vm4396_vm11 = vcmask 261248  }
 0x1f7   : > { %3822 = vst.msk [vmem:[#allocation3 + $0x38] sm:$0xff] %vm3814_vm3, %v3757_v5  ;;  %1680 = vperm.xlu0 %9742, %v1521_v3  }
 0x1f8   : > { %4139 = vst.msk [vmem:[#allocation2 + $0x1a] sm:$0xff] %vm3814_vm3, %v4104_v57  ;;  %v3566_v24 = vadd.f32 %v10811_v20, %v3498_v15  ;;  %4300 = vrot.lane.b32.xlu2 %v4236_v48, %s10229_s5  ;;  %v2035_v57 = vld [vmem:[#allocation2 + $0xc2] sm:$0xff]  ;;  %v1959_v48 = vadd.f32 %v1895_v7, %v1381_v8 }
 0x1f9   : > { %3212 = vperm.xlu1 %9743, %v3061_v43   ;;  %v3153_v6 = vpop.permute.xlu0 %3152 }
 0x1fa   : > { %vm3630_vm12 = vcmp.gt.f32.partialorder %v3566_v24, 0.0  ;;  %v3694_v38 = vmul.f32 0.01, %v3566_v24  ;;  %v10915_v34 = vpop.permute.xlu2 %2144  ;;  %v3435_v0 = vmul.f32 %v10809_v32, %v3153_v6  ;;  %v2473_v4 = vadd.f32 %v2409_v23, %v1959_v48 }
 0x1fb   : > { %v2639_v58 = vpop.permute.xlu1 %2638 }
 0x1fc   : > { %v3758_v1 = vsel %vm3630_vm12, %v3566_v24, %v3694_v38  ;;  %v2921_v44 = vmul.f32 %v10801_v46, %v2639_v58 }
 0x1fd   : > { %3823 = vst.msk [vmem:[#allocation3 + $0x40] sm:$0xff] %vm3814_vm3, %v3758_v1 }
 0x1fe   : > { %v2985_v2 = vadd.f32 %v2921_v44, %v2471_v30  ;;  %v3885_v12 = vld [vmem:[#allocation3 + $0x30] ss:$2 sm:$0xff]  ;;  %v3949_v60 = vld [vmem:[#allocation3 + $0x31] ss:$2 sm:$0xff]  ;;  %v1960_v44 = vadd.f32 %v1896_v55, %v1382_v63 }
 0x1ff   : > { %4688 = vrot.lane.b32.xlu0 %v4624_v16, %s10230_s27  ;;  %v4175_v26 = vld [vmem:[#allocation2 + $0x18] sm:$0xff]  ;;  %v4073_v49 = vmax.f32 %v3885_v12, %v3949_v60  ;;  %v2924_v60 = vmul.f32 %v10801_v46, %v10899_v11  ;;  %v3063_v11 = vld [vmem:[#allocation2 + $0xcc] sm:$0xff] }
 0x200   : > { %v3499_v28 = vadd.f32 %v3435_v0, %v2985_v2  ;;  %4494 = vrot.lane.b32.xlu2 %v4430_v61, %s10231_s2  ;;  %4207 = vst.msk [vmem:[#allocation4 + $0x48] sm:$0xff] %vm3814_vm3, %v4175_v26  ;;  %v4818_v43 = vld [vmem:[#allocation2 + $0x14] sm:$0xff] }
 0x201   : > { %3217 = vperm.xlu1 %9743, %v3062_v14   ;;  %v2140_v36 = vpop.permute.xlu0 %2139 }
 0x202   : > { %v3567_v18 = vadd.f32 %v10811_v20, %v3499_v28  ;;  %v10929_v29 = vpop.permute.xlu2 %2663  ;;  %v2410_v30 = vmul.f32 %v10792_v52, %v2140_v36 }
 0x203   : > { %v3158_v31 = vpop.permute.xlu1 %3157 }
 0x204   : > { %v4013_v37 = vld [vmem:[#allocation3 + $0x32] ss:$2 sm:$0xff]  ;;  %vm3631_vm13 = vcmp.gt.f32.partialorder %v3567_v18, 0.0  ;;  %v3695_v42 = vmul.f32 0.01, %v3567_v18  ;;  %v3436_v3 = vmul.f32 %v10809_v32, %v3158_v31  ;;  %v2474_v10 = vadd.f32 %v2410_v30, %v1960_v44 }
 0x205   : > { %v4105_v40 = vmax.f32 %v4073_v49, %v4013_v37  ;;  %v1523_v37 = vld [vmem:[#allocation2 + $0xcd] sm:$0xff]  ;;  %v2926_v44 = vmul.f32 %v10801_v46, %v10929_v29 }
 0x206   : > { %v3759_v5 = vsel %vm3631_vm13, %v3567_v18, %v3695_v42  ;;  %v3500_v15 = vadd.f32 %v3436_v3, %v2986_v41  ;;  %v2988_v49 = vadd.f32 %v2924_v60, %v2474_v10  ;;  %v1897_v42 = vmul.f32 %v10790_v56, %v10756_v27 }
 0x207   : > { %4140 = vst.msk [vmem:[#allocation2 + $0x22] sm:$0xff] %vm3814_vm3, %v4105_v40  ;;  %4882 = vrot.lane.b32.xlu0 %v4818_v43, %s10232_s10  ;;  %v1383_v40 = vmul.f32 %v10788_v47, %v10649_v19  ;;  %v1898_v43 = vmul.f32 %v10790_v56, %v10770_v33  ;;  %vm4590_vm13 = vcmask 392448  }
 0x208   : > { %3824 = vst.msk [vmem:[#allocation3 + $0x48] sm:$0xff] %vm3814_vm3, %v3759_v5  ;;  %v3568_v13 = vadd.f32 %v10811_v20, %v3500_v15  ;;  %2194 = vperm.xlu2 %9744, %v2035_v57   ;;  %v2411_v57 = vmul.f32 %v10792_v52, %v10915_v34  ;;  %v4237_v5 = vld [vmem:[#allocation2 + $0xd] sm:$0xff]  ;;  %v1384_v34 = vmul.f32 %v10788_v47, %v10627_v62 }
 0x209   : > { %1685 = vperm.xlu1 %9743, %v1522_v35   ;;  %v3163_v24 = vpop.permute.xlu0 %3162  ;;  %v1961_v27 = vadd.f32 %v1897_v42, %v1383_v40 }
 0x20a   : > { %vm3632_vm14 = vcmp.gt.f32.partialorder %v3568_v13, 0.0  ;;  %v3696_v53 = vmul.f32 0.01, %v3568_v13  ;;  %v10944_v6 = vpop.permute.xlu2 %2154  ;;  %v3437_v1 = vmul.f32 %v10809_v32, %v3163_v24  ;;  %v1962_v63 = vadd.f32 %v1898_v43, %v1384_v34  ;;  %v2038_v34 = vld [vmem:[#allocation2 + $0xda] sm:$0xff] }
 0x20b   : > { %v2649_v38 = vpop.permute.xlu1 %2648  ;;  %v2475_v23 = vadd.f32 %v2411_v57, %v1961_v27  ;;  %v2552_v27 = vld [vmem:[#allocation2 + $0xdf] sm:$0xff]  ;;  %v1902_v43 = vmul.f32 %v10790_v56, %v10784_v9 }
 0x20c   : > { %v3760_v59 = vsel %vm3632_vm14, %v3568_v13, %v3696_v53  ;;  %v2923_v58 = vmul.f32 %v10801_v46, %v2649_v38  ;;  %v4625_v38 = vld [vmem:[#allocation2 + $0x17] sm:$0xff] }
 0x20d   : > { %3825 = vst.msk [vmem:[#allocation3 + $0x50] sm:$0xff] %vm3814_vm3, %v3760_v59  ;;  %v4431_v59 = vld [vmem:[#allocation2 + $0x12] sm:$0xff] }
 0x20e   : > { %v2987_v0 = vadd.f32 %v2923_v58, %v2473_v4  ;;  %v4176_v61 = vld [vmem:[#allocation2 + $0x20] sm:$0xff]  ;;  %v3064_v4 = vld [vmem:[#allocation2 + $0xd4] sm:$0xff] }
 0x20f   : > { %2713 = vperm.xlu0 %9742, %v2550_v51   ;;  %v3887_v2 = vld [vmem:[#allocation3 + $0x40] ss:$2 sm:$0xff]  ;;  %v3951_v14 = vld [vmem:[#allocation3 + $0x41] ss:$2 sm:$0xff]  ;;  %4208 = vst.msk [vmem:[#allocation4 + $0x60] sm:$0xff] %vm3814_vm3, %v4176_v61 }
 0x210   : > { %v3501_v16 = vadd.f32 %v3437_v1, %v2987_v0  ;;  %2708 = vperm.xlu2 %9744, %v2549_v39   ;;  %v4074_v26 = vmax.f32 %v3887_v2, %v3951_v14  ;;  %v4819_v29 = vld [vmem:[#allocation2 + $0x1c] sm:$0xff] }
 0x211   : > { %2199 = vperm.xlu1 %9743, %v2036_v50   ;;  %v2150_v12 = vpop.permute.xlu0 %2149 }
 0x212   : > { %v3569_v45 = vadd.f32 %v10811_v20, %v3501_v16  ;;  %v10956_v28 = vpop.permute.xlu2 %2673  ;;  %v2412_v24 = vmul.f32 %v10792_v52, %v2150_v12 }
 0x213   : > { %v3168_v36 = vpop.permute.xlu1 %3167 }
 0x214   : > { %v4015_v54 = vld [vmem:[#allocation3 + $0x42] ss:$2 sm:$0xff]  ;;  %vm3633_vm15 = vcmp.gt.f32.partialorder %v3569_v45, 0.0  ;;  %v3697_v18 = vmul.f32 0.01, %v3569_v45  ;;  %v3438_v31 = vmul.f32 %v10809_v32, %v3168_v36  ;;  %v2476_v58 = vadd.f32 %v2412_v24, %v1962_v63 }
 0x215   : > { %v4106_v41 = vmax.f32 %v4074_v26, %v4015_v54  ;;  %v1899_v26 = vmul.f32 %v10790_v56, %v10780_v22  ;;  %v1900_v22 = vmul.f32 %v10790_v56, %v10762_v21  ;;  %v2928_v63 = vmul.f32 %v10801_v46, %v10956_v28 }
 0x216   : > { %v3761_v3 = vsel %vm3633_vm15, %v3569_v45, %v3697_v18  ;;  %v3502_v7 = vadd.f32 %v3438_v31, %v2988_v49  ;;  %v2990_v61 = vadd.f32 %v2926_v44, %v2476_v58  ;;  %v2037_v45 = vld [vmem:[#allocation2 + $0xd2] sm:$0xff]  ;;  %v1385_v49 = vmul.f32 %v10788_v47, %v10645_v17 }
 0x217   : > { %4141 = vst.msk [vmem:[#allocation2 + $0x2a] sm:$0xff] %vm3814_vm3, %v4106_v41  ;;  %1690 = vperm.xlu0 %9742, %v1523_v37   ;;  %v1524_v18 = vld [vmem:[#allocation2 + $0xd5] sm:$0xff]  ;;  %v2413_v31 = vmul.f32 %v10792_v52, %v10944_v6  ;;  %v1386_v17 = vmul.f32 %v10788_v47, %v10655_v25  ;;  %vm5479_vm15 = vcmask 254976  }
 0x218   : > { %3826 = vst.msk [vmem:[#allocation3 + $0x58] sm:$0xff] %vm3814_vm3, %v3761_v3  ;;  %v3570_v15 = vadd.f32 %v10811_v20, %v3502_v7  ;;  %4302 = vrot.lane.b32.xlu2 %v4237_v5, %s10229_s5  ;;  %v1963_v41 = vadd.f32 %v1899_v26, %v1385_v49  ;;  %v13250_v26 = vld [vmem:[#allocation33_spill] sm:$0xff] }
 0x219   : > { %3222 = vperm.xlu1 %9743, %v3063_v11   ;;  %v3173_v35 = vpop.permute.xlu0 %3172  ;;  %v1964_v21 = vadd.f32 %v1900_v22, %v1386_v17 }
 0x21a   : > { %vm3634_vm1 = vcmp.gt.f32.partialorder %v3570_v15, 0.0  ;;  %v3698_v19 = vmul.f32 0.01, %v3570_v15  ;;  %v10971_v8 = vpop.permute.xlu2 %2164  ;;  %v3439_v53 = vmul.f32 %v10809_v32, %v3173_v35  ;;  %v2477_v40 = vadd.f32 %v2413_v31, %v1963_v41  ;;  %v2551_v35 = vld [vmem:[#allocation2 + $0xd7] sm:$0xff] }
 0x21b   : > { %v2659_v13 = vpop.permute.xlu1 %2658 }
 0x21c   : > { %v3762_v48 = vsel %vm3634_vm1, %v3570_v15, %v3698_v19  ;;  %v2925_v55 = vmul.f32 %v10801_v46, %v2659_v13  ;;  %vm4784_vm1 = vcmask 523648  }
 0x21d   : > { %3827 = vst.msk [vmem:[#allocation3 + $0x60] sm:$0xff] %vm3814_vm3, %v3762_v48 }
 0x21e   : > { %v2989_v33 = vadd.f32 %v2925_v55, %v2475_v23  ;;  %v4177_v51 = vld [vmem:[#allocation2 + $0x28] sm:$0xff]  ;;  %v13248_v23 = vld [vmem:[#allocation36_spill] sm:$0xff] }
 0x21f   : > { %4690 = vrot.lane.b32.xlu0 %v4625_v38, %s10230_s27  ;;  %v3889_v30 = vld [vmem:[#allocation3 + $0x50] ss:$2 sm:$0xff]  ;;  %v3953_v62 = vld [vmem:[#allocation3 + $0x51] ss:$2 sm:$0xff]  ;;  %4209 = vst.msk [vmem:[#allocation4 + $0x78] sm:$0xff] %vm3814_vm3, %v4177_v51  ;;  %v1388_v13 = vmul.f32 %v10788_v47, %v13248_v23  ;;  %v1525_v51 = vld [vmem:[#allocation2 + $0xdd] sm:$0xff] }
 0x220   : > { %v3503_v1 = vadd.f32 %v3439_v53, %v2989_v33  ;;  %4496 = vrot.lane.b32.xlu2 %v4431_v59, %s10231_s2  ;;  %v4075_v2 = vmax.f32 %v3889_v30, %v3953_v62 }
 0x221   : > { %3227 = vperm.xlu1 %9743, %v3064_v4   ;;  %v2160_v39 = vpop.permute.xlu0 %2159  ;;  %v1966_v9 = vadd.f32 %v1902_v43, %v1388_v13  ;;  %v13251_v13 = vmov 0.0  }
 0x222   : > { %v3571_v0 = vadd.f32 %v10811_v20, %v3503_v1  ;;  %v2684_v50 = vpop.permute.xlu2 %2683  ;;  %v2414_v11 = vmul.f32 %v10792_v52, %v2160_v39  ;;  %5480 = vst.msk [vmem:[#allocation2 + $0x8] sm:$0x3] %vm5479_vm15, %v13251_v13 }
 0x223   : > { %v3178_v14 = vpop.permute.xlu1 %3177  ;;  %v2930_v62 = vmul.f32 %v10801_v46, %v2684_v50 }
 0x224   : > { %v4017_v10 = vld [vmem:[#allocation3 + $0x52] ss:$2 sm:$0xff]  ;;  %vm3635_vm4 = vcmp.gt.f32.partialorder %v3571_v0, 0.0  ;;  %v3699_v16 = vmul.f32 0.01, %v3571_v0  ;;  %v3440_v12 = vmul.f32 %v10809_v32, %v3178_v14  ;;  %v2478_v25 = vadd.f32 %v2414_v11, %v1964_v21  ;;  %v13249_v14 = vld [vmem:[#allocation80_spill] sm:$0xff] }
 0x225   : > { %v4107_v60 = vmax.f32 %v4075_v2, %v4017_v10  ;;  %v4172_v2 = vld [vmem:[#allocation2] sm:$0xff]  ;;  %v1901_v10 = vmul.f32 %v10790_v56, %v13249_v14 }
 0x226   : > { %v3763_v36 = vsel %vm3635_vm4, %v3571_v0, %v3699_v16  ;;  %v3504_v54 = vadd.f32 %v3440_v12, %v2990_v61  ;;  %v2992_v1 = vadd.f32 %v2928_v63, %v2478_v25  ;;  %4204 = vst.msk [vmem:[#allocation4] sm:$0xff] %vm3814_vm3, %v4172_v2  ;;  %v2554_v2 = vld [vmem:[#allocation2 + $0xef] sm:$0xff]  ;;  %v2553_v14 = vld [vmem:[#allocation2 + $0xe7] sm:$0xff] }
 0x227   : > { %4142 = vst.msk [vmem:[#allocation2 + $0x32] sm:$0xff] %vm3814_vm3, %v4107_v60  ;;  %4884 = vrot.lane.b32.xlu0 %v4819_v29, %s10232_s10 }
 0x228   : > { %3828 = vst.msk [vmem:[#allocation3 + $0x68] sm:$0xff] %vm3814_vm3, %v3763_v36  ;;  %v3572_v37 = vadd.f32 %v10811_v20, %v3504_v54  ;;  %2204 = vperm.xlu2 %9744, %v2037_v45   ;;  %v3065_v45 = vld [vmem:[#allocation2 + $0xdc] sm:$0xff]  ;;  %v1387_v36 = vmul.f32 %v10788_v47, %v13250_v26  ;;  %v2415_v54 = vmul.f32 %v10792_v52, %v10971_v8 }
 0x229   : > { %1695 = vperm.xlu1 %9743, %v1524_v18   ;;  %v3183_v42 = vpop.permute.xlu0 %3182  ;;  %v4238_v18 = vld [vmem:[#allocation2 + $0x15] sm:$0xff]  ;;  %5478 = vst.msk [vmem:[#allocation2] sm:$0xff] %vm5364_vm9, %v13251_v13 }
 0x22a   : > { %vm3636_vm5 = vcmp.gt.f32.partialorder %v3572_v37, 0.0  ;;  %v3700_v3 = vmul.f32 0.01, %v3572_v37  ;;  %v3198_v7 = vpop.permute.xlu2 %3197  ;;  %v3441_v15 = vmul.f32 %v10809_v32, %v3183_v42  ;;  %v1965_v31 = vadd.f32 %v1901_v10, %v1387_v36 }
 0x22b   : > { %v2669_v6 = vpop.permute.xlu1 %2668  ;;  %v3444_v61 = vmul.f32 %v10809_v32, %v3198_v7 }
 0x22c   : > { %v3764_v57 = vsel %vm3636_vm5, %v3572_v37, %v3700_v3  ;;  %v2927_v5 = vmul.f32 %v10801_v46, %v2669_v6  ;;  %v2479_v8 = vadd.f32 %v2415_v54, %v1965_v31  ;;  %v13254_v31 = vld [vmem:[#allocation34_spill] sm:$0xff]  ;;  %vm4978_vm5 = vcmask 654848  }
 0x22d   : > { %3829 = vst.msk [vmem:[#allocation3 + $0x70] sm:$0xff] %vm3814_vm3, %v3764_v57 }
 0x22e   : > { %v2991_v19 = vadd.f32 %v2927_v5, %v2477_v40  ;;  %v4178_v53 = vld [vmem:[#allocation2 + $0x30] sm:$0xff]  ;;  %v3066_v5 = vld [vmem:[#allocation2 + $0xe4] sm:$0xff] }
 0x22f   : > { %2723 = vperm.xlu0 %9742, %v2552_v27   ;;  %v3891_v48 = vld [vmem:[#allocation3 + $0x60] ss:$2 sm:$0xff]  ;;  %v3955_v24 = vld [vmem:[#allocation3 + $0x61] ss:$2 sm:$0xff]  ;;  %4210 = vst.msk [vmem:[#allocation4 + $0x90] sm:$0xff] %vm3814_vm3, %v4178_v53 }
 0x230   : > { %v3505_v55 = vadd.f32 %v3441_v15, %v2991_v19  ;;  %2718 = vperm.xlu2 %9744, %v2551_v35   ;;  %v4076_v30 = vmax.f32 %v3891_v48, %v3955_v24  ;;  %v4626_v15 = vld [vmem:[#allocation2 + $0x1f] sm:$0xff] }
 0x231   : > { %2209 = vperm.xlu1 %9743, %v2038_v34   ;;  %v2170_v33 = vpop.permute.xlu0 %2169  ;;  %v4432_v27 = vld [vmem:[#allocation2 + $0x1a] sm:$0xff] }
 0x232   : > { %v3573_v4 = vadd.f32 %v10811_v20, %v3505_v55  ;;  %v11012_v38 = vpop.permute.xlu2 %2179  ;;  %v2416_v59 = vmul.f32 %v10792_v52, %v2170_v33  ;;  %v2039_v33 = vld [vmem:[#allocation2 + $0xe2] sm:$0xff] }
 0x233   : > { %v3188_v58 = vpop.permute.xlu1 %3187 }
 0x234   : > { %v4019_v39 = vld [vmem:[#allocation3 + $0x62] ss:$2 sm:$0xff]  ;;  %vm3637_vm6 = vcmp.gt.f32.partialorder %v3573_v4, 0.0  ;;  %v3701_v28 = vmul.f32 0.01, %v3573_v4  ;;  %v3442_v44 = vmul.f32 %v10809_v32, %v3188_v58  ;;  %v2480_v0 = vadd.f32 %v2416_v59, %v1966_v9 }
 0x235   : > { %v4108_v16 = vmax.f32 %v4076_v30, %v4019_v39  ;;  %v4820_v59 = vld [vmem:[#allocation2 + $0x24] sm:$0xff] }
 0x236   : > { %v3765_v12 = vsel %vm3637_vm6, %v3573_v4, %v3701_v28  ;;  %v3506_v50 = vadd.f32 %v3442_v44, %v2992_v1  ;;  %v2994_v60 = vadd.f32 %v2930_v62, %v2480_v0  ;;  %v1526_v4 = vld [vmem:[#allocation2 + $0xe5] sm:$0xff]  ;;  %v13252_v58 = vld [vmem:[#allocation40_spill] sm:$0xff] }
 0x237   : > { %4143 = vst.msk [vmem:[#allocation2 + $0x3a] sm:$0xff] %vm3814_vm3, %v4108_v16  ;;  %1700 = vperm.xlu0 %9742, %v1525_v51   ;;  %v1389_v1 = vmul.f32 %v10788_v47, %v13252_v58  ;;  %v2040_v16 = vld [vmem:[#allocation2 + $0xea] sm:$0xff] }
 0x238   : > { %3830 = vst.msk [vmem:[#allocation3 + $0x78] sm:$0xff] %vm3814_vm3, %v3765_v12  ;;  %v3574_v29 = vadd.f32 %v10811_v20, %v3506_v50  ;;  %v3508_v49 = vadd.f32 %v3444_v61, %v2994_v60  ;;  %4304 = vrot.lane.b32.xlu2 %v4238_v18, %s10229_s5 }
 0x239   : > { %3232 = vperm.xlu1 %9743, %v3065_v45   ;;  %v3193_v37 = vpop.permute.xlu0 %3192 }
 0x23a   : > { %vm3638_vm7 = vcmp.gt.f32.partialorder %v3574_v29, 0.0  ;;  %v3702_v22 = vmul.f32 0.01, %v3574_v29  ;;  %v3576_v42 = vadd.f32 %v10811_v20, %v3508_v49  ;;  %v3203_v41 = vpop.permute.xlu2 %3202  ;;  %v3443_v7 = vmul.f32 %v10809_v32, %v3193_v37  ;;  %v11063_v49 = vld [vmem:[#allocation6] ss:$0 sm:$0xff] }
 0x23b   : > { %v2679_v3 = vpop.permute.xlu1 %2678  ;;  %v3445_v12 = vmul.f32 %v10809_v32, %v3203_v41  ;;  %v5053_v32 = vld [vmem:[%s13253_s3 + $0x48] sm:$0xff]  ;;  %v1390_v37 = vmul.f32 %v11063_v49, %v13254_v31  ;;  %v5052_v41 = vld [vmem:[%s13253_s3 + $0x40] sm:$0xff] }
 0x23c   : > { %v3766_v17 = vsel %vm3638_vm7, %v3574_v29, %v3702_v22  ;;  %vm3640_vm8 = vcmp.gt.f32.partialorder %v3576_v42, 0.0  ;;  %v3704_v11 = vmul.f32 0.01, %v3576_v42  ;;  %v2929_v6 = vmul.f32 %v10801_v46, %v2679_v3  ;;  %5161 = vmatpush.msra.mxu0 %v5053_v32  ;;  %v13256_v32 = vld [vmem:[#allocation43_spill] sm:$0xff] }
 0x23d   : > { %3831 = vst.msk [vmem:[#allocation3 + $0x80] sm:$0xff] %vm3814_vm3, %v3766_v17  ;;  %v4239_v17 = vld [vmem:[#allocation2 + $0x1d] sm:$0xff]  ;;  %v1392_v31 = vmul.f32 %v11063_v49, %v13256_v32  ;;  %vm5058_vm7 = vcmask 654336  }
 0x23e   : > { %v3768_v40 = vsel %vm3640_vm8, %v3576_v42, %v3704_v11  ;;  %v2993_v57 = vadd.f32 %v2929_v6, %v2479_v8  ;;  %v4179_v19 = vld [vmem:[#allocation2 + $0x38] sm:$0xff]  ;;  %v1527_v42 = vld [vmem:[#allocation2 + $0xed] sm:$0xff]  ;;  %5162 = vmatpush.msra.mxu0 %v5052_v41 }
 0x23f   : > { %3833 = vst.msk [vmem:[#allocation3 + $0x90] sm:$0xff] %vm3814_vm3, %v3768_v40  ;;  %4692 = vrot.lane.b32.xlu0 %v4626_v15, %s10230_s27  ;;  %v3893_v21 = vld [vmem:[#allocation3 + $0x70] ss:$2 sm:$0xff]  ;;  %v3957_v35 = vld [vmem:[#allocation3 + $0x71] ss:$2 sm:$0xff]  ;;  %v5051_v11 = vld [vmem:[%s13253_s3 + $0x38] sm:$0xff] }
 0x240   : > { %v3507_v43 = vadd.f32 %v3443_v7, %v2993_v57  ;;  %4498 = vrot.lane.b32.xlu2 %v4432_v27, %s10231_s2  ;;  %4211 = vst.msk [vmem:[#allocation4 + $0xa8] sm:$0xff] %vm3814_vm3, %v4179_v19  ;;  %v4077_v48 = vmax.f32 %v3893_v21, %v3957_v35  ;;  %v3067_v7 = vld [vmem:[#allocation2 + $0xec] sm:$0xff]  ;;  %v11075_v6 = vld [vmem:[#allocation6 + $0x2] ss:$0 sm:$0xff]  ;;  %v11079_v57 = vld [vmem:[#allocation6 + $0x3] ss:$0 sm:$0xff]  ;;  %5163 = vmatpush.msra.mxu0 %v5051_v11 }
 0x241   : > { %3237 = vperm.xlu1 %9743, %v3066_v5   ;;  %v1666_v34 = vpop.permute.xlu0 %1665  ;;  %v5050_v27 = vld [vmem:[%s13253_s3 + $0x30] sm:$0xff]  ;;  %v2042_v11 = vld [vmem:[#allocation2 + $0xfa] sm:$0xff] }
 0x242   : > { %v3575_v25 = vadd.f32 %v10811_v20, %v3507_v43  ;;  %v11038_v23 = vpop.permute.xlu2 %1675  ;;  %5164 = vmatpush.msra.mxu0 %v5050_v27  ;;  %v5049_v43 = vld [vmem:[%s13253_s3 + $0x28] sm:$0xff] }
 0x243   : > { %v1661_v24 = vpop.permute.xlu1 %1660 }
 0x244   : > { %v4021_v55 = vld [vmem:[#allocation3 + $0x72] ss:$2 sm:$0xff]  ;;  %vm3639_vm10 = vcmp.gt.f32.partialorder %v3575_v25, 0.0  ;;  %v3703_v53 = vmul.f32 0.01, %v3575_v25  ;;  %v1903_v30 = vmul.f32 %v10790_v56, %v1661_v24  ;;  %5165 = vmatpush.msra.mxu0 %v5049_v43 }
 0x245   : > { %v4109_v63 = vmax.f32 %v4077_v48, %v4021_v55  ;;  %v5048_v48 = vld [vmem:[%s13253_s3 + $0x20] sm:$0xff] }
 0x246   : > { %v3767_v9 = vsel %vm3639_vm10, %v3575_v25, %v3703_v53  ;;  %v1967_v28 = vadd.f32 %v1903_v30, %v1389_v1  ;;  %v3068_v53 = vld [vmem:[#allocation2 + $0xf4] sm:$0xff]  ;;  %5166 = vmatpush.msra.mxu0 %v5048_v48  ;;  %v3069_v48 = vld [vmem:[#allocation2 + $0xfc] sm:$0xff] }
 0x247   : > { %4144 = vst.msk [vmem:[#allocation2 + $0x42] sm:$0xff] %vm3814_vm3, %v4109_v63  ;;  %4886 = vrot.lane.b32.xlu0 %v4820_v59, %s10232_s10  ;;  %v4627_v63 = vld [vmem:[#allocation2 + $0x27] sm:$0xff] }
 0x248   : > { %3832 = vst.msk [vmem:[#allocation3 + $0x88] sm:$0xff] %vm3814_vm3, %v3767_v9  ;;  %2214 = vperm.xlu2 %9744, %v2039_v33   ;;  %v4433_v33 = vld [vmem:[#allocation2 + $0x22] sm:$0xff]  ;;  %v5047_v9 = vld [vmem:[%s13253_s3 + $0x18] sm:$0xff] }
 0x249   : > { %1705 = vperm.xlu1 %9743, %v1526_v4   ;;  %v2689_v62 = vpop.permute.xlu0 %2688  ;;  %v11102_v4 = vld [vmem:[#allocation8] ss:$0 sm:$0xff]  ;;  %5167 = vmatpush.msra.mxu0 %v5047_v9  ;;  %v1530_v9 = vld [vmem:[#allocation2 + $0x105] sm:$0xff] }
 0x24a   : > { %v11048_v51 = vpop.permute.xlu2 %2698  ;;  %v2931_v0 = vmul.f32 %v10801_v46, %v2689_v62  ;;  %v5046_v62 = vld [vmem:[%s13253_s3 + $0x10] sm:$0xff] }
 0x24b   : > { %v2175_v39 = vpop.permute.xlu1 %2174  ;;  %5168 = vmatpush.msra.mxu0 %v5046_v62 }
 0x24c   : > { %v2417_v44 = vmul.f32 %v10792_v52, %v2175_v39  ;;  %v11056_v52 = vld [vmem:[#allocation6 + $0x1] ss:$0 sm:$0xff] }
 0x24d   : > { %v1904_v36 = vmul.f32 %v11056_v52, %v1666_v34  ;;  %v11091_v34 = vld [vmem:[#allocation6 + $0x4] ss:$0 sm:$0xff] }
 0x24e   : > { %v2481_v10 = vadd.f32 %v2417_v44, %v1967_v28  ;;  %v4180_v47 = vld [vmem:[#allocation2 + $0x40] sm:$0xff]  ;;  %v5045_v44 = vld [vmem:[%s13253_s3 + $0x8] sm:$0xff] }
 0x24f   : > { %v3895_v61 = vld [vmem:[#allocation3 + $0x80] ss:$2 sm:$0xff]  ;;  %v3959_v56 = vld [vmem:[#allocation3 + $0x81] ss:$2 sm:$0xff]  ;;  %2733 = vperm.xlu0 %9742, %v2554_v2   ;;  %4212 = vst.msk [vmem:[#allocation4 + $0xc0] sm:$0xff] %vm3814_vm3, %v4180_v47  ;;  %v1968_v8 = vadd.f32 %v1904_v36, %v1390_v37  ;;  %5169 = vmatpush.msra.mxu0 %v5045_v44  ;;  %v2933_v36 = vmul.f32 %v11079_v57, %v11048_v51  ;;  %v2558_v44 = vld [vmem:[#allocation2 + $0x10f] sm:$0xff] }
 0x250   : > { %v4078_v50 = vmax.f32 %v3895_v61, %v3959_v56  ;;  %v2995_v60 = vadd.f32 %v2931_v0, %v2481_v10  ;;  %2728 = vperm.xlu2 %9744, %v2553_v14   ;;  %v4023_v45 = vld [vmem:[#allocation3 + $0x82] ss:$2 sm:$0xff]  ;;  %v13255_v0 = vld [vmem:[#allocation38_spill] sm:$0xff] }
 0x251   : > { %2219 = vperm.xlu1 %9743, %v2040_v16   ;;  %v11053_v26 = vpop.permute.xlu0 %1670  ;;  %v1391_v2 = vmul.f32 %v11063_v49, %v13255_v0  ;;  %v2041_v16 = vld [vmem:[#allocation2 + $0xf2] sm:$0xff]  ;;  %v5044_v61 = vld [vmem:[%s13253_s3] sm:$0xff] }
 0x252   : > { %v4110_v46 = vmax.f32 %v4078_v50, %v4023_v45  ;;  %v3509_v54 = vadd.f32 %v3445_v12, %v2995_v60  ;;  %v4301_v18 = vpop.permute.xlu2 %4300  ;;  %v1905_v58 = vmul.f32 %v11056_v52, %v11053_v26  ;;  %v1528_v12 = vld [vmem:[#allocation2 + $0xf5] sm:$0xff]  ;;  %v4821_v50 = vld [vmem:[#allocation2 + $0x2c] sm:$0xff]  ;;  %5170 = vmatpush.msra.mxu0 %v5044_v61 }
 0x253   : > { %v2694_v29 = vpop.permute.xlu1 %2693  ;;  %4397 = vst.msk [vmem:[#allocation4] sm:$0xff] %vm4396_vm11, %v4301_v18  ;;  %v11150_v0 = vld [vmem:[#allocation2 + $0x10c] sm:$0xff] }
 0x254   : > { %4145 = vst.msk [vmem:[#allocation2 + $0x4a] sm:$0xff] %vm3814_vm3, %v4110_v46  ;;  %v3577_v22 = vadd.f32 %v10811_v20, %v3509_v54  ;;  %v2418_v20 = vmul.f32 %v11075_v6, %v11012_v38  ;;  %v2932_v5 = vmul.f32 %v11079_v57, %v2694_v29  ;;  %v1969_v56 = vadd.f32 %v1905_v58, %v1391_v2  ;;  %v2044_v58 = vld [vmem:[#allocation2 + $0x10a] sm:$0xff] }
 0x255   : > { %v1906_v46 = vmul.f32 %v11056_v52, %v11038_v23  ;;  %v11152_v2 = vld [vmem:[#allocation2 + $0x10d] sm:$0xff] }
 0x256   : > { %vm3641_vm12 = vcmp.gt.f32.partialorder %v3577_v22, 0.0  ;;  %v3705_v3 = vmul.f32 0.01, %v3577_v22  ;;  %v2482_v21 = vadd.f32 %v2418_v20, %v1968_v8  ;;  %v2556_v8 = vld [vmem:[#allocation2 + $0xff] sm:$0xff] }
 0x257   : > { %1710 = vperm.xlu0 %9742, %v1527_v42   ;;  %v1970_v23 = vadd.f32 %v1906_v46, %v1392_v31 }
 0x258   : > { %v3769_v40 = vsel %vm3641_vm12, %v3577_v22, %v3705_v3  ;;  %4306 = vrot.lane.b32.xlu2 %v4239_v17, %s10229_s5  ;;  %v2996_v19 = vadd.f32 %v2932_v5, %v2482_v21 }
 0x259   : > { %3834 = vst.msk [vmem:[#allocation3 + $0x98] sm:$0xff] %vm3814_vm3, %v3769_v40  ;;  %3242 = vperm.xlu1 %9743, %v3067_v7   ;;  %v2185_v15 = vpop.permute.xlu0 %2184  ;;  %v2555_v7 = vld [vmem:[#allocation2 + $0xf7] sm:$0xff] }
 0x25a   : > { %v4495_v35 = vpop.permute.xlu2 %4494  ;;  %v2419_v10 = vmul.f32 %v11075_v6, %v2185_v15 }
 0x25b   : > { %v3208_v38 = vpop.permute.xlu1 %3207  ;;  %4591 = vst.msk [vmem:[#allocation4] sm:$0xff] %vm4590_vm13, %v4495_v35  ;;  %v4181_v24 = vld [vmem:[#allocation2 + $0x48] sm:$0xff] }
 0x25c   : > { %v3446_v25 = vmul.f32 %v11091_v34, %v3208_v38  ;;  %4213 = vst.msk [vmem:[#allocation4 + $0xd8] sm:$0xff] %vm3814_vm3, %v4181_v24  ;;  %v2483_v45 = vadd.f32 %v2419_v10, %v1969_v56  ;;  %v4240_v24 = vld [vmem:[#allocation2 + $0x25] sm:$0xff]  ;;  %v4628_v10 = vld [vmem:[#allocation2 + $0x2f] sm:$0xff] }
 0x25e   : > { %v3510_v55 = vadd.f32 %v3446_v25, %v2996_v19  ;;  %v2997_v42 = vadd.f32 %v2933_v36, %v2483_v45  ;;  %v1529_v19 = vld [vmem:[#allocation2 + $0xfd] sm:$0xff] }
 0x25f   : > { %4694 = vrot.lane.b32.xlu0 %v4627_v63, %s10230_s27 }
 0x260   : > { %v3578_v59 = vadd.f32 %v11102_v4, %v3510_v55  ;;  %4500 = vrot.lane.b32.xlu2 %v4433_v33, %s10231_s2  ;;  %v3897_v60 = vld [vmem:[#allocation3 + $0x90] ss:$2 sm:$0xff]  ;;  %v3961_v47 = vld [vmem:[#allocation3 + $0x91] ss:$2 sm:$0xff] }
 0x261   : > { %3247 = vperm.xlu1 %9743, %v3068_v53   ;;  %v2704_v30 = vpop.permute.xlu0 %2703  ;;  %v4079_v18 = vmax.f32 %v3897_v60, %v3961_v47  ;;  %v3070_v33 = vld [vmem:[#allocation2 + $0x104] sm:$0xff]  ;;  %v13257_v47 = vld [vmem:[#allocation35_spill] sm:$0xff] }
 0x262   : > { %vm3642_vm14 = vcmp.gt.f32.partialorder %v3578_v59, 0.0  ;;  %v3706_v1 = vmul.f32 0.01, %v3578_v59  ;;  %v11111_v39 = vpop.permute.xlu2 %2194  ;;  %v2934_v20 = vmul.f32 %v11079_v57, %v2704_v30  ;;  %v1393_v45 = vmul.f32 %v11063_v49, %v13257_v47 }
 0x263   : > { %v2190_v28 = vpop.permute.xlu1 %2189 }
 0x264   : > { %v3770_v14 = vsel %vm3642_vm14, %v3578_v59, %v3706_v1  ;;  %v2420_v22 = vmul.f32 %v11075_v6, %v2190_v28  ;;  %v2043_v59 = vld [vmem:[#allocation2 + $0x102] sm:$0xff] }
 0x265   : > { %3835 = vst.msk [vmem:[#allocation3 + $0xa0] sm:$0xff] %vm3814_vm3, %v3770_v14  ;;  %v2557_v1 = vld [vmem:[#allocation2 + $0x107] sm:$0xff] }
 0x266   : > { %v2484_v51 = vadd.f32 %v2420_v22, %v1970_v23  ;;  %4170 = vst.msk [vmem:[#allocation2 + $0x109] sm:$0xff] %vm3814_vm3, %v13251_v13  ;;  %v13258_v23 = vld [vmem:[#allocation41_spill] sm:$0xff] }
 0x267   : > { %4888 = vrot.lane.b32.xlu0 %v4821_v50, %s10232_s10 }
 0x268   : > { %2224 = vperm.xlu2 %9744, %v2041_v16   ;;  %v2998_v35 = vadd.f32 %v2934_v20, %v2484_v51  ;;  %v4434_v16 = vld [vmem:[#allocation2 + $0x2a] sm:$0xff] }
 0x269   : > { %1715 = vperm.xlu1 %9743, %v1528_v12   ;;  %v11126_v26 = vpop.permute.xlu0 %1680 }
 0x26a   : > { %v11132_v54 = vpop.permute.xlu2 %2708  ;;  %v1907_v12 = vmul.f32 %v11056_v52, %v11126_v26  ;;  %v2421_v26 = vmul.f32 %v11075_v6, %v11111_v39 }
 0x26b   : > { %v3213_v29 = vpop.permute.xlu1 %3212 }
 0x26c   : > { %v4025_v37 = vld [vmem:[#allocation3 + $0x92] ss:$2 sm:$0xff]  ;;  %v3447_v41 = vmul.f32 %v11091_v34, %v3213_v29  ;;  %v1971_v29 = vadd.f32 %v1907_v12, %v1393_v45 }
 0x26d   : > { %v4111_v3 = vmax.f32 %v4079_v18, %v4025_v37  ;;  %v4822_v37 = vld [vmem:[#allocation2 + $0x34] sm:$0xff] }
 0x26e   : > { %v3511_v17 = vadd.f32 %v3447_v41, %v2997_v42  ;;  %v2485_v22 = vadd.f32 %v2421_v26, %v1971_v29  ;;  %v11170_v41 = vld [vmem:[#allocation2 + $0x112] sm:$0xff]  ;;  %v4823_v29 = vld [vmem:[#allocation2 + $0x3c] sm:$0xff] }
 0x26f   : > { %4146 = vst.msk [vmem:[#allocation2 + $0x52] sm:$0xff] %vm3814_vm3, %v4111_v3  ;;  %2743 = vperm.xlu0 %9742, %v2556_v8   ;;  %v2935_v8 = vmul.f32 %v11079_v57, %v11132_v54 }
 0x270   : > { %v3579_v40 = vadd.f32 %v11102_v4, %v3511_v17  ;;  %2738 = vperm.xlu2 %9744, %v2555_v7   ;;  %4171 = vst.msk [vmem:[#allocation2 + $0x111] sm:$0x3] %vm4135_vm2, %v13251_v13  ;;  %v1394_v17 = vmul.f32 %v11063_v49, %v13258_v23 }
 0x271   : > { %2229 = vperm.xlu1 %9743, %v2042_v11   ;;  %v4689_v5 = vpop.permute.xlu0 %4688  ;;  %v2999_v51 = vadd.f32 %v2935_v8, %v2485_v22 }
 0x272   : > { %vm3643_vm4 = vcmp.gt.f32.partialorder %v3579_v40, 0.0  ;;  %v3707_v15 = vmul.f32 0.01, %v3579_v40  ;;  %v4303_v27 = vpop.permute.xlu2 %4302  ;;  %4785 = vst.msk [vmem:[#allocation4] sm:$0xff] %vm4784_vm1, %v4689_v5 }
 0x273   : > { %v3218_v21 = vpop.permute.xlu1 %3217  ;;  %4398 = vst.msk [vmem:[#allocation4 + $0x18] sm:$0xff] %vm4396_vm11, %v4303_v27 }
 0x274   : > { %v3771_v38 = vsel %vm3643_vm4, %v3579_v40, %v3707_v15  ;;  %v3448_v43 = vmul.f32 %v11091_v34, %v3218_v21 }
 0x275   : > { %3836 = vst.msk [vmem:[#allocation3 + $0xa8] sm:$0xff] %vm3814_vm3, %v3771_v38 }
 0x276   : > { %v3512_v25 = vadd.f32 %v3448_v43, %v2998_v35  ;;  %v4182_v55 = vld [vmem:[#allocation2 + $0x50] sm:$0xff] }
 0x277   : > { %1720 = vperm.xlu0 %9742, %v1529_v19   ;;  %4214 = vst.msk [vmem:[#allocation4 + $0xf0] sm:$0xff] %vm3814_vm3, %v4182_v55 }
 0x278   : > { %v3580_v53 = vadd.f32 %v11102_v4, %v3512_v25  ;;  %4308 = vrot.lane.b32.xlu2 %v4240_v24, %s10229_s5 }
 0x279   : > { %3252 = vperm.xlu1 %9743, %v3069_v48   ;;  %v4883_v63 = vpop.permute.xlu0 %4882 }
 0x27a   : > { %vm3644_vm6 = vcmp.gt.f32.partialorder %v3580_v53, 0.0  ;;  %v3708_v30 = vmul.f32 0.01, %v3580_v53  ;;  %v4497_v62 = vpop.permute.xlu2 %4496  ;;  %4979 = vst.msk [vmem:[#allocation4] sm:$0xff] %vm4978_vm5, %v4883_v63 }
 0x27b   : > { %v1686_v28 = vpop.permute.xlu1 %1685  ;;  %4592 = vst.msk [vmem:[#allocation4 + $0x18] sm:$0xff] %vm4590_vm13, %v4497_v62 }
 0x27c   : > { %v3772_v14 = vsel %vm3644_vm6, %v3580_v53, %v3708_v30  ;;  %v3899_v61 = vld [vmem:[#allocation3 + $0xa0] ss:$2 sm:$0xff]  ;;  %v3963_v56 = vld [vmem:[#allocation3 + $0xa1] ss:$2 sm:$0xff]  ;;  %v1908_v3 = vmul.f32 %v11056_v52, %v1686_v28  ;;  %v4241_v53 = vld [vmem:[#allocation2 + $0x2d] sm:$0xff] }
 0x27d   : > { %3837 = vst.msk [vmem:[#allocation3 + $0xb0] sm:$0xff] %vm3814_vm3, %v3772_v14  ;;  %v4080_v36 = vmax.f32 %v3899_v61, %v3963_v56  ;;  %v4435_v28 = vld [vmem:[#allocation2 + $0x32] sm:$0xff] }
 0x27e   : > { %v1972_v40 = vadd.f32 %v1908_v3, %v1394_v17  ;;  %v2560_v17 = vld [vmem:[#allocation2 + $0x11f] sm:$0xff] }
 0x27f   : > { %4696 = vrot.lane.b32.xlu0 %v4628_v10, %s10230_s27 }
 0x280   : > { %4502 = vrot.lane.b32.xlu2 %v4434_v16, %s10231_s2  ;;  %v13259_v16 = vld [vmem:[#allocation46_spill] sm:$0xff] }
 0x281   : > { %3257 = vperm.xlu1 %9743, %v3070_v33   ;;  %v2714_v50 = vpop.permute.xlu0 %2713  ;;  %v5012_v60 = vld [vmem:[#allocation4] sm:$0xff]  ;;  %v1395_v61 = vmul.f32 %v11063_v49, %v13259_v16 }
 0x282   : > { %v11163_v46 = vpop.permute.xlu2 %2204  ;;  %9461 = vmatmul.msk.f32.vlgmr.msra.gmra.mxu0 %vm5058_vm7, %v5012_v60  ;;  %v2936_v27 = vmul.f32 %v11079_v57, %v2714_v50 }
 0x283   : > { %v2200_v18 = vpop.permute.xlu1 %2199 }
 0x284   : > { %v4027_v32 = vld [vmem:[#allocation3 + $0xa2] ss:$2 sm:$0xff]  ;;  %v2422_v11 = vmul.f32 %v11075_v6, %v2200_v18 }
 0x285   : > { %v4112_v31 = vmax.f32 %v4080_v36, %v4027_v32  ;;  %v2423_v36 = vmul.f32 %v11075_v6, %v11163_v46  ;;  %v1532_v18 = vld [vmem:[#allocation2 + $0x115] sm:$0xff]  ;;  %v13260_v46 = vld [vmem:[#allocation37_spill] sm:$0xff] }
 0x286   : > { %v2486_v15 = vadd.f32 %v2422_v11, %v1972_v40  ;;  %v1396_v8 = vmul.f32 %v11063_v49, %v13260_v46 }
 0x287   : > { %4147 = vst.msk [vmem:[#allocation2 + $0x5a] sm:$0xff] %vm3814_vm3, %v4112_v31  ;;  %4890 = vrot.lane.b32.xlu0 %v4822_v37, %s10232_s10 }
 0x288   : > { %2234 = vperm.xlu2 %9744, %v2043_v59   ;;  %v3000_v25 = vadd.f32 %v2936_v27, %v2486_v15 }
 0x289   : > { %1725 = vperm.xlu1 %9743, %v1530_v9   ;;  %v1691_v42 = vpop.permute.xlu0 %1690 }
 0x28a   : > { %v11175_v7 = vpop.permute.xlu2 %2718 }
 0x28b   : > { %v3223_v39 = vpop.permute.xlu1 %3222  ;;  %v2937_v26 = vmul.f32 %v11079_v57, %v11175_v7 }
 0x28c   : > { %v3449_v20 = vmul.f32 %v11091_v34, %v3223_v39 }
 0x28e   : > { %v3513_v5 = vadd.f32 %v3449_v20, %v2999_v51  ;;  %v4183_v54 = vld [vmem:[#allocation2 + $0x58] sm:$0xff] }
 0x28f   : > { %2753 = vperm.xlu0 %9742, %v2558_v44   ;;  %4215 = vst.msk [vmem:[#allocation4 + $0x108] sm:$0xff] %vm3814_vm3, %v4183_v54  ;;  %v2046_v20 = vld [vmem:[#allocation2 + $0x11a] sm:$0xff] }
 0x290   : > { %v3581_v21 = vadd.f32 %v11102_v4, %v3513_v5  ;;  %2748 = vperm.xlu2 %9744, %v2557_v1   ;;  %v4629_v1 = vld [vmem:[#allocation2 + $0x37] sm:$0xff] }
 0x291   : > { %2239 = vperm.xlu1 %9743, %v2044_v58   ;;  %v4691_v35 = vpop.permute.xlu0 %4690  ;;  %v3072_v58 = vld [vmem:[#allocation2 + $0x114] sm:$0xff] }
 0x292   : > { %vm3645_vm2 = vcmp.gt.f32.partialorder %v3581_v21, 0.0  ;;  %v3709_v38 = vmul.f32 0.01, %v3581_v21  ;;  %v4305_v43 = vpop.permute.xlu2 %4304  ;;  %4786 = vst.msk [vmem:[#allocation4 + $0x18] sm:$0xff] %vm4784_vm1, %v4691_v35 }
 0x293   : > { %v3228_v19 = vpop.permute.xlu1 %3227  ;;  %4399 = vst.msk [vmem:[#allocation4 + $0x30] sm:$0xff] %vm4396_vm11, %v4305_v43 }
 0x294   : > { %v3773_v48 = vsel %vm3645_vm2, %v3581_v21, %v3709_v38  ;;  %v3450_v24 = vmul.f32 %v11091_v34, %v3228_v19 }
 0x295   : > { %3838 = vst.msk [vmem:[#allocation3 + $0xb8] sm:$0xff] %vm3814_vm3, %v3773_v48 }
 0x296   : > { %v3514_v55 = vadd.f32 %v3450_v24, %v3000_v25  ;;  %v1533_v25 = vld [vmem:[#allocation2 + $0x11d] sm:$0xff] }
 0x297   : > { %1730 = vperm.xlu0 %9742, %v11152_v2   ;;  %v3073_v24 = vld [vmem:[#allocation2 + $0x11c] sm:$0xff] }
 0x298   : > { %v3582_v63 = vadd.f32 %v11102_v4, %v3514_v55  ;;  %4310 = vrot.lane.b32.xlu2 %v4241_v53, %s10229_s5  ;;  %v4242_v55 = vld [vmem:[#allocation2 + $0x35] sm:$0xff] }
 0x299   : > { %3262 = vperm.xlu1 %9743, %v11150_v0   ;;  %v4885_v33 = vpop.permute.xlu0 %4884  ;;  %v1909_v0 = vmul.f32 %v11056_v52, %v1691_v42 }
 0x29a   : > { %vm3646_vm8 = vcmp.gt.f32.partialorder %v3582_v63, 0.0  ;;  %v3710_v9 = vmul.f32 0.01, %v3582_v63  ;;  %v4499_v59 = vpop.permute.xlu2 %4498  ;;  %4980 = vst.msk [vmem:[#allocation4 + $0x18] sm:$0xff] %vm4978_vm5, %v4885_v33 }
 0x29b   : > { %v1696_v30 = vpop.permute.xlu1 %1695  ;;  %4593 = vst.msk [vmem:[#allocation4 + $0x30] sm:$0xff] %vm4590_vm13, %v4499_v59  ;;  %v1973_v60 = vadd.f32 %v1909_v0, %v1395_v61 }
 0x29c   : > { %v3774_v62 = vsel %vm3646_vm8, %v3582_v63, %v3710_v9  ;;  %v3901_v44 = vld [vmem:[#allocation3 + $0xb0] ss:$2 sm:$0xff]  ;;  %v3965_v2 = vld [vmem:[#allocation3 + $0xb1] ss:$2 sm:$0xff]  ;;  %v1910_v37 = vmul.f32 %v11056_v52, %v1696_v30 }
 0x29d   : > { %3839 = vst.msk [vmem:[#allocation3 + $0xc0] sm:$0xff] %vm3814_vm3, %v3774_v62  ;;  %v4081_v12 = vmax.f32 %v3901_v44, %v3965_v2  ;;  %v2487_v32 = vadd.f32 %v2423_v36, %v1973_v60  ;;  %v3074_v62 = vld [vmem:[#allocation2 + $0x124] sm:$0xff] }
 0x29e   : > { %v1974_v11 = vadd.f32 %v1910_v37, %v1396_v8  ;;  %v2047_v36 = vld [vmem:[#allocation2 + $0x122] sm:$0xff] }
 0x29f   : > { %4698 = vrot.lane.b32.xlu0 %v4629_v1, %s10230_s27  ;;  %v3001_v39 = vadd.f32 %v2937_v26, %v2487_v32  ;;  %v4436_v1 = vld [vmem:[#allocation2 + $0x3a] sm:$0xff]  ;;  %v4824_v32 = vld [vmem:[#allocation2 + $0x44] sm:$0xff] }
 0x2a0   : > { %4504 = vrot.lane.b32.xlu2 %v4435_v28, %s10231_s2 }
 0x2a1   : > { %3267 = vperm.xlu1 %9743, %v3072_v58   ;;  %v2724_v14 = vpop.permute.xlu0 %2723  ;;  %v5013_v10 = vld [vmem:[#allocation4 + $0x18] sm:$0xff]  ;;  %v4630_v58 = vld [vmem:[#allocation2 + $0x3f] sm:$0xff] }
 0x2a2   : > { %v11202_v56 = vpop.permute.xlu2 %2214  ;;  %9462 = vmatmul.msk.f32.gmra.mxu0 %vm5058_vm7, %v5013_v10  ;;  %v2938_v5 = vmul.f32 %v11079_v57, %v2724_v14  ;;  %v13261_v10 = vld [vmem:[#allocation44_spill] sm:$0xff] }
 0x2a3   : > { %v2210_v50 = vpop.permute.xlu1 %2209  ;;  %v1397_v16 = vmul.f32 %v11063_v49, %v13261_v10  ;;  %v13263_v10 = vld [vmem:[#allocation39_spill] sm:$0xff] }
 0x2a4   : > { %v4029_v47 = vld [vmem:[#allocation3 + $0xb2] ss:$2 sm:$0xff]  ;;  %v2424_v3 = vmul.f32 %v11075_v6, %v2210_v50 }
 0x2a5   : > { %v4113_v45 = vmax.f32 %v4081_v12, %v4029_v47 }
 0x2a6   : > { %v2488_v40 = vadd.f32 %v2424_v3, %v1974_v11  ;;  %v13262_v3 = vld [vmem:[#allocation49_spill] sm:$0xff] }
 0x2a7   : > { %4148 = vst.msk [vmem:[#allocation2 + $0x62] sm:$0xff] %vm3814_vm3, %v4113_v45  ;;  %4892 = vrot.lane.b32.xlu0 %v4823_v29, %s10232_s10  ;;  %v1534_v29 = vld [vmem:[#allocation2 + $0x125] sm:$0xff] }
 0x2a8   : > { %2244 = vperm.xlu2 %9744, %v11170_v41   ;;  %v2559_v41 = vld [vmem:[#allocation2 + $0x117] sm:$0xff]  ;;  %v3002_v38 = vadd.f32 %v2938_v5, %v2488_v40  ;;  %v2561_v11 = vld [vmem:[#allocation2 + $0x127] sm:$0xff] }
 0x2a9   : > { %1735 = vperm.xlu1 %9743, %v1532_v18   ;;  %v1701_v31 = vpop.permute.xlu0 %1700  ;;  %v2425_v18 = vmul.f32 %v11075_v6, %v11202_v56  ;;  %v1398_v56 = vmul.f32 %v11063_v49, %v13262_v3 }
 0x2aa   : > { %v11213_v22 = vpop.permute.xlu2 %2728  ;;  %v1911_v2 = vmul.f32 %v11056_v52, %v1701_v31 }
 0x2ab   : > { %v3233_v42 = vpop.permute.xlu1 %3232  ;;  %v2939_v37 = vmul.f32 %v11079_v57, %v11213_v22 }
 0x2ac   : > { %v3451_v23 = vmul.f32 %v11091_v34, %v3233_v42  ;;  %v1975_v60 = vadd.f32 %v1911_v2, %v1397_v16  ;;  %v1399_v16 = vmul.f32 %v11063_v49, %v13263_v10 }
 0x2ae   : > { %v3515_v51 = vadd.f32 %v3451_v23, %v3001_v39  ;;  %v4184_v7 = vld [vmem:[#allocation2 + $0x60] sm:$0xff]  ;;  %v2489_v31 = vadd.f32 %v2425_v18, %v1975_v60  ;;  %v2049_v18 = vld [vmem:[#allocation2 + $0x132] sm:$0xff] }
 0x2af   : > { %2763 = vperm.xlu0 %9742, %v2560_v17   ;;  %4216 = vst.msk [vmem:[#allocation4 + $0x120] sm:$0xff] %vm3814_vm3, %v4184_v7  ;;  %v2048_v7 = vld [vmem:[#allocation2 + $0x12a] sm:$0xff] }
 0x2b0   : > { %v3583_v54 = vadd.f32 %v11102_v4, %v3515_v51  ;;  %2758 = vperm.xlu2 %9744, %v2559_v41   ;;  %v3003_v23 = vadd.f32 %v2939_v37, %v2489_v31  ;;  %v2562_v41 = vld [vmem:[#allocation2 + $0x12f] sm:$0xff] }
 0x2b1   : > { %2249 = vperm.xlu1 %9743, %v2046_v20   ;;  %v4693_v15 = vpop.permute.xlu0 %4692  ;;  %v4825_v31 = vld [vmem:[#allocation2 + $0x4c] sm:$0xff] }
 0x2b2   : > { %vm3647_vm10 = vcmp.gt.f32.partialorder %v3583_v54, 0.0  ;;  %v3711_v27 = vmul.f32 0.01, %v3583_v54  ;;  %v4307_v21 = vpop.permute.xlu2 %4306  ;;  %4787 = vst.msk [vmem:[#allocation4 + $0x30] sm:$0xff] %vm4784_vm1, %v4693_v15 }
 0x2b3   : > { %v3238_v35 = vpop.permute.xlu1 %3237  ;;  %4400 = vst.msk [vmem:[#allocation4 + $0x48] sm:$0xff] %vm4396_vm11, %v4307_v21 }
 0x2b4   : > { %v3775_v43 = vsel %vm3647_vm10, %v3583_v54, %v3711_v27  ;;  %v3452_v19 = vmul.f32 %v11091_v34, %v3238_v35 }
 0x2b5   : > { %3840 = vst.msk [vmem:[#allocation3 + $0xc8] sm:$0xff] %vm3814_vm3, %v3775_v43 }
 0x2b6   : > { %v3516_v48 = vadd.f32 %v3452_v19, %v3002_v38 }
 0x2b7   : > { %1740 = vperm.xlu0 %9742, %v1533_v25   ;;  %v1535_v25 = vld [vmem:[#allocation2 + $0x12d] sm:$0xff] }
 0x2b8   : > { %v3584_v53 = vadd.f32 %v11102_v4, %v3516_v48  ;;  %4312 = vrot.lane.b32.xlu2 %v4242_v55, %s10229_s5  ;;  %v4243_v55 = vld [vmem:[#allocation2 + $0x3d] sm:$0xff] }
 0x2b9   : > { %3272 = vperm.xlu1 %9743, %v3073_v24   ;;  %v4887_v63 = vpop.permute.xlu0 %4886  ;;  %v3075_v24 = vld [vmem:[#allocation2 + $0x12c] sm:$0xff] }
 0x2ba   : > { %vm3648_vm12 = vcmp.gt.f32.partialorder %v3584_v53, 0.0  ;;  %v3712_v33 = vmul.f32 0.01, %v3584_v53  ;;  %v4501_v9 = vpop.permute.xlu2 %4500  ;;  %4981 = vst.msk [vmem:[#allocation4 + $0x30] sm:$0xff] %vm4978_vm5, %v4887_v63 }
 0x2bb   : > { %v1706_v59 = vpop.permute.xlu1 %1705  ;;  %4594 = vst.msk [vmem:[#allocation4 + $0x48] sm:$0xff] %vm4590_vm13, %v4501_v9 }
 0x2bc   : > { %v3776_v30 = vsel %vm3648_vm12, %v3584_v53, %v3712_v33  ;;  %v3903_v28 = vld [vmem:[#allocation3 + $0xc0] ss:$2 sm:$0xff]  ;;  %v3967_v44 = vld [vmem:[#allocation3 + $0xc1] ss:$2 sm:$0xff]  ;;  %v1912_v42 = vmul.f32 %v11056_v52, %v1706_v59 }
 0x2bd   : > { %3841 = vst.msk [vmem:[#allocation3 + $0xd0] sm:$0xff] %vm3814_vm3, %v3776_v30  ;;  %v4082_v12 = vmax.f32 %v3903_v28, %v3967_v44 }
 0x2be   : > { %v1976_v51 = vadd.f32 %v1912_v42, %v1398_v56 }
 0x2bf   : > { %4700 = vrot.lane.b32.xlu0 %v4630_v58, %s10230_s27  ;;  %v4631_v58 = vld [vmem:[#allocation2 + $0x47] sm:$0xff] }
 0x2c0   : > { %4506 = vrot.lane.b32.xlu2 %v4436_v1, %s10231_s2  ;;  %v4437_v1 = vld [vmem:[#allocation2 + $0x42] sm:$0xff] }
 0x2c1   : > { %3277 = vperm.xlu1 %9743, %v3074_v62   ;;  %v2734_v0 = vpop.permute.xlu0 %2733  ;;  %v5014_v14 = vld [vmem:[#allocation4 + $0x30] sm:$0xff]  ;;  %v3076_v62 = vld [vmem:[#allocation2 + $0x134] sm:$0xff] }
 0x2c2   : > { %v11236_v61 = vpop.permute.xlu2 %2224  ;;  %9463 = vmatmul.msk.f32.gmra.mxu0 %vm5058_vm7, %v5014_v14  ;;  %v2940_v5 = vmul.f32 %v11079_v57, %v2734_v0 }
 0x2c3   : > { %v2220_v50 = vpop.permute.xlu1 %2219 }
 0x2c4   : > { %v4031_v47 = vld [vmem:[#allocation3 + $0xc2] ss:$2 sm:$0xff]  ;;  %v2426_v39 = vmul.f32 %v11075_v6, %v2220_v50 }
 0x2c5   : > { %v4114_v45 = vmax.f32 %v4082_v12, %v4031_v47 }
 0x2c6   : > { %v2490_v40 = vadd.f32 %v2426_v39, %v1976_v51  ;;  %v13264_v39 = vld [vmem:[#allocation47_spill] sm:$0xff] }
 0x2c7   : > { %4149 = vst.msk [vmem:[#allocation2 + $0x6a] sm:$0xff] %vm3814_vm3, %v4114_v45  ;;  %4894 = vrot.lane.b32.xlu0 %v4824_v32, %s10232_s10  ;;  %v1536_v32 = vld [vmem:[#allocation2 + $0x135] sm:$0xff] }
 0x2c8   : > { %2254 = vperm.xlu2 %9744, %v2047_v36   ;;  %v3004_v38 = vadd.f32 %v2940_v5, %v2490_v40  ;;  %v2563_v51 = vld [vmem:[#allocation2 + $0x137] sm:$0xff] }
 0x2c9   : > { %1745 = vperm.xlu1 %9743, %v1534_v29   ;;  %v1711_v26 = vpop.permute.xlu0 %1710  ;;  %v2427_v29 = vmul.f32 %v11075_v6, %v11236_v61  ;;  %v1400_v61 = vmul.f32 %v11063_v49, %v13264_v39  ;;  %v4826_v39 = vld [vmem:[#allocation2 + $0x54] sm:$0xff] }
 0x2ca   : > { %v11246_v46 = vpop.permute.xlu2 %2738  ;;  %v1913_v2 = vmul.f32 %v11056_v52, %v1711_v26 }
 0x2cb   : > { %v3243_v8 = vpop.permute.xlu1 %3242  ;;  %v2941_v42 = vmul.f32 %v11079_v57, %v11246_v46 }
 0x2cc   : > { %v3453_v17 = vmul.f32 %v11091_v34, %v3243_v8  ;;  %v1977_v47 = vadd.f32 %v1913_v2, %v1399_v16 }
 0x2ce   : > { %v3517_v20 = vadd.f32 %v3453_v17, %v3003_v23  ;;  %v4185_v22 = vld [vmem:[#allocation2 + $0x68] sm:$0xff]  ;;  %v2491_v26 = vadd.f32 %v2427_v29, %v1977_v47 }
 0x2cf   : > { %2773 = vperm.xlu0 %9742, %v2562_v41   ;;  %4217 = vst.msk [vmem:[#allocation4 + $0x138] sm:$0xff] %vm3814_vm3, %v4185_v22  ;;  %v2050_v22 = vld [vmem:[#allocation2 + $0x13a] sm:$0xff] }
 0x2d0   : > { %v3585_v54 = vadd.f32 %v11102_v4, %v3517_v20  ;;  %2768 = vperm.xlu2 %9744, %v2561_v11   ;;  %v3005_v17 = vadd.f32 %v2941_v42, %v2491_v26  ;;  %v2564_v11 = vld [vmem:[#allocation2 + $0x13f] sm:$0xff] }
 0x2d1   : > { %2259 = vperm.xlu1 %9743, %v2048_v7   ;;  %v4695_v15 = vpop.permute.xlu0 %4694  ;;  %v2051_v42 = vld [vmem:[#allocation2 + $0x142] sm:$0xff] }
 0x2d2   : > { %vm3649_vm14 = vcmp.gt.f32.partialorder %v3585_v54, 0.0  ;;  %v3713_v27 = vmul.f32 0.01, %v3585_v54  ;;  %v4309_v21 = vpop.permute.xlu2 %4308  ;;  %4788 = vst.msk [vmem:[#allocation4 + $0x48] sm:$0xff] %vm4784_vm1, %v4695_v15 }
 0x2d3   : > { %v3248_v35 = vpop.permute.xlu1 %3247  ;;  %4401 = vst.msk [vmem:[#allocation4 + $0x60] sm:$0xff] %vm4396_vm11, %v4309_v21 }
 0x2d4   : > { %v3777_v43 = vsel %vm3649_vm14, %v3585_v54, %v3713_v27  ;;  %v3454_v19 = vmul.f32 %v11091_v34, %v3248_v35 }
 0x2d5   : > { %3842 = vst.msk [vmem:[#allocation3 + $0xd8] sm:$0xff] %vm3814_vm3, %v3777_v43 }
 0x2d6   : > { %v3518_v48 = vadd.f32 %v3454_v19, %v3004_v38 }
 0x2d7   : > { %1750 = vperm.xlu0 %9742, %v1535_v25   ;;  %v1537_v25 = vld [vmem:[#allocation2 + $0x13d] sm:$0xff] }
 0x2d8   : > { %v3586_v53 = vadd.f32 %v11102_v4, %v3518_v48  ;;  %4314 = vrot.lane.b32.xlu2 %v4243_v55, %s10229_s5  ;;  %v4244_v55 = vld [vmem:[#allocation2 + $0x45] sm:$0xff] }
 0x2d9   : > { %3282 = vperm.xlu1 %9743, %v3075_v24   ;;  %v4889_v63 = vpop.permute.xlu0 %4888  ;;  %v3077_v24 = vld [vmem:[#allocation2 + $0x13c] sm:$0xff] }
 0x2da   : > { %vm3650_vm4 = vcmp.gt.f32.partialorder %v3586_v53, 0.0  ;;  %v3714_v33 = vmul.f32 0.01, %v3586_v53  ;;  %v4503_v9 = vpop.permute.xlu2 %4502  ;;  %4982 = vst.msk [vmem:[#allocation4 + $0x48] sm:$0xff] %vm4978_vm5, %v4889_v63 }
 0x2db   : > { %v1716_v59 = vpop.permute.xlu1 %1715  ;;  %4595 = vst.msk [vmem:[#allocation4 + $0x60] sm:$0xff] %vm4590_vm13, %v4503_v9 }
 0x2dc   : > { %v3778_v30 = vsel %vm3650_vm4, %v3586_v53, %v3714_v33  ;;  %v3905_v28 = vld [vmem:[#allocation3 + $0xd0] ss:$2 sm:$0xff]  ;;  %v3969_v44 = vld [vmem:[#allocation3 + $0xd1] ss:$2 sm:$0xff]  ;;  %v1914_v8 = vmul.f32 %v11056_v52, %v1716_v59 }
 0x2dd   : > { %3843 = vst.msk [vmem:[#allocation3 + $0xe0] sm:$0xff] %vm3814_vm3, %v3778_v30  ;;  %v4083_v50 = vmax.f32 %v3905_v28, %v3969_v44  ;;  %v4438_v28 = vld [vmem:[#allocation2 + $0x4a] sm:$0xff] }
 0x2de   : > { %v1978_v20 = vadd.f32 %v1914_v8, %v1400_v61 }
 0x2df   : > { %4702 = vrot.lane.b32.xlu0 %v4631_v58, %s10230_s27  ;;  %v3078_v58 = vld [vmem:[#allocation2 + $0x144] sm:$0xff] }
 0x2e0   : > { %4508 = vrot.lane.b32.xlu2 %v4437_v1, %s10231_s2  ;;  %v4632_v1 = vld [vmem:[#allocation2 + $0x4f] sm:$0xff] }
 0x2e1   : > { %3287 = vperm.xlu1 %9743, %v3076_v62   ;;  %v2744_v0 = vpop.permute.xlu0 %2743  ;;  %v5015_v14 = vld [vmem:[#allocation4 + $0x48] sm:$0xff] }
 0x2e2   : > { %v11269_v12 = vpop.permute.xlu2 %2234  ;;  %9464 = vmatmul.msk.f32.gmra.mxu0 %vm5058_vm7, %v5015_v14  ;;  %v2942_v5 = vmul.f32 %v11079_v57, %v2744_v0  ;;  %v11296_v62 = vld [vmem:[#allocation10] ss:$0 sm:$0xff] }
 0x2e3   : > { %v2230_v60 = vpop.permute.xlu1 %2229  ;;  %v2429_v8 = vmul.f32 %v11075_v6, %v11269_v12 }
 0x2e4   : > { %v4033_v45 = vld [vmem:[#allocation3 + $0xd2] ss:$2 sm:$0xff]  ;;  %v2428_v23 = vmul.f32 %v11075_v6, %v2230_v60  ;;  %v13265_v60 = vld [vmem:[#allocation52_spill] sm:$0xff] }
 0x2e5   : > { %v4115_v36 = vmax.f32 %v4083_v50, %v4033_v45  ;;  %v1401_v47 = vmul.f32 %v11063_v49, %v13265_v60  ;;  %v11340_v60 = vld [vmem:[#allocation6] ss:$0 sm:$0xff] }
 0x2e6   : > { %v2492_v40 = vadd.f32 %v2428_v23, %v1978_v20  ;;  %v13266_v20 = vld [vmem:[#allocation42_spill] sm:$0xff] }
 0x2e7   : > { %4150 = vst.msk [vmem:[#allocation2 + $0x72] sm:$0xff] %vm3814_vm3, %v4115_v36  ;;  %4896 = vrot.lane.b32.xlu0 %v4825_v31, %s10232_s10  ;;  %v1402_v12 = vmul.f32 %v11063_v49, %v13266_v20  ;;  %v11354_v20 = vld [vmem:[#allocation6 + $0x3] ss:$0 sm:$0xff] }
 0x2e8   : > { %2264 = vperm.xlu2 %9744, %v2049_v18   ;;  %v3006_v38 = vadd.f32 %v2942_v5, %v2492_v40  ;;  %v2566_v40 = vld [vmem:[#allocation2 + $0x14f] sm:$0xff]  ;;  %v2565_v5 = vld [vmem:[#allocation2 + $0x147] sm:$0xff] }
 0x2e9   : > { %1755 = vperm.xlu1 %9743, %v1536_v32   ;;  %v1721_v37 = vpop.permute.xlu0 %1720 }
 0x2ea   : > { %v11279_v3 = vpop.permute.xlu2 %2748  ;;  %v1915_v14 = vmul.f32 %v11056_v52, %v1721_v37 }
 0x2eb   : > { %v3253_v56 = vpop.permute.xlu1 %3252 }
 0x2ec   : > { %v3455_v41 = vmul.f32 %v11091_v34, %v3253_v56  ;;  %v1979_v32 = vadd.f32 %v1915_v14, %v1401_v47  ;;  %v1538_v56 = vld [vmem:[#allocation2 + $0x145] sm:$0xff]  ;;  %v13267_v47 = vld [vmem:[#allocation50_spill] sm:$0xff] }
 0x2ee   : > { %v3519_v7 = vadd.f32 %v3455_v41, %v3005_v17  ;;  %v4186_v46 = vld [vmem:[#allocation2 + $0x70] sm:$0xff]  ;;  %v2493_v61 = vadd.f32 %v2429_v8, %v1979_v32  ;;  %v2943_v17 = vmul.f32 %v11079_v57, %v11279_v3 }
 0x2ef   : > { %2783 = vperm.xlu0 %9742, %v2564_v11   ;;  %4218 = vst.msk [vmem:[#allocation4 + $0x150] sm:$0xff] %vm3814_vm3, %v4186_v46 }
 0x2f0   : > { %v3587_v54 = vadd.f32 %v11102_v4, %v3519_v7  ;;  %2778 = vperm.xlu2 %9744, %v2563_v51  }
 0x2f1   : > { %2269 = vperm.xlu1 %9743, %v2050_v22   ;;  %v4697_v15 = vpop.permute.xlu0 %4696  ;;  %v3007_v22 = vadd.f32 %v2943_v17, %v2493_v61  ;;  %v4827_v17 = vld [vmem:[#allocation2 + $0x5c] sm:$0xff] }
 0x2f2   : > { %vm3651_vm6 = vcmp.gt.f32.partialorder %v3587_v54, 0.0  ;;  %v3715_v27 = vmul.f32 0.01, %v3587_v54  ;;  %v4311_v21 = vpop.permute.xlu2 %4310  ;;  %4789 = vst.msk [vmem:[#allocation4 + $0x60] sm:$0xff] %vm4784_vm1, %v4697_v15 }
 0x2f3   : > { %v3258_v35 = vpop.permute.xlu1 %3257  ;;  %4402 = vst.msk [vmem:[#allocation4 + $0x78] sm:$0xff] %vm4396_vm11, %v4311_v21 }
 0x2f4   : > { %v3779_v43 = vsel %vm3651_vm6, %v3587_v54, %v3715_v27  ;;  %v3456_v19 = vmul.f32 %v11091_v34, %v3258_v35  ;;  %v2052_v27 = vld [vmem:[#allocation2 + $0x14a] sm:$0xff] }
 0x2f5   : > { %3844 = vst.msk [vmem:[#allocation3 + $0xe8] sm:$0xff] %vm3814_vm3, %v3779_v43 }
 0x2f6   : > { %v3520_v48 = vadd.f32 %v3456_v19, %v3006_v38 }
 0x2f7   : > { %1760 = vperm.xlu0 %9742, %v1537_v25  }
 0x2f8   : > { %v3588_v53 = vadd.f32 %v11102_v4, %v3520_v48  ;;  %4316 = vrot.lane.b32.xlu2 %v4244_v55, %s10229_s5  ;;  %v3079_v55 = vld [vmem:[#allocation2 + $0x14c] sm:$0xff] }
 0x2f9   : > { %3292 = vperm.xlu1 %9743, %v3077_v24   ;;  %v4891_v63 = vpop.permute.xlu0 %4890 }
 0x2fa   : > { %vm3652_vm2 = vcmp.gt.f32.partialorder %v3588_v53, 0.0  ;;  %v3716_v33 = vmul.f32 0.01, %v3588_v53  ;;  %v4505_v9 = vpop.permute.xlu2 %4504  ;;  %4983 = vst.msk [vmem:[#allocation4 + $0x60] sm:$0xff] %vm4978_vm5, %v4891_v63 }
 0x2fb   : > { %v1726_v59 = vpop.permute.xlu1 %1725  ;;  %4596 = vst.msk [vmem:[#allocation4 + $0x78] sm:$0xff] %vm4590_vm13, %v4505_v9 }
 0x2fc   : > { %v3780_v30 = vsel %vm3652_vm2, %v3588_v53, %v3716_v33  ;;  %v3907_v2 = vld [vmem:[#allocation3 + $0xe0] ss:$2 sm:$0xff]  ;;  %v3971_v0 = vld [vmem:[#allocation3 + $0xe1] ss:$2 sm:$0xff]  ;;  %v1916_v41 = vmul.f32 %v11056_v52, %v1726_v59  ;;  %v4245_v53 = vld [vmem:[#allocation2 + $0x4d] sm:$0xff] }
 0x2fd   : > { %3845 = vst.msk [vmem:[#allocation3 + $0xf0] sm:$0xff] %vm3814_vm3, %v3780_v30  ;;  %v4084_v18 = vmax.f32 %v3907_v2, %v3971_v0  ;;  %v11335_v0 = vld [vmem:[#allocation6 + $0x1] ss:$0 sm:$0xff] }
 0x2fe   : > { %v1980_v54 = vadd.f32 %v1916_v41, %v1402_v12 }
 0x2ff   : > { %4704 = vrot.lane.b32.xlu0 %v4632_v1, %s10230_s27  ;;  %v5172_v44 = vpop.f32.mrf.mxu0  ;;  %v4633_v1 = vld [vmem:[#allocation2 + $0x57] sm:$0xff] }
 0x300   : > { %4510 = vrot.lane.b32.xlu2 %v4438_v28, %s10231_s2  ;;  %v5173_v10 = vadd.f32 %v11296_v62, %v5172_v44  ;;  %v4439_v28 = vld [vmem:[#allocation2 + $0x52] sm:$0xff] }
 0x301   : > { %3297 = vperm.xlu1 %9743, %v3078_v58   ;;  %v2754_v16 = vpop.permute.xlu0 %2753  ;;  %v5016_v50 = vld [vmem:[#allocation4 + $0x60] sm:$0xff] }
 0x302   : > { %vm5268_vm8 = vcmp.gt.f32.partialorder %v5173_v10, 0.0  ;;  %v5300_v45 = vmul.f32 0.01, %v5173_v10  ;;  %v11305_v36 = vpop.permute.xlu2 %2244  ;;  %9465 = vmatmul.msk.f32.gmra.mxu0 %vm5058_vm7, %v5016_v50  ;;  %v2944_v52 = vmul.f32 %v11079_v57, %v2754_v16  ;;  %v1539_v57 = vld [vmem:[#allocation2 + $0x14d] sm:$0xff] }
 0x303   : > { %v2240_v29 = vpop.permute.xlu1 %2239  ;;  %v3080_v58 = vld [vmem:[#allocation2 + $0x154] sm:$0xff] }
 0x304   : > { %v4035_v31 = vld [vmem:[#allocation3 + $0xe2] ss:$2 sm:$0xff]  ;;  %v5332_v26 = vsel %vm5268_vm8, %v5173_v10, %v5300_v45  ;;  %v2430_v7 = vmul.f32 %v11075_v6, %v2240_v29  ;;  %v1403_v45 = vmul.f32 %v11340_v60, %v13267_v47 }
 0x305   : > { %v4116_v37 = vmax.f32 %v4084_v18, %v4035_v31  ;;  %5365 = vst.msk [vmem:[#allocation3] sm:$0xff] %vm5364_vm9, %v5332_v26 }
 0x306   : > { %v2494_v21 = vadd.f32 %v2430_v7, %v1980_v54 }
 0x307   : > { %4151 = vst.msk [vmem:[#allocation2 + $0x7a] sm:$0xff] %vm3814_vm3, %v4116_v37  ;;  %4898 = vrot.lane.b32.xlu0 %v4826_v39, %s10232_s10  ;;  %v11348_v39 = vld [vmem:[#allocation6 + $0x2] ss:$0 sm:$0xff] }
 0x308   : > { %2274 = vperm.xlu2 %9744, %v2051_v42   ;;  %v3008_v19 = vadd.f32 %v2944_v52, %v2494_v21  ;;  %v2431_v61 = vmul.f32 %v11348_v39, %v11305_v36  ;;  %v2567_v21 = vld [vmem:[#allocation2 + $0x157] sm:$0xff] }
 0x309   : > { %1765 = vperm.xlu1 %9743, %v1538_v56   ;;  %v1731_v23 = vpop.permute.xlu0 %1730  ;;  %v2053_v56 = vld [vmem:[#allocation2 + $0x152] sm:$0xff] }
 0x30a   : > { %v11316_v11 = vpop.permute.xlu2 %2758  ;;  %v1917_v14 = vmul.f32 %v11335_v0, %v1731_v23  ;;  %v1540_v23 = vld [vmem:[#allocation2 + $0x155] sm:$0xff] }
 0x30b   : > { %v3263_v51 = vpop.permute.xlu1 %3262  ;;  %v2945_v12 = vmul.f32 %v11354_v20, %v11316_v11  ;;  %v2054_v11 = vld [vmem:[#allocation2 + $0x15a] sm:$0xff] }
 0x30c   : > { %v3457_v46 = vmul.f32 %v11091_v34, %v3263_v51  ;;  %v1981_v26 = vadd.f32 %v1917_v14, %v1403_v45  ;;  %v4634_v14 = vld [vmem:[#allocation2 + $0x5f] sm:$0xff] }
 0x30e   : > { %v3521_v15 = vadd.f32 %v3457_v46, %v3007_v22  ;;  %v4187_v3 = vld [vmem:[#allocation2 + $0x78] sm:$0xff]  ;;  %v2495_v41 = vadd.f32 %v2431_v61, %v1981_v26  ;;  %v13269_v26 = vld [vmem:[#allocation45_spill] sm:$0xff] }
 0x30f   : > { %2793 = vperm.xlu0 %9742, %v2566_v40   ;;  %4219 = vst.msk [vmem:[#allocation4 + $0x168] sm:$0xff] %vm3814_vm3, %v4187_v3  ;;  %v13268_v46 = vld [vmem:[#allocation55_spill] sm:$0xff]  ;;  %v2568_v3 = vld [vmem:[#allocation2 + $0x15f] sm:$0xff] }
 0x310   : > { %v3589_v35 = vadd.f32 %v11102_v4, %v3521_v15  ;;  %2788 = vperm.xlu2 %9744, %v2565_v5   ;;  %v1404_v40 = vmul.f32 %v11340_v60, %v13268_v46  ;;  %v3009_v54 = vadd.f32 %v2945_v12, %v2495_v41  ;;  %v11364_v15 = vld [vmem:[#allocation6 + $0x4] ss:$0 sm:$0xff]  ;;  %v2055_v12 = vld [vmem:[#allocation2 + $0x162] sm:$0xff] }
 0x311   : > { %2279 = vperm.xlu1 %9743, %v2052_v27   ;;  %v4699_v49 = vpop.permute.xlu0 %4698  ;;  %v4828_v46 = vld [vmem:[#allocation2 + $0x64] sm:$0xff] }
 0x312   : > { %vm3653_vm10 = vcmp.gt.f32.partialorder %v3589_v35, 0.0  ;;  %v3717_v6 = vmul.f32 0.01, %v3589_v35  ;;  %v4313_v38 = vpop.permute.xlu2 %4312  ;;  %4790 = vst.msk [vmem:[#allocation4 + $0x78] sm:$0xff] %vm4784_vm1, %v4699_v49 }
 0x313   : > { %v3268_v43 = vpop.permute.xlu1 %3267  ;;  %4403 = vst.msk [vmem:[#allocation4 + $0x90] sm:$0xff] %vm4396_vm11, %v4313_v38 }
 0x314   : > { %v3781_v25 = vsel %vm3653_vm10, %v3589_v35, %v3717_v6  ;;  %v3458_v48 = vmul.f32 %v11091_v34, %v3268_v43  ;;  %v11368_v43 = vld [vmem:[#allocation8] ss:$0 sm:$0xff] }
 0x315   : > { %3846 = vst.msk [vmem:[#allocation3 + $0xf8] sm:$0xff] %vm3814_vm3, %v3781_v25 }
 0x316   : > { %v3522_v24 = vadd.f32 %v3458_v48, %v3008_v19 }
 0x317   : > { %1770 = vperm.xlu0 %9742, %v1539_v57  }
 0x318   : > { %v3590_v63 = vadd.f32 %v11102_v4, %v3522_v24  ;;  %4318 = vrot.lane.b32.xlu2 %v4245_v53, %s10229_s5 }
 0x319   : > { %3302 = vperm.xlu1 %9743, %v3079_v55   ;;  %v4893_v33 = vpop.permute.xlu0 %4892 }
 0x31a   : > { %vm3654_vm12 = vcmp.gt.f32.partialorder %v3590_v63, 0.0  ;;  %v3718_v9 = vmul.f32 0.01, %v3590_v63  ;;  %v4507_v59 = vpop.permute.xlu2 %4506  ;;  %4984 = vst.msk [vmem:[#allocation4 + $0x78] sm:$0xff] %vm4978_vm5, %v4893_v33  ;;  %v1541_v33 = vld [vmem:[#allocation2 + $0x15d] sm:$0xff] }
 0x31b   : > { %v1736_v30 = vpop.permute.xlu1 %1735  ;;  %4597 = vst.msk [vmem:[#allocation4 + $0x90] sm:$0xff] %vm4590_vm13, %v4507_v59  ;;  %v3081_v59 = vld [vmem:[#allocation2 + $0x15c] sm:$0xff] }
 0x31c   : > { %v3782_v34 = vsel %vm3654_vm12, %v3590_v63, %v3718_v9  ;;  %v3909_v44 = vld [vmem:[#allocation3 + $0xf0] ss:$2 sm:$0xff]  ;;  %v3973_v2 = vld [vmem:[#allocation3 + $0xf1] ss:$2 sm:$0xff]  ;;  %v1918_v7 = vmul.f32 %v11335_v0, %v1736_v30 }
 0x31d   : > { %3847 = vst.msk [vmem:[#allocation3 + $0x100] sm:$0xff] %vm3814_vm3, %v3782_v34  ;;  %v4085_v32 = vmax.f32 %v3909_v44, %v3973_v2  ;;  %v4246_v30 = vld [vmem:[#allocation2 + $0x55] sm:$0xff]  ;;  %v3082_v2 = vld [vmem:[#allocation2 + $0x164] sm:$0xff] }
 0x31e   : > { %v1982_v52 = vadd.f32 %v1918_v7, %v1404_v40 }
 0x31f   : > { %4706 = vrot.lane.b32.xlu0 %v4633_v1, %s10230_s27  ;;  %v5175_v4 = vpop.f32.mrf.mxu0 }
 0x320   : > { %4512 = vrot.lane.b32.xlu2 %v4439_v28, %s10231_s2  ;;  %v5176_v10 = vadd.f32 %v11296_v62, %v5175_v4 }
 0x321   : > { %3307 = vperm.xlu1 %9743, %v3080_v58   ;;  %v2764_v16 = vpop.permute.xlu0 %2763  ;;  %v5017_v50 = vld [vmem:[#allocation4 + $0x78] sm:$0xff] }
 0x322   : > { %vm5269_vm14 = vcmp.gt.f32.partialorder %v5176_v10, 0.0  ;;  %v5301_v18 = vmul.f32 0.01, %v5176_v10  ;;  %v11344_v29 = vpop.permute.xlu2 %2254  ;;  %9466 = vmatmul.msk.f32.gmra.mxu0 %vm5058_vm7, %v5017_v50  ;;  %v2946_v38 = vmul.f32 %v11354_v20, %v2764_v16 }
 0x323   : > { %v2250_v31 = vpop.permute.xlu1 %2249  ;;  %v2433_v7 = vmul.f32 %v11348_v39, %v11344_v29 }
 0x324   : > { %v4037_v37 = vld [vmem:[#allocation3 + $0xf2] ss:$2 sm:$0xff]  ;;  %v5333_v42 = vsel %vm5269_vm14, %v5176_v10, %v5301_v18  ;;  %v2432_v5 = vmul.f32 %v11348_v39, %v2250_v31  ;;  %v4440_v10 = vld [vmem:[#allocation2 + $0x5a] sm:$0xff] }
 0x325   : > { %v4117_v8 = vmax.f32 %v4085_v32, %v4037_v37  ;;  %5366 = vst.msk [vmem:[#allocation3 + $0x8] sm:$0xff] %vm5364_vm9, %v5333_v42  ;;  %v1405_v37 = vmul.f32 %v11340_v60, %v13269_v26 }
 0x326   : > { %v2496_v6 = vadd.f32 %v2432_v5, %v1982_v52 }
 0x327   : > { %4152 = vst.msk [vmem:[#allocation2 + $0x82] sm:$0xff] %vm3814_vm3, %v4117_v8  ;;  %4900 = vrot.lane.b32.xlu0 %v4827_v17, %s10232_s10 }
 0x328   : > { %2284 = vperm.xlu2 %9744, %v2053_v56   ;;  %v3010_v55 = vadd.f32 %v2946_v38, %v2496_v6 }
 0x329   : > { %1775 = vperm.xlu1 %9743, %v1540_v23   ;;  %v1741_v51 = vpop.permute.xlu0 %1740 }
 0x32a   : > { %v11359_v22 = vpop.permute.xlu2 %2768  ;;  %v1919_v45 = vmul.f32 %v11335_v0, %v1741_v51 }
 0x32b   : > { %v3273_v36 = vpop.permute.xlu1 %3272 }
 0x32c   : > { %v3459_v27 = vmul.f32 %v11364_v15, %v3273_v36  ;;  %v1983_v23 = vadd.f32 %v1919_v45, %v1405_v37  ;;  %v1542_v36 = vld [vmem:[#allocation2 + $0x165] sm:$0xff]  ;;  %v3084_v37 = vld [vmem:[#allocation2 + $0x174] sm:$0xff] }
 0x32d   : > { %v5398_v40 = vld [vmem:[#allocation3] ss:$2 sm:$0xff]  ;;  %v5414_v5 = vld [vmem:[#allocation3 + $0x1] ss:$2 sm:$0xff] }
 0x32e   : > { %v3523_v35 = vadd.f32 %v3459_v27, %v3009_v54  ;;  %v4188_v49 = vld [vmem:[#allocation2 + $0x80] sm:$0xff]  ;;  %v2497_v54 = vadd.f32 %v2433_v7, %v1983_v23  ;;  %v5446_v29 = vmax.f32 %v5398_v40, %v5414_v5 }
 0x32f   : > { %2803 = vperm.xlu0 %9742, %v2568_v3   ;;  %4220 = vst.msk [vmem:[#allocation4 + $0x180] sm:$0xff] %vm3814_vm3, %v4188_v49  ;;  %v2947_v3 = vmul.f32 %v11354_v20, %v11359_v22 }
 0x330   : > { %v3591_v19 = vadd.f32 %v11368_v43, %v3523_v35  ;;  %2798 = vperm.xlu2 %9744, %v2567_v21  }
 0x331   : > { %2289 = vperm.xlu1 %9743, %v2054_v11   ;;  %v4701_v25 = vpop.permute.xlu0 %4700  ;;  %v13270_v11 = vld [vmem:[#allocation53_spill] sm:$0xff] }
 0x332   : > { %vm3655_vm4 = vcmp.gt.f32.partialorder %v3591_v19, 0.0  ;;  %v3719_v48 = vmul.f32 0.01, %v3591_v19  ;;  %v4315_v57 = vpop.permute.xlu2 %4314  ;;  %4791 = vst.msk [vmem:[#allocation4 + $0x90] sm:$0xff] %vm4784_vm1, %v4701_v25  ;;  %v1406_v49 = vmul.f32 %v11340_v60, %v13270_v11  ;;  %v2057_v11 = vld [vmem:[#allocation2 + $0x172] sm:$0xff] }
 0x333   : > { %v3278_v24 = vpop.permute.xlu1 %3277  ;;  %4404 = vst.msk [vmem:[#allocation4 + $0xa8] sm:$0xff] %vm4396_vm11, %v4315_v57 }
 0x334   : > { %v3783_v53 = vsel %vm3655_vm4, %v3591_v19, %v3719_v48  ;;  %v3460_v63 = vmul.f32 %v11364_v15, %v3278_v24  ;;  %v3011_v19 = vadd.f32 %v2947_v3, %v2497_v54  ;;  %v2570_v48 = vld [vmem:[#allocation2 + $0x16f] sm:$0xff]  ;;  %v2569_v24 = vld [vmem:[#allocation2 + $0x167] sm:$0xff] }
 0x335   : > { %3848 = vst.msk [vmem:[#allocation3 + $0x108] sm:$0xff] %vm3814_vm3, %v3783_v53  ;;  %v2056_v53 = vld [vmem:[#allocation2 + $0x16a] sm:$0xff] }
 0x336   : > { %v3524_v9 = vadd.f32 %v3460_v63, %v3010_v55 }
 0x337   : > { %1780 = vperm.xlu0 %9742, %v1541_v33  }
 0x338   : > { %v3592_v34 = vadd.f32 %v11368_v43, %v3524_v9  ;;  %4320 = vrot.lane.b32.xlu2 %v4246_v30, %s10229_s5 }
 0x339   : > { %3312 = vperm.xlu1 %9743, %v3081_v59   ;;  %v4895_v58 = vpop.permute.xlu0 %4894 }
 0x33a   : > { %vm3656_vm6 = vcmp.gt.f32.partialorder %v3592_v34, 0.0  ;;  %v3720_v1 = vmul.f32 0.01, %v3592_v34  ;;  %v4509_v28 = vpop.permute.xlu2 %4508  ;;  %4985 = vst.msk [vmem:[#allocation4 + $0x90] sm:$0xff] %vm4978_vm5, %v4895_v58 }
 0x33b   : > { %v1746_v4 = vpop.permute.xlu1 %1745  ;;  %4598 = vst.msk [vmem:[#allocation4 + $0xa8] sm:$0xff] %vm4590_vm13, %v4509_v28 }
 0x33c   : > { %v3784_v44 = vsel %vm3656_vm6, %v3592_v34, %v3720_v1  ;;  %v3911_v50 = vld [vmem:[#allocation3 + $0x100] ss:$2 sm:$0xff]  ;;  %v3975_v47 = vld [vmem:[#allocation3 + $0x101] ss:$2 sm:$0xff]  ;;  %v1920_v21 = vmul.f32 %v11335_v0, %v1746_v4 }
 0x33d   : > { %3849 = vst.msk [vmem:[#allocation3 + $0x110] sm:$0xff] %vm3814_vm3, %v3784_v44  ;;  %v4086_v56 = vmax.f32 %v3911_v50, %v3975_v47  ;;  %v4247_v50 = vld [vmem:[#allocation2 + $0x5d] sm:$0xff] }
 0x33e   : > { %v1984_v55 = vadd.f32 %v1920_v21, %v1406_v49 }
 0x33f   : > { %4708 = vrot.lane.b32.xlu0 %v4634_v14, %s10230_s27  ;;  %v5178_v16 = vpop.f32.mrf.mxu0 }
 0x340   : > { %4514 = vrot.lane.b32.xlu2 %v4440_v10, %s10231_s2  ;;  %v5179_v18 = vadd.f32 %v11296_v62, %v5178_v16  ;;  %v3083_v10 = vld [vmem:[#allocation2 + $0x16c] sm:$0xff] }
 0x341   : > { %3317 = vperm.xlu1 %9743, %v3082_v2   ;;  %v2774_v32 = vpop.permute.xlu0 %2773  ;;  %v5018_v31 = vld [vmem:[#allocation4 + $0x90] sm:$0xff] }
 0x342   : > { %vm5270_vm2 = vcmp.gt.f32.partialorder %v5179_v18, 0.0  ;;  %v5302_v42 = vmul.f32 0.01, %v5179_v18  ;;  %v11387_v8 = vpop.permute.xlu2 %2264  ;;  %9467 = vmatmul.msk.f32.gmra.mxu0 %vm5058_vm7, %v5018_v31  ;;  %v2948_v9 = vmul.f32 %v11354_v20, %v2774_v32  ;;  %v1543_v2 = vld [vmem:[#allocation2 + $0x16d] sm:$0xff] }
 0x343   : > { %v2260_v61 = vpop.permute.xlu1 %2259  ;;  %v2435_v49 = vmul.f32 %v11348_v39, %v11387_v8  ;;  %v13272_v8 = vld [vmem:[#allocation48_spill] sm:$0xff] }
 0x344   : > { %v4039_v17 = vld [vmem:[#allocation3 + $0x102] ss:$2 sm:$0xff]  ;;  %v5334_v41 = vsel %vm5270_vm2, %v5179_v18, %v5302_v42  ;;  %v2434_v38 = vmul.f32 %v11348_v39, %v2260_v61 }
 0x345   : > { %v4118_v51 = vmax.f32 %v4086_v56, %v4039_v17  ;;  %5367 = vst.msk [vmem:[#allocation3 + $0x10] sm:$0xff] %vm5364_vm9, %v5334_v41  ;;  %v4635_v42 = vld [vmem:[#allocation2 + $0x67] sm:$0xff] }
 0x346   : > { %v2498_v33 = vadd.f32 %v2434_v38, %v1984_v55  ;;  %v4441_v56 = vld [vmem:[#allocation2 + $0x62] sm:$0xff]  ;;  %v4829_v38 = vld [vmem:[#allocation2 + $0x6c] sm:$0xff] }
 0x347   : > { %4153 = vst.msk [vmem:[#allocation2 + $0x8a] sm:$0xff] %vm3814_vm3, %v4118_v51  ;;  %4902 = vrot.lane.b32.xlu0 %v4828_v46, %s10232_s10 }
 0x348   : > { %2294 = vperm.xlu2 %9744, %v2055_v12   ;;  %v3012_v28 = vadd.f32 %v2948_v9, %v2498_v33  ;;  %v2572_v9 = vld [vmem:[#allocation2 + $0x17f] sm:$0xff] }
 0x349   : > { %1785 = vperm.xlu1 %9743, %v1542_v36   ;;  %v11395_v27 = vpop.permute.xlu0 %1750  ;;  %v13271_v36 = vld [vmem:[#allocation58_spill] sm:$0xff] }
 0x34a   : > { %v11400_v52 = vpop.permute.xlu2 %2778  ;;  %v1921_v41 = vmul.f32 %v11335_v0, %v11395_v27  ;;  %v1407_v46 = vmul.f32 %v11340_v60, %v13271_v36 }
 0x34b   : > { %v3283_v35 = vpop.permute.xlu1 %3282 }
 0x34c   : > { %v5430_v6 = vld [vmem:[#allocation3 + $0x2] ss:$2 sm:$0xff]  ;;  %v3461_v25 = vmul.f32 %v11364_v15, %v3283_v35  ;;  %v1985_v21 = vadd.f32 %v1921_v41, %v1407_v46 }
 0x34d   : > { %v5462_v57 = vmax.f32 %v5446_v29, %v5430_v6  ;;  %v1544_v6 = vld [vmem:[#allocation2 + $0x175] sm:$0xff] }
 0x34e   : > { %v3525_v22 = vadd.f32 %v3461_v25, %v3011_v19  ;;  %v4189_v63 = vld [vmem:[#allocation2 + $0x88] sm:$0xff]  ;;  %v2499_v19 = vadd.f32 %v2435_v49, %v1985_v21  ;;  %v3085_v41 = vld [vmem:[#allocation2 + $0x17c] sm:$0xff] }
 0x34f   : > { %5481 = vst.msk [vmem:[#allocation2 + $0xa] sm:$0xff] %vm5364_vm9, %v5462_v57  ;;  %2813 = vperm.xlu0 %9742, %v2570_v48   ;;  %v2949_v48 = vmul.f32 %v11354_v20, %v11400_v52  ;;  %v4636_v21 = vld [vmem:[#allocation2 + $0x6f] sm:$0xff] }
 0x350   : > { %v3593_v59 = vadd.f32 %v11368_v43, %v3525_v22  ;;  %2808 = vperm.xlu2 %9744, %v2569_v24   ;;  %4221 = vst.msk [vmem:[#allocation4 + $0x198] sm:$0xff] %vm3814_vm3, %v4189_v63  ;;  %v1408_v22 = vmul.f32 %v11340_v60, %v13272_v8 }
 0x351   : > { %2299 = vperm.xlu1 %9743, %v2056_v53   ;;  %v4703_v30 = vpop.permute.xlu0 %4702  ;;  %v3013_v63 = vadd.f32 %v2949_v48, %v2499_v19  ;;  %v13273_v48 = vld [vmem:[#allocation56_spill] sm:$0xff] }
 0x352   : > { %vm3657_vm8 = vcmp.gt.f32.partialorder %v3593_v59, 0.0  ;;  %v3721_v34 = vmul.f32 0.01, %v3593_v59  ;;  %v4317_v58 = vpop.permute.xlu2 %4316  ;;  %4792 = vst.msk [vmem:[#allocation4 + $0xa8] sm:$0xff] %vm4784_vm1, %v4703_v30 }
 0x353   : > { %v3288_v1 = vpop.permute.xlu1 %3287  ;;  %4405 = vst.msk [vmem:[#allocation4 + $0xc0] sm:$0xff] %vm4396_vm11, %v4317_v58  ;;  %v2058_v58 = vld [vmem:[#allocation2 + $0x17a] sm:$0xff] }
 0x354   : > { %v3785_v4 = vsel %vm3657_vm8, %v3593_v59, %v3721_v34  ;;  %v3462_v44 = vmul.f32 %v11364_v15, %v3288_v1  ;;  %v2571_v59 = vld [vmem:[#allocation2 + $0x177] sm:$0xff]  ;;  %v11448_v1 = vld [vmem:[#allocation2 + $0x8a] sm:$0xff] }
 0x355   : > { %3850 = vst.msk [vmem:[#allocation3 + $0x118] sm:$0xff] %vm3814_vm3, %v3785_v4 }
 0x356   : > { %v3526_v14 = vadd.f32 %v3462_v44, %v3012_v28  ;;  %v5500_v16 = vld [vmem:[#allocation2 + $0x8] sm:$0xff] }
 0x357   : > { %1790 = vperm.xlu0 %9742, %v1543_v2   ;;  %5516 = vst.msk [vmem:[#allocation4 + $0x18] sm:$0xff] %vm5364_vm9, %v5500_v16 }
 0x358   : > { %v3594_v47 = vadd.f32 %v11368_v43, %v3526_v14  ;;  %4322 = vrot.lane.b32.xlu2 %v4247_v50, %s10229_s5 }
 0x359   : > { %3322 = vperm.xlu1 %9743, %v3083_v10   ;;  %v4897_v45 = vpop.permute.xlu0 %4896 }
 0x35a   : > { %vm3658_vm10 = vcmp.gt.f32.partialorder %v3594_v47, 0.0  ;;  %v3722_v18 = vmul.f32 0.01, %v3594_v47  ;;  %v4511_v32 = vpop.permute.xlu2 %4510  ;;  %4986 = vst.msk [vmem:[#allocation4 + $0xa8] sm:$0xff] %vm4978_vm5, %v4897_v45 }
 0x35b   : > { %v1756_v31 = vpop.permute.xlu1 %1755  ;;  %4599 = vst.msk [vmem:[#allocation4 + $0xc0] sm:$0xff] %vm4590_vm13, %v4511_v32 }
 0x35c   : > { %v3786_v26 = vsel %vm3658_vm10, %v3594_v47, %v3722_v18  ;;  %v3913_v23 = vld [vmem:[#allocation3 + $0x110] ss:$2 sm:$0xff]  ;;  %v3977_v17 = vld [vmem:[#allocation3 + $0x111] ss:$2 sm:$0xff]  ;;  %v1922_v57 = vmul.f32 %v11335_v0, %v1756_v31 }
 0x35d   : > { %3851 = vst.msk [vmem:[#allocation3 + $0x120] sm:$0xff] %vm3814_vm3, %v3786_v26  ;;  %v4087_v54 = vmax.f32 %v3913_v23, %v3977_v17  ;;  %v11462_v18 = vld [vmem:[#allocation2 + $0x82] sm:$0xff] }
 0x35e   : > { %v1986_v30 = vadd.f32 %v1922_v57, %v1408_v22  ;;  %v11465_v31 = vld [vmem:[#allocation2 + $0x84] sm:$0xff]  ;;  %v1409_v57 = vmul.f32 %v11340_v60, %v13273_v48 }
 0x35f   : > { %4710 = vrot.lane.b32.xlu0 %v4635_v42, %s10230_s27  ;;  %v5181_v61 = vpop.f32.mrf.mxu0  ;;  %v11467_v26 = vld [vmem:[#allocation2 + $0x87] sm:$0xff]  ;;  %v1545_v23 = vld [vmem:[#allocation2 + $0x17d] sm:$0xff] }
 0x360   : > { %4516 = vrot.lane.b32.xlu2 %v4441_v56, %s10231_s2  ;;  %v5182_v51 = vadd.f32 %v11296_v62, %v5181_v61 }
 0x361   : > { %3327 = vperm.xlu1 %9743, %v3084_v37   ;;  %v2784_v12 = vpop.permute.xlu0 %2783  ;;  %v5019_v7 = vld [vmem:[#allocation4 + $0xa8] sm:$0xff] }
 0x362   : > { %vm5271_vm12 = vcmp.gt.f32.partialorder %v5182_v51, 0.0  ;;  %v5303_v40 = vmul.f32 0.01, %v5182_v51  ;;  %v11427_v5 = vpop.permute.xlu2 %2274  ;;  %9468 = vmatmul.msk.f32.gmra.mxu0 %vm5058_vm7, %v5019_v7  ;;  %v2950_v44 = vmul.f32 %v11354_v20, %v2784_v12  ;;  %v11469_v37 = vld [vmem:[#allocation2 + $0x85] sm:$0xff] }
 0x363   : > { %v2270_v3 = vpop.permute.xlu1 %2269 }
 0x364   : > { %v4041_v27 = vld [vmem:[#allocation3 + $0x112] ss:$2 sm:$0xff]  ;;  %v5335_v29 = vsel %vm5271_vm12, %v5182_v51, %v5303_v40  ;;  %v2436_v53 = vmul.f32 %v11348_v39, %v2270_v3 }
 0x365   : > { %v4119_v35 = vmax.f32 %v4087_v54, %v4041_v27  ;;  %5368 = vst.msk [vmem:[#allocation3 + $0x18] sm:$0xff] %vm5364_vm9, %v5335_v29  ;;  %v4248_v51 = vld [vmem:[#allocation2 + $0x65] sm:$0xff] }
 0x366   : > { %v2500_v4 = vadd.f32 %v2436_v53, %v1986_v30  ;;  %v3086_v3 = vld [vmem:[#allocation2 + $0x184] sm:$0xff]  ;;  %v2437_v30 = vmul.f32 %v11348_v39, %v11427_v5 }
 0x367   : > { %4154 = vst.msk [vmem:[#allocation2 + $0x92] sm:$0xff] %vm3814_vm3, %v4119_v35  ;;  %4904 = vrot.lane.b32.xlu0 %v4829_v38, %s10232_s10  ;;  %v4442_v27 = vld [vmem:[#allocation2 + $0x6a] sm:$0xff] }
 0x368   : > { %2304 = vperm.xlu2 %9744, %v2057_v11   ;;  %v3014_v42 = vadd.f32 %v2950_v44, %v2500_v4 }
 0x369   : > { %1795 = vperm.xlu1 %9743, %v1544_v6   ;;  %v11435_v25 = vpop.permute.xlu0 %1760 }
 0x36a   : > { %v11440_v24 = vpop.permute.xlu2 %2788  ;;  %v1923_v49 = vmul.f32 %v11335_v0, %v11435_v25 }
 0x36b   : > { %v3293_v55 = vpop.permute.xlu1 %3292 }
 0x36c   : > { %v3463_v33 = vmul.f32 %v11364_v15, %v3293_v55  ;;  %v5415_v4 = vld [vmem:[#allocation3 + $0x11] ss:$2 sm:$0xff] }
 0x36e   : > { %v3527_v34 = vadd.f32 %v3463_v33, %v3013_v63  ;;  %v11446_v52 = vld [vmem:[#allocation2 + $0x8c] sm:$0xff]  ;;  %v1987_v63 = vadd.f32 %v1923_v49, %v1409_v57 }
 0x36f   : > { %2823 = vperm.xlu0 %9742, %v2572_v9   ;;  %v4190_v28 = vld [vmem:[#allocation2 + $0x90] sm:$0xff] }
 0x370   : > { %v3595_v2 = vadd.f32 %v11368_v43, %v3527_v34  ;;  %2818 = vperm.xlu2 %9744, %v2571_v59   ;;  %v11452_v14 = vld [vmem:[#allocation2 + $0x8f] sm:$0xff]  ;;  %4222 = vst.msk [vmem:[#allocation4 + $0x1b0] sm:$0xff] %vm3814_vm3, %v4190_v28  ;;  %v2059_v59 = vld [vmem:[#allocation2 + $0x182] sm:$0xff]  ;;  %v2501_v44 = vadd.f32 %v2437_v30, %v1987_v63 }
 0x371   : > { %v11454_v10 = vld [vmem:[#allocation2 + $0x8d] sm:$0xff]  ;;  %2309 = vperm.xlu1 %9743, %v2058_v58   ;;  %v4705_v50 = vpop.permute.xlu0 %4704  ;;  %v1546_v34 = vld [vmem:[#allocation2 + $0x185] sm:$0xff] }
 0x372   : > { %v11456_v16 = vld [vmem:[#allocation2 + $0x92] sm:$0xff]  ;;  %vm3659_vm14 = vcmp.gt.f32.partialorder %v3595_v2, 0.0  ;;  %v3723_v47 = vmul.f32 0.01, %v3595_v2  ;;  %v4319_v45 = vpop.permute.xlu2 %4318  ;;  %4793 = vst.msk [vmem:[#allocation4 + $0xc0] sm:$0xff] %vm4784_vm1, %v4705_v50  ;;  %v2951_v50 = vmul.f32 %v11354_v20, %v11440_v24 }
 0x373   : > { %5498 = vst.msk [vmem:[#allocation2 + $0x91] sm:$0x3] %vm5479_vm15, %v13251_v13  ;;  %v3298_v32 = vpop.permute.xlu1 %3297  ;;  %v4830_v58 = vld [vmem:[#allocation2 + $0x74] sm:$0xff]  ;;  %v3087_v57 = vld [vmem:[#allocation2 + $0x18c] sm:$0xff] }
 0x374   : > { %4406 = vst.msk [vmem:[#allocation4 + $0xd8] sm:$0xff] %vm4396_vm11, %v4319_v45  ;;  %v3787_v56 = vsel %vm3659_vm14, %v3595_v2, %v3723_v47  ;;  %v3464_v61 = vmul.f32 %v11364_v15, %v3298_v32  ;;  %v5399_v28 = vld [vmem:[#allocation3 + $0x10] ss:$2 sm:$0xff] }
 0x375   : > { %5497 = vst.msk [vmem:[#allocation2 + $0x89] sm:$0xff] %vm5364_vm9, %v13251_v13  ;;  %v5447_v5 = vmax.f32 %v5399_v28, %v5415_v4  ;;  %v3088_v30 = vld [vmem:[#allocation2 + $0x194] sm:$0xff] }
 0x376   : > { %3852 = vst.msk [vmem:[#allocation3 + $0x128] sm:$0xff] %vm3814_vm3, %v3787_v56  ;;  %v3528_v17 = vadd.f32 %v3464_v61, %v3014_v42  ;;  %v13274_v42 = vld [vmem:[#allocation61_spill] sm:$0xff] }
 0x377   : > { %1800 = vperm.xlu0 %9742, %v1545_v23   ;;  %v1410_v56 = vmul.f32 %v11340_v60, %v13274_v42  ;;  %v13275_v42 = vld [vmem:[#allocation51_spill] sm:$0xff] }
 0x378   : > { %v3596_v12 = vadd.f32 %v11368_v43, %v3528_v17  ;;  %4324 = vrot.lane.b32.xlu2 %v4248_v51, %s10229_s5  ;;  %v3015_v17 = vadd.f32 %v2951_v50, %v2501_v44  ;;  %v2574_v51 = vld [vmem:[#allocation2 + $0x18f] sm:$0xff] }
 0x379   : > { %3332 = vperm.xlu1 %9743, %v3085_v41   ;;  %v4899_v7 = vpop.permute.xlu0 %4898 }
 0x37a   : > { %vm3660_vm15 = vcmp.gt.f32.partialorder %v3596_v12, 0.0  ;;  %v3724_v36 = vmul.f32 0.01, %v3596_v12  ;;  %v4513_v46 = vpop.permute.xlu2 %4512  ;;  %4987 = vst.msk [vmem:[#allocation4 + $0xc0] sm:$0xff] %vm4978_vm5, %v4899_v7  ;;  %v2573_v7 = vld [vmem:[#allocation2 + $0x187] sm:$0xff] }
 0x37b   : > { %v1766_v40 = vpop.permute.xlu1 %1765  ;;  %4600 = vst.msk [vmem:[#allocation4 + $0xd8] sm:$0xff] %vm4590_vm13, %v4513_v46  ;;  %v2060_v46 = vld [vmem:[#allocation2 + $0x18a] sm:$0xff] }
 0x37c   : > { %v3788_v54 = vsel %vm3660_vm15, %v3596_v12, %v3724_v36  ;;  %v1924_v47 = vmul.f32 %v11335_v0, %v1766_v40 }
 0x37d   : > { %3853 = vst.msk [vmem:[#allocation3 + $0x130] sm:$0xff] %vm3814_vm3, %v3788_v54  ;;  %v3915_v35 = vld [vmem:[#allocation3 + $0x120] ss:$2 sm:$0xff]  ;;  %v3979_v11 = vld [vmem:[#allocation3 + $0x121] ss:$2 sm:$0xff] }
 0x37e   : > { %v4088_v22 = vmax.f32 %v3915_v35, %v3979_v11  ;;  %v1988_v36 = vadd.f32 %v1924_v47, %v1410_v56  ;;  %v1411_v56 = vmul.f32 %v11340_v60, %v13275_v42 }
 0x37f   : > { %4712 = vrot.lane.b32.xlu0 %v4636_v21, %s10230_s27  ;;  %v5184_v29 = vpop.f32.mrf.mxu0 }
 0x380   : > { %4518 = vrot.lane.b32.xlu2 %v4442_v27, %s10231_s2  ;;  %v5185_v6 = vadd.f32 %v11296_v62, %v5184_v29 }
 0x381   : > { %3337 = vperm.xlu1 %9743, %v3086_v3   ;;  %v2794_v38 = vpop.permute.xlu0 %2793  ;;  %v5020_v19 = vld [vmem:[#allocation4 + $0xc0] sm:$0xff] }
 0x382   : > { %vm5272_vm4 = vcmp.gt.f32.partialorder %v5185_v6, 0.0  ;;  %v5304_v55 = vmul.f32 0.01, %v5185_v6  ;;  %v11487_v8 = vpop.permute.xlu2 %2284  ;;  %9469 = vmatmul.msk.f32.gmra.mxu0 %vm5058_vm7, %v5020_v19  ;;  %v2952_v3 = vmul.f32 %v11354_v20, %v2794_v38  ;;  %v1547_v38 = vld [vmem:[#allocation2 + $0x18d] sm:$0xff] }
 0x383   : > { %v2280_v53 = vpop.permute.xlu1 %2279 }
 0x384   : > { %v4043_v25 = vld [vmem:[#allocation3 + $0x122] ss:$2 sm:$0xff]  ;;  %v5336_v33 = vsel %vm5272_vm4, %v5185_v6, %v5304_v55  ;;  %v2438_v23 = vmul.f32 %v11348_v39, %v2280_v53  ;;  %v4249_v55 = vld [vmem:[#allocation2 + $0x6d] sm:$0xff] }
 0x385   : > { %v4120_v9 = vmax.f32 %v4088_v22, %v4043_v25  ;;  %5369 = vst.msk [vmem:[#allocation3 + $0x20] sm:$0xff] %vm5364_vm9, %v5336_v33 }
 0x386   : > { %v2502_v54 = vadd.f32 %v2438_v23, %v1988_v36  ;;  %v2439_v36 = vmul.f32 %v11348_v39, %v11487_v8 }
 0x387   : > { %4155 = vst.msk [vmem:[#allocation2 + $0x9a] sm:$0xff] %vm3814_vm3, %v4120_v9  ;;  %4906 = vrot.lane.b32.xlu0 %v4830_v58, %s10232_s10  ;;  %v4443_v58 = vld [vmem:[#allocation2 + $0x72] sm:$0xff] }
 0x388   : > { %2314 = vperm.xlu2 %9744, %v2059_v59   ;;  %v3016_v49 = vadd.f32 %v2952_v3, %v2502_v54 }
 0x389   : > { %1805 = vperm.xlu1 %9743, %v1546_v34   ;;  %v11495_v2 = vpop.permute.xlu0 %1770  ;;  %v4637_v34 = vld [vmem:[#allocation2 + $0x77] sm:$0xff] }
 0x38a   : > { %v11500_v45 = vpop.permute.xlu2 %2798  ;;  %v1925_v50 = vmul.f32 %v11335_v0, %v11495_v2 }
 0x38b   : > { %v3303_v32 = vpop.permute.xlu1 %3302  ;;  %v2953_v3 = vmul.f32 %v11354_v20, %v11500_v45 }
 0x38c   : > { %v5431_v61 = vld [vmem:[#allocation3 + $0x12] ss:$2 sm:$0xff]  ;;  %v3465_v41 = vmul.f32 %v11364_v15, %v3303_v32 }
 0x38d   : > { %v5463_v12 = vmax.f32 %v5447_v5, %v5431_v61 }
 0x38e   : > { %v3529_v24 = vadd.f32 %v3465_v41, %v3015_v17  ;;  %v4191_v40 = vld [vmem:[#allocation2 + $0x98] sm:$0xff] }
 0x38f   : > { %5482 = vst.msk [vmem:[#allocation2 + $0x12] sm:$0xff] %vm5364_vm9, %v5463_v12  ;;  %2833 = vperm.xlu0 %9742, %v2574_v51   ;;  %v1989_v51 = vadd.f32 %v1925_v50, %v1411_v56  ;;  %v4250_v50 = vld [vmem:[#allocation2 + $0x75] sm:$0xff] }
 0x390   : > { %v3597_v21 = vadd.f32 %v11368_v43, %v3529_v24  ;;  %2828 = vperm.xlu2 %9744, %v2573_v7   ;;  %4223 = vst.msk [vmem:[#allocation4 + $0x1c8] sm:$0xff] %vm3814_vm3, %v4191_v40  ;;  %v1548_v24 = vld [vmem:[#allocation2 + $0x195] sm:$0xff] }
 0x391   : > { %2319 = vperm.xlu1 %9743, %v2060_v46   ;;  %v4707_v27 = vpop.permute.xlu0 %4706  ;;  %v4831_v46 = vld [vmem:[#allocation2 + $0x7c] sm:$0xff]  ;;  %v2503_v40 = vadd.f32 %v2439_v36, %v1989_v51 }
 0x392   : > { %vm3661_vm6 = vcmp.gt.f32.partialorder %v3597_v21, 0.0  ;;  %v3725_v29 = vmul.f32 0.01, %v3597_v21  ;;  %v4321_v35 = vpop.permute.xlu2 %4320  ;;  %4794 = vst.msk [vmem:[#allocation4 + $0xd8] sm:$0xff] %vm4784_vm1, %v4707_v27  ;;  %v4638_v51 = vld [vmem:[#allocation2 + $0x7f] sm:$0xff] }
 0x393   : > { %v3308_v11 = vpop.permute.xlu1 %3307  ;;  %4407 = vst.msk [vmem:[#allocation4 + $0xf0] sm:$0xff] %vm4396_vm11, %v4321_v35  ;;  %v13276_v35 = vld [vmem:[#allocation59_spill] sm:$0xff] }
 0x394   : > { %v3789_v6 = vsel %vm3661_vm6, %v3597_v21, %v3725_v29  ;;  %v3466_v19 = vmul.f32 %v11364_v15, %v3308_v11  ;;  %v1412_v8 = vmul.f32 %v11340_v60, %v13276_v35  ;;  %v13278_v35 = vld [vmem:[#allocation64_spill] sm:$0xff] }
 0x395   : > { %3854 = vst.msk [vmem:[#allocation3 + $0x138] sm:$0xff] %vm3814_vm3, %v3789_v6 }
 0x396   : > { %v3530_v48 = vadd.f32 %v3466_v19, %v3016_v49  ;;  %v5501_v22 = vld [vmem:[#allocation2 + $0x10] sm:$0xff]  ;;  %v3017_v49 = vadd.f32 %v2953_v3, %v2503_v40  ;;  %v2576_v19 = vld [vmem:[#allocation2 + $0x19f] sm:$0xff] }
 0x397   : > { %1810 = vperm.xlu0 %9742, %v1547_v38   ;;  %5517 = vst.msk [vmem:[#allocation4 + $0x30] sm:$0xff] %vm5364_vm9, %v5501_v22  ;;  %v2575_v38 = vld [vmem:[#allocation2 + $0x197] sm:$0xff] }
 0x398   : > { %v3598_v53 = vadd.f32 %v11368_v43, %v3530_v48  ;;  %4326 = vrot.lane.b32.xlu2 %v4249_v55, %s10229_s5  ;;  %v2062_v55 = vld [vmem:[#allocation2 + $0x19a] sm:$0xff] }
 0x399   : > { %3342 = vperm.xlu1 %9743, %v3087_v57   ;;  %v4901_v63 = vpop.permute.xlu0 %4900 }
 0x39a   : > { %vm3662_vm2 = vcmp.gt.f32.partialorder %v3598_v53, 0.0  ;;  %v3726_v25 = vmul.f32 0.01, %v3598_v53  ;;  %v4515_v33 = vpop.permute.xlu2 %4514  ;;  %4988 = vst.msk [vmem:[#allocation4 + $0xd8] sm:$0xff] %vm4978_vm5, %v4901_v63 }
 0x39b   : > { %v1776_v9 = vpop.permute.xlu1 %1775  ;;  %4601 = vst.msk [vmem:[#allocation4 + $0xf0] sm:$0xff] %vm4590_vm13, %v4515_v33 }
 0x39c   : > { %v3790_v59 = vsel %vm3662_vm2, %v3598_v53, %v3726_v25  ;;  %v3917_v4 = vld [vmem:[#allocation3 + $0x130] ss:$2 sm:$0xff]  ;;  %v3981_v44 = vld [vmem:[#allocation3 + $0x131] ss:$2 sm:$0xff]  ;;  %v1926_v21 = vmul.f32 %v11335_v0, %v1776_v9 }
 0x39d   : > { %3855 = vst.msk [vmem:[#allocation3 + $0x140] sm:$0xff] %vm3814_vm3, %v3790_v59  ;;  %v4089_v17 = vmax.f32 %v3917_v4, %v3981_v44  ;;  %v3089_v44 = vld [vmem:[#allocation2 + $0x19c] sm:$0xff] }
 0x39e   : > { %v1990_v48 = vadd.f32 %v1926_v21, %v1412_v8  ;;  %v1413_v8 = vmul.f32 %v11340_v60, %v13278_v35 }
 0x39f   : > { %4714 = vrot.lane.b32.xlu0 %v4637_v34, %s10230_s27  ;;  %v5187_v28 = vpop.f32.mrf.mxu0 }
 0x3a0   : > { %4520 = vrot.lane.b32.xlu2 %v4443_v58, %s10231_s2  ;;  %v5188_v47 = vadd.f32 %v11296_v62, %v5187_v28  ;;  %v2061_v62 = vld [vmem:[#allocation2 + $0x192] sm:$0xff]  ;;  %v1549_v28 = vld [vmem:[#allocation2 + $0x19d] sm:$0xff] }
 0x3a1   : > { %3347 = vperm.xlu1 %9743, %v3088_v30   ;;  %v2804_v5 = vpop.permute.xlu0 %2803  ;;  %v5021_v32 = vld [vmem:[#allocation4 + $0xd8] sm:$0xff] }
 0x3a2   : > { %vm5273_vm8 = vcmp.gt.f32.partialorder %v5188_v47, 0.0  ;;  %v5305_v61 = vmul.f32 0.01, %v5188_v47  ;;  %v11527_v23 = vpop.permute.xlu2 %2294  ;;  %9470 = vmatmul.msk.f32.gmra.mxu0 %vm5058_vm7, %v5021_v32  ;;  %v2954_v53 = vmul.f32 %v11354_v20, %v2804_v5 }
 0x3a3   : > { %v2290_v41 = vpop.permute.xlu1 %2289 }
 0x3a4   : > { %v4045_v2 = vld [vmem:[#allocation3 + $0x132] ss:$2 sm:$0xff]  ;;  %v5337_v12 = vsel %vm5273_vm8, %v5188_v47, %v5305_v61  ;;  %v2440_v11 = vmul.f32 %v11348_v39, %v2290_v41 }
 0x3a5   : > { %v4121_v7 = vmax.f32 %v4089_v17, %v4045_v2  ;;  %5370 = vst.msk [vmem:[#allocation3 + $0x28] sm:$0xff] %vm5364_vm9, %v5337_v12  ;;  %v5908_v17 = vld [vmem:[%s13277_s25 + $0x98] sm:$0xff]  ;;  %v3090_v41 = vld [vmem:[#allocation2 + $0x1a4] sm:$0xff] }
 0x3a6   : > { %v2504_v22 = vadd.f32 %v2440_v11, %v1990_v48  ;;  %6038 = vmatpush.msra.mxu2 %v5908_v17  ;;  %v4444_v2 = vld [vmem:[#allocation2 + $0x7a] sm:$0xff]  ;;  %v2064_v17 = vld [vmem:[#allocation2 + $0x1aa] sm:$0xff] }
 0x3a7   : > { %4156 = vst.msk [vmem:[#allocation2 + $0xa2] sm:$0xff] %vm3814_vm3, %v4121_v7  ;;  %4908 = vrot.lane.b32.xlu0 %v4831_v46, %s10232_s10  ;;  %v5907_v7 = vld [vmem:[%s13277_s25 + $0x90] sm:$0xff]  ;;  %v11565_v46 = vld [vmem:[#allocation10] ss:$0 sm:$0xff] }
 0x3a8   : > { %2324 = vperm.xlu2 %9744, %v2061_v62   ;;  %v3018_v30 = vadd.f32 %v2954_v53, %v2504_v22  ;;  %6039 = vmatpush.msra.mxu2 %v5907_v7  ;;  %v2441_v22 = vmul.f32 %v11348_v39, %v11527_v23  ;;  %v1550_v53 = vld [vmem:[#allocation2 + $0x1a5] sm:$0xff] }
 0x3a9   : > { %1815 = vperm.xlu1 %9743, %v1548_v24   ;;  %v1781_v54 = vpop.permute.xlu0 %1780 }
 0x3aa   : > { %v11538_v27 = vpop.permute.xlu2 %2808  ;;  %v1927_v24 = vmul.f32 %v11335_v0, %v1781_v54 }
 0x3ab   : > { %v3313_v29 = vpop.permute.xlu1 %3312 }
 0x3ac   : > { %v3467_v6 = vmul.f32 %v11364_v15, %v3313_v29  ;;  %v5906_v29 = vld [vmem:[%s13277_s25 + $0x88] sm:$0xff] }
 0x3ad   : > { %6040 = vmatpush.msra.mxu2 %v5906_v29 }
 0x3ae   : > { %v3531_v57 = vadd.f32 %v3467_v6, %v3017_v49  ;;  %v4192_v45 = vld [vmem:[#allocation2 + $0xa0] sm:$0xff] }
 0x3af   : > { %2843 = vperm.xlu0 %9742, %v2576_v19   ;;  %4224 = vst.msk [vmem:[#allocation4 + $0x1e0] sm:$0xff] %vm3814_vm3, %v4192_v45  ;;  %v5905_v19 = vld [vmem:[%s13277_s25 + $0x80] sm:$0xff] }
 0x3b0   : > { %v3599_v63 = vadd.f32 %v11368_v43, %v3531_v57  ;;  %2838 = vperm.xlu2 %9744, %v2575_v38   ;;  %v1991_v38 = vadd.f32 %v1927_v24, %v1413_v8  ;;  %6041 = vmatpush.msra.mxu2 %v5905_v19  ;;  %v2063_v45 = vld [vmem:[#allocation2 + $0x1a2] sm:$0xff]  ;;  %v3092_v19 = vld [vmem:[#allocation2 + $0x1b4] sm:$0xff] }
 0x3b1   : > { %2329 = vperm.xlu1 %9743, %v2062_v55   ;;  %v4709_v25 = vpop.permute.xlu0 %4708 }
 0x3b2   : > { %vm3663_vm10 = vcmp.gt.f32.partialorder %v3599_v63, 0.0  ;;  %v3727_v33 = vmul.f32 0.01, %v3599_v63  ;;  %v4323_v9 = vpop.permute.xlu2 %4322  ;;  %4795 = vst.msk [vmem:[#allocation4 + $0xf0] sm:$0xff] %vm4784_vm1, %v4709_v25  ;;  %v5416_v25 = vld [vmem:[#allocation3 + $0x21] ss:$2 sm:$0xff] }
 0x3b3   : > { %v3318_v59 = vpop.permute.xlu1 %3317  ;;  %4408 = vst.msk [vmem:[#allocation4 + $0x108] sm:$0xff] %vm4396_vm11, %v4323_v9 }
 0x3b4   : > { %v3791_v34 = vsel %vm3663_vm10, %v3599_v63, %v3727_v33  ;;  %v3468_v58 = vmul.f32 %v11364_v15, %v3318_v59  ;;  %v5400_v63 = vld [vmem:[#allocation3 + $0x20] ss:$2 sm:$0xff]  ;;  %v2505_v33 = vadd.f32 %v2441_v22, %v1991_v38  ;;  %v2955_v59 = vmul.f32 %v11354_v20, %v11538_v27 }
 0x3b5   : > { %3856 = vst.msk [vmem:[#allocation3 + $0x148] sm:$0xff] %vm3814_vm3, %v3791_v34  ;;  %v5448_v23 = vmax.f32 %v5400_v63, %v5416_v25  ;;  %v11621_v25 = vld [vmem:[#allocation6] ss:$0 sm:$0xff] }
 0x3b6   : > { %v3532_v4 = vadd.f32 %v3468_v58, %v3018_v30 }
 0x3b7   : > { %1820 = vperm.xlu0 %9742, %v1549_v28   ;;  %v13279_v28 = vld [vmem:[#allocation54_spill] sm:$0xff] }
 0x3b8   : > { %v3600_v47 = vadd.f32 %v11368_v43, %v3532_v4  ;;  %4328 = vrot.lane.b32.xlu2 %v4250_v50, %s10229_s5  ;;  %v1414_v4 = vmul.f32 %v11340_v60, %v13279_v28  ;;  %v3019_v50 = vadd.f32 %v2955_v59, %v2505_v33 }
 0x3b9   : > { %3352 = vperm.xlu1 %9743, %v3089_v44   ;;  %v4903_v5 = vpop.permute.xlu0 %4902 }
 0x3ba   : > { %vm3664_vm12 = vcmp.gt.f32.partialorder %v3600_v47, 0.0  ;;  %v3728_v32 = vmul.f32 0.01, %v3600_v47  ;;  %v4517_v42 = vpop.permute.xlu2 %4516  ;;  %4989 = vst.msk [vmem:[#allocation4 + $0xf0] sm:$0xff] %vm4978_vm5, %v4903_v5  ;;  %v2578_v5 = vld [vmem:[#allocation2 + $0x1af] sm:$0xff] }
 0x3bb   : > { %v1786_v56 = vpop.permute.xlu1 %1785  ;;  %4602 = vst.msk [vmem:[#allocation4 + $0x108] sm:$0xff] %vm4590_vm13, %v4517_v42  ;;  %v2577_v42 = vld [vmem:[#allocation2 + $0x1a7] sm:$0xff] }
 0x3bc   : > { %v3792_v61 = vsel %vm3664_vm12, %v3600_v47, %v3728_v32  ;;  %v3919_v62 = vld [vmem:[#allocation3 + $0x140] ss:$2 sm:$0xff]  ;;  %v3983_v36 = vld [vmem:[#allocation3 + $0x141] ss:$2 sm:$0xff]  ;;  %v1928_v30 = vmul.f32 %v11335_v0, %v1786_v56 }
 0x3bd   : > { %3857 = vst.msk [vmem:[#allocation3 + $0x150] sm:$0xff] %vm3814_vm3, %v3792_v61  ;;  %v4090_v49 = vmax.f32 %v3919_v62, %v3983_v36 }
 0x3be   : > { %v1992_v61 = vadd.f32 %v1928_v30, %v1414_v4 }
 0x3bf   : > { %4716 = vrot.lane.b32.xlu0 %v4638_v51, %s10230_s27  ;;  %v5190_v12 = vpop.f32.mrf.mxu0 }
 0x3c0   : > { %4522 = vrot.lane.b32.xlu2 %v4444_v2, %s10231_s2  ;;  %v5191_v40 = vadd.f32 %v11565_v46, %v5190_v12 }
 0x3c1   : > { %3357 = vperm.xlu1 %9743, %v3090_v41   ;;  %v2814_v3 = vpop.permute.xlu0 %2813  ;;  %v5022_v21 = vld [vmem:[#allocation4 + $0xf0] sm:$0xff] }
 0x3c2   : > { %vm5274_vm14 = vcmp.gt.f32.partialorder %v5191_v40, 0.0  ;;  %v5306_v11 = vmul.f32 0.01, %v5191_v40  ;;  %v11573_v54 = vpop.permute.xlu2 %2304  ;;  %9471 = vmatmul.msk.f32.gmra.mxu0 %vm5058_vm7, %v5022_v21  ;;  %v2956_v41 = vmul.f32 %v11354_v20, %v2814_v3  ;;  %v1551_v20 = vld [vmem:[#allocation2 + $0x1ad] sm:$0xff]  ;;  %v4251_v21 = vld [vmem:[#allocation2 + $0x7d] sm:$0xff] }
 0x3c3   : > { %v2300_v6 = vpop.permute.xlu1 %2299 }
 0x3c4   : > { %v4047_v48 = vld [vmem:[#allocation3 + $0x142] ss:$2 sm:$0xff]  ;;  %v5338_v57 = vsel %vm5274_vm14, %v5191_v40, %v5306_v11  ;;  %v2442_v44 = vmul.f32 %v11348_v39, %v2300_v6  ;;  %v3091_v40 = vld [vmem:[#allocation2 + $0x1ac] sm:$0xff] }
 0x3c5   : > { %v4122_v55 = vmax.f32 %v4090_v49, %v4047_v48  ;;  %5371 = vst.msk [vmem:[#allocation3 + $0x30] sm:$0xff] %vm5364_vm9, %v5338_v57 }
 0x3c6   : > { %v2506_v56 = vadd.f32 %v2442_v44, %v1992_v61  ;;  %v11629_v44 = vld [vmem:[#allocation6 + $0x2] ss:$0 sm:$0xff] }
 0x3c7   : > { %4157 = vst.msk [vmem:[#allocation2 + $0xaa] sm:$0xff] %vm3814_vm3, %v4122_v55  ;;  %4910 = vrot.lane.b32.xlu0 %v11465_v31, %s10232_s10  ;;  %v11614_v55 = vld [vmem:[#allocation6 + $0x1] ss:$0 sm:$0xff] }
 0x3c8   : > { %2334 = vperm.xlu2 %9744, %v2063_v45   ;;  %v3020_v7 = vadd.f32 %v2956_v41, %v2506_v56 }
 0x3c9   : > { %1825 = vperm.xlu1 %9743, %v1550_v53   ;;  %v11585_v9 = vpop.permute.xlu0 %1790 }
 0x3ca   : > { %v11590_v34 = vpop.permute.xlu2 %2818  ;;  %v1929_v45 = vmul.f32 %v11614_v55, %v11585_v9 }
 0x3cb   : > { %v3323_v58 = vpop.permute.xlu1 %3322 }
 0x3cc   : > { %v5432_v31 = vld [vmem:[#allocation3 + $0x22] ss:$2 sm:$0xff]  ;;  %v3469_v47 = vmul.f32 %v11364_v15, %v3323_v58 }
 0x3cd   : > { %v5464_v32 = vmax.f32 %v5448_v23, %v5432_v31  ;;  %v2065_v31 = vld [vmem:[#allocation2 + $0x1b2] sm:$0xff] }
 0x3ce   : > { %v3533_v27 = vadd.f32 %v3469_v47, %v3019_v50  ;;  %v4193_v0 = vld [vmem:[#allocation2 + $0xa8] sm:$0xff]  ;;  %v2443_v50 = vmul.f32 %v11629_v44, %v11573_v54  ;;  %v1552_v47 = vld [vmem:[#allocation2 + $0x1b5] sm:$0xff] }
 0x3cf   : > { %5483 = vst.msk [vmem:[#allocation2 + $0x1a] sm:$0xff] %vm5364_vm9, %v5464_v32  ;;  %2853 = vperm.xlu0 %9742, %v2578_v5  }
 0x3d0   : > { %v3601_v60 = vadd.f32 %v11368_v43, %v3533_v27  ;;  %2848 = vperm.xlu2 %9744, %v2577_v42   ;;  %4225 = vst.msk [vmem:[#allocation4 + $0x1f8] sm:$0xff] %vm3814_vm3, %v4193_v0  ;;  %v11636_v42 = vld [vmem:[#allocation6 + $0x3] ss:$0 sm:$0xff] }
 0x3d1   : > { %2339 = vperm.xlu1 %9743, %v2064_v17   ;;  %v4711_v39 = vpop.permute.xlu0 %4710  ;;  %v2957_v61 = vmul.f32 %v11636_v42, %v11590_v34  ;;  %v13281_v0 = vld [vmem:[#allocation67_spill] sm:$0xff] }
 0x3d2   : > { %vm3665_vm15 = vcmp.gt.f32.partialorder %v3601_v60, 0.0  ;;  %v3729_v51 = vmul.f32 0.01, %v3601_v60  ;;  %v4325_v2 = vpop.permute.xlu2 %4324  ;;  %4796 = vst.msk [vmem:[#allocation4 + $0x108] sm:$0xff] %vm4784_vm1, %v4711_v39  ;;  %v1416_v56 = vmul.f32 %v11621_v25, %v13281_v0  ;;  %v2066_v34 = vld [vmem:[#allocation2 + $0x1ba] sm:$0xff] }
 0x3d3   : > { %v3328_v12 = vpop.permute.xlu1 %3327  ;;  %4409 = vst.msk [vmem:[#allocation4 + $0x120] sm:$0xff] %vm4396_vm11, %v4325_v2  ;;  %v2579_v2 = vld [vmem:[#allocation2 + $0x1b7] sm:$0xff] }
 0x3d4   : > { %v3793_v62 = vsel %vm3665_vm15, %v3601_v60, %v3729_v51  ;;  %v3470_v36 = vmul.f32 %v11364_v15, %v3328_v12  ;;  %v11646_v60 = vld [vmem:[#allocation6 + $0x4] ss:$0 sm:$0xff]  ;;  %v2580_v51 = vld [vmem:[#allocation2 + $0x1bf] sm:$0xff] }
 0x3d5   : > { %3858 = vst.msk [vmem:[#allocation3 + $0x158] sm:$0xff] %vm3814_vm3, %v3793_v62 }
 0x3d6   : > { %v3534_v24 = vadd.f32 %v3470_v36, %v3020_v7  ;;  %v5825_v3 = vld [vmem:[#allocation2 + $0x14] sm:$0xff] }
 0x3d7   : > { %1830 = vperm.xlu0 %9742, %v1551_v20   ;;  %5841 = vst.msk [vmem:[#allocation4 + $0x8] sm:$0xff] %vm5364_vm9, %v5825_v3  ;;  %v5502_v29 = vld [vmem:[#allocation2 + $0x18] sm:$0xff] }
 0x3d8   : > { %v3602_v35 = vadd.f32 %v11368_v43, %v3534_v24  ;;  %4330 = vrot.lane.b32.xlu2 %v4251_v21, %s10229_s5  ;;  %5518 = vst.msk [vmem:[#allocation4 + $0x48] sm:$0xff] %vm5364_vm9, %v5502_v29  ;;  %v11650_v24 = vld [vmem:[#allocation8] ss:$0 sm:$0xff] }
 0x3d9   : > { %3362 = vperm.xlu1 %9743, %v3091_v40   ;;  %v4905_v8 = vpop.permute.xlu0 %4904 }
 0x3da   : > { %vm3666_vm4 = vcmp.gt.f32.partialorder %v3602_v35, 0.0  ;;  %v3730_v15 = vmul.f32 0.01, %v3602_v35  ;;  %v4519_v11 = vpop.permute.xlu2 %4518  ;;  %4990 = vst.msk [vmem:[#allocation4 + $0x108] sm:$0xff] %vm4978_vm5, %v4905_v8 }
 0x3db   : > { %v1796_v49 = vpop.permute.xlu1 %1795  ;;  %4603 = vst.msk [vmem:[#allocation4 + $0x120] sm:$0xff] %vm4590_vm13, %v4519_v11 }
 0x3dc   : > { %v3794_v6 = vsel %vm3666_vm4, %v3602_v35, %v3730_v15  ;;  %v3921_v48 = vld [vmem:[#allocation3 + $0x150] ss:$2 sm:$0xff]  ;;  %v3985_v57 = vld [vmem:[#allocation3 + $0x151] ss:$2 sm:$0xff]  ;;  %v1930_v27 = vmul.f32 %v11614_v55, %v1796_v49  ;;  %v1553_v49 = vld [vmem:[#allocation2 + $0x1bd] sm:$0xff] }
 0x3dd   : > { %3859 = vst.msk [vmem:[#allocation3 + $0x160] sm:$0xff] %vm3814_vm3, %v3794_v6  ;;  %v4091_v9 = vmax.f32 %v3921_v48, %v3985_v57 }
 0x3de   : > { %v5858_v38 = vld [vmem:[#allocation4 + $0x8] sm:$0xff]  ;;  %v1994_v12 = vadd.f32 %v1930_v27, %v1416_v56 }
 0x3df   : > { %4718 = vrot.lane.b32.xlu0 %v11467_v26, %s10230_s27  ;;  %v5193_v43 = vpop.f32.mrf.mxu0  ;;  %9493 = vmatmul.msk.f32.vlgmr.msra.gmra.mxu2 %vm5364_vm9, %v5858_v38  ;;  %v13280_v26 = vld [vmem:[#allocation62_spill] sm:$0xff]  ;;  %v1554_v27 = vld [vmem:[#allocation2 + $0x1c5] sm:$0xff] }
 0x3e0   : > { %4524 = vrot.lane.b32.xlu2 %v11462_v18, %s10231_s2  ;;  %v5194_v22 = vadd.f32 %v11565_v46, %v5193_v43  ;;  %v1415_v33 = vmul.f32 %v11621_v25, %v13280_v26 }
 0x3e1   : > { %3367 = vperm.xlu1 %9743, %v3092_v19   ;;  %v2824_v53 = vpop.permute.xlu0 %2823  ;;  %v5023_v63 = vld [vmem:[#allocation4 + $0x108] sm:$0xff] }
 0x3e2   : > { %vm5275_vm6 = vcmp.gt.f32.partialorder %v5194_v22, 0.0  ;;  %v5307_v59 = vmul.f32 0.01, %v5194_v22  ;;  %v11625_v30 = vpop.permute.xlu2 %2314  ;;  %9472 = vmatmul.msk.f32.gmra.mxu0 %vm5058_vm7, %v5023_v63  ;;  %v1993_v58 = vadd.f32 %v1929_v45, %v1415_v33  ;;  %v2958_v20 = vmul.f32 %v11636_v42, %v2824_v53  ;;  %v3093_v19 = vld [vmem:[#allocation2 + $0x1bc] sm:$0xff]  ;;  %v3094_v53 = vld [vmem:[#allocation2 + $0x1c4] sm:$0xff] }
 0x3e3   : > { %v2310_v23 = vpop.permute.xlu1 %2309 }
 0x3e4   : > { %v4049_v18 = vld [vmem:[#allocation3 + $0x152] ss:$2 sm:$0xff]  ;;  %v5339_v28 = vsel %vm5275_vm6, %v5194_v22, %v5307_v59  ;;  %v2507_v5 = vadd.f32 %v2443_v50, %v1993_v58  ;;  %v2444_v41 = vmul.f32 %v11629_v44, %v2310_v23 }
 0x3e5   : > { %v4123_v4 = vmax.f32 %v4091_v9, %v4049_v18  ;;  %5372 = vst.msk [vmem:[#allocation3 + $0x38] sm:$0xff] %vm5364_vm9, %v5339_v28  ;;  %v13282_v58 = vld [vmem:[#allocation57_spill] sm:$0xff] }
 0x3e6   : > { %v2508_v36 = vadd.f32 %v2444_v41, %v1994_v12  ;;  %v1417_v18 = vmul.f32 %v11621_v25, %v13282_v58 }
 0x3e7   : > { %4158 = vst.msk [vmem:[#allocation2 + $0xb2] sm:$0xff] %vm3814_vm3, %v4123_v4  ;;  %4912 = vrot.lane.b32.xlu0 %v11446_v52, %s10232_s10  ;;  %v3021_v52 = vadd.f32 %v2957_v61, %v2507_v5  ;;  %v2445_v61 = vmul.f32 %v11629_v44, %v11625_v30 }
 0x3e8   : > { %2344 = vperm.xlu2 %9744, %v2065_v31   ;;  %v3022_v8 = vadd.f32 %v2958_v20, %v2508_v36 }
 0x3e9   : > { %1835 = vperm.xlu1 %9743, %v1552_v47   ;;  %v1801_v32 = vpop.permute.xlu0 %1800 }
 0x3ea   : > { %v11641_v17 = vpop.permute.xlu2 %2828  ;;  %v1931_v33 = vmul.f32 %v11614_v55, %v1801_v32  ;;  %v2067_v32 = vld [vmem:[#allocation2 + $0x1c2] sm:$0xff] }
 0x3eb   : > { %v3333_v54 = vpop.permute.xlu1 %3332 }
 0x3ec   : > { %v3471_v39 = vmul.f32 %v11646_v60, %v3333_v54  ;;  %v1995_v50 = vadd.f32 %v1931_v33, %v1417_v18  ;;  %v4834_v54 = vld [vmem:[#allocation2 + $0x94] sm:$0xff] }
 0x3ed   : > { %v5401_v0 = vld [vmem:[#allocation3 + $0x30] ss:$2 sm:$0xff]  ;;  %v5417_v56 = vld [vmem:[#allocation3 + $0x31] ss:$2 sm:$0xff] }
 0x3ee   : > { %v3535_v7 = vadd.f32 %v3471_v39, %v3021_v52  ;;  %v4194_v62 = vld [vmem:[#allocation2 + $0xb0] sm:$0xff]  ;;  %v2509_v41 = vadd.f32 %v2445_v61, %v1995_v50  ;;  %v2959_v39 = vmul.f32 %v11636_v42, %v11641_v17  ;;  %v5449_v30 = vmax.f32 %v5401_v0, %v5417_v56 }
 0x3ef   : > { %2863 = vperm.xlu0 %9742, %v2580_v51   ;;  %4226 = vst.msk [vmem:[#allocation4 + $0x210] sm:$0xff] %vm3814_vm3, %v4194_v62 }
 0x3f0   : > { %v3603_v40 = vadd.f32 %v11650_v24, %v3535_v7  ;;  %2858 = vperm.xlu2 %9744, %v2579_v2   ;;  %v13283_v7 = vld [vmem:[#allocation65_spill] sm:$0xff]  ;;  %v3023_v20 = vadd.f32 %v2959_v39, %v2509_v41 }
 0x3f1   : > { %2349 = vperm.xlu1 %9743, %v2066_v34   ;;  %v4713_v3 = vpop.permute.xlu0 %4712  ;;  %v1418_v34 = vmul.f32 %v11621_v25, %v13283_v7  ;;  %v2069_v7 = vld [vmem:[#allocation2 + $0x1d2] sm:$0xff] }
 0x3f2   : > { %vm3667_vm2 = vcmp.gt.f32.partialorder %v3603_v40, 0.0  ;;  %v3731_v21 = vmul.f32 0.01, %v3603_v40  ;;  %v4327_v29 = vpop.permute.xlu2 %4326  ;;  %4797 = vst.msk [vmem:[#allocation4 + $0x120] sm:$0xff] %vm4784_vm1, %v4713_v3  ;;  %v2582_v3 = vld [vmem:[#allocation2 + $0x1cf] sm:$0xff] }
 0x3f3   : > { %v3338_v35 = vpop.permute.xlu1 %3337  ;;  %4410 = vst.msk [vmem:[#allocation4 + $0x138] sm:$0xff] %vm4396_vm11, %v4327_v29  ;;  %v2581_v29 = vld [vmem:[#allocation2 + $0x1c7] sm:$0xff] }
 0x3f4   : > { %v3795_v15 = vsel %vm3667_vm2, %v3603_v40, %v3731_v21  ;;  %v3472_v11 = vmul.f32 %v11646_v60, %v3338_v35 }
 0x3f5   : > { %3860 = vst.msk [vmem:[#allocation3 + $0x168] sm:$0xff] %vm3814_vm3, %v3795_v15 }
 0x3f6   : > { %v3536_v6 = vadd.f32 %v3472_v11, %v3022_v8  ;;  %v2068_v8 = vld [vmem:[#allocation2 + $0x1ca] sm:$0xff] }
 0x3f7   : > { %1840 = vperm.xlu0 %9742, %v1553_v49  }
 0x3f8   : > { %v3604_v38 = vadd.f32 %v11650_v24, %v3536_v6  ;;  %4332 = vrot.lane.b32.xlu2 %v11469_v37, %s10229_s5 }
 0x3f9   : > { %3372 = vperm.xlu1 %9743, %v3093_v19   ;;  %v4907_v43 = vpop.permute.xlu0 %4906 }
 0x3fa   : > { %vm3668_vm8 = vcmp.gt.f32.partialorder %v3604_v38, 0.0  ;;  %v3732_v48 = vmul.f32 0.01, %v3604_v38  ;;  %v4521_v57 = vpop.permute.xlu2 %4520  ;;  %4991 = vst.msk [vmem:[#allocation4 + $0x120] sm:$0xff] %vm4978_vm5, %v4907_v43 }
 0x3fb   : > { %v1806_v45 = vpop.permute.xlu1 %1805  ;;  %4604 = vst.msk [vmem:[#allocation4 + $0x138] sm:$0xff] %vm4590_vm13, %v4521_v57 }
 0x3fc   : > { %v3796_v22 = vsel %vm3668_vm8, %v3604_v38, %v3732_v48  ;;  %v3923_v26 = vld [vmem:[#allocation3 + $0x160] ss:$2 sm:$0xff]  ;;  %v3987_v37 = vld [vmem:[#allocation3 + $0x161] ss:$2 sm:$0xff]  ;;  %v1932_v51 = vmul.f32 %v11614_v55, %v1806_v45 }
 0x3fd   : > { %3861 = vst.msk [vmem:[#allocation3 + $0x170] sm:$0xff] %vm3814_vm3, %v3796_v22 }
 0x3fe   : > { %v1996_v35 = vadd.f32 %v1932_v51, %v1418_v34 }
 0x3ff   : > { %4720 = vrot.lane.b32.xlu0 %v11452_v14, %s10230_s27  ;;  %v5196_v63 = vpop.f32.mrf.mxu0  ;;  %v4092_v14 = vmax.f32 %v3923_v26, %v3987_v37  ;;  %v3095_v26 = vld [vmem:[#allocation2 + $0x1cc] sm:$0xff] }
 0x400   : > { %4526 = vrot.lane.b32.xlu2 %v11448_v1, %s10231_s2  ;;  %v5197_v59 = vadd.f32 %v11565_v46, %v5196_v63 }
 0x401   : > { %3377 = vperm.xlu1 %9743, %v3094_v53   ;;  %v2834_v9 = vpop.permute.xlu0 %2833  ;;  %v5024_v23 = vld [vmem:[#allocation4 + $0x120] sm:$0xff]  ;;  %v1555_v53 = vld [vmem:[#allocation2 + $0x1cd] sm:$0xff] }
 0x402   : > { %vm5276_vm10 = vcmp.gt.f32.partialorder %v5197_v59, 0.0  ;;  %v5308_v28 = vmul.f32 0.01, %v5197_v59  ;;  %v11672_v4 = vpop.permute.xlu2 %2324  ;;  %9473 = vmatmul.msk.f32.gmra.mxu0 %vm5058_vm7, %v5024_v23  ;;  %v2960_v49 = vmul.f32 %v11636_v42, %v2834_v9 }
 0x403   : > { %v2320_v31 = vpop.permute.xlu1 %2319  ;;  %v2447_v34 = vmul.f32 %v11629_v44, %v11672_v4 }
 0x404   : > { %v4051_v47 = vld [vmem:[#allocation3 + $0x162] ss:$2 sm:$0xff]  ;;  %v5340_v5 = vsel %vm5276_vm10, %v5197_v59, %v5308_v28  ;;  %v2446_v36 = vmul.f32 %v11629_v44, %v2320_v31 }
 0x405   : > { %v4124_v1 = vmax.f32 %v4092_v14, %v4051_v47  ;;  %5373 = vst.msk [vmem:[#allocation3 + $0x40] sm:$0xff] %vm5364_vm9, %v5340_v5  ;;  %v3096_v14 = vld [vmem:[#allocation2 + $0x1d4] sm:$0xff] }
 0x406   : > { %v2510_v11 = vadd.f32 %v2446_v36, %v1996_v35  ;;  %v4641_v31 = vld [vmem:[#allocation2 + $0x97] sm:$0xff] }
 0x407   : > { %4159 = vst.msk [vmem:[#allocation2 + $0xba] sm:$0xff] %vm3814_vm3, %v4124_v1  ;;  %4914 = vrot.lane.b32.xlu0 %v4834_v54, %s10232_s10  ;;  %v13284_v54 = vld [vmem:[#allocation70_spill] sm:$0xff]  ;;  %v4835_v36 = vld [vmem:[#allocation2 + $0x9c] sm:$0xff] }
 0x408   : > { %2354 = vperm.xlu2 %9744, %v2067_v32   ;;  %v3024_v57 = vadd.f32 %v2960_v49, %v2510_v11  ;;  %v1419_v0 = vmul.f32 %v11621_v25, %v13284_v54  ;;  %v2584_v49 = vld [vmem:[#allocation2 + $0x1df] sm:$0xff] }
 0x409   : > { %1845 = vperm.xlu1 %9743, %v1554_v27   ;;  %v11680_v52 = vpop.permute.xlu0 %1810 }
 0x40a   : > { %v11685_v2 = vpop.permute.xlu2 %2838  ;;  %v1933_v1 = vmul.f32 %v11614_v55, %v11680_v52 }
 0x40b   : > { %v3343_v12 = vpop.permute.xlu1 %3342 }
 0x40c   : > { %v5433_v62 = vld [vmem:[#allocation3 + $0x32] ss:$2 sm:$0xff]  ;;  %v3473_v40 = vmul.f32 %v11646_v60, %v3343_v12  ;;  %v1997_v52 = vadd.f32 %v1933_v1, %v1419_v0  ;;  %v4642_v1 = vld [vmem:[#allocation2 + $0x9f] sm:$0xff] }
 0x40d   : > { %v5465_v21 = vmax.f32 %v5449_v30, %v5433_v62  ;;  %v1556_v62 = vld [vmem:[#allocation2 + $0x1d5] sm:$0xff] }
 0x40e   : > { %v3537_v17 = vadd.f32 %v3473_v40, %v3023_v20  ;;  %v4195_v15 = vld [vmem:[#allocation2 + $0xb8] sm:$0xff]  ;;  %v2511_v20 = vadd.f32 %v2447_v34, %v1997_v52 }
 0x40f   : > { %5484 = vst.msk [vmem:[#allocation2 + $0x22] sm:$0xff] %vm5364_vm9, %v5465_v21  ;;  %2873 = vperm.xlu0 %9742, %v2582_v3   ;;  %v2961_v3 = vmul.f32 %v11636_v42, %v11685_v2  ;;  %v13286_v52 = vld [vmem:[#allocation68_spill] sm:$0xff] }
 0x410   : > { %v3605_v6 = vadd.f32 %v11650_v24, %v3537_v17  ;;  %2868 = vperm.xlu2 %9744, %v2581_v29   ;;  %4227 = vst.msk [vmem:[#allocation4 + $0x228] sm:$0xff] %vm3814_vm3, %v4195_v15  ;;  %v13285_v17 = vld [vmem:[#allocation60_spill] sm:$0xff] }
 0x411   : > { %2359 = vperm.xlu1 %9743, %v2068_v8   ;;  %v4715_v19 = vpop.permute.xlu0 %4714  ;;  %v1420_v4 = vmul.f32 %v11621_v25, %v13285_v17  ;;  %v3025_v15 = vadd.f32 %v2961_v3, %v2511_v20  ;;  %v2071_v3 = vld [vmem:[#allocation2 + $0x1e2] sm:$0xff] }
 0x412   : > { %vm3669_vm12 = vcmp.gt.f32.partialorder %v3605_v6, 0.0  ;;  %v3733_v38 = vmul.f32 0.01, %v3605_v6  ;;  %v4329_v43 = vpop.permute.xlu2 %4328  ;;  %4798 = vst.msk [vmem:[#allocation4 + $0x138] sm:$0xff] %vm4784_vm1, %v4715_v19  ;;  %v4836_v17 = vld [vmem:[#allocation2 + $0xa4] sm:$0xff] }
 0x413   : > { %v3348_v48 = vpop.permute.xlu1 %3347  ;;  %4411 = vst.msk [vmem:[#allocation4 + $0x150] sm:$0xff] %vm4396_vm11, %v4329_v43  ;;  %v2070_v43 = vld [vmem:[#allocation2 + $0x1da] sm:$0xff] }
 0x414   : > { %v3797_v45 = vsel %vm3669_vm12, %v3605_v6, %v3733_v38  ;;  %v3474_v22 = vmul.f32 %v11646_v60, %v3348_v48  ;;  %v2583_v6 = vld [vmem:[#allocation2 + $0x1d7] sm:$0xff] }
 0x415   : > { %3862 = vst.msk [vmem:[#allocation3 + $0x178] sm:$0xff] %vm3814_vm3, %v3797_v45 }
 0x416   : > { %v3538_v63 = vadd.f32 %v3474_v22, %v3024_v57  ;;  %v5826_v37 = vld [vmem:[#allocation2 + $0x1c] sm:$0xff] }
 0x417   : > { %1850 = vperm.xlu0 %9742, %v1555_v53   ;;  %5842 = vst.msk [vmem:[#allocation4 + $0x20] sm:$0xff] %vm5364_vm9, %v5826_v37  ;;  %v5503_v33 = vld [vmem:[#allocation2 + $0x20] sm:$0xff] }
 0x418   : > { %v3606_v59 = vadd.f32 %v11650_v24, %v3538_v63  ;;  %4334 = vrot.lane.b32.xlu2 %v11454_v10, %s10229_s5  ;;  %5519 = vst.msk [vmem:[#allocation4 + $0x60] sm:$0xff] %vm5364_vm9, %v5503_v33 }
 0x419   : > { %3382 = vperm.xlu1 %9743, %v3095_v26   ;;  %v4909_v9 = vpop.permute.xlu0 %4908 }
 0x41a   : > { %vm3670_vm14 = vcmp.gt.f32.partialorder %v3606_v59, 0.0  ;;  %v3734_v23 = vmul.f32 0.01, %v3606_v59  ;;  %v4523_v58 = vpop.permute.xlu2 %4522  ;;  %4992 = vst.msk [vmem:[#allocation4 + $0x138] sm:$0xff] %vm4978_vm5, %v4909_v9  ;;  %v1557_v9 = vld [vmem:[#allocation2 + $0x1dd] sm:$0xff] }
 0x41b   : > { %v1816_v18 = vpop.permute.xlu1 %1815  ;;  %4605 = vst.msk [vmem:[#allocation4 + $0x150] sm:$0xff] %vm4590_vm13, %v4523_v58  ;;  %v3097_v58 = vld [vmem:[#allocation2 + $0x1dc] sm:$0xff] }
 0x41c   : > { %v3798_v28 = vsel %vm3670_vm14, %v3606_v59, %v3734_v23  ;;  %v3925_v47 = vld [vmem:[#allocation3 + $0x170] ss:$2 sm:$0xff]  ;;  %v3989_v5 = vld [vmem:[#allocation3 + $0x171] ss:$2 sm:$0xff]  ;;  %v1934_v21 = vmul.f32 %v11614_v55, %v1816_v18 }
 0x41d   : > { %3863 = vst.msk [vmem:[#allocation3 + $0x180] sm:$0xff] %vm3814_vm3, %v3798_v28  ;;  %v4093_v39 = vmax.f32 %v3925_v47, %v3989_v5  ;;  %v4254_v18 = vld [vmem:[#allocation2 + $0x95] sm:$0xff]  ;;  %v3098_v5 = vld [vmem:[#allocation2 + $0x1e4] sm:$0xff] }
 0x41e   : > { %v5860_v50 = vld [vmem:[#allocation4 + $0x20] sm:$0xff]  ;;  %v1998_v19 = vadd.f32 %v1934_v21, %v1420_v4 }
 0x41f   : > { %4722 = vrot.lane.b32.xlu0 %v4641_v31, %s10230_s27  ;;  %v5199_v10 = vpop.f32.mrf.mxu0  ;;  %9494 = vmatmul.msk.f32.gmra.mxu2 %vm5364_vm9, %v5860_v50 }
 0x420   : > { %4528 = vrot.lane.b32.xlu2 %v11456_v16, %s10231_s2  ;;  %v5200_v32 = vadd.f32 %v11565_v46, %v5199_v10 }
 0x421   : > { %3387 = vperm.xlu1 %9743, %v3096_v14   ;;  %v2844_v61 = vpop.permute.xlu0 %2843  ;;  %v5025_v27 = vld [vmem:[#allocation4 + $0x138] sm:$0xff] }
 0x422   : > { %vm5277_vm15 = vcmp.gt.f32.partialorder %v5200_v32, 0.0  ;;  %v5309_v56 = vmul.f32 0.01, %v5200_v32  ;;  %v11716_v41 = vpop.permute.xlu2 %2334  ;;  %9474 = vmatmul.msk.f32.gmra.mxu0 %vm5058_vm7, %v5025_v27  ;;  %v2962_v57 = vmul.f32 %v11636_v42, %v2844_v61 }
 0x423   : > { %v2330_v51 = vpop.permute.xlu1 %2329  ;;  %v2449_v21 = vmul.f32 %v11629_v44, %v11716_v41 }
 0x424   : > { %v4053_v30 = vld [vmem:[#allocation3 + $0x172] ss:$2 sm:$0xff]  ;;  %v5341_v12 = vsel %vm5277_vm15, %v5200_v32, %v5309_v56  ;;  %v2448_v8 = vmul.f32 %v11629_v44, %v2330_v51  ;;  %v4448_v32 = vld [vmem:[#allocation2 + $0x9a] sm:$0xff] }
 0x425   : > { %v4125_v16 = vmax.f32 %v4093_v39, %v4053_v30  ;;  %5374 = vst.msk [vmem:[#allocation3 + $0x48] sm:$0xff] %vm5364_vm9, %v5341_v12  ;;  %v1421_v30 = vmul.f32 %v11621_v25, %v13286_v52 }
 0x426   : > { %v2512_v48 = vadd.f32 %v2448_v8, %v1998_v19 }
 0x427   : > { %4160 = vst.msk [vmem:[#allocation2 + $0xc2] sm:$0xff] %vm3814_vm3, %v4125_v16  ;;  %4916 = vrot.lane.b32.xlu0 %v4835_v36, %s10232_s10 }
 0x428   : > { %2364 = vperm.xlu2 %9744, %v2069_v7   ;;  %v3026_v37 = vadd.f32 %v2962_v57, %v2512_v48 }
 0x429   : > { %1855 = vperm.xlu1 %9743, %v1556_v62   ;;  %v1821_v40 = vpop.permute.xlu0 %1820 }
 0x42a   : > { %v11727_v29 = vpop.permute.xlu2 %2848  ;;  %v1935_v0 = vmul.f32 %v11614_v55, %v1821_v40 }
 0x42b   : > { %v3353_v35 = vpop.permute.xlu1 %3352 }
 0x42c   : > { %v3475_v11 = vmul.f32 %v11646_v60, %v3353_v35  ;;  %v1999_v62 = vadd.f32 %v1935_v0, %v1421_v30  ;;  %v1558_v35 = vld [vmem:[#allocation2 + $0x1e5] sm:$0xff] }
 0x42d   : > { %v5402_v4 = vld [vmem:[#allocation3 + $0x40] ss:$2 sm:$0xff]  ;;  %v5418_v8 = vld [vmem:[#allocation3 + $0x41] ss:$2 sm:$0xff] }
 0x42e   : > { %v3539_v38 = vadd.f32 %v3475_v11, %v3025_v15  ;;  %v4196_v2 = vld [vmem:[#allocation2 + $0xc0] sm:$0xff]  ;;  %v2513_v15 = vadd.f32 %v2449_v21, %v1999_v62  ;;  %v5450_v19 = vmax.f32 %v5402_v4, %v5418_v8  ;;  %v13288_v8 = vld [vmem:[#allocation63_spill] sm:$0xff] }
 0x42f   : > { %2883 = vperm.xlu0 %9742, %v2584_v49   ;;  %4228 = vst.msk [vmem:[#allocation4 + $0x240] sm:$0xff] %vm3814_vm3, %v4196_v2  ;;  %v2963_v49 = vmul.f32 %v11636_v42, %v11727_v29 }
 0x430   : > { %v3607_v45 = vadd.f32 %v11650_v24, %v3539_v38  ;;  %2878 = vperm.xlu2 %9744, %v2583_v6  }
 0x431   : > { %2369 = vperm.xlu1 %9743, %v2070_v43   ;;  %v4717_v22 = vpop.permute.xlu0 %4716  ;;  %v13287_v43 = vld [vmem:[#allocation73_spill] sm:$0xff] }
 0x432   : > { %vm3671_vm4 = vcmp.gt.f32.partialorder %v3607_v45, 0.0  ;;  %v3735_v53 = vmul.f32 0.01, %v3607_v45  ;;  %v4331_v63 = vpop.permute.xlu2 %4330  ;;  %4799 = vst.msk [vmem:[#allocation4 + $0x150] sm:$0xff] %vm4784_vm1, %v4717_v22  ;;  %v1422_v2 = vmul.f32 %v11621_v25, %v13287_v43 }
 0x433   : > { %v3358_v26 = vpop.permute.xlu1 %3357  ;;  %4412 = vst.msk [vmem:[#allocation4 + $0x168] sm:$0xff] %vm4396_vm11, %v4331_v63  ;;  %v917_v63 = vld [vmem:[%s10479_s22 + $0x1f8] sm:$0xff]  ;;  %s10233_s22 = smov 96  }
 0x434   : > { %v3799_v33 = vsel %vm3671_vm4, %v3607_v45, %v3735_v53  ;;  %v3476_v59 = vmul.f32 %v11646_v60, %v3358_v26  ;;  %v3027_v45 = vadd.f32 %v2963_v49, %v2513_v15  ;;  %v2586_v53 = vld [vmem:[#allocation2 + $0x1ef] sm:$0xff]  ;;  %981 = vst.msk [vmem:[#allocation2 + $0x202] sm:$0xff] %vm850_vm0, %v917_v63  ;;  %v1423_v15 = vmul.f32 %v11621_v25, %v13288_v8 }
 0x435   : > { %3864 = vst.msk [vmem:[#allocation3 + $0x188] sm:$0xff] %vm3814_vm3, %v3799_v33 }
 0x436   : > { %v3540_v23 = vadd.f32 %v3476_v59, %v3026_v37  ;;  %v2585_v37 = vld [vmem:[#allocation2 + $0x1e7] sm:$0xff] }
 0x437   : > { %1860 = vperm.xlu0 %9742, %v1557_v9   ;;  %v2072_v59 = vld [vmem:[#allocation2 + $0x1ea] sm:$0xff] }
 0x438   : > { %v3608_v28 = vadd.f32 %v11650_v24, %v3540_v23  ;;  %4336 = vrot.lane.b32.xlu2 %v4254_v18, %s10229_s5 }
 0x439   : > { %3392 = vperm.xlu1 %9743, %v3097_v58   ;;  %v4911_v14 = vpop.permute.xlu0 %4910 }
 0x43a   : > { %vm3672_vm6 = vcmp.gt.f32.partialorder %v3608_v28, 0.0  ;;  %v3736_v31 = vmul.f32 0.01, %v3608_v28  ;;  %v4525_v50 = vpop.permute.xlu2 %4524  ;;  %4993 = vst.msk [vmem:[#allocation4 + $0x150] sm:$0xff] %vm4978_vm5, %v4911_v14 }
 0x43b   : > { %v1826_v10 = vpop.permute.xlu1 %1825  ;;  %4606 = vst.msk [vmem:[#allocation4 + $0x168] sm:$0xff] %vm4590_vm13, %v4525_v50 }
 0x43c   : > { %v3800_v47 = vsel %vm3672_vm6, %v3608_v28, %v3736_v31  ;;  %v3927_v27 = vld [vmem:[#allocation3 + $0x180] ss:$2 sm:$0xff]  ;;  %v3991_v54 = vld [vmem:[#allocation3 + $0x181] ss:$2 sm:$0xff]  ;;  %v1936_v6 = vmul.f32 %v11614_v55, %v1826_v10 }
 0x43d   : > { %3865 = vst.msk [vmem:[#allocation3 + $0x190] sm:$0xff] %vm3814_vm3, %v3800_v47  ;;  %v4094_v7 = vmax.f32 %v3927_v27, %v3991_v54  ;;  %v4255_v54 = vld [vmem:[#allocation2 + $0x9d] sm:$0xff] }
 0x43e   : > { %v2000_v29 = vadd.f32 %v1936_v6, %v1422_v2 }
 0x43f   : > { %4724 = vrot.lane.b32.xlu0 %v4642_v1, %s10230_s27  ;;  %v5202_v61 = vpop.f32.mrf.mxu0  ;;  %v1559_v1 = vld [vmem:[#allocation2 + $0x1ed] sm:$0xff] }
 0x440   : > { %4530 = vrot.lane.b32.xlu2 %v4448_v32, %s10231_s2  ;;  %v5203_v56 = vadd.f32 %v11565_v46, %v5202_v61  ;;  %v3099_v61 = vld [vmem:[#allocation2 + $0x1ec] sm:$0xff] }
 0x441   : > { %3397 = vperm.xlu1 %9743, %v3098_v5   ;;  %v2854_v39 = vpop.permute.xlu0 %2853  ;;  %v5026_v51 = vld [vmem:[#allocation4 + $0x150] sm:$0xff] }
 0x442   : > { %vm5278_vm2 = vcmp.gt.f32.partialorder %v5203_v56, 0.0  ;;  %v5310_v12 = vmul.f32 0.01, %v5203_v56  ;;  %v11751_v16 = vpop.permute.xlu2 %2344  ;;  %9475 = vmatmul.msk.f32.gmra.mxu0 %vm5058_vm7, %v5026_v51  ;;  %v2964_v58 = vmul.f32 %v11636_v42, %v2854_v39 }
 0x443   : > { %v2340_v34 = vpop.permute.xlu1 %2339 }
 0x444   : > { %v4055_v36 = vld [vmem:[#allocation3 + $0x182] ss:$2 sm:$0xff]  ;;  %v5342_v20 = vsel %vm5278_vm2, %v5203_v56, %v5310_v12  ;;  %v2450_v57 = vmul.f32 %v11629_v44, %v2340_v34 }
 0x445   : > { %v4126_v40 = vmax.f32 %v4094_v7, %v4055_v36  ;;  %5375 = vst.msk [vmem:[#allocation3 + $0x50] sm:$0xff] %vm5364_vm9, %v5342_v20  ;;  %v3100_v7 = vld [vmem:[#allocation2 + $0x1f4] sm:$0xff]  ;;  %v4643_v34 = vld [vmem:[#allocation2 + $0xa7] sm:$0xff] }
 0x446   : > { %v2514_v23 = vadd.f32 %v2450_v57, %v2000_v29  ;;  %v4449_v36 = vld [vmem:[#allocation2 + $0xa2] sm:$0xff]  ;;  %v2451_v57 = vmul.f32 %v11629_v44, %v11751_v16 }
 0x447   : > { %4161 = vst.msk [vmem:[#allocation2 + $0xca] sm:$0xff] %vm3814_vm3, %v4126_v40  ;;  %4918 = vrot.lane.b32.xlu0 %v4836_v17, %s10232_s10 }
 0x448   : > { %2374 = vperm.xlu2 %9744, %v2071_v3   ;;  %v3028_v10 = vadd.f32 %v2964_v58, %v2514_v23 }
 0x449   : > { %1865 = vperm.xlu1 %9743, %v1558_v35   ;;  %v11759_v11 = vpop.permute.xlu0 %1830 }
 0x44a   : > { %v11764_v41 = vpop.permute.xlu2 %2858  ;;  %v1937_v21 = vmul.f32 %v11614_v55, %v11759_v11 }
 0x44b   : > { %v3363_v38 = vpop.permute.xlu1 %3362 }
 0x44c   : > { %v5434_v48 = vld [vmem:[#allocation3 + $0x42] ss:$2 sm:$0xff]  ;;  %v3477_v22 = vmul.f32 %v11646_v60, %v3363_v38  ;;  %v2001_v43 = vadd.f32 %v1937_v21, %v1423_v15  ;;  %v4450_v21 = vld [vmem:[#allocation2 + $0xaa] sm:$0xff]  ;;  %v11827_v15 = vld [vmem:[#allocation10] ss:$0 sm:$0xff] }
 0x44d   : > { %v5466_v26 = vmax.f32 %v5450_v19, %v5434_v48 }
 0x44e   : > { %v3541_v33 = vadd.f32 %v3477_v22, %v3027_v45  ;;  %v4197_v9 = vld [vmem:[#allocation2 + $0xc8] sm:$0xff]  ;;  %v1560_v45 = vld [vmem:[#allocation2 + $0x1f5] sm:$0xff] }
 0x44f   : > { %5485 = vst.msk [vmem:[#allocation2 + $0x2a] sm:$0xff] %vm5364_vm9, %v5466_v26  ;;  %2893 = vperm.xlu0 %9742, %v2586_v53   ;;  %v4837_v22 = vld [vmem:[#allocation2 + $0xac] sm:$0xff]  ;;  %v2515_v53 = vadd.f32 %v2451_v57, %v2001_v43  ;;  %v2965_v26 = vmul.f32 %v11636_v42, %v11764_v41  ;;  %v13290_v43 = vld [vmem:[#allocation75_spill] sm:$0xff] }
 0x450   : > { %v3609_v18 = vadd.f32 %v11650_v24, %v3541_v33  ;;  %2888 = vperm.xlu2 %9744, %v2585_v37   ;;  %4229 = vst.msk [vmem:[#allocation4 + $0x258] sm:$0xff] %vm3814_vm3, %v4197_v9 }
 0x451   : > { %2379 = vperm.xlu1 %9743, %v2072_v59   ;;  %v4719_v28 = vpop.permute.xlu0 %4718  ;;  %v13289_v59 = vld [vmem:[#allocation71_spill] sm:$0xff]  ;;  %v3029_v23 = vadd.f32 %v2965_v26, %v2515_v53 }
 0x452   : > { %vm3673_vm8 = vcmp.gt.f32.partialorder %v3609_v18, 0.0  ;;  %v3737_v14 = vmul.f32 0.01, %v3609_v18  ;;  %v4333_v31 = vpop.permute.xlu2 %4332  ;;  %4800 = vst.msk [vmem:[#allocation4 + $0x168] sm:$0xff] %vm4784_vm1, %v4719_v28  ;;  %v1424_v16 = vmul.f32 %v11621_v25, %v13289_v59  ;;  %v2587_v28 = vld [vmem:[#allocation2 + $0x1f7] sm:$0xff] }
 0x453   : > { %v3368_v50 = vpop.permute.xlu1 %3367  ;;  %4413 = vst.msk [vmem:[#allocation4 + $0x180] sm:$0xff] %vm4396_vm11, %v4333_v31  ;;  %v4838_v59 = vld [vmem:[#allocation2 + $0xb4] sm:$0xff] }
 0x454   : > { %v3801_v47 = vsel %vm3673_vm8, %v3609_v18, %v3737_v14  ;;  %v3478_v5 = vmul.f32 %v11646_v60, %v3368_v50  ;;  %v2588_v18 = vld [vmem:[#allocation2 + $0x1ff] sm:$0xff] }
 0x455   : > { %3866 = vst.msk [vmem:[#allocation3 + $0x198] sm:$0xff] %vm3814_vm3, %v3801_v47  ;;  %v2074_v50 = vld [vmem:[#allocation2 + $0x1fa] sm:$0xff] }
 0x456   : > { %v3542_v32 = vadd.f32 %v3478_v5, %v3028_v10  ;;  %v5827_v27 = vld [vmem:[#allocation2 + $0x24] sm:$0xff] }
 0x457   : > { %1870 = vperm.xlu0 %9742, %v1559_v1   ;;  %5843 = vst.msk [vmem:[#allocation4 + $0x38] sm:$0xff] %vm5364_vm9, %v5827_v27  ;;  %v5504_v0 = vld [vmem:[#allocation2 + $0x28] sm:$0xff] }
 0x458   : > { %v3610_v56 = vadd.f32 %v11650_v24, %v3542_v32  ;;  %4338 = vrot.lane.b32.xlu2 %v4255_v54, %s10229_s5  ;;  %5520 = vst.msk [vmem:[#allocation4 + $0x78] sm:$0xff] %vm5364_vm9, %v5504_v0 }
 0x459   : > { %3402 = vperm.xlu1 %9743, %v3099_v61   ;;  %v4913_v39 = vpop.permute.xlu0 %4912 }
 0x45a   : > { %vm3674_vm0 = vcmp.gt.f32.partialorder %v3610_v56, 0.0  ;;  %v3738_v51 = vmul.f32 0.01, %v3610_v56  ;;  %v4527_v52 = vpop.permute.xlu2 %4526  ;;  %4994 = vst.msk [vmem:[#allocation4 + $0x168] sm:$0xff] %vm4978_vm5, %v4913_v39  ;;  %v1561_v39 = vld [vmem:[#allocation2 + $0x1fd] sm:$0xff] }
 0x45b   : > { %v1836_v30 = vpop.permute.xlu1 %1835  ;;  %4607 = vst.msk [vmem:[#allocation4 + $0x180] sm:$0xff] %vm4590_vm13, %v4527_v52  ;;  %v3101_v52 = vld [vmem:[#allocation2 + $0x1fc] sm:$0xff] }
 0x45c   : > { %v3802_v12 = vsel %vm3674_vm0, %v3610_v56, %v3738_v51  ;;  %v3929_v40 = vld [vmem:[#allocation3 + $0x190] ss:$2 sm:$0xff]  ;;  %v3993_v3 = vld [vmem:[#allocation3 + $0x191] ss:$2 sm:$0xff]  ;;  %v1938_v37 = vmul.f32 %v11614_v55, %v1836_v30 }
 0x45d   : > { %3867 = vst.msk [vmem:[#allocation3 + $0x1a0] sm:$0xff] %vm3814_vm3, %v3802_v12  ;;  %v4095_v19 = vmax.f32 %v3929_v40, %v3993_v3  ;;  %v4256_v30 = vld [vmem:[#allocation2 + $0xa5] sm:$0xff]  ;;  %v4644_v3 = vld [vmem:[#allocation2 + $0xaf] sm:$0xff] }
 0x45e   : > { %v5862_v62 = vld [vmem:[#allocation4 + $0x38] sm:$0xff]  ;;  %v2002_v14 = vadd.f32 %v1938_v37, %v1424_v16  ;;  %v3102_v40 = vld [vmem:[#allocation2 + $0x204] sm:$0xff] }
 0x45f   : > { %4726 = vrot.lane.b32.xlu0 %v4643_v34, %s10230_s27  ;;  %v5205_v20 = vpop.f32.mrf.mxu0  ;;  %9495 = vmatmul.msk.f32.gmra.mxu2 %vm5364_vm9, %v5862_v62 }
 0x460   : > { %4532 = vrot.lane.b32.xlu2 %v4449_v36, %s10231_s2  ;;  %v5206_v35 = vadd.f32 %v11565_v46, %v5205_v20  ;;  %v2073_v46 = vld [vmem:[#allocation2 + $0x1f2] sm:$0xff] }
 0x461   : > { %3407 = vperm.xlu1 %9743, %v3100_v7   ;;  %v2864_v17 = vpop.permute.xlu0 %2863  ;;  %v5027_v4 = vld [vmem:[#allocation4 + $0x168] sm:$0xff] }
 0x462   : > { %vm5279_vm10 = vcmp.gt.f32.partialorder %v5206_v35, 0.0  ;;  %v5311_v49 = vmul.f32 0.01, %v5206_v35  ;;  %v11795_v6 = vpop.permute.xlu2 %2354  ;;  %9476 = vmatmul.msk.f32.gmra.mxu0 %vm5058_vm7, %v5027_v4  ;;  %v2966_v47 = vmul.f32 %v11636_v42, %v2864_v17 }
 0x463   : > { %v2350_v38 = vpop.permute.xlu1 %2349  ;;  %v2453_v37 = vmul.f32 %v11629_v44, %v11795_v6 }
 0x464   : > { %v4057_v11 = vld [vmem:[#allocation3 + $0x192] ss:$2 sm:$0xff]  ;;  %v5343_v2 = vsel %vm5279_vm10, %v5206_v35, %v5311_v49  ;;  %v2452_v9 = vmul.f32 %v11629_v44, %v2350_v38 }
 0x465   : > { %v4127_v48 = vmax.f32 %v4095_v19, %v4057_v11  ;;  %5376 = vst.msk [vmem:[#allocation3 + $0x58] sm:$0xff] %vm5364_vm9, %v5343_v2  ;;  %v1425_v11 = vmul.f32 %v11621_v25, %v13290_v43 }
 0x466   : > { %v2516_v10 = vadd.f32 %v2452_v9, %v2002_v14 }
 0x467   : > { %4162 = vst.msk [vmem:[#allocation2 + $0xd2] sm:$0xff] %vm3814_vm3, %v4127_v48  ;;  %4920 = vrot.lane.b32.xlu0 %v4837_v22, %s10232_s10 }
 0x468   : > { %2384 = vperm.xlu2 %9744, %v2073_v46   ;;  %v3030_v54 = vadd.f32 %v2966_v47, %v2516_v10 }
 0x469   : > { %1875 = vperm.xlu1 %9743, %v1560_v45   ;;  %v1841_v63 = vpop.permute.xlu0 %1840 }
 0x46a   : > { %v11806_v29 = vpop.permute.xlu2 %2868  ;;  %v1939_v8 = vmul.f32 %v11614_v55, %v1841_v63  ;;  %v2589_v63 = vld [vmem:[#allocation2 + $0x207] sm:$0xff] }
 0x46b   : > { %v3373_v33 = vpop.permute.xlu1 %3372 }
 0x46c   : > { %v3479_v58 = vmul.f32 %v11646_v60, %v3373_v33  ;;  %v2003_v45 = vadd.f32 %v1939_v8, %v1425_v11  ;;  %v2075_v33 = vld [vmem:[#allocation2 + $0x202] sm:$0xff] }
 0x46d   : > { %v5403_v16 = vld [vmem:[#allocation3 + $0x50] ss:$2 sm:$0xff]  ;;  %v5419_v9 = vld [vmem:[#allocation3 + $0x51] ss:$2 sm:$0xff] }
 0x46e   : > { %v3543_v31 = vadd.f32 %v3479_v58, %v3029_v23  ;;  %v4198_v41 = vld [vmem:[#allocation2 + $0xd0] sm:$0xff]  ;;  %v2517_v23 = vadd.f32 %v2453_v37, %v2003_v45  ;;  %v5451_v6 = vmax.f32 %v5403_v16, %v5419_v9 }
 0x46f   : > { %2903 = vperm.xlu0 %9742, %v2588_v18   ;;  %4230 = vst.msk [vmem:[#allocation4 + $0x270] sm:$0xff] %vm3814_vm3, %v4198_v41  ;;  %v2967_v18 = vmul.f32 %v11636_v42, %v11806_v29  ;;  %v4451_v29 = vld [vmem:[#allocation2 + $0xb2] sm:$0xff] }
 0x470   : > { %v3611_v5 = vadd.f32 %v11650_v24, %v3543_v31  ;;  %2898 = vperm.xlu2 %9744, %v2587_v28  }
 0x471   : > { %2389 = vperm.xlu1 %9743, %v2074_v50   ;;  %v4721_v1 = vpop.permute.xlu0 %4720  ;;  %v13291_v50 = vld [vmem:[#allocation66_spill] sm:$0xff] }
 0x472   : > { %vm3675_vm12 = vcmp.gt.f32.partialorder %v3611_v5, 0.0  ;;  %v3739_v32 = vmul.f32 0.01, %v3611_v5  ;;  %v4335_v61 = vpop.permute.xlu2 %4334  ;;  %4801 = vst.msk [vmem:[#allocation4 + $0x180] sm:$0xff] %vm4784_vm1, %v4721_v1  ;;  %v1426_v41 = vmul.f32 %v11621_v25, %v13291_v50  ;;  %v4647_v50 = vld [vmem:[#allocation2 + $0xc7] sm:$0xff] }
 0x473   : > { %v3378_v27 = vpop.permute.xlu1 %3377  ;;  %4414 = vst.msk [vmem:[#allocation4 + $0x198] sm:$0xff] %vm4396_vm11, %v4335_v61 }
 0x474   : > { %v3803_v0 = vsel %vm3675_vm12, %v3611_v5, %v3739_v32  ;;  %v3480_v56 = vmul.f32 %v11646_v60, %v3378_v27  ;;  %v3031_v5 = vadd.f32 %v2967_v18, %v2517_v23 }
 0x475   : > { %3868 = vst.msk [vmem:[#allocation3 + $0x1a8] sm:$0xff] %vm3814_vm3, %v3803_v0 }
 0x476   : > { %v3544_v51 = vadd.f32 %v3480_v56, %v3030_v54  ;;  %v3103_v54 = vld [vmem:[#allocation2 + $0x20c] sm:$0xff] }
 0x477   : > { %1880 = vperm.xlu0 %9742, %v1561_v39  }
 0x478   : > { %v3612_v12 = vadd.f32 %v11650_v24, %v3544_v51  ;;  %4340 = vrot.lane.b32.xlu2 %v4256_v30, %s10229_s5 }
 0x479   : > { %3412 = vperm.xlu1 %9743, %v3101_v52   ;;  %v4915_v7 = vpop.permute.xlu0 %4914 }
 0x47a   : > { %vm3676_vm14 = vcmp.gt.f32.partialorder %v3612_v12, 0.0  ;;  %v3740_v34 = vmul.f32 0.01, %v3612_v12  ;;  %v4529_v62 = vpop.permute.xlu2 %4528  ;;  %4995 = vst.msk [vmem:[#allocation4 + $0x180] sm:$0xff] %vm4978_vm5, %v4915_v7 }
 0x47b   : > { %v1846_v36 = vpop.permute.xlu1 %1845  ;;  %4608 = vst.msk [vmem:[#allocation4 + $0x198] sm:$0xff] %vm4590_vm13, %v4529_v62  ;;  %v4258_v62 = vld [vmem:[#allocation2 + $0xb5] sm:$0xff] }
 0x47c   : > { %v3804_v20 = vsel %vm3676_vm14, %v3612_v12, %v3740_v34  ;;  %v3931_v17 = vld [vmem:[#allocation3 + $0x1a0] ss:$2 sm:$0xff]  ;;  %v3995_v4 = vld [vmem:[#allocation3 + $0x1a1] ss:$2 sm:$0xff]  ;;  %v1940_v28 = vmul.f32 %v11614_v55, %v1846_v36  ;;  %v4257_v55 = vld [vmem:[#allocation2 + $0xad] sm:$0xff] }
 0x47d   : > { %3869 = vst.msk [vmem:[#allocation3 + $0x1b0] sm:$0xff] %vm3814_vm3, %v3804_v20  ;;  %v4096_v46 = vmax.f32 %v3931_v17, %v3995_v4  ;;  %v4839_v20 = vld [vmem:[#allocation2 + $0xbc] sm:$0xff] }
 0x47e   : > { %v2004_v61 = vadd.f32 %v1940_v28, %v1426_v41  ;;  %v4453_v41 = vld [vmem:[#allocation2 + $0xc2] sm:$0xff] }
 0x47f   : > { %4728 = vrot.lane.b32.xlu0 %v4644_v3, %s10230_s27  ;;  %v5208_v35 = vpop.f32.mrf.mxu0 }
 0x480   : > { %4534 = vrot.lane.b32.xlu2 %v4450_v21, %s10231_s2  ;;  %v5209_v49 = vadd.f32 %v11827_v15, %v5208_v35  ;;  %v4645_v21 = vld [vmem:[#allocation2 + $0xb7] sm:$0xff] }
 0x481   : > { %3417 = vperm.xlu1 %9743, %v3102_v40   ;;  %v2874_v19 = vpop.permute.xlu0 %2873  ;;  %v5028_v38 = vld [vmem:[#allocation4 + $0x180] sm:$0xff] }
 0x482   : > { %vm5280_vm15 = vcmp.gt.f32.partialorder %v5209_v49, 0.0  ;;  %v5312_v2 = vmul.f32 0.01, %v5209_v49  ;;  %v11832_v48 = vpop.permute.xlu2 %2364  ;;  %9477 = vmatmul.msk.f32.gmra.mxu0 %vm5058_vm7, %v5028_v38  ;;  %v2968_v25 = vmul.f32 %v11636_v42, %v2874_v19  ;;  %v4646_v19 = vld [vmem:[#allocation2 + $0xbf] sm:$0xff] }
 0x483   : > { %v2360_v57 = vpop.permute.xlu1 %2359 }
 0x484   : > { %v4059_v22 = vld [vmem:[#allocation3 + $0x1a2] ss:$2 sm:$0xff]  ;;  %v5344_v53 = vsel %vm5280_vm15, %v5209_v49, %v5312_v2  ;;  %v2454_v47 = vmul.f32 %v11629_v44, %v2360_v57 }
 0x485   : > { %v4128_v26 = vmax.f32 %v4096_v46, %v4059_v22  ;;  %5377 = vst.msk [vmem:[#allocation3 + $0x60] sm:$0xff] %vm5364_vm9, %v5344_v53  ;;  %v11872_v2 = vld [vmem:[#allocation6 + $0x1] ss:$0 sm:$0xff] }
 0x486   : > { %v2518_v56 = vadd.f32 %v2454_v47, %v2004_v61  ;;  %v4452_v57 = vld [vmem:[#allocation2 + $0xba] sm:$0xff] }
 0x487   : > { %4163 = vst.msk [vmem:[#allocation2 + $0xda] sm:$0xff] %vm3814_vm3, %v4128_v26  ;;  %2908 = vperm.xlu0 %9742, %v2589_v63   ;;  %v11879_v63 = vld [vmem:[#allocation6] ss:$0 sm:$0xff]  ;;  %v13292_v26 = vld [vmem:[#allocation74_spill] sm:$0xff]  ;;  %v4259_v47 = vld [vmem:[#allocation2 + $0xbd] sm:$0xff] }
 0x488   : > { %4922 = vrot.lane.b32.xlu2 %v4838_v59, %s10232_s10  ;;  %v3032_v12 = vadd.f32 %v2968_v25, %v2518_v56  ;;  %v1427_v37 = vmul.f32 %v11879_v63, %v13292_v26  ;;  %v11905_v56 = vld [vmem:[#allocation6 + $0x4] ss:$0 sm:$0xff] }
 0x489   : > { %2394 = vperm.xlu1 %9743, %v2075_v33   ;;  %v11840_v58 = vpop.permute.xlu0 %1850 }
 0x48a   : > { %v11845_v14 = vpop.permute.xlu2 %2878  ;;  %v1941_v46 = vmul.f32 %v11872_v2, %v11840_v58 }
 0x48b   : > { %v3383_v31 = vpop.permute.xlu1 %3382 }
 0x48c   : > { %v5435_v10 = vld [vmem:[#allocation3 + $0x52] ss:$2 sm:$0xff]  ;;  %v3481_v1 = vmul.f32 %v11646_v60, %v3383_v31  ;;  %v2005_v23 = vadd.f32 %v1941_v46, %v1427_v37 }
 0x48d   : > { %v5467_v32 = vmax.f32 %v5451_v6, %v5435_v10  ;;  %v11887_v6 = vld [vmem:[#allocation6 + $0x2] ss:$0 sm:$0xff]  ;;  %v4455_v37 = vld [vmem:[#allocation2 + $0xd2] sm:$0xff] }
 0x48e   : > { %v3545_v27 = vadd.f32 %v3481_v1, %v3031_v5  ;;  %v4199_v0 = vld [vmem:[#allocation2 + $0xd8] sm:$0xff]  ;;  %v2455_v31 = vmul.f32 %v11887_v6, %v11832_v48 }
 0x48f   : > { %5486 = vst.msk [vmem:[#allocation2 + $0x32] sm:$0xff] %vm5364_vm9, %v5467_v32  ;;  %4536 = vrot.lane.b32.xlu0 %v4451_v29, %s10231_s2  ;;  %v11895_v1 = vld [vmem:[#allocation6 + $0x3] ss:$0 sm:$0xff] }
 0x490   : > { %v3613_v39 = vadd.f32 %v11650_v24, %v3545_v27  ;;  %4342 = vrot.lane.b32.xlu2 %v4257_v55, %s10229_s5  ;;  %4231 = vst.msk [vmem:[#allocation4 + $0x288] sm:$0xff] %vm3814_vm3, %v4199_v0  ;;  %v2519_v10 = vadd.f32 %v2455_v31, %v2005_v23  ;;  %v2969_v32 = vmul.f32 %v11895_v1, %v11845_v14  ;;  %v13294_v23 = vld [vmem:[#allocation69_spill] sm:$0xff] }
 0x491   : > { %3422 = vperm.xlu1 %9743, %v3103_v54   ;;  %v4723_v44 = vpop.permute.xlu0 %4722  ;;  %v13293_v54 = vld [vmem:[#allocation77_spill] sm:$0xff] }
 0x492   : > { %vm3677_vm4 = vcmp.gt.f32.partialorder %v3613_v39, 0.0  ;;  %v3741_v51 = vmul.f32 0.01, %v3613_v39  ;;  %v4337_v52 = vpop.permute.xlu2 %4336  ;;  %4802 = vst.msk [vmem:[#allocation4 + $0x198] sm:$0xff] %vm4784_vm1, %v4723_v44  ;;  %v1428_v29 = vmul.f32 %v11879_v63, %v13293_v54  ;;  %v3033_v0 = vadd.f32 %v2969_v32, %v2519_v10 }
 0x493   : > { %v3388_v30 = vpop.permute.xlu1 %3387  ;;  %4415 = vst.msk [vmem:[#allocation4 + $0x1b0] sm:$0xff] %vm4396_vm11, %v4337_v52  ;;  %v4260_v52 = vld [vmem:[#allocation2 + $0xc5] sm:$0xff] }
 0x494   : > { %v3805_v7 = vsel %vm3677_vm4, %v3613_v39, %v3741_v51  ;;  %v3482_v42 = vmul.f32 %v11646_v60, %v3388_v30  ;;  %v4454_v51 = vld [vmem:[#allocation2 + $0xca] sm:$0xff] }
 0x495   : > { %3870 = vst.msk [vmem:[#allocation3 + $0x1b8] sm:$0xff] %vm3814_vm3, %v3805_v7  ;;  %v11910_v7 = vld [vmem:[#allocation8] ss:$0 sm:$0xff] }
 0x496   : > { %v3546_v34 = vadd.f32 %v3482_v42, %v3032_v12  ;;  %v5828_v36 = vld [vmem:[#allocation2 + $0x2c] sm:$0xff] }
 0x497   : > { %4344 = vrot.lane.b32.xlu0 %v4258_v62, %s10229_s5  ;;  %5844 = vst.msk [vmem:[#allocation4 + $0x50] sm:$0xff] %vm5364_vm9, %v5828_v36  ;;  %v5505_v40 = vld [vmem:[#allocation2 + $0x30] sm:$0xff] }
 0x498   : > { %v3614_v3 = vadd.f32 %v11650_v24, %v3546_v34  ;;  %4924 = vrot.lane.b32.xlu2 %v4839_v20, %s10232_s10  ;;  %5521 = vst.msk [vmem:[#allocation4 + $0x90] sm:$0xff] %vm5364_vm9, %v5505_v40  ;;  %v4840_v24 = vld [vmem:[#allocation2 + $0xc4] sm:$0xff]  ;;  %v4841_v34 = vld [vmem:[#allocation2 + $0xcc] sm:$0xff] }
 0x499   : > { %4730 = vrot.lane.b32.xlu1 %v4645_v21, %s10230_s27  ;;  %v4917_v60 = vpop.permute.xlu0 %4916 }
 0x49a   : > { %vm3678_vm6 = vcmp.gt.f32.partialorder %v3614_v3, 0.0  ;;  %v3742_v35 = vmul.f32 0.01, %v3614_v3  ;;  %v4531_v17 = vpop.permute.xlu2 %4530  ;;  %4996 = vst.msk [vmem:[#allocation4 + $0x198] sm:$0xff] %vm4978_vm5, %v4917_v60 }
 0x49b   : > { %v1856_v4 = vpop.permute.xlu1 %1855  ;;  %4609 = vst.msk [vmem:[#allocation4 + $0x1b0] sm:$0xff] %vm4590_vm13, %v4531_v17  ;;  %v4261_v17 = vld [vmem:[#allocation2 + $0xcd] sm:$0xff] }
 0x49c   : > { %v3806_v8 = vsel %vm3678_vm6, %v3614_v3, %v3742_v35  ;;  %v3933_v43 = vld [vmem:[#allocation3 + $0x1b0] ss:$2 sm:$0xff]  ;;  %v3997_v11 = vld [vmem:[#allocation3 + $0x1b1] ss:$2 sm:$0xff]  ;;  %v1942_v48 = vmul.f32 %v11872_v2, %v1856_v4 }
 0x49d   : > { %3871 = vst.msk [vmem:[#allocation3 + $0x1c0] sm:$0xff] %vm3814_vm3, %v3806_v8  ;;  %v4097_v16 = vmax.f32 %v3933_v43, %v3997_v11  ;;  %v4842_v4 = vld [vmem:[#allocation2 + $0xd4] sm:$0xff] }
 0x49e   : > { %v5864_v49 = vld [vmem:[#allocation4 + $0x50] sm:$0xff]  ;;  %v2006_v39 = vadd.f32 %v1942_v48, %v1428_v29 }
 0x49f   : > { %4926 = vrot.lane.b32.xlu0 %v4840_v24, %s10232_s10  ;;  %v5211_v38 = vpop.f32.mrf.mxu0  ;;  %9496 = vmatmul.msk.f32.gmra.mxu2 %vm5364_vm9, %v5864_v49  ;;  %v4648_v24 = vld [vmem:[#allocation2 + $0xcf] sm:$0xff] }
 0x4a0   : > { %4732 = vrot.lane.b32.xlu2 %v4646_v19, %s10230_s27  ;;  %v5212_v45 = vadd.f32 %v11827_v15, %v5211_v38 }
 0x4a1   : > { %4538 = vrot.lane.b32.xlu1 %v4452_v57, %s10231_s2  ;;  %v2884_v22 = vpop.permute.xlu0 %2883  ;;  %v5029_v53 = vld [vmem:[#allocation4 + $0x198] sm:$0xff] }
 0x4a2   : > { %vm5281_vm2 = vcmp.gt.f32.partialorder %v5212_v45, 0.0  ;;  %v5313_v33 = vmul.f32 0.01, %v5212_v45  ;;  %v11883_v59 = vpop.permute.xlu2 %2374  ;;  %9478 = vmatmul.msk.f32.gmra.mxu0 %vm5058_vm7, %v5029_v53  ;;  %v2970_v12 = vmul.f32 %v11895_v1, %v2884_v22  ;;  %v4649_v57 = vld [vmem:[#allocation2 + $0xd7] sm:$0xff] }
 0x4a3   : > { %v2370_v9 = vpop.permute.xlu1 %2369  ;;  %v2457_v32 = vmul.f32 %v11887_v6, %v11883_v59 }
 0x4a4   : > { %v4061_v58 = vld [vmem:[#allocation3 + $0x1b2] ss:$2 sm:$0xff]  ;;  %v5345_v18 = vsel %vm5281_vm2, %v5212_v45, %v5313_v33  ;;  %v2456_v55 = vmul.f32 %v11887_v6, %v2370_v9 }
 0x4a5   : > { %v4129_v28 = vmax.f32 %v4097_v16, %v4061_v58  ;;  %5378 = vst.msk [vmem:[#allocation3 + $0x68] sm:$0xff] %vm5364_vm9, %v5345_v18  ;;  %v1429_v58 = vmul.f32 %v11879_v63, %v13294_v23 }
 0x4a6   : > { %v2520_v30 = vadd.f32 %v2456_v55, %v2006_v39 }
 0x4a7   : > { %4164 = vst.msk [vmem:[#allocation2 + $0xe2] sm:$0xff] %vm3814_vm3, %v4129_v28  ;;  %4734 = vrot.lane.b32.xlu0 %v4647_v50, %s10230_s27 }
 0x4a8   : > { %4540 = vrot.lane.b32.xlu2 %v4453_v41, %s10231_s2  ;;  %v3034_v3 = vadd.f32 %v2970_v12, %v2520_v30 }
 0x4a9   : > { %4346 = vrot.lane.b32.xlu1 %v4259_v47, %s10229_s5  ;;  %v1861_v5 = vpop.permute.xlu0 %1860 }
 0x4aa   : > { %v11900_v61 = vpop.permute.xlu2 %2888  ;;  %v1943_v26 = vmul.f32 %v11872_v2, %v1861_v5 }
 0x4ab   : > { %v3393_v27 = vpop.permute.xlu1 %3392  ;;  %v2971_v39 = vmul.f32 %v11895_v1, %v11900_v61 }
 0x4ac   : > { %v3483_v25 = vmul.f32 %v11905_v56, %v3393_v27  ;;  %v2007_v41 = vadd.f32 %v1943_v26, %v1429_v58  ;;  %v4456_v27 = vld [vmem:[#allocation2 + $0xda] sm:$0xff] }
 0x4ad   : > { %v5404_v54 = vld [vmem:[#allocation3 + $0x60] ss:$2 sm:$0xff]  ;;  %v5420_v29 = vld [vmem:[#allocation3 + $0x61] ss:$2 sm:$0xff] }
 0x4ae   : > { %v3547_v44 = vadd.f32 %v3483_v25, %v3033_v0  ;;  %v4200_v14 = vld [vmem:[#allocation2 + $0xe0] sm:$0xff]  ;;  %v2521_v55 = vadd.f32 %v2457_v32, %v2007_v41  ;;  %v4262_v0 = vld [vmem:[#allocation2 + $0xd5] sm:$0xff] }
 0x4af   : > { %4542 = vrot.lane.b32.xlu0 %v4454_v51, %s10231_s2  ;;  %4232 = vst.msk [vmem:[#allocation4 + $0x2a0] sm:$0xff] %vm3814_vm3, %v4200_v14  ;;  %v4843_v46 = vld [vmem:[#allocation2 + $0xdc] sm:$0xff]  ;;  %v5452_v51 = vmax.f32 %v5404_v54, %v5420_v29 }
 0x4b0   : > { %v3615_v42 = vadd.f32 %v11910_v7, %v3547_v44  ;;  %4348 = vrot.lane.b32.xlu2 %v4260_v52, %s10229_s5  ;;  %v4650_v48 = vld [vmem:[#allocation2 + $0xdf] sm:$0xff] }
 0x4b1   : > { %4928 = vrot.lane.b32.xlu1 %v4841_v34, %s10232_s10  ;;  %v4725_v62 = vpop.permute.xlu0 %4724  ;;  %v13295_v14 = vld [vmem:[#allocation76_spill] sm:$0xff]  ;;  %v3035_v34 = vadd.f32 %v2971_v39, %v2521_v55 }
 0x4b2   : > { %vm3679_vm8 = vcmp.gt.f32.partialorder %v3615_v42, 0.0  ;;  %v3743_v36 = vmul.f32 0.01, %v3615_v42  ;;  %v4339_v20 = vpop.permute.xlu2 %4338  ;;  %4803 = vst.msk [vmem:[#allocation4 + $0x1b0] sm:$0xff] %vm4784_vm1, %v4725_v62  ;;  %v1430_v30 = vmul.f32 %v11879_v63, %v13295_v14  ;;  %v4263_v61 = vld [vmem:[#allocation2 + $0xdd] sm:$0xff] }
 0x4b3   : > { %v3398_v40 = vpop.permute.xlu1 %3397  ;;  %4416 = vst.msk [vmem:[#allocation4 + $0x1c8] sm:$0xff] %vm4396_vm11, %v4339_v20 }
 0x4b4   : > { %v3807_v21 = vsel %vm3679_vm8, %v3615_v42, %v3743_v36  ;;  %v3484_v60 = vmul.f32 %v11905_v56, %v3398_v40 }
 0x4b5   : > { %3872 = vst.msk [vmem:[#allocation3 + $0x1c8] sm:$0xff] %vm3814_vm3, %v3807_v21 }
 0x4b6   : > { %v3548_v35 = vadd.f32 %v3484_v60, %v3034_v3  ;;  %v4457_v3 = vld [vmem:[#allocation2 + $0xe2] sm:$0xff] }
 0x4b7   : > { %4350 = vrot.lane.b32.xlu0 %v4261_v17, %s10229_s5 }
 0x4b8   : > { %v3616_v8 = vadd.f32 %v11910_v7, %v3548_v35  ;;  %4930 = vrot.lane.b32.xlu2 %v4842_v4, %s10232_s10 }
 0x4b9   : > { %4736 = vrot.lane.b32.xlu1 %v4648_v24, %s10230_s27  ;;  %v4919_v49 = vpop.permute.xlu0 %4918 }
 0x4ba   : > { %vm3680_vm0 = vcmp.gt.f32.partialorder %v3616_v8, 0.0  ;;  %v3744_v19 = vmul.f32 0.01, %v3616_v8  ;;  %v4533_v38 = vpop.permute.xlu2 %4532  ;;  %4997 = vst.msk [vmem:[#allocation4 + $0x1b0] sm:$0xff] %vm4978_vm5, %v4919_v49 }
 0x4bb   : > { %v1866_v43 = vpop.permute.xlu1 %1865  ;;  %4610 = vst.msk [vmem:[#allocation4 + $0x1c8] sm:$0xff] %vm4590_vm13, %v4533_v38 }
 0x4bc   : > { %v3808_v11 = vsel %vm3680_vm0, %v3616_v8, %v3744_v19  ;;  %v3935_v22 = vld [vmem:[#allocation3 + $0x1c0] ss:$2 sm:$0xff]  ;;  %v3999_v53 = vld [vmem:[#allocation3 + $0x1c1] ss:$2 sm:$0xff]  ;;  %v1944_v59 = vmul.f32 %v11872_v2, %v1866_v43  ;;  %vm4168_vm0 = vcmask 129024  }
 0x4bd   : > { %3873 = vst.msk [vmem:[#allocation3 + $0x1d0] sm:$0xff] %vm3814_vm3, %v3808_v11  ;;  %v4098_v31 = vmax.f32 %v3935_v22, %v3999_v53 }
 0x4be   : > { %v2008_v20 = vadd.f32 %v1944_v59, %v1430_v30 }
 0x4bf   : > { %4932 = vrot.lane.b32.xlu0 %v4843_v46, %s10232_s10  ;;  %v5214_v45 = vpop.f32.mrf.mxu0 }
 0x4c0   : > { %4738 = vrot.lane.b32.xlu2 %v4649_v57, %s10230_s27  ;;  %v5215_v33 = vadd.f32 %v11827_v15, %v5214_v45 }
 0x4c1   : > { %4544 = vrot.lane.b32.xlu1 %v4455_v37, %s10231_s2  ;;  %v2894_v16 = vpop.permute.xlu0 %2893  ;;  %v5030_v9 = vld [vmem:[#allocation4 + $0x1b0] sm:$0xff] }
 0x4c2   : > { %vm5282_vm10 = vcmp.gt.f32.partialorder %v5215_v33, 0.0  ;;  %v5314_v18 = vmul.f32 0.01, %v5215_v33  ;;  %v11934_v28 = vpop.permute.xlu2 %2384  ;;  %9479 = vmatmul.msk.f32.gmra.mxu0 %vm5058_vm7, %v5030_v9  ;;  %v2972_v35 = vmul.f32 %v11895_v1, %v2894_v16 }
 0x4c3   : > { %v2380_v50 = vpop.permute.xlu1 %2379 }
 0x4c4   : > { %v4063_v10 = vld [vmem:[#allocation3 + $0x1c2] ss:$2 sm:$0xff]  ;;  %v5346_v47 = vsel %vm5282_vm10, %v5215_v33, %v5314_v18  ;;  %v2458_v42 = vmul.f32 %v11887_v6, %v2380_v50 }
 0x4c5   : > { %v4130_v5 = vmax.f32 %v4098_v31, %v4063_v10  ;;  %5379 = vst.msk [vmem:[#allocation3 + $0x70] sm:$0xff] %vm5364_vm9, %v5346_v47 }
 0x4c6   : > { %v2522_v60 = vadd.f32 %v2458_v42, %v2008_v20 }
 0x4c7   : > { %4165 = vst.msk [vmem:[#allocation2 + $0xea] sm:$0xff] %vm3814_vm3, %v4130_v5  ;;  %4740 = vrot.lane.b32.xlu0 %v4650_v48, %s10230_s27  ;;  %v13296_v48 = vld [vmem:[#allocation79_spill] sm:$0xff] }
 0x4c8   : > { %4546 = vrot.lane.b32.xlu2 %v4456_v27, %s10231_s2  ;;  %v3036_v38 = vadd.f32 %v2972_v35, %v2522_v60  ;;  %v1431_v27 = vmul.f32 %v11879_v63, %v13296_v48 }
 0x4c9   : > { %4352 = vrot.lane.b32.xlu1 %v4262_v0, %s10229_s5  ;;  %v1871_v25 = vpop.permute.xlu0 %1870 }
 0x4ca   : > { %v11947_v44 = vpop.permute.xlu2 %2898  ;;  %v1945_v41 = vmul.f32 %v11872_v2, %v1871_v25 }
 0x4cb   : > { %v3403_v52 = vpop.permute.xlu1 %3402 }
 0x4cc   : > { %v5436_v12 = vld [vmem:[#allocation3 + $0x62] ss:$2 sm:$0xff]  ;;  %v3485_v62 = vmul.f32 %v11905_v56, %v3403_v52  ;;  %v2009_v39 = vadd.f32 %v1945_v41, %v1431_v27  ;;  %v2459_v52 = vmul.f32 %v11887_v6, %v11934_v28 }
 0x4cd   : > { %v5468_v36 = vmax.f32 %v5452_v51, %v5436_v12  ;;  %v2973_v12 = vmul.f32 %v11895_v1, %v11947_v44 }
 0x4ce   : > { %v3549_v40 = vadd.f32 %v3485_v62, %v3035_v34  ;;  %v4201_v21 = vld [vmem:[#allocation2 + $0xe8] sm:$0xff]  ;;  %v2523_v14 = vadd.f32 %v2459_v52, %v2009_v39 }
 0x4cf   : > { %5487 = vst.msk [vmem:[#allocation2 + $0x3a] sm:$0xff] %vm5364_vm9, %v5468_v36  ;;  %4548 = vrot.lane.b32.xlu0 %v4457_v3, %s10231_s2  ;;  %v4844_v4 = vld [vmem:[#allocation2 + $0xe4] sm:$0xff] }
 0x4d0   : > { %v3617_v17 = vadd.f32 %v11910_v7, %v3549_v40  ;;  %4354 = vrot.lane.b32.xlu2 %v4263_v61, %s10229_s5  ;;  %4233 = vst.msk [vmem:[#allocation4 + $0x2b8] sm:$0xff] %vm3814_vm3, %v4201_v21  ;;  %v4264_v57 = vld [vmem:[#allocation2 + $0xe5] sm:$0xff]  ;;  %v13297_v36 = vld [vmem:[#allocation72_spill] sm:$0xff]  ;;  %v3037_v3 = vadd.f32 %v2973_v12, %v2523_v14 }
 0x4d1   : > { %4934 = vrot.lane.b32.xlu1 %v4844_v4, %s10232_s10  ;;  %v4727_v8 = vpop.permute.xlu0 %4726  ;;  %v4651_v26 = vld [vmem:[#allocation2 + $0xe7] sm:$0xff]  ;;  %v1432_v20 = vmul.f32 %v11879_v63, %v13297_v36 }
 0x4d2   : > { %vm3681_vm12 = vcmp.gt.f32.partialorder %v3617_v17, 0.0  ;;  %v3745_v24 = vmul.f32 0.01, %v3617_v17  ;;  %v4341_v49 = vpop.permute.xlu2 %4340  ;;  %4804 = vst.msk [vmem:[#allocation4 + $0x1c8] sm:$0xff] %vm4784_vm1, %v4727_v8  ;;  %v4458_v10 = vld [vmem:[#allocation2 + $0xea] sm:$0xff] }
 0x4d3   : > { %v3408_v19 = vpop.permute.xlu1 %3407  ;;  %4417 = vst.msk [vmem:[#allocation4 + $0x1e0] sm:$0xff] %vm4396_vm11, %v4341_v49 }
 0x4d4   : > { %v3809_v43 = vsel %vm3681_vm12, %v3617_v17, %v3745_v24  ;;  %v3486_v11 = vmul.f32 %v11905_v56, %v3408_v19 }
 0x4d5   : > { %3874 = vst.msk [vmem:[#allocation3 + $0x1d8] sm:$0xff] %vm3814_vm3, %v3809_v43 }
 0x4d6   : > { %v3550_v46 = vadd.f32 %v3486_v11, %v3036_v38  ;;  %v5829_v45 = vld [vmem:[#allocation2 + $0x34] sm:$0xff] }
 0x4d7   : > { %4356 = vrot.lane.b32.xlu0 %v4264_v57, %s10229_s5  ;;  %5845 = vst.msk [vmem:[#allocation4 + $0x68] sm:$0xff] %vm5364_vm9, %v5829_v45  ;;  %v5506_v22 = vld [vmem:[#allocation2 + $0x38] sm:$0xff] }
 0x4d8   : > { %v3618_v53 = vadd.f32 %v11910_v7, %v3550_v46  ;;  %5522 = vst.msk [vmem:[#allocation4 + $0xa8] sm:$0xff] %vm5364_vm9, %v5506_v22 }
 0x4d9   : > { %4742 = vrot.lane.b32.xlu1 %v4651_v26, %s10230_s27  ;;  %v4921_v37 = vpop.permute.xlu0 %4920 }
 0x4da   : > { %vm3682_vm14 = vcmp.gt.f32.partialorder %v3618_v53, 0.0  ;;  %v3746_v33 = vmul.f32 0.01, %v3618_v53  ;;  %v4535_v16 = vpop.permute.xlu2 %4534  ;;  %4998 = vst.msk [vmem:[#allocation4 + $0x1c8] sm:$0xff] %vm4978_vm5, %v4921_v37 }
 0x4db   : > { %v1876_v9 = vpop.permute.xlu1 %1875  ;;  %4611 = vst.msk [vmem:[#allocation4 + $0x1e0] sm:$0xff] %vm4590_vm13, %v4535_v16 }
 0x4dc   : > { %v3810_v23 = vsel %vm3682_vm14, %v3618_v53, %v3746_v33  ;;  %v3937_v31 = vld [vmem:[#allocation3 + $0x1d0] ss:$2 sm:$0xff]  ;;  %v4001_v50 = vld [vmem:[#allocation3 + $0x1d1] ss:$2 sm:$0xff]  ;;  %v1946_v42 = vmul.f32 %v11872_v2, %v1876_v9 }
 0x4dd   : > { %3875 = vst.msk [vmem:[#allocation3 + $0x1e0] sm:$0xff] %vm3814_vm3, %v3810_v23  ;;  %v4099_v55 = vmax.f32 %v3937_v31, %v4001_v50  ;;  %v13298_v23 = vld [vmem:[#allocation78_spill] sm:$0xff] }
 0x4de   : > { %v5866_v58 = vld [vmem:[#allocation4 + $0x68] sm:$0xff]  ;;  %v2010_v61 = vadd.f32 %v1946_v42, %v1432_v20 }
 0x4df   : > { %v5217_v18 = vpop.f32.mrf.mxu0  ;;  %9497 = vmatmul.msk.f32.gmra.mxu2 %vm5364_vm9, %v5866_v58  ;;  %v1433_v58 = vmul.f32 %v11879_v63, %v13298_v23 }
 0x4e0   : > { %v5218_v47 = vadd.f32 %v11827_v15, %v5217_v18 }
 0x4e1   : > { %4550 = vrot.lane.b32.xlu1 %v4458_v10, %s10231_s2  ;;  %v2904_v5 = vpop.permute.xlu0 %2903  ;;  %v5031_v32 = vld [vmem:[#allocation4 + $0x1c8] sm:$0xff] }
 0x4e2   : > { %vm5283_vm15 = vcmp.gt.f32.partialorder %v5218_v47, 0.0  ;;  %v5315_v54 = vmul.f32 0.01, %v5218_v47  ;;  %v4923_v29 = vpop.permute.xlu2 %4922  ;;  %9480 = vmatmul.msk.f32.gmra.mxu0 %vm5058_vm7, %v5031_v32  ;;  %v2974_v4 = vmul.f32 %v11895_v1, %v2904_v5 }
 0x4e3   : > { %v2390_v0 = vpop.permute.xlu1 %2389 }
 0x4e4   : > { %v4065_v59 = vld [vmem:[#allocation3 + $0x1d2] ss:$2 sm:$0xff]  ;;  %v5347_v25 = vsel %vm5283_vm15, %v5218_v47, %v5315_v54  ;;  %v2460_v40 = vmul.f32 %v11887_v6, %v2390_v0  ;;  %vm6139_vm15 = vcmask 523264  }
 0x4e5   : > { %v4131_v51 = vmax.f32 %v4099_v55, %v4065_v59  ;;  %5380 = vst.msk [vmem:[#allocation3 + $0x78] sm:$0xff] %vm5364_vm9, %v5347_v25 }
 0x4e6   : > { %v2524_v17 = vadd.f32 %v2460_v40, %v2010_v61 }
 0x4e7   : > { %4166 = vst.msk [vmem:[#allocation2 + $0xf2] sm:$0xff] %vm3814_vm3, %v4131_v51 }
 0x4e8   : > { %v3038_v43 = vadd.f32 %v2974_v4, %v2524_v17 }
 0x4e9   : > { %v1881_v30 = vpop.permute.xlu0 %1880 }
 0x4ea   : > { %v4343_v34 = vpop.permute.xlu2 %4342  ;;  %v1947_v26 = vmul.f32 %v11872_v2, %v1881_v30 }
 0x4eb   : > { %v3413_v62 = vpop.permute.xlu1 %3412  ;;  %4418 = vst.msk [vmem:[#allocation4 + $0x1f8] sm:$0xff] %vm4396_vm11, %v4343_v34 }
 0x4ec   : > { %v3487_v28 = vmul.f32 %v11905_v56, %v3413_v62  ;;  %v2011_v50 = vadd.f32 %v1947_v26, %v1433_v58  ;;  %v5421_v52 = vld [vmem:[#allocation3 + $0x71] ss:$2 sm:$0xff] }
 0x4ee   : > { %v3551_v21 = vadd.f32 %v3487_v28, %v3037_v3  ;;  %v4845_v60 = vld [vmem:[#allocation2 + $0xec] sm:$0xff] }
 0x4ef   : > { %v4265_v35 = vld [vmem:[#allocation2 + $0xed] sm:$0xff]  ;;  %4936 = vrot.lane.b32.xlu2 %v4845_v60, %s10232_s10 }
 0x4f0   : > { %4358 = vrot.lane.b32.xlu1 %v4265_v35, %s10229_s5  ;;  %v4202_v44 = vld [vmem:[#allocation2 + $0xf0] sm:$0xff]  ;;  %v3619_v8 = vadd.f32 %v11910_v7, %v3551_v21 }
 0x4f1   : > { %4234 = vst.msk [vmem:[#allocation4 + $0x2d0] sm:$0xff] %vm3814_vm3, %v4202_v44  ;;  %v4729_v24 = vpop.permute.xlu0 %4728  ;;  %v4652_v45 = vld [vmem:[#allocation2 + $0xef] sm:$0xff] }
 0x4f2   : > { %vm3683_vm4 = vcmp.gt.f32.partialorder %v3619_v8, 0.0  ;;  %v3747_v49 = vmul.f32 0.01, %v3619_v8  ;;  %v11996_v19 = vpop.permute.xlu2 %4924  ;;  %4805 = vst.msk [vmem:[#allocation4 + $0x1e0] sm:$0xff] %vm4784_vm1, %v4729_v24  ;;  %v4459_v41 = vld [vmem:[#allocation2 + $0xf2] sm:$0xff] }
 0x4f3   : > { %v3418_v38 = vpop.permute.xlu1 %3417  ;;  %4999 = vst.msk [vmem:[#allocation4 + $0x1e0] sm:$0xff] %vm4978_vm5, %v4923_v29 }
 0x4f4   : > { %v3811_v11 = vsel %vm3683_vm4, %v3619_v8, %v3747_v49  ;;  %v3488_v46 = vmul.f32 %v11905_v56, %v3418_v38 }
 0x4f5   : > { %3876 = vst.msk [vmem:[#allocation3 + $0x1e8] sm:$0xff] %vm3814_vm3, %v3811_v11 }
 0x4f6   : > { %v3552_v57 = vadd.f32 %v3488_v46, %v3038_v43 }
 0x4f7   : > { %4744 = vrot.lane.b32.xlu2 %v4652_v45, %s10230_s27 }
 0x4f8   : > { %v3620_v22 = vadd.f32 %v11910_v7, %v3552_v57 }
 0x4f9   : > { %v2909_v53 = vpop.permute.xlu0 %2908 }
 0x4fa   : > { %vm3684_vm6 = vcmp.gt.f32.partialorder %v3620_v22, 0.0  ;;  %v3748_v37 = vmul.f32 0.01, %v3620_v22  ;;  %v12005_v33 = vpop.permute.xlu2 %4732  ;;  %v5032_v16 = vld [vmem:[#allocation4 + $0x1e0] sm:$0xff]  ;;  %v2975_v32 = vmul.f32 %v11895_v1, %v2909_v53  ;;  %v5405_v1 = vld [vmem:[#allocation3 + $0x70] ss:$2 sm:$0xff] }
 0x4fb   : > { %v2395_v9 = vpop.permute.xlu1 %2394  ;;  %9481 = vmatmul.msk.f32.gmra.mxu0 %vm5058_vm7, %v5032_v16  ;;  %v5453_v34 = vmax.f32 %v5405_v1, %v5421_v52  ;;  %v5631_v1 = vld [vmem:[#allocation2 + $0x1a] sm:$0xff]  ;;  %v5532_v52 = vld [vmem:[#allocation2 + $0xd] sm:$0xff] }
 0x4fc   : > { %v3812_v18 = vsel %vm3684_vm6, %v3620_v22, %v3748_v37  ;;  %v2461_v31 = vmul.f32 %v11887_v6, %v2395_v9  ;;  %v3939_v10 = vld [vmem:[#allocation3 + $0x1e0] ss:$2 sm:$0xff]  ;;  %v4003_v47 = vld [vmem:[#allocation3 + $0x1e1] ss:$2 sm:$0xff]  ;;  %vm4622_vm6 = vcmask 391424  }
 0x4fd   : > { %3877 = vst.msk [vmem:[#allocation3 + $0x1f0] sm:$0xff] %vm3814_vm3, %v3812_v18  ;;  %v4100_v6 = vmax.f32 %v3939_v10, %v4003_v47 }
 0x4fe   : > { %v2525_v5 = vadd.f32 %v2461_v31, %v2011_v50 }
 0x4ff   : > { %4552 = vrot.lane.b32.xlu2 %v4459_v41, %s10231_s2  ;;  %v5220_v2 = vpop.f32.mrf.mxu0 }
 0x500   : > { %v5221_v48 = vadd.f32 %v11827_v15, %v5220_v2  ;;  %v3039_v0 = vadd.f32 %v2975_v32, %v2525_v5  ;;  %v4849_v5 = vld [vmem:[#allocation2 + $0x10c] sm:$0x7f] }
 0x501   : > { %v4537_v27 = vpop.permute.xlu0 %4536 }
 0x502   : > { %vm5284_vm2 = vcmp.gt.f32.partialorder %v5221_v48, 0.0  ;;  %v5316_v63 = vmul.f32 0.01, %v5221_v48  ;;  %v4541_v54 = vpop.permute.xlu2 %4540  ;;  %4612 = vst.msk [vmem:[#allocation4 + $0x1f8] sm:$0xff] %vm4590_vm13, %v4537_v27 }
 0x503   : > { %v3423_v29 = vpop.permute.xlu1 %3422 }
 0x504   : > { %v4067_v55 = vld [vmem:[#allocation3 + $0x1e2] ss:$2 sm:$0xff]  ;;  %v5348_v39 = vsel %vm5284_vm2, %v5221_v48, %v5316_v63  ;;  %v3489_v59 = vmul.f32 %v11905_v56, %v3423_v29  ;;  %v5629_v48 = vld [vmem:[#allocation2 + $0xa] sm:$0xff]  ;;  %v5630_v29 = vld [vmem:[#allocation2 + $0x12] sm:$0xff]  ;;  %vm4816_vm2 = vcmask 522624  }
 0x505   : > { %v4132_v25 = vmax.f32 %v4100_v6, %v4067_v55  ;;  %5381 = vst.msk [vmem:[#allocation3 + $0x80] sm:$0xff] %vm5364_vm9, %v5348_v39  ;;  %v5727_v6 = vld [vmem:[#allocation2 + $0xf] sm:$0xff]  ;;  %v5531_v55 = vld [vmem:[#allocation2 + $0x5] sm:$0xff] }
 0x506   : > { %v3553_v51 = vadd.f32 %v3489_v59, %v3039_v0 }
 0x507   : > { %4167 = vst.msk [vmem:[#allocation2 + $0xfa] sm:$0xff] %vm3814_vm3, %v4132_v25  ;;  %v5728_v25 = vld [vmem:[#allocation2 + $0x17] sm:$0xff] }
 0x508   : > { %v3621_v14 = vadd.f32 %v11910_v7, %v3553_v51 }
 0x509   : > { %v4345_v30 = vpop.permute.xlu0 %4344 }
 0x50a   : > { %vm3685_vm8 = vcmp.gt.f32.partialorder %v3621_v14, 0.0  ;;  %v3749_v12 = vmul.f32 0.01, %v3621_v14  ;;  %v4349_v42 = vpop.permute.xlu2 %4348  ;;  %4419 = vst.msk [vmem:[#allocation4 + $0x210] sm:$0xff] %vm4396_vm11, %v4345_v30 }
 0x50b   : > { %v4731_v62 = vpop.permute.xlu1 %4730  ;;  %4421 = vst.msk [vmem:[#allocation4 + $0x240] sm:$0xff] %vm4396_vm11, %v4349_v42 }
 0x50c   : > { %v5437_v56 = vld [vmem:[#allocation3 + $0x72] ss:$2 sm:$0xff]  ;;  %v3813_v36 = vsel %vm3685_vm8, %v3621_v14, %v3749_v12  ;;  %4806 = vst.msk [vmem:[#allocation4 + $0x1f8] sm:$0xff] %vm4784_vm1, %v4731_v62  ;;  %v5729_v62 = vld [vmem:[#allocation2 + $0x1f] sm:$0xff]  ;;  %vm5010_vm8 = vcmask 653824  }
 0x50d   : > { %v5469_v20 = vmax.f32 %v5453_v34, %v5437_v56  ;;  %3878 = vst.msk [vmem:[#allocation3 + $0x1f8] sm:$0xff] %vm3814_vm3, %v3813_v36  ;;  %v5533_v56 = vld [vmem:[#allocation2 + $0x15] sm:$0xff] }
 0x50e   : > { %5000 = vst.msk [vmem:[#allocation4 + $0x1f8] sm:$0xff] %vm4978_vm5, %v11996_v19  ;;  %v4846_v7 = vld [vmem:[#allocation2 + $0xf4] sm:$0xff] }
 0x50f   : > { %v4266_v40 = vld [vmem:[#allocation2 + $0xf5] sm:$0xff]  ;;  %5488 = vst.msk [vmem:[#allocation2 + $0x42] sm:$0xff] %vm5364_vm9, %v5469_v20  ;;  %4938 = vrot.lane.b32.xlu0 %v4846_v7, %s10232_s10  ;;  %v5632_v20 = vld [vmem:[#allocation2 + $0x22] sm:$0xff] }
 0x510   : > { %4360 = vrot.lane.b32.xlu2 %v4266_v40, %s10229_s5  ;;  %v4203_v3 = vld [vmem:[#allocation2 + $0xf8] sm:$0x7f] }
 0x511   : > { %4235 = vst.msk [vmem:[#allocation4 + $0x2e8] sm:$0x7f] %vm4168_vm0, %v4203_v3  ;;  %v4927_v28 = vpop.permute.xlu0 %4926  ;;  %v4653_v8 = vld [vmem:[#allocation2 + $0xf7] sm:$0xff] }
 0x512   : > { %v4931_v61 = vpop.permute.xlu2 %4930  ;;  %v4460_v57 = vld [vmem:[#allocation2 + $0xfa] sm:$0xff] }
 0x513   : > { %v4539_v21 = vpop.permute.xlu1 %4538 }
 0x514   : > { %v3941_v60 = vld [vmem:[#allocation3 + $0x1f0] ss:$2 sm:$0x7f]  ;;  %v4005_v35 = vld [vmem:[#allocation3 + $0x1f1] ss:$2 sm:$0x7f] }
 0x515   : > { %v4101_v44 = vmax.f32 %v3941_v60, %v4005_v35  ;;  %4613 = vst.msk [vmem:[#allocation4 + $0x210] sm:$0xff] %vm4590_vm13, %v4539_v21  ;;  %v5033_v17 = vld [vmem:[#allocation4 + $0x1f8] sm:$0xff]  ;;  %v5730_v35 = vld [vmem:[#allocation2 + $0x27] sm:$0xff] }
 0x516   : > { %v4069_v4 = vld [vmem:[#allocation3 + $0x1f2] ss:$2 sm:$0x7f]  ;;  %4807 = vst.msk [vmem:[#allocation4 + $0x210] sm:$0xff] %vm4784_vm1, %v12005_v33  ;;  %9482 = vmatmul.msk.f32.gmra.mxu0 %vm5058_vm7, %v5033_v17  ;;  %v5830_v24 = vld [vmem:[#allocation2 + $0x3c] sm:$0xff] }
 0x517   : > { %v4133_v49 = vmax.f32 %v4101_v44, %v4069_v4  ;;  %5001 = vst.msk [vmem:[#allocation4 + $0x210] sm:$0xff] %vm4978_vm5, %v4927_v28  ;;  %4746 = vrot.lane.b32.xlu0 %v4653_v8, %s10230_s27  ;;  %v5507_v19 = vld [vmem:[#allocation2 + $0x40] sm:$0xff]  ;;  %v5633_v44 = vld [vmem:[#allocation2 + $0x2a] sm:$0xff] }
 0x518   : > { %5846 = vst.msk [vmem:[#allocation4 + $0x80] sm:$0xff] %vm5364_vm9, %v5830_v24  ;;  %v5534_v17 = vld [vmem:[#allocation2 + $0x1d] sm:$0xff] }
 0x519   : > { %v4735_v38 = vpop.permute.xlu0 %4734  ;;  %4169 = vst.msk [vmem:[#allocation2 + $0x102] sm:$0x7f] %vm4168_vm0, %v4133_v49  ;;  %v5731_v49 = vld [vmem:[#allocation2 + $0x2f] sm:$0xff] }
 0x51a   : > { %v4739_v43 = vpop.permute.xlu2 %4738  ;;  %5523 = vst.msk [vmem:[#allocation4 + $0xc0] sm:$0xff] %vm5364_vm9, %v5507_v19 }
 0x51b   : > { %v4347_v11 = vpop.permute.xlu1 %4346 }
 0x51c   : > { %4420 = vst.msk [vmem:[#allocation4 + $0x228] sm:$0xff] %vm4396_vm11, %v4347_v11  ;;  %v5535_v11 = vld [vmem:[#allocation2 + $0x25] sm:$0xff] }
 0x51d   : > { %4614 = vst.msk [vmem:[#allocation4 + $0x228] sm:$0xff] %vm4590_vm13, %v4541_v54 }
 0x51e   : > { %4808 = vst.msk [vmem:[#allocation4 + $0x228] sm:$0xff] %vm4784_vm1, %v4735_v38  ;;  %v5034_v46 = vld [vmem:[#allocation4 + $0x210] sm:$0xff] }
 0x51f   : > { %9483 = vmatmul.msk.f32.gmra.mxu0 %vm5058_vm7, %v5034_v46  ;;  %4554 = vrot.lane.b32.xlu0 %v4460_v57, %s10231_s2  ;;  %v5223_v45 = vpop.f32.mrf.mxu0  ;;  %v5868_v22 = vld [vmem:[#allocation4 + $0x80] sm:$0xff] }
 0x520   : > { %v4847_v53 = vld [vmem:[#allocation2 + $0xfc] sm:$0xff]  ;;  %v4848_v26 = vld [vmem:[#allocation2 + $0x104] sm:$0xff]  ;;  %v5224_v37 = vadd.f32 %v11827_v15, %v5223_v45  ;;  %9498 = vmatmul.msk.f32.gmra.mxu2 %vm5364_vm9, %v5868_v22 }
 0x521   : > { %4940 = vrot.lane.b32.xlu1 %v4847_v53, %s10232_s10  ;;  %4942 = vrot.lane.b32.xlu2 %v4848_v26, %s10232_s10  ;;  %v4543_v33 = vpop.permute.xlu0 %4542  ;;  %v4267_v18 = vld [vmem:[#allocation2 + $0xfd] sm:$0x7f]  ;;  %v4655_v50 = vld [vmem:[#allocation2 + $0x107] sm:$0x7f] }
 0x522   : > { %vm5285_vm3 = vcmp.gt.f32.partialorder %v5224_v37, 0.0  ;;  %v5317_v16 = vmul.f32 0.01, %v5224_v37  ;;  %v4547_v9 = vpop.permute.xlu2 %4546  ;;  %4615 = vst.msk [vmem:[#allocation4 + $0x240] sm:$0xff] %vm4590_vm13, %v4543_v33  ;;  %v4654_v31 = vld [vmem:[#allocation2 + $0xff] sm:$0xff]  ;;  %v5732_v46 = vld [vmem:[#allocation2 + $0x37] sm:$0xff] }
 0x523   : > { %v4929_v23 = vpop.permute.xlu1 %4928  ;;  %v4461_v32 = vld [vmem:[#allocation2 + $0x102] sm:$0x7f]  ;;  %v5635_v22 = vld [vmem:[#allocation2 + $0x3a] sm:$0xff]  ;;  %v5536_v53 = vld [vmem:[#allocation2 + $0x2d] sm:$0xff] }
 0x524   : > { %v5349_v58 = vsel %vm5285_vm3, %v5224_v37, %v5317_v16  ;;  %5002 = vst.msk [vmem:[#allocation4 + $0x228] sm:$0xff] %vm4978_vm5, %v4929_v23  ;;  %v12101_v26 = vld [vmem:[#allocation10] ss:$0 sm:$0xff]  ;;  %vm5807_vm3 = vcmask 1048320  }
 0x525   : > { %5382 = vst.msk [vmem:[#allocation3 + $0x88] sm:$0xff] %vm5364_vm9, %v5349_v58  ;;  %v5733_v58 = vld [vmem:[#allocation2 + $0x3f] sm:$0xff] }
 0x527   : > { %4362 = vrot.lane.b32.xlu0 %v4267_v18, %s10229_s5  ;;  %v5636_v18 = vld [vmem:[#allocation2 + $0x42] sm:$0xff] }
 0x529   : > { %4748 = vrot.lane.b32.xlu1 %v4654_v31, %s10230_s27  ;;  %4750 = vrot.lane.b32.xlu2 %v4655_v50, %s10230_s27  ;;  %v4351_v41 = vpop.permute.xlu0 %4350  ;;  %v5537_v31 = vld [vmem:[#allocation2 + $0x35] sm:$0xff] }
 0x52a   : > { %v4355_v2 = vpop.permute.xlu2 %4354  ;;  %4422 = vst.msk [vmem:[#allocation4 + $0x258] sm:$0xff] %vm4396_vm11, %v4351_v41 }
 0x52b   : > { %v4737_v10 = vpop.permute.xlu1 %4736  ;;  %4424 = vst.msk [vmem:[#allocation4 + $0x288] sm:$0xff] %vm4396_vm11, %v4355_v2  ;;  %v5035_v47 = vld [vmem:[#allocation4 + $0x228] sm:$0xff] }
 0x52c   : > { %4809 = vst.msk [vmem:[#allocation4 + $0x240] sm:$0xff] %vm4784_vm1, %v4737_v10  ;;  %9484 = vmatmul.msk.f32.gmra.mxu0 %vm5058_vm7, %v5035_v47  ;;  %v5422_v36 = vld [vmem:[#allocation3 + $0x81] ss:$2 sm:$0xff] }
 0x52d   : > { %5003 = vst.msk [vmem:[#allocation4 + $0x240] sm:$0xff] %vm4978_vm5, %v4931_v61  ;;  %v5538_v10 = vld [vmem:[#allocation2 + $0x3d] sm:$0xff] }
 0x52f   : > { %4944 = vrot.lane.b32.xlu0 %v4849_v5, %s10232_s10 }
 0x531   : > { %4556 = vrot.lane.b32.xlu1 %v4461_v32, %s10231_s2  ;;  %5661 = vrot.lane.b32.xlu2 %v5629_v48, %s10232_s10  ;;  %v4933_v27 = vpop.permute.xlu0 %4932  ;;  %v5904_v48 = vld [vmem:[%s13277_s25 + $0x78] sm:$0xff] }
 0x532   : > { %5961 = vmatpush.msra.mxu1 %v5904_v48 }
 0x533   : > { %v4545_v63 = vpop.permute.xlu1 %4544 }
 0x534   : > { %4616 = vst.msk [vmem:[#allocation4 + $0x258] sm:$0xff] %vm4590_vm13, %v4545_v63  ;;  %v5036_v54 = vld [vmem:[#allocation4 + $0x240] sm:$0xff]  ;;  %v5903_v63 = vld [vmem:[%s13277_s25 + $0x70] sm:$0xff] }
 0x535   : > { %4810 = vst.msk [vmem:[#allocation4 + $0x258] sm:$0xff] %vm4784_vm1, %v4739_v43  ;;  %9485 = vmatmul.msk.f32.gmra.mxu0 %vm5058_vm7, %v5036_v54  ;;  %v5634_v43 = vld [vmem:[#allocation2 + $0x32] sm:$0xff]  ;;  %5962 = vmatpush.msra.mxu1 %v5903_v63 }
 0x536   : > { %5004 = vst.msk [vmem:[#allocation4 + $0x258] sm:$0xff] %vm4978_vm5, %v4933_v27 }
 0x537   : > { %5759 = vrot.lane.b32.xlu0 %v5727_v6, %s10233_s22  ;;  %v5902_v6 = vld [vmem:[%s13277_s25 + $0x68] sm:$0xff] }
 0x538   : > { %5963 = vmatpush.msra.mxu1 %v5902_v6 }
 0x539   : > { %5663 = vrot.lane.b32.xlu2 %v5630_v29, %s10232_s10  ;;  %5563 = vrot.lane.b32.xlu1 %v5531_v55, %s10231_s2  ;;  %v4741_v0 = vpop.permute.xlu0 %4740  ;;  %v5901_v29 = vld [vmem:[%s13277_s25 + $0x60] sm:$0xff] }
 0x53a   : > { %5964 = vmatpush.msra.mxu1 %v5901_v29 }
 0x53b   : > { %v4353_v39 = vpop.permute.xlu1 %4352 }
 0x53c   : > { %4423 = vst.msk [vmem:[#allocation4 + $0x270] sm:$0xff] %vm4396_vm11, %v4353_v39 }
 0x53d   : > { %4617 = vst.msk [vmem:[#allocation4 + $0x270] sm:$0xff] %vm4590_vm13, %v4547_v9  ;;  %v5037_v59 = vld [vmem:[#allocation4 + $0x258] sm:$0xff] }
 0x53e   : > { %4811 = vst.msk [vmem:[#allocation4 + $0x270] sm:$0xff] %vm4784_vm1, %v4741_v0  ;;  %9486 = vmatmul.msk.f32.gmra.mxu0 %vm5058_vm7, %v5037_v59  ;;  %v5900_v59 = vld [vmem:[%s13277_s25 + $0x58] sm:$0xff] }
 0x53f   : > { %5761 = vrot.lane.b32.xlu0 %v5728_v25, %s10233_s22  ;;  %v5226_v51 = vpop.f32.mrf.mxu0  ;;  %5965 = vmatpush.msra.mxu1 %v5900_v59  ;;  %v5899_v25 = vld [vmem:[%s13277_s25 + $0x50] sm:$0xff] }
 0x540   : > { %v5227_v14 = vadd.f32 %v11827_v15, %v5226_v51  ;;  %v5406_v15 = vld [vmem:[#allocation3 + $0x80] ss:$2 sm:$0xff] }
 0x541   : > { %5665 = vrot.lane.b32.xlu2 %v5631_v1, %s10232_s10  ;;  %5565 = vrot.lane.b32.xlu1 %v5532_v52, %s10231_s2  ;;  %v4549_v30 = vpop.permute.xlu0 %4548  ;;  %v5454_v3 = vmax.f32 %v5406_v15, %v5422_v36  ;;  %v5898_v52 = vld [vmem:[%s13277_s25 + $0x48] sm:$0xff]  ;;  %v5499_v36 = vld [vmem:[#allocation2] sm:$0xff] }
 0x542   : > { %vm5286_vm10 = vcmp.gt.f32.partialorder %v5227_v14, 0.0  ;;  %v5318_v12 = vmul.f32 0.01, %v5227_v14  ;;  %4618 = vst.msk [vmem:[#allocation4 + $0x288] sm:$0xff] %vm4590_vm13, %v4549_v30  ;;  %5966 = vmatpush.msra.mxu1 %v5899_v25  ;;  %v5897_v30 = vld [vmem:[%s13277_s25 + $0x40] sm:$0xff]  ;;  %v5894_v15 = vld [vmem:[%s13277_s25 + $0x28] sm:$0xff] }
 0x543   : > { %v4935_v42 = vpop.permute.xlu1 %4934  ;;  %5515 = vst.msk [vmem:[#allocation4] sm:$0xff] %vm5364_vm9, %v5499_v36 }
 0x544   : > { %v5350_v34 = vsel %vm5286_vm10, %v5227_v14, %v5318_v12  ;;  %5005 = vst.msk [vmem:[#allocation4 + $0x270] sm:$0xff] %vm4978_vm5, %v4935_v42  ;;  %5967 = vmatpush.msra.mxu1 %v5898_v52 }
 0x545   : > { %5383 = vst.msk [vmem:[#allocation3 + $0x90] sm:$0xff] %vm5364_vm9, %v5350_v34 }
 0x546   : > { %5968 = vmatpush.msra.mxu1 %v5897_v30  ;;  %6197 = vst.msk [vmem:[#allocation2] sm:$0xff] %vm6139_vm15, %v13251_v13 }
 0x547   : > { %5763 = vrot.lane.b32.xlu0 %v5729_v62, %s10233_s22  ;;  %v5896_v62 = vld [vmem:[%s13277_s25 + $0x38] sm:$0xff] }
 0x548   : > { %5969 = vmatpush.msra.mxu1 %v5896_v62 }
 0x549   : > { %5667 = vrot.lane.b32.xlu2 %v5632_v20, %s10232_s10  ;;  %5567 = vrot.lane.b32.xlu1 %v5533_v56, %s10231_s2  ;;  %v4357_v7 = vpop.permute.xlu0 %4356  ;;  %v4937_v40 = vpop.permute.xlu2 %4936  ;;  %v5895_v56 = vld [vmem:[%s13277_s25 + $0x30] sm:$0xff] }
 0x54a   : > { %4425 = vst.msk [vmem:[#allocation4 + $0x2a0] sm:$0xff] %vm4396_vm11, %v4357_v7  ;;  %5970 = vmatpush.msra.mxu1 %v5895_v56 }
 0x54b   : > { %v4743_v28 = vpop.permute.xlu1 %4742  ;;  %v5038_v61 = vld [vmem:[#allocation4 + $0x270] sm:$0xff] }
 0x54c   : > { %v5438_v21 = vld [vmem:[#allocation3 + $0x82] ss:$2 sm:$0xff]  ;;  %4812 = vst.msk [vmem:[#allocation4 + $0x288] sm:$0xff] %vm4784_vm1, %v4743_v28  ;;  %9487 = vmatmul.msk.f32.gmra.mxu0 %vm5058_vm7, %v5038_v61  ;;  %5971 = vmatpush.msra.mxu1 %v5894_v15 }
 0x54d   : > { %v5470_v60 = vmax.f32 %v5454_v3, %v5438_v21  ;;  %5006 = vst.msk [vmem:[#allocation4 + $0x288] sm:$0xff] %vm4978_vm5, %v4937_v40  ;;  %v5893_v28 = vld [vmem:[%s13277_s25 + $0x20] sm:$0xff] }
 0x54e   : > { %5972 = vmatpush.msra.mxu1 %v5893_v28  ;;  %v6210_v52 = vld [vmem:[#allocation2] sm:$0xff] }
 0x54f   : > { %5489 = vst.msk [vmem:[#allocation2 + $0x4a] sm:$0xff] %vm5364_vm9, %v5470_v60  ;;  %5765 = vrot.lane.b32.xlu0 %v5730_v35, %s10233_s22  ;;  %v5892_v60 = vld [vmem:[%s13277_s25 + $0x18] sm:$0xff] }
 0x550   : > { %5973 = vmatpush.msra.mxu1 %v5892_v60 }
 0x551   : > { %5669 = vrot.lane.b32.xlu2 %v5633_v44, %s10232_s10  ;;  %5569 = vrot.lane.b32.xlu1 %v5534_v17, %s10231_s2  ;;  %v4745_v8 = vpop.permute.xlu2 %4744 }
 0x553   : > { %v4551_v4 = vpop.permute.xlu1 %4550 }
 0x554   : > { %4619 = vst.msk [vmem:[#allocation4 + $0x2a0] sm:$0xff] %vm4590_vm13, %v4551_v4  ;;  %v5039_v24 = vld [vmem:[#allocation4 + $0x288] sm:$0xff]  ;;  %v5891_v4 = vld [vmem:[%s13277_s25 + $0x10] sm:$0xff] }
 0x555   : > { %4813 = vst.msk [vmem:[#allocation4 + $0x2a0] sm:$0xff] %vm4784_vm1, %v4745_v8  ;;  %9488 = vmatmul.msk.f32.gmra.mxu0 %vm5058_vm7, %v5039_v24  ;;  %5974 = vmatpush.msra.mxu1 %v5891_v4  ;;  %v5890_v24 = vld [vmem:[%s13277_s25 + $0x8] sm:$0xff] }
 0x556   : > { %v5831_v19 = vld [vmem:[#allocation2 + $0x44] sm:$0xff] }
 0x557   : > { %5767 = vrot.lane.b32.xlu0 %v5731_v49, %s10233_s22  ;;  %5847 = vst.msk [vmem:[#allocation4 + $0x98] sm:$0xff] %vm5364_vm9, %v5831_v19  ;;  %v5508_v38 = vld [vmem:[#allocation2 + $0x48] sm:$0xff]  ;;  %5975 = vmatpush.msra.mxu1 %v5890_v24  ;;  %v5889_v19 = vld [vmem:[%s13277_s25] sm:$0xff] }
 0x558   : > { %5524 = vst.msk [vmem:[#allocation4 + $0xd8] sm:$0xff] %vm5364_vm9, %v5508_v38  ;;  %v5734_v41 = vld [vmem:[#allocation2 + $0x47] sm:$0xff] }
 0x559   : > { %5671 = vrot.lane.b32.xlu2 %v5634_v43, %s10232_s10  ;;  %5571 = vrot.lane.b32.xlu1 %v5535_v11, %s10231_s2  ;;  %v4553_v33 = vpop.permute.xlu2 %4552  ;;  %v5637_v2 = vld [vmem:[#allocation2 + $0x4a] sm:$0xff] }
 0x55a   : > { %v5539_v47 = vld [vmem:[#allocation2 + $0x45] sm:$0xff]  ;;  %5976 = vmatpush.msra.mxu1 %v5889_v19 }
 0x55e   : > { %v5870_v57 = vld [vmem:[#allocation4 + $0x98] sm:$0xff] }
 0x55f   : > { %5769 = vrot.lane.b32.xlu0 %v5732_v46, %s10233_s22  ;;  %v5229_v45 = vpop.f32.mrf.mxu0  ;;  %9499 = vmatmul.msk.f32.gmra.mxu2 %vm5364_vm9, %v5870_v57 }
 0x560   : > { %v5230_v37 = vadd.f32 %v12101_v26, %v5229_v45 }
 0x561   : > { %5673 = vrot.lane.b32.xlu2 %v5635_v22, %s10232_s10  ;;  %5573 = vrot.lane.b32.xlu1 %v5536_v53, %s10231_s2 }
 0x562   : > { %v4359_v16 = vpop.permute.xlu1 %4358  ;;  %vm5287_vm12 = vcmp.gt.f32.partialorder %v5230_v37, 0.0  ;;  %v5319_v9 = vmul.f32 0.01, %v5230_v37 }
 0x563   : > { %4426 = vst.msk [vmem:[#allocation4 + $0x2b8] sm:$0xff] %vm4396_vm11, %v4359_v16 }
 0x564   : > { %4620 = vst.msk [vmem:[#allocation4 + $0x2b8] sm:$0xff] %vm4590_vm13, %v4553_v33  ;;  %v5351_v23 = vsel %vm5287_vm12, %v5230_v37, %v5319_v9 }
 0x565   : > { %5384 = vst.msk [vmem:[#allocation3 + $0x98] sm:$0xff] %vm5364_vm9, %v5351_v23 }
 0x567   : > { %5771 = vrot.lane.b32.xlu0 %v5733_v58, %s10233_s22 }
 0x569   : > { %5675 = vrot.lane.b32.xlu2 %v5636_v18, %s10232_s10  ;;  %5575 = vrot.lane.b32.xlu1 %v5537_v31, %s10231_s2 }
 0x56a   : > { %v4361_v50 = vpop.permute.xlu2 %4360 }
 0x56b   : > { %4427 = vst.msk [vmem:[#allocation4 + $0x2d0] sm:$0xff] %vm4396_vm11, %v4361_v50 }
 0x56c   : > { %v5407_v55 = vld [vmem:[#allocation3 + $0x90] ss:$2 sm:$0xff]  ;;  %v5423_v0 = vld [vmem:[#allocation3 + $0x91] ss:$2 sm:$0xff] }
 0x56d   : > { %v5455_v51 = vmax.f32 %v5407_v55, %v5423_v0 }
 0x56f   : > { %5773 = vrot.lane.b32.xlu0 %v5734_v41, %s10233_s22 }
 0x571   : > { %5677 = vrot.lane.b32.xlu2 %v5637_v2, %s10232_s10  ;;  %5577 = vrot.lane.b32.xlu1 %v5538_v10, %s10231_s2 }
 0x578   : > { %v5232_v5 = vpop.f32.mrf.mxu0 }
 0x579   : > { %5579 = vrot.lane.b32.xlu1 %v5539_v47, %s10231_s2  ;;  %v5233_v32 = vadd.f32 %v12101_v26, %v5232_v5 }
 0x57b   : > { %vm5288_vm11 = vcmp.gt.f32.partialorder %v5233_v32, 0.0  ;;  %v5320_v27 = vmul.f32 0.01, %v5233_v32  ;;  %v4943_v12 = vpop.permute.xlu2 %4942 }
 0x57d   : > { %v5352_v54 = vsel %vm5288_vm11, %v5233_v32, %v5320_v27 }
 0x57e   : > { %5385 = vst.msk [vmem:[#allocation3 + $0xa0] sm:$0xff] %vm5364_vm9, %v5352_v54 }
 0x581   : > { %v4939_v39 = vpop.permute.xlu0 %4938 }
 0x582   : > { %5007 = vst.msk [vmem:[#allocation4 + $0x2a0] sm:$0xff] %vm4978_vm5, %v4939_v39 }
 0x583   : > { %v4751_v35 = vpop.permute.xlu2 %4750 }
 0x585   : > { %v5439_v1 = vld [vmem:[#allocation3 + $0x92] ss:$2 sm:$0xff] }
 0x586   : > { %v5471_v14 = vmax.f32 %v5455_v51, %v5439_v1 }
 0x588   : > { %5490 = vst.msk [vmem:[#allocation2 + $0x52] sm:$0xff] %vm5364_vm9, %v5471_v14 }
 0x589   : > { %v4747_v42 = vpop.permute.xlu0 %4746  ;;  %v5040_v34 = vld [vmem:[#allocation4 + $0x2a0] sm:$0xff] }
 0x58a   : > { %4814 = vst.msk [vmem:[#allocation4 + $0x2b8] sm:$0xff] %vm4784_vm1, %v4747_v42  ;;  %9489 = vmatmul.msk.f32.gmra.mxu0 %vm5058_vm7, %v5040_v34 }
 0x58b   : > { %v5662_v45 = vpop.permute.xlu2 %5661 }
 0x58f   : > { %v5735_v20 = vld [vmem:[#allocation2 + $0x4f] sm:$0xff] }
 0x590   : > { %v5638_v7 = vld [vmem:[#allocation2 + $0x52] sm:$0xff]  ;;  %5775 = vrot.lane.b32.xlu0 %v5735_v20, %s10233_s22 }
 0x591   : > { %v5540_v40 = vld [vmem:[#allocation2 + $0x4d] sm:$0xff]  ;;  %5679 = vrot.lane.b32.xlu2 %v5638_v7, %s10232_s10  ;;  %v4555_v21 = vpop.permute.xlu0 %4554 }
 0x592   : > { %v5832_v3 = vld [vmem:[#allocation2 + $0x4c] sm:$0xff]  ;;  %5581 = vrot.lane.b32.xlu1 %v5540_v40, %s10231_s2  ;;  %4621 = vst.msk [vmem:[#allocation4 + $0x2d0] sm:$0xff] %vm4590_vm13, %v4555_v21  ;;  %vm4428_vm13 = vcmask 260224  }
 0x593   : > { %v5509_v61 = vld [vmem:[#allocation2 + $0x50] sm:$0xff]  ;;  %5848 = vst.msk [vmem:[#allocation4 + $0xb0] sm:$0xff] %vm5364_vm9, %v5832_v3  ;;  %v5235_v44 = vpop.f32.mrf.mxu0  ;;  %v4941_v17 = vpop.permute.xlu1 %4940 }
 0x594   : > { %5525 = vst.msk [vmem:[#allocation4 + $0xf0] sm:$0xff] %vm5364_vm9, %v5509_v61  ;;  %v5236_v8 = vadd.f32 %v12101_v26, %v5235_v44  ;;  %v5664_v31 = vpop.permute.xlu2 %5663 }
 0x595   : > { %5008 = vst.msk [vmem:[#allocation4 + $0x2b8] sm:$0xff] %vm4978_vm5, %v4941_v17 }
 0x596   : > { %vm5289_vm14 = vcmp.gt.f32.partialorder %v5236_v8, 0.0  ;;  %v5321_v49 = vmul.f32 0.01, %v5236_v8  ;;  %6208 = vst.msk [vmem:[#allocation2 + $0x49] sm:$0xff] %vm6139_vm15, %v13251_v13 }
 0x598   : > { %v5353_v38 = vsel %vm5289_vm14, %v5236_v8, %v5321_v49 }
 0x599   : > { %5386 = vst.msk [vmem:[#allocation3 + $0xa8] sm:$0xff] %vm5364_vm9, %v5353_v38  ;;  %v4363_v11 = vpop.permute.xlu0 %4362 }
 0x59a   : > { %v5872_v43 = vld [vmem:[#allocation4 + $0xb0] sm:$0xff]  ;;  %4429 = vst.msk [vmem:[#allocation4 + $0x2e8] sm:$0x7f] %vm4428_vm13, %v4363_v11  ;;  %vm5396_vm13 = vcmask 260096  }
 0x59b   : > { %9500 = vmatmul.msk.f32.gmra.mxu2 %vm5364_vm9, %v5872_v43  ;;  %v4749_v46 = vpop.permute.xlu1 %4748 }
 0x59c   : > { %v5041_v57 = vld [vmem:[#allocation4 + $0x2b8] sm:$0xff]  ;;  %4815 = vst.msk [vmem:[#allocation4 + $0x2d0] sm:$0xff] %vm4784_vm1, %v4749_v46  ;;  %v5238_v22 = vpop.f32.mrf.mxu0  ;;  %vm5611_vm1 = vcmask 523520   ;;  %v5666_v54 = vpop.permute.xlu2 %5665 }
 0x59d   : > { %9490 = vmatmul.msk.f32.gmra.mxu0 %vm5058_vm7, %v5041_v57  ;;  %5009 = vst.msk [vmem:[#allocation4 + $0x2d0] sm:$0xff] %vm4978_vm5, %v4943_v12  ;;  %v5239_v53 = vadd.f32 %v12101_v26, %v5238_v22  ;;  %vm5709_vm5 = vcmask 785920  }
 0x59f   : > { %vm5290_vm4 = vcmp.gt.f32.partialorder %v5239_v53, 0.0  ;;  %v5322_v37 = vmul.f32 0.01, %v5239_v53 }
 0x5a0   : > { %v5408_v58 = vld [vmem:[#allocation3 + $0xa0] ss:$2 sm:$0xff]  ;;  %v5424_v18 = vld [vmem:[#allocation3 + $0xa1] ss:$2 sm:$0xff] }
 0x5a1   : > { %v5354_v33 = vsel %vm5290_vm4, %v5239_v53, %v5322_v37  ;;  %v4945_v16 = vpop.permute.xlu0 %4944  ;;  %v5456_v50 = vmax.f32 %v5408_v58, %v5424_v18 }
 0x5a2   : > { %5387 = vst.msk [vmem:[#allocation3 + $0xb0] sm:$0xff] %vm5364_vm9, %v5354_v33 }
 0x5a3   : > { %v4557_v9 = vpop.permute.xlu1 %4556 }
 0x5a4   : > { %4623 = vst.msk [vmem:[#allocation4 + $0x2e8] sm:$0x7f] %vm4622_vm6, %v4557_v9  ;;  %v5042_v23 = vld [vmem:[#allocation4 + $0x2d0] sm:$0xff]  ;;  %v5668_v34 = vpop.permute.xlu2 %5667 }
 0x5a5   : > { %4817 = vst.msk [vmem:[#allocation4 + $0x2e8] sm:$0x7f] %vm4816_vm2, %v4751_v35  ;;  %9491 = vmatmul.msk.f32.gmra.mxu0 %vm5058_vm7, %v5042_v23 }
 0x5a6   : > { %5011 = vst.msk [vmem:[#allocation4 + $0x2e8] sm:$0x7f] %vm5010_vm8, %v4945_v16 }
 0x5a9   : > { %v5440_v41 = vld [vmem:[#allocation3 + $0xa2] ss:$2 sm:$0xff]  ;;  %v5241_v2 = vpop.f32.mrf.mxu0  ;;  %v5760_v10 = vpop.permute.xlu0 %5759 }
 0x5aa   : > { %v5472_v47 = vmax.f32 %v5456_v50, %v5440_v41  ;;  %v5242_v5 = vadd.f32 %v12101_v26, %v5241_v2 }
 0x5ab   : > { %v5564_v32 = vpop.permute.xlu1 %5563 }
 0x5ac   : > { %5491 = vst.msk [vmem:[#allocation2 + $0x5a] sm:$0xff] %vm5364_vm9, %v5472_v47  ;;  %vm5291_vm0 = vcmp.gt.f32.partialorder %v5242_v5, 0.0  ;;  %v5323_v48 = vmul.f32 0.01, %v5242_v5  ;;  %v5670_v17 = vpop.permute.xlu2 %5669 }
 0x5ad   : > { %5612 = vst.msk [vmem:[#allocation4] sm:$0xff] %vm5611_vm1, %v5564_v32  ;;  %v5043_v27 = vld [vmem:[#allocation4 + $0x2e8] sm:$0x7f] }
 0x5ae   : > { %v5355_v63 = vsel %vm5291_vm0, %v5242_v5, %v5323_v48  ;;  %5710 = vst.msk [vmem:[#allocation4] sm:$0xff] %vm5709_vm5, %v5662_v45  ;;  %9492 = vmatmul.msk.f32.gmra.mxu0 %vm5058_vm7, %v5043_v27  ;;  %vm6198_vm0 = vcmask 517120  }
 0x5af   : > { %5388 = vst.msk [vmem:[#allocation3 + $0xb8] sm:$0xff] %vm5364_vm9, %v5355_v63 }
 0x5b0   : > { %5808 = vst.msk [vmem:[#allocation4] sm:$0xff] %vm5807_vm3, %v5760_v10 }
 0x5b1   : > { %v5762_v6 = vpop.permute.xlu0 %5761  ;;  %6199 = vst.msk [vmem:[#allocation2 + $0x8] sm:$0x3] %vm6198_vm0, %v13251_v13 }
 0x5b2   : > { %v5244_v29 = vpop.f32.mrf.mxu0  ;;  %6209 = vst.msk [vmem:[#allocation2 + $0x51] sm:$0x3] %vm6198_vm0, %v13251_v13 }
 0x5b3   : > { %v5245_v55 = vadd.f32 %v12101_v26, %v5244_v29  ;;  %v5736_v0 = vld [vmem:[#allocation2 + $0x57] sm:$0xff]  ;;  %v5566_v25 = vpop.permute.xlu1 %5565 }
 0x5b4   : > { %v5639_v39 = vld [vmem:[#allocation2 + $0x5a] sm:$0xff]  ;;  %5777 = vrot.lane.b32.xlu0 %v5736_v0, %s10233_s22  ;;  %5613 = vst.msk [vmem:[#allocation4 + $0x18] sm:$0xff] %vm5611_vm1, %v5566_v25  ;;  %v5672_v53 = vpop.permute.xlu2 %5671 }
 0x5b5   : > { %v5541_v59 = vld [vmem:[#allocation2 + $0x55] sm:$0xff]  ;;  %5681 = vrot.lane.b32.xlu2 %v5639_v39, %s10232_s10  ;;  %vm5292_vm7 = vcmp.gt.f32.partialorder %v5245_v55, 0.0  ;;  %v5324_v1 = vmul.f32 0.01, %v5245_v55  ;;  %5711 = vst.msk [vmem:[#allocation4 + $0x18] sm:$0xff] %vm5709_vm5, %v5664_v31 }
 0x5b6   : > { %v5833_v51 = vld [vmem:[#allocation2 + $0x54] sm:$0xff]  ;;  %5583 = vrot.lane.b32.xlu1 %v5541_v59, %s10231_s2  ;;  %5809 = vst.msk [vmem:[#allocation4 + $0x18] sm:$0xff] %vm5807_vm3, %v5762_v6 }
 0x5b7   : > { %v5356_v14 = vsel %vm5292_vm7, %v5245_v55, %v5324_v1  ;;  %v5857_v30 = vld [vmem:[#allocation4] sm:$0xff]  ;;  %5849 = vst.msk [vmem:[#allocation4 + $0xc8] sm:$0xff] %vm5364_vm9, %v5833_v51  ;;  %v5409_v62 = vld [vmem:[#allocation3 + $0xb0] ss:$2 sm:$0xff]  ;;  %v5425_v56 = vld [vmem:[#allocation3 + $0xb1] ss:$2 sm:$0xff] }
 0x5b8   : > { %v5510_v12 = vld [vmem:[#allocation2 + $0x58] sm:$0xff]  ;;  %5389 = vst.msk [vmem:[#allocation3 + $0xc0] sm:$0xff] %vm5364_vm9, %v5356_v14  ;;  %5977 = vmatmul.f32.vlgmr.msra.gmra.mxu1 %v5857_v30  ;;  %v5457_v40 = vmax.f32 %v5409_v62, %v5425_v56 }
 0x5b9   : > { %6218 = vst.msk [vmem:[#allocation4] sm:$0xff] %vm6139_vm15, %v6210_v52  ;;  %v5764_v42 = vpop.permute.xlu0 %5763 }
 0x5ba   : > { %5526 = vst.msk [vmem:[#allocation4 + $0x108] sm:$0xff] %vm5364_vm9, %v5510_v12 }
 0x5bb   : > { %v5247_v15 = vpop.f32.mrf.mxu0  ;;  %v5568_v36 = vpop.permute.xlu1 %5567 }
 0x5bc   : > { %v5248_v20 = vadd.f32 %v12101_v26, %v5247_v15  ;;  %5614 = vst.msk [vmem:[#allocation4 + $0x30] sm:$0xff] %vm5611_vm1, %v5568_v36  ;;  %v5674_v32 = vpop.permute.xlu2 %5673 }
 0x5bd   : > { %5712 = vst.msk [vmem:[#allocation4 + $0x30] sm:$0xff] %vm5709_vm5, %v5666_v54  ;;  %v5859_v7 = vld [vmem:[#allocation4 + $0x18] sm:$0xff] }
 0x5be   : > { %vm5293_vm10 = vcmp.gt.f32.partialorder %v5248_v20, 0.0  ;;  %v5325_v3 = vmul.f32 0.01, %v5248_v20  ;;  %v5874_v28 = vld [vmem:[#allocation4 + $0xc8] sm:$0xff]  ;;  %5810 = vst.msk [vmem:[#allocation4 + $0x30] sm:$0xff] %vm5807_vm3, %v5764_v42 }
 0x5bf   : > { %v5441_v61 = vld [vmem:[#allocation3 + $0xb2] ss:$2 sm:$0xff]  ;;  %9501 = vmatmul.msk.f32.gmra.mxu2 %vm5364_vm9, %v5874_v28 }
 0x5c0   : > { %v5473_v21 = vmax.f32 %v5457_v40, %v5441_v61  ;;  %v5357_v60 = vsel %vm5293_vm10, %v5248_v20, %v5325_v3  ;;  %5980 = vmatmul.f32.gmra.mxu1 %v5859_v7 }
 0x5c1   : > { %5390 = vst.msk [vmem:[#allocation3 + $0xc8] sm:$0xff] %vm5364_vm9, %v5357_v60  ;;  %v5766_v35 = vpop.permute.xlu0 %5765 }
 0x5c2   : > { %5492 = vst.msk [vmem:[#allocation2 + $0x62] sm:$0xff] %vm5364_vm9, %v5473_v21 }
 0x5c3   : > { %v5570_v44 = vpop.permute.xlu1 %5569 }
 0x5c4   : > { %5615 = vst.msk [vmem:[#allocation4 + $0x48] sm:$0xff] %vm5611_vm1, %v5570_v44  ;;  %v5676_v39 = vpop.permute.xlu2 %5675 }
 0x5c5   : > { %5713 = vst.msk [vmem:[#allocation4 + $0x48] sm:$0xff] %vm5709_vm5, %v5668_v34  ;;  %v5861_v4 = vld [vmem:[#allocation4 + $0x30] sm:$0xff] }
 0x5c6   : > { %5811 = vst.msk [vmem:[#allocation4 + $0x48] sm:$0xff] %vm5807_vm3, %v5766_v35  ;;  %v5840_v35 = vld [vmem:[#allocation2 + $0x8c] sm:$0x7f] }
 0x5c7   : > { %5856 = vst.msk [vmem:[#allocation4 + $0x170] sm:$0x7f] %vm5396_vm13, %v5840_v35 }
 0x5c8   : > { %5983 = vmatmul.f32.gmra.mxu1 %v5861_v4  ;;  %v5410_v16 = vld [vmem:[#allocation3 + $0xc0] ss:$2 sm:$0xff]  ;;  %v5426_v9 = vld [vmem:[#allocation3 + $0xc1] ss:$2 sm:$0xff] }
 0x5c9   : > { %v5250_v8 = vpop.f32.mrf.mxu0  ;;  %v5768_v24 = vpop.permute.xlu0 %5767  ;;  %v5737_v49 = vld [vmem:[#allocation2 + $0x5f] sm:$0xff]  ;;  %v5458_v50 = vmax.f32 %v5410_v16, %v5426_v9 }
 0x5ca   : > { %v5640_v19 = vld [vmem:[#allocation2 + $0x62] sm:$0xff]  ;;  %v5251_v43 = vadd.f32 %v12101_v26, %v5250_v8  ;;  %5779 = vrot.lane.b32.xlu0 %v5737_v49, %s10233_s22 }
 0x5cb   : > { %v5542_v38 = vld [vmem:[#allocation2 + $0x5d] sm:$0xff]  ;;  %5683 = vrot.lane.b32.xlu2 %v5640_v19, %s10232_s10  ;;  %v5572_v46 = vpop.permute.xlu1 %5571 }
 0x5cc   : > { %v5834_v11 = vld [vmem:[#allocation2 + $0x5c] sm:$0xff]  ;;  %5585 = vrot.lane.b32.xlu1 %v5542_v38, %s10231_s2  ;;  %vm5294_vm12 = vcmp.gt.f32.partialorder %v5251_v43, 0.0  ;;  %v5326_v57 = vmul.f32 0.01, %v5251_v43  ;;  %5616 = vst.msk [vmem:[#allocation4 + $0x60] sm:$0xff] %vm5611_vm1, %v5572_v46  ;;  %v5678_v14 = vpop.permute.xlu2 %5677 }
 0x5cd   : > { %5850 = vst.msk [vmem:[#allocation4 + $0xe0] sm:$0xff] %vm5364_vm9, %v5834_v11  ;;  %v5863_v45 = vld [vmem:[#allocation4 + $0x48] sm:$0xff] }
 0x5ce   : > { %5714 = vst.msk [vmem:[#allocation4 + $0x60] sm:$0xff] %vm5709_vm5, %v5670_v17  ;;  %v5511_v22 = vld [vmem:[#allocation2 + $0x60] sm:$0xff]  ;;  %v5358_v37 = vsel %vm5294_vm12, %v5251_v43, %v5326_v57 }
 0x5cf   : > { %5812 = vst.msk [vmem:[#allocation4 + $0x60] sm:$0xff] %vm5807_vm3, %v5768_v24 }
 0x5d0   : > { %5391 = vst.msk [vmem:[#allocation3 + $0xd0] sm:$0xff] %vm5364_vm9, %v5358_v37  ;;  %5986 = vmatmul.f32.gmra.mxu1 %v5863_v45 }
 0x5d1   : > { %5527 = vst.msk [vmem:[#allocation4 + $0x120] sm:$0xff] %vm5364_vm9, %v5511_v22  ;;  %v5770_v33 = vpop.permute.xlu0 %5769 }
 0x5d2   : > { %v5253_v23 = vpop.f32.mrf.mxu0 }
 0x5d3   : > { %v5254_v18 = vadd.f32 %v12101_v26, %v5253_v23  ;;  %v5574_v31 = vpop.permute.xlu1 %5573 }
 0x5d4   : > { %v5876_v58 = vld [vmem:[#allocation4 + $0xe0] sm:$0xff]  ;;  %5617 = vst.msk [vmem:[#allocation4 + $0x78] sm:$0xff] %vm5611_vm1, %v5574_v31 }
 0x5d5   : > { %9502 = vmatmul.msk.f32.gmra.mxu2 %vm5364_vm9, %v5876_v58  ;;  %vm5295_vm11 = vcmp.gt.f32.partialorder %v5254_v18, 0.0  ;;  %v5327_v41 = vmul.f32 0.01, %v5254_v18  ;;  %5715 = vst.msk [vmem:[#allocation4 + $0x78] sm:$0xff] %vm5709_vm5, %v5672_v53 }
 0x5d6   : > { %v5865_v2 = vld [vmem:[#allocation4 + $0x60] sm:$0xff]  ;;  %5813 = vst.msk [vmem:[#allocation4 + $0x78] sm:$0xff] %vm5807_vm3, %v5770_v33 }
 0x5d7   : > { %v5442_v10 = vld [vmem:[#allocation3 + $0xc2] ss:$2 sm:$0xff]  ;;  %v5359_v5 = vsel %vm5295_vm11, %v5254_v18, %v5327_v41 }
 0x5d8   : > { %v5474_v47 = vmax.f32 %v5458_v50, %v5442_v10  ;;  %5392 = vst.msk [vmem:[#allocation3 + $0xd8] sm:$0xff] %vm5364_vm9, %v5359_v5  ;;  %5989 = vmatmul.f32.gmra.mxu1 %v5865_v2  ;;  %v12274_v2 = vld [vmem:[#allocation11] ss:$0 sm:$0xff]  ;;  %v6043_v5 = vpop.f32.mrf.mxu2 }
 0x5d9   : > { %v5772_v48 = vpop.permute.xlu0 %5771 }
 0x5da   : > { %5493 = vst.msk [vmem:[#allocation2 + $0x6a] sm:$0xff] %vm5364_vm9, %v5474_v47 }
 0x5db   : > { %v5576_v27 = vpop.permute.xlu1 %5575 }
 0x5dc   : > { %5618 = vst.msk [vmem:[#allocation4 + $0x90] sm:$0xff] %vm5611_vm1, %v5576_v27 }
 0x5dd   : > { %5716 = vst.msk [vmem:[#allocation4 + $0x90] sm:$0xff] %vm5709_vm5, %v5674_v32  ;;  %v5867_v63 = vld [vmem:[#allocation4 + $0x78] sm:$0xff] }
 0x5de   : > { %5814 = vst.msk [vmem:[#allocation4 + $0x90] sm:$0xff] %vm5807_vm3, %v5772_v48 }
 0x5df   : > { %v5411_v7 = vld [vmem:[#allocation3 + $0xd0] ss:$2 sm:$0xff]  ;;  %v5427_v40 = vld [vmem:[#allocation3 + $0xd1] ss:$2 sm:$0xff] }
 0x5e0   : > { %5992 = vmatmul.f32.gmra.mxu1 %v5867_v63  ;;  %v5459_v3 = vmax.f32 %v5411_v7, %v5427_v40 }
 0x5e1   : > { %v5738_v54 = vld [vmem:[#allocation2 + $0x67] sm:$0xff]  ;;  %v5774_v25 = vpop.permute.xlu0 %5773 }
 0x5e2   : > { %v5641_v6 = vld [vmem:[#allocation2 + $0x6a] sm:$0xff]  ;;  %5781 = vrot.lane.b32.xlu0 %v5738_v54, %s10233_s22 }
 0x5e3   : > { %v5543_v29 = vld [vmem:[#allocation2 + $0x65] sm:$0xff]  ;;  %5685 = vrot.lane.b32.xlu2 %v5641_v6, %s10232_s10  ;;  %v5578_v59 = vpop.permute.xlu1 %5577 }
 0x5e4   : > { %v5835_v55 = vld [vmem:[#allocation2 + $0x64] sm:$0xff]  ;;  %5587 = vrot.lane.b32.xlu1 %v5543_v29, %s10231_s2  ;;  %5619 = vst.msk [vmem:[#allocation4 + $0xa8] sm:$0xff] %vm5611_vm1, %v5578_v59 }
 0x5e5   : > { %v5512_v0 = vld [vmem:[#allocation2 + $0x68] sm:$0xff]  ;;  %5851 = vst.msk [vmem:[#allocation4 + $0xf8] sm:$0xff] %vm5364_vm9, %v5835_v55 }
 0x5e6   : > { %5528 = vst.msk [vmem:[#allocation4 + $0x138] sm:$0xff] %vm5364_vm9, %v5512_v0  ;;  %v5869_v51 = vld [vmem:[#allocation4 + $0x90] sm:$0xff] }
 0x5e7   : > { %5717 = vst.msk [vmem:[#allocation4 + $0xa8] sm:$0xff] %vm5709_vm5, %v5676_v39 }
 0x5e8   : > { %5815 = vst.msk [vmem:[#allocation4 + $0xa8] sm:$0xff] %vm5807_vm3, %v5774_v25  ;;  %5995 = vmatmul.f32.gmra.mxu1 %v5869_v51 }
 0x5eb   : > { %v5580_v52 = vpop.permute.xlu1 %5579  ;;  %v5680_v34 = vpop.permute.xlu2 %5679 }
 0x5ec   : > { %v5878_v1 = vld [vmem:[#allocation4 + $0xf8] sm:$0xff]  ;;  %5620 = vst.msk [vmem:[#allocation4 + $0xc0] sm:$0xff] %vm5611_vm1, %v5580_v52 }
 0x5ed   : > { %9503 = vmatmul.msk.f32.gmra.mxu2 %vm5364_vm9, %v5878_v1  ;;  %5718 = vst.msk [vmem:[#allocation4 + $0xc0] sm:$0xff] %vm5709_vm5, %v5678_v14  ;;  %v6046_v14 = vpop.f32.mrf.mxu2 }
 0x5ef   : > { %v5871_v30 = vld [vmem:[#allocation4 + $0xa8] sm:$0xff] }
 0x5f0   : > { %5998 = vmatmul.f32.gmra.mxu1 %v5871_v30 }
 0x602   : > { %v5776_v12 = vpop.permute.xlu0 %5775 }
 0x603   : > { %5816 = vst.msk [vmem:[#allocation4 + $0xc0] sm:$0xff] %vm5807_vm3, %v5776_v12 }
 0x604   : > { %v5582_v42 = vpop.permute.xlu1 %5581 }
 0x605   : > { %5621 = vst.msk [vmem:[#allocation4 + $0xd8] sm:$0xff] %vm5611_vm1, %v5582_v42 }
 0x606   : > { %5719 = vst.msk [vmem:[#allocation4 + $0xd8] sm:$0xff] %vm5709_vm5, %v5680_v34 }
 0x607   : > { %v5256_v62 = vpop.f32.mrf.mxu0 }
 0x608   : > { %v5257_v56 = vadd.f32 %v12101_v26, %v5256_v62 }
 0x60a   : > { %vm5296_vm14 = vcmp.gt.f32.partialorder %v5257_v56, 0.0  ;;  %v5328_v15 = vmul.f32 0.01, %v5257_v56  ;;  %v5873_v36 = vld [vmem:[#allocation4 + $0xc0] sm:$0xff] }
 0x60b   : > { %6001 = vmatmul.f32.gmra.mxu1 %v5873_v36 }
 0x60c   : > { %v5360_v20 = vsel %vm5296_vm14, %v5257_v56, %v5328_v15 }
 0x60d   : > { %5393 = vst.msk [vmem:[#allocation3 + $0xe0] sm:$0xff] %vm5364_vm9, %v5360_v20 }
 0x60f   : > { %v5682_v53 = vpop.permute.xlu2 %5681 }
 0x614   : > { %v5443_v28 = vld [vmem:[#allocation3 + $0xd2] ss:$2 sm:$0xff] }
 0x615   : > { %v5475_v61 = vmax.f32 %v5459_v3, %v5443_v28 }
 0x617   : > { %5494 = vst.msk [vmem:[#allocation2 + $0x72] sm:$0xff] %vm5364_vm9, %v5475_v61 }
 0x61a   : > { %v5259_v21 = vpop.f32.mrf.mxu0 }
 0x61b   : > { %v5260_v60 = vadd.f32 %v12101_v26, %v5259_v21  ;;  %v6049_v21 = vpop.f32.mrf.mxu2 }
 0x61d   : > { %vm5297_vm4 = vcmp.gt.f32.partialorder %v5260_v60, 0.0  ;;  %v5329_v44 = vmul.f32 0.01, %v5260_v60 }
 0x61e   : > { %v5739_v4 = vld [vmem:[#allocation2 + $0x6f] sm:$0xff] }
 0x61f   : > { %v5361_v17 = vsel %vm5297_vm4, %v5260_v60, %v5329_v44  ;;  %v5642_v8 = vld [vmem:[#allocation2 + $0x72] sm:$0xff]  ;;  %5783 = vrot.lane.b32.xlu0 %v5739_v4, %s10233_s22 }
 0x620   : > { %v5544_v24 = vld [vmem:[#allocation2 + $0x6d] sm:$0xff]  ;;  %5394 = vst.msk [vmem:[#allocation3 + $0xe8] sm:$0xff] %vm5364_vm9, %v5361_v17  ;;  %5687 = vrot.lane.b32.xlu2 %v5642_v8, %s10232_s10 }
 0x621   : > { %v5836_v49 = vld [vmem:[#allocation2 + $0x6c] sm:$0xff]  ;;  %5589 = vrot.lane.b32.xlu1 %v5544_v24, %s10231_s2 }
 0x622   : > { %v5513_v19 = vld [vmem:[#allocation2 + $0x70] sm:$0xff]  ;;  %5852 = vst.msk [vmem:[#allocation4 + $0x110] sm:$0xff] %vm5364_vm9, %v5836_v49  ;;  %v5262_v38 = vpop.f32.mrf.mxu0 }
 0x623   : > { %5529 = vst.msk [vmem:[#allocation4 + $0x150] sm:$0xff] %vm5364_vm9, %v5513_v19  ;;  %v5263_v43 = vadd.f32 %v12101_v26, %v5262_v38  ;;  %v6052_v49 = vpop.f32.mrf.mxu2 }
 0x625   : > { %vm5298_vm6 = vcmp.gt.f32.partialorder %v5263_v43, 0.0  ;;  %v5330_v11 = vmul.f32 0.01, %v5263_v43  ;;  %v5684_v30 = vpop.permute.xlu2 %5683 }
 0x626   : > { %v5778_v46 = vpop.permute.xlu0 %5777 }
 0x627   : > { %v5362_v57 = vsel %vm5298_vm6, %v5263_v43, %v5330_v11  ;;  %5817 = vst.msk [vmem:[#allocation4 + $0xd8] sm:$0xff] %vm5807_vm3, %v5778_v46  ;;  %v5412_v37 = vld [vmem:[#allocation3 + $0xe0] ss:$2 sm:$0xff]  ;;  %v5428_v33 = vld [vmem:[#allocation3 + $0xe1] ss:$2 sm:$0xff] }
 0x628   : > { %v5584_v45 = vpop.permute.xlu1 %5583  ;;  %5395 = vst.msk [vmem:[#allocation3 + $0xf0] sm:$0xff] %vm5364_vm9, %v5362_v57  ;;  %v5460_v23 = vmax.f32 %v5412_v37, %v5428_v33 }
 0x629   : > { %v5880_v22 = vld [vmem:[#allocation4 + $0x110] sm:$0xff]  ;;  %5622 = vst.msk [vmem:[#allocation4 + $0xf0] sm:$0xff] %vm5611_vm1, %v5584_v45 }
 0x62a   : > { %9504 = vmatmul.msk.f32.gmra.mxu2 %vm5364_vm9, %v5880_v22  ;;  %5720 = vst.msk [vmem:[#allocation4 + $0xf0] sm:$0xff] %vm5709_vm5, %v5682_v53 }
 0x62b   : > { %v5265_v16 = vpop.f32.mrf.mxu0 }
 0x62c   : > { %v5266_v9 = vadd.f32 %v12101_v26, %v5265_v16 }
 0x62e   : > { %vm5299_vm2 = vcmp.gt.f32.partialorder %v5266_v9, 0.0  ;;  %v5331_v58 = vmul.f32 0.01, %v5266_v9  ;;  %v5875_v18 = vld [vmem:[#allocation4 + $0xd8] sm:$0xff] }
 0x62f   : > { %v5444_v31 = vld [vmem:[#allocation3 + $0xe2] ss:$2 sm:$0xff]  ;;  %6004 = vmatmul.f32.gmra.mxu1 %v5875_v18 }
 0x630   : > { %v5476_v50 = vmax.f32 %v5460_v23, %v5444_v31  ;;  %v5363_v41 = vsel %vm5299_vm2, %v5266_v9, %v5331_v58  ;;  %v6055_v23 = vpop.f32.mrf.mxu2  ;;  %vm5823_vm2 = vcmask 1047296  }
 0x631   : > { %5397 = vst.msk [vmem:[#allocation3 + $0xf8] sm:$0x7f] %vm5396_vm13, %v5363_v41 }
 0x632   : > { %5495 = vst.msk [vmem:[#allocation2 + $0x7a] sm:$0xff] %vm5364_vm9, %v5476_v50 }
 0x635   : > { %v5978_v10 = vpop.f32.mrf.mxu1 }
 0x636   : > { %v5979_v47 = vadd.f32 %v12274_v2, %v5978_v10  ;;  %v6419_v10 = vld [vmem:[%s13161_s7 + $0x138] sm:$0xff] }
 0x637   : > { %6538 = vmatpush.msrb.mxu2 %v6419_v10 }
 0x638   : > { %v5413_v32 = vld [vmem:[#allocation3 + $0xf0] ss:$2 sm:$0x7f]  ;;  %v5429_v26 = vld [vmem:[#allocation3 + $0xf1] ss:$2 sm:$0x7f]  ;;  %v6044_v48 = vadd.f32 %v6043_v5, %v5979_v47 }
 0x639   : > { %v5445_v27 = vld [vmem:[#allocation3 + $0xf2] ss:$2 sm:$0x7f]  ;;  %v5461_v63 = vmax.f32 %v5413_v32, %v5429_v26  ;;  %v5740_v54 = vld [vmem:[#allocation2 + $0x77] sm:$0xff] }
 0x63a   : > { %v5643_v6 = vld [vmem:[#allocation2 + $0x7a] sm:$0xff]  ;;  %vm6091_vm8 = vcmp.gt.f32.partialorder %v6044_v48, 0.0  ;;  %v6107_v29 = vmul.f32 0.01, %v6044_v48  ;;  %5785 = vrot.lane.b32.xlu0 %v5740_v54, %s10233_s22  ;;  %v6418_v5 = vld [vmem:[%s13161_s7 + $0x130] sm:$0xff]  ;;  %v6417_v32 = vld [vmem:[%s13161_s7 + $0x128] sm:$0xff]  ;;  %v6058_v54 = vpop.f32.mrf.mxu2 }
 0x63b   : > { %5689 = vrot.lane.b32.xlu2 %v5643_v6, %s10232_s10  ;;  %v5545_v55 = vld [vmem:[#allocation2 + $0x75] sm:$0xff]  ;;  %v5477_v39 = vmax.f32 %v5461_v63, %v5445_v27  ;;  %v5888_v27 = vld [vmem:[#allocation4 + $0x170] sm:$0x7f]  ;;  %6539 = vmatpush.msrb.mxu2 %v6418_v5 }
 0x63c   : > { %v5837_v0 = vld [vmem:[#allocation2 + $0x74] sm:$0xff]  ;;  %5591 = vrot.lane.b32.xlu1 %v5545_v55, %s10231_s2  ;;  %v6123_v59 = vsel %vm6091_vm8, %v6044_v48, %v6107_v29  ;;  %v5780_v25 = vpop.permute.xlu0 %5779 }
 0x63d   : > { %5853 = vst.msk [vmem:[#allocation4 + $0x128] sm:$0xff] %vm5364_vm9, %v5837_v0  ;;  %v5981_v51 = vpop.f32.mrf.mxu1  ;;  %v5514_v42 = vld [vmem:[#allocation2 + $0x78] sm:$0x7f]  ;;  %v5686_v58 = vpop.permute.xlu2 %5685  ;;  %v6416_v0 = vld [vmem:[%s13161_s7 + $0x120] sm:$0xff]  ;;  %6540 = vmatpush.msrb.mxu2 %v6417_v32  ;;  %v6394_v5 = vld [vmem:[%s13161_s7 + $0x70] sm:$0xff] }
 0x63e   : > { %5496 = vst.msk [vmem:[#allocation2 + $0x82] sm:$0x7f] %vm5396_vm13, %v5477_v39  ;;  %v5586_v1 = vpop.permute.xlu1 %5585  ;;  %v5982_v52 = vadd.f32 %v12274_v2, %v5981_v51  ;;  %v6393_v32 = vld [vmem:[%s13161_s7 + $0x68] sm:$0xff] }
 0x63f   : > { %6140 = vst.msk [vmem:[#allocation3] sm:$0xff] %vm6139_vm15, %v6123_v59  ;;  %6541 = vmatpush.msrb.mxu2 %v6416_v0 }
 0x640   : > { %5818 = vst.msk [vmem:[#allocation4 + $0xf0] sm:$0xff] %vm5807_vm3, %v5780_v25  ;;  %v6047_v12 = vadd.f32 %v6046_v14, %v5982_v52  ;;  %v6415_v25 = vld [vmem:[%s13161_s7 + $0x118] sm:$0xff]  ;;  %v6414_v14 = vld [vmem:[%s13161_s7 + $0x110] sm:$0xff] }
 0x641   : > { %5623 = vst.msk [vmem:[#allocation4 + $0x108] sm:$0xff] %vm5611_vm1, %v5586_v1  ;;  %6542 = vmatpush.msrb.mxu2 %v6415_v25 }
 0x642   : > { %5721 = vst.msk [vmem:[#allocation4 + $0x108] sm:$0xff] %vm5709_vm5, %v5684_v30  ;;  %vm6092_vm7 = vcmp.gt.f32.partialorder %v6047_v12, 0.0  ;;  %v6108_v34 = vmul.f32 0.01, %v6047_v12 }
 0x643   : > { %5530 = vst.msk [vmem:[#allocation4 + $0x168] sm:$0x7f] %vm5396_vm13, %v5514_v42  ;;  %6543 = vmatpush.msrb.mxu2 %v6414_v14 }
 0x644   : > { %v5882_v62 = vld [vmem:[#allocation4 + $0x128] sm:$0xff]  ;;  %v6124_v56 = vsel %vm6092_vm7, %v6047_v12, %v6108_v34  ;;  %v6413_v34 = vld [vmem:[%s13161_s7 + $0x108] sm:$0xff] }
 0x645   : > { %9505 = vmatmul.msk.f32.gmra.mxu2 %vm5364_vm9, %v5882_v62  ;;  %v5741_v15 = vld [vmem:[#allocation2 + $0x7f] sm:$0xff]  ;;  %6141 = vst.msk [vmem:[#allocation3 + $0x8] sm:$0xff] %vm6139_vm15, %v6124_v56  ;;  %v5984_v7 = vpop.f32.mrf.mxu1  ;;  %v5742_v17 = vld [vmem:[#allocation2 + $0x87] sm:$0x7f]  ;;  %v6061_v62 = vpop.f32.mrf.mxu2 }
 0x646   : > { %v5644_v36 = vld [vmem:[#allocation2 + $0x82] sm:$0x7f]  ;;  %5787 = vrot.lane.b32.xlu0 %v5741_v15, %s10233_s22  ;;  %v5985_v28 = vadd.f32 %v12274_v2, %v5984_v7  ;;  %6544 = vmatpush.msrb.mxu2 %v6413_v34 }
 0x647   : > { %v5546_v20 = vld [vmem:[#allocation2 + $0x7d] sm:$0x7f]  ;;  %5691 = vrot.lane.b32.xlu2 %v5644_v36, %s10232_s10  ;;  %v5839_v3 = vld [vmem:[#allocation2 + $0x84] sm:$0xff] }
 0x648   : > { %v5838_v40 = vld [vmem:[#allocation2 + $0x7c] sm:$0xff]  ;;  %5593 = vrot.lane.b32.xlu1 %v5546_v20, %s10231_s2  ;;  %v5877_v61 = vld [vmem:[#allocation4 + $0xf0] sm:$0xff]  ;;  %5855 = vst.msk [vmem:[#allocation4 + $0x158] sm:$0xff] %vm5364_vm9, %v5839_v3  ;;  %v6050_v60 = vadd.f32 %v6049_v21, %v5985_v28 }
 0x649   : > { %5854 = vst.msk [vmem:[#allocation4 + $0x140] sm:$0xff] %vm5364_vm9, %v5838_v40  ;;  %6007 = vmatmul.f32.gmra.mxu1 %v5877_v61  ;;  %v6412_v15 = vld [vmem:[%s13161_s7 + $0x100] sm:$0xff] }
 0x64a   : > { %vm6093_vm10 = vcmp.gt.f32.partialorder %v6050_v60, 0.0  ;;  %v6109_v35 = vmul.f32 0.01, %v6050_v60  ;;  %6545 = vmatpush.msrb.mxu2 %v6412_v15  ;;  %v6385_v15 = vld [vmem:[%s13161_s7 + $0x28] sm:$0xff] }
 0x64c   : > { %v6125_v44 = vsel %vm6093_vm10, %v6050_v60, %v6109_v35  ;;  %v6157_v19 = vld [vmem:[#allocation3] ss:$2 sm:$0xff]  ;;  %v6165_v38 = vld [vmem:[#allocation3 + $0x1] ss:$2 sm:$0xff] }
 0x64d   : > { %6142 = vst.msk [vmem:[#allocation3 + $0x10] sm:$0xff] %vm6139_vm15, %v6125_v44  ;;  %v5987_v4 = vpop.f32.mrf.mxu1  ;;  %v6181_v46 = vmax.f32 %v6157_v19, %v6165_v38  ;;  %v6064_v61 = vpop.f32.mrf.mxu2 }
 0x64e   : > { %5789 = vrot.lane.b32.xlu0 %v5742_v17, %s10233_s22  ;;  %v5988_v24 = vadd.f32 %v12274_v2, %v5987_v4 }
 0x64f   : > { %v5886_v16 = vld [vmem:[#allocation4 + $0x158] sm:$0xff] }
 0x650   : > { %v5884_v8 = vld [vmem:[#allocation4 + $0x140] sm:$0xff]  ;;  %v6053_v43 = vadd.f32 %v6052_v49, %v5988_v24 }
 0x651   : > { %9506 = vmatmul.msk.f32.gmra.mxu2 %vm5364_vm9, %v5884_v8 }
 0x652   : > { %vm6094_vm12 = vcmp.gt.f32.partialorder %v6053_v43, 0.0  ;;  %v6110_v11 = vmul.f32 0.01, %v6053_v43 }
 0x654   : > { %v5782_v57 = vpop.permute.xlu0 %5781  ;;  %v6173_v45 = vld [vmem:[#allocation3 + $0x2] ss:$2 sm:$0xff]  ;;  %v6126_v22 = vsel %vm6094_vm12, %v6053_v43, %v6110_v11 }
 0x655   : > { %5819 = vst.msk [vmem:[#allocation4 + $0x108] sm:$0xff] %vm5807_vm3, %v5782_v57  ;;  %v6189_v37 = vmax.f32 %v6181_v46, %v6173_v45  ;;  %v5990_v33 = vpop.f32.mrf.mxu1 }
 0x656   : > { %v5588_v53 = vpop.permute.xlu1 %5587  ;;  %6143 = vst.msk [vmem:[#allocation3 + $0x18] sm:$0xff] %vm6139_vm15, %v6126_v22  ;;  %v5991_v9 = vadd.f32 %v12274_v2, %v5990_v33  ;;  %v6067_v22 = vpop.f32.mrf.mxu2 }
 0x657   : > { %5624 = vst.msk [vmem:[#allocation4 + $0x120] sm:$0xff] %vm5611_vm1, %v5588_v53 }
 0x658   : > { %6200 = vst.msk [vmem:[#allocation2 + $0xa] sm:$0xff] %vm6139_vm15, %v6189_v37  ;;  %v6056_v18 = vadd.f32 %v6055_v23, %v5991_v9 }
 0x659   : > { %9507 = vmatmul.msk.f32.gmra.mxu2 %vm5364_vm9, %v5886_v16  ;;  %5722 = vst.msk [vmem:[#allocation4 + $0x120] sm:$0xff] %vm5709_vm5, %v5686_v58 }
 0x65a   : > { %vm6095_vm11 = vcmp.gt.f32.partialorder %v6056_v18, 0.0  ;;  %v6111_v31 = vmul.f32 0.01, %v6056_v18 }
 0x65c   : > { %v5879_v50 = vld [vmem:[#allocation4 + $0x108] sm:$0xff]  ;;  %v6127_v41 = vsel %vm6095_vm11, %v6056_v18, %v6111_v31 }
 0x65d   : > { %6010 = vmatmul.f32.gmra.mxu1 %v5879_v50  ;;  %6144 = vst.msk [vmem:[#allocation3 + $0x20] sm:$0xff] %vm6139_vm15, %v6127_v41  ;;  %v5993_v47 = vpop.f32.mrf.mxu1  ;;  %v6158_v6 = vld [vmem:[#allocation3 + $0x10] ss:$2 sm:$0xff]  ;;  %v6166_v29 = vld [vmem:[#allocation3 + $0x11] ss:$2 sm:$0xff] }
 0x65e   : > { %v5994_v26 = vadd.f32 %v12274_v2, %v5993_v47  ;;  %v6182_v51 = vmax.f32 %v6158_v6, %v6166_v29  ;;  %v6395_v47 = vld [vmem:[%s13161_s7 + $0x78] sm:$0xff] }
 0x65f   : > { %v6226_v48 = vld [vmem:[#allocation2 + $0x5] sm:$0xff]  ;;  %6448 = vmatpush.msra.mxu3 %v6395_v47 }
 0x660   : > { %v6211_v63 = vld [vmem:[#allocation2 + $0x8] sm:$0xff]  ;;  %6242 = vrot.lane.b32.xlu1 %v6226_v48, %s10232_s10  ;;  %6623 = vst.msk [vmem:[#allocation2] sm:$0xff] %vm6139_vm15, %v13251_v13  ;;  %v6059_v55 = vadd.f32 %v6058_v54, %v5994_v26  ;;  %v6392_v26 = vld [vmem:[%s13161_s7 + $0x60] sm:$0xff]  ;;  %v6391_v54 = vld [vmem:[%s13161_s7 + $0x58] sm:$0xff] }
 0x661   : > { %9508 = vmatmul.msk.f32.gmra.mxu2 %vm5364_vm9, %v5888_v27  ;;  %6219 = vst.msk [vmem:[#allocation4 + $0x18] sm:$0xff] %vm6139_vm15, %v6211_v63  ;;  %v6276_v39 = vld [vmem:[#allocation2 + $0xa] sm:$0xff]  ;;  %6449 = vmatpush.msra.mxu3 %v6394_v5 }
 0x662   : > { %6624 = vst.msk [vmem:[#allocation2 + $0x8] sm:$0x3] %vm6198_vm0, %v13251_v13  ;;  %vm6096_vm14 = vcmp.gt.f32.partialorder %v6059_v55, 0.0  ;;  %v6112_v59 = vmul.f32 0.01, %v6059_v55 }
 0x663   : > { %6284 = vst.msk [vmem:[#allocation4 + $0x8] sm:$0xff] %vm6139_vm15, %v6276_v39  ;;  %6450 = vmatpush.msra.mxu3 %v6393_v32 }
 0x664   : > { %v6174_v1 = vld [vmem:[#allocation3 + $0x12] ss:$2 sm:$0xff]  ;;  %v6128_v52 = vsel %vm6096_vm14, %v6059_v55, %v6112_v59  ;;  %vm6155_vm14 = vcmask 522240  }
 0x665   : > { %v6190_v30 = vmax.f32 %v6182_v51, %v6174_v1  ;;  %6145 = vst.msk [vmem:[#allocation3 + $0x28] sm:$0xff] %vm6139_vm15, %v6128_v52  ;;  %v5996_v12 = vpop.f32.mrf.mxu1  ;;  %6451 = vmatpush.msra.mxu3 %v6392_v26  ;;  %v6390_v55 = vld [vmem:[%s13161_s7 + $0x50] sm:$0xff]  ;;  %v6389_v51 = vld [vmem:[%s13161_s7 + $0x48] sm:$0xff]  ;;  %v6070_v1 = vpop.f32.mrf.mxu2 }
 0x666   : > { %v5997_v42 = vadd.f32 %v12274_v2, %v5996_v12 }
 0x667   : > { %6201 = vst.msk [vmem:[#allocation2 + $0x12] sm:$0xff] %vm6139_vm15, %v6190_v30  ;;  %6452 = vmatpush.msra.mxu3 %v6391_v54  ;;  %v6388_v30 = vld [vmem:[%s13161_s7 + $0x40] sm:$0xff] }
 0x668   : > { %v6062_v56 = vadd.f32 %v6061_v62, %v5997_v42  ;;  %v6387_v42 = vld [vmem:[%s13161_s7 + $0x38] sm:$0xff]  ;;  %v6386_v62 = vld [vmem:[%s13161_s7 + $0x30] sm:$0xff] }
 0x669   : > { %6453 = vmatpush.msra.mxu3 %v6390_v55 }
 0x66a   : > { %vm6097_vm9 = vcmp.gt.f32.partialorder %v6062_v56, 0.0  ;;  %v6113_v36 = vmul.f32 0.01, %v6062_v56 }
 0x66b   : > { %6454 = vmatpush.msra.mxu3 %v6389_v51 }
 0x66c   : > { %v6129_v20 = vsel %vm6097_vm9, %v6062_v56, %v6113_v36  ;;  %v6159_v60 = vld [vmem:[#allocation3 + $0x20] ss:$2 sm:$0xff]  ;;  %v6167_v35 = vld [vmem:[#allocation3 + $0x21] ss:$2 sm:$0xff]  ;;  %vm6274_vm9 = vcmask 1047040  }
 0x66d   : > { %6146 = vst.msk [vmem:[#allocation3 + $0x30] sm:$0xff] %vm6139_vm15, %v6129_v20  ;;  %v5999_v7 = vpop.f32.mrf.mxu1  ;;  %v6183_v4 = vmax.f32 %v6159_v60, %v6167_v35  ;;  %6455 = vmatpush.msra.mxu3 %v6388_v30  ;;  %v6384_v36 = vld [vmem:[%s13161_s7 + $0x20] sm:$0xff] }
 0x66e   : > { %v6000_v40 = vadd.f32 %v12274_v2, %v5999_v7  ;;  %v6227_v3 = vld [vmem:[#allocation2 + $0xd] sm:$0xff]  ;;  %v6383_v7 = vld [vmem:[%s13161_s7 + $0x18] sm:$0xff] }
 0x66f   : > { %v6212_v28 = vld [vmem:[#allocation2 + $0x10] sm:$0xff]  ;;  %6244 = vrot.lane.b32.xlu2 %v6227_v3, %s10232_s10  ;;  %6456 = vmatpush.msra.mxu3 %v6387_v42 }
 0x670   : > { %6220 = vst.msk [vmem:[#allocation4 + $0x30] sm:$0xff] %vm6139_vm15, %v6212_v28  ;;  %v6277_v21 = vld [vmem:[#allocation2 + $0x12] sm:$0xff]  ;;  %v6065_v44 = vadd.f32 %v6064_v61, %v6000_v40  ;;  %v6381_v61 = vld [vmem:[%s13161_s7 + $0x8] sm:$0xff] }
 0x671   : > { %6285 = vst.msk [vmem:[#allocation4 + $0x20] sm:$0xff] %vm6139_vm15, %v6277_v21  ;;  %6457 = vmatpush.msra.mxu3 %v6386_v62  ;;  %v6382_v28 = vld [vmem:[%s13161_s7 + $0x10] sm:$0xff]  ;;  %v6380_v21 = vld [vmem:[%s13161_s7] sm:$0xff] }
 0x672   : > { %vm6098_vm13 = vcmp.gt.f32.partialorder %v6065_v44, 0.0  ;;  %v6114_v17 = vmul.f32 0.01, %v6065_v44 }
 0x673   : > { %6458 = vmatpush.msra.mxu3 %v6385_v15 }
 0x674   : > { %v6175_v8 = vld [vmem:[#allocation3 + $0x22] ss:$2 sm:$0xff]  ;;  %v6130_v24 = vsel %vm6098_vm13, %v6065_v44, %v6114_v17 }
 0x675   : > { %v6191_v49 = vmax.f32 %v6183_v4, %v6175_v8  ;;  %6147 = vst.msk [vmem:[#allocation3 + $0x38] sm:$0xff] %vm6139_vm15, %v6130_v24  ;;  %6459 = vmatpush.msra.mxu3 %v6384_v36  ;;  %v6073_v4 = vpop.f32.mrf.mxu2 }
 0x677   : > { %6202 = vst.msk [vmem:[#allocation2 + $0x1a] sm:$0xff] %vm6139_vm15, %v6191_v49  ;;  %6460 = vmatpush.msra.mxu3 %v6383_v7 }
 0x679   : > { %6461 = vmatpush.msra.mxu3 %v6382_v28 }
 0x67a   : > { %v5688_v18 = vpop.permute.xlu2 %5687 }
 0x67b   : > { %6462 = vmatpush.msra.mxu3 %v6381_v61 }
 0x67c   : > { %v6160_v23 = vld [vmem:[#allocation3 + $0x30] ss:$2 sm:$0xff]  ;;  %v6168_v58 = vld [vmem:[#allocation3 + $0x31] ss:$2 sm:$0xff] }
 0x67d   : > { %v6184_v31 = vmax.f32 %v6160_v23, %v6168_v58  ;;  %6463 = vmatpush.msra.mxu3 %v6380_v21 }
 0x67e   : > { %v6228_v19 = vld [vmem:[#allocation2 + $0x15] sm:$0xff] }
 0x67f   : > { %v6340_v38 = vld [vmem:[#allocation2 + $0x14] sm:$0xff]  ;;  %6246 = vrot.lane.b32.xlu0 %v6228_v19, %s10232_s10 }
 0x680   : > { %v6213_v43 = vld [vmem:[#allocation2 + $0x18] sm:$0xff]  ;;  %6348 = vst.msk [vmem:[#allocation4 + $0x10] sm:$0xff] %vm6139_vm15, %v6340_v38 }
 0x681   : > { %v6278_v11 = vld [vmem:[#allocation2 + $0x1a] sm:$0xff]  ;;  %6221 = vst.msk [vmem:[#allocation4 + $0x48] sm:$0xff] %vm6139_vm15, %v6213_v43 }
 0x682   : > { %6286 = vst.msk [vmem:[#allocation4 + $0x38] sm:$0xff] %vm6139_vm15, %v6278_v11 }
 0x687   : > { %v6358_v46 = vld [vmem:[#allocation4 + $0x10] sm:$0xff] }
 0x688   : > { %9509 = vmatmul.msk.f32.vlgmr.msrb.gmra.mxu2 %vm6139_vm15, %v6358_v46  ;;  %v6002_v57 = vpop.f32.mrf.mxu1 }
 0x689   : > { %v6003_v45 = vadd.f32 %v12274_v2, %v6002_v57 }
 0x68b   : > { %v6068_v53 = vadd.f32 %v6067_v22, %v6003_v45 }
 0x68d   : > { %vm6099_vm4 = vcmp.gt.f32.partialorder %v6068_v53, 0.0  ;;  %v6115_v37 = vmul.f32 0.01, %v6068_v53 }
 0x68f   : > { %v6131_v33 = vsel %vm6099_vm4, %v6068_v53, %v6115_v37  ;;  %v6631_v53 = vld [vmem:[#allocation2] sm:$0xff] }
 0x690   : > { %6148 = vst.msk [vmem:[#allocation3 + $0x40] sm:$0xff] %vm6139_vm15, %v6131_v33 }
 0x691   : > { %v5784_v16 = vpop.permute.xlu0 %5783 }
 0x692   : > { %5820 = vst.msk [vmem:[#allocation4 + $0x120] sm:$0xff] %vm5807_vm3, %v5784_v16 }
 0x693   : > { %v5590_v9 = vpop.permute.xlu1 %5589 }
 0x694   : > { %5625 = vst.msk [vmem:[#allocation4 + $0x138] sm:$0xff] %vm5611_vm1, %v5590_v9 }
 0x695   : > { %5723 = vst.msk [vmem:[#allocation4 + $0x138] sm:$0xff] %vm5709_vm5, %v5688_v18  ;;  %v5690_v52 = vpop.permute.xlu2 %5689 }
 0x697   : > { %v6176_v50 = vld [vmem:[#allocation3 + $0x32] ss:$2 sm:$0xff] }
 0x698   : > { %v6192_v41 = vmax.f32 %v6184_v31, %v6176_v50 }
 0x699   : > { %v5881_v10 = vld [vmem:[#allocation4 + $0x120] sm:$0xff] }
 0x69a   : > { %6203 = vst.msk [vmem:[#allocation2 + $0x22] sm:$0xff] %vm6139_vm15, %v6192_v41  ;;  %6013 = vmatmul.f32.gmra.mxu1 %v5881_v10 }
 0x6a1   : > { %v6229_v48 = vld [vmem:[#allocation2 + $0x1d] sm:$0xff]  ;;  %v5692_v3 = vpop.permute.xlu2 %5691 }
 0x6a2   : > { %v6341_v27 = vld [vmem:[#allocation2 + $0x1c] sm:$0xff]  ;;  %6248 = vrot.lane.b32.xlu1 %v6229_v48, %s10232_s10 }
 0x6a3   : > { %v6214_v63 = vld [vmem:[#allocation2 + $0x20] sm:$0xff]  ;;  %6349 = vst.msk [vmem:[#allocation4 + $0x28] sm:$0xff] %vm6139_vm15, %v6341_v27 }
 0x6a4   : > { %v6279_v6 = vld [vmem:[#allocation2 + $0x22] sm:$0xff]  ;;  %6222 = vst.msk [vmem:[#allocation4 + $0x60] sm:$0xff] %vm6139_vm15, %v6214_v63 }
 0x6a5   : > { %6287 = vst.msk [vmem:[#allocation4 + $0x50] sm:$0xff] %vm6139_vm15, %v6279_v6 }
 0x6aa   : > { %v6361_v29 = vld [vmem:[#allocation4 + $0x28] sm:$0xff] }
 0x6ab   : > { %9510 = vmatmul.msk.f32.gmra.mxu2 %vm6139_vm15, %v6361_v29 }
 0x6ac   : > { %v6005_v0 = vpop.f32.mrf.mxu1  ;;  %v5786_v39 = vpop.permute.xlu0 %5785 }
 0x6ad   : > { %v6006_v59 = vadd.f32 %v12274_v2, %v6005_v0  ;;  %5821 = vst.msk [vmem:[#allocation4 + $0x138] sm:$0xff] %vm5807_vm3, %v5786_v39  ;;  %v6076_v9 = vpop.f32.mrf.mxu2 }
 0x6ae   : > { %v5592_v25 = vpop.permute.xlu1 %5591 }
 0x6af   : > { %5626 = vst.msk [vmem:[#allocation4 + $0x150] sm:$0xff] %vm5611_vm1, %v5592_v25  ;;  %v6071_v14 = vadd.f32 %v6070_v1, %v6006_v59  ;;  %vm5627_vm1 = vcmask 522496  }
 0x6b0   : > { %5724 = vst.msk [vmem:[#allocation4 + $0x150] sm:$0xff] %vm5709_vm5, %v5690_v52  ;;  %vm5725_vm5 = vcmask 784896  }
 0x6b1   : > { %vm6100_vm6 = vcmp.gt.f32.partialorder %v6071_v14, 0.0  ;;  %v6116_v12 = vmul.f32 0.01, %v6071_v14 }
 0x6b3   : > { %v6132_v34 = vsel %vm6100_vm6, %v6071_v14, %v6116_v12 }
 0x6b4   : > { %6149 = vst.msk [vmem:[#allocation3 + $0x48] sm:$0xff] %vm6139_vm15, %v6132_v34  ;;  %v5883_v56 = vld [vmem:[#allocation4 + $0x138] sm:$0xff] }
 0x6b5   : > { %6016 = vmatmul.f32.gmra.mxu1 %v5883_v56 }
 0x6b8   : > { %v5788_v20 = vpop.permute.xlu0 %5787 }
 0x6b9   : > { %5822 = vst.msk [vmem:[#allocation4 + $0x150] sm:$0xff] %vm5807_vm3, %v5788_v20  ;;  %vm6266_vm3 = vcmask 1048064  }
 0x6ba   : > { %v5594_v40 = vpop.permute.xlu1 %5593 }
 0x6bb   : > { %5628 = vst.msk [vmem:[#allocation4 + $0x168] sm:$0x7f] %vm5627_vm1, %v5594_v40  ;;  %v6161_v43 = vld [vmem:[#allocation3 + $0x40] ss:$2 sm:$0xff]  ;;  %v6169_v11 = vld [vmem:[#allocation3 + $0x41] ss:$2 sm:$0xff] }
 0x6bc   : > { %5726 = vst.msk [vmem:[#allocation4 + $0x168] sm:$0x7f] %vm5725_vm5, %v5692_v3  ;;  %v6185_v57 = vmax.f32 %v6161_v43, %v6169_v11  ;;  %v6292_v3 = vld [vmem:[#allocation2 + $0xf] sm:$0xff] }
 0x6c0   : > { %v5790_v60 = vpop.permute.xlu0 %5789  ;;  %v5885_v35 = vld [vmem:[#allocation4 + $0x150] sm:$0xff] }
 0x6c1   : > { %5824 = vst.msk [vmem:[#allocation4 + $0x168] sm:$0x7f] %vm5823_vm2, %v5790_v60  ;;  %6019 = vmatmul.f32.gmra.mxu1 %v5885_v35 }
 0x6c6   : > { %v6008_v44 = vpop.f32.mrf.mxu1 }
 0x6c7   : > { %v6009_v17 = vadd.f32 %v12274_v2, %v6008_v44 }
 0x6c8   : > { %v5887_v24 = vld [vmem:[#allocation4 + $0x168] sm:$0x7f]  ;;  %v6079_v54 = vpop.f32.mrf.mxu2 }
 0x6c9   : > { %v6074_v8 = vadd.f32 %v6073_v4, %v6009_v17  ;;  %6022 = vmatmul.f32.gmra.mxu1 %v5887_v24  ;;  %v6245_v19 = vpop.permute.xlu2 %6244 }
 0x6ca   : > { %6268 = vst.msk [vmem:[#allocation4 + $0x18] sm:$0xff] %vm6266_vm3, %v6245_v19 }
 0x6cb   : > { %vm6101_vm8 = vcmp.gt.f32.partialorder %v6074_v8, 0.0  ;;  %v6117_v49 = vmul.f32 0.01, %v6074_v8 }
 0x6cd   : > { %v6133_v38 = vsel %vm6101_vm8, %v6074_v8, %v6117_v49 }
 0x6ce   : > { %6150 = vst.msk [vmem:[#allocation3 + $0x50] sm:$0xff] %vm6139_vm15, %v6133_v38 }
 0x6d1   : > { %v6359_v47 = vld [vmem:[#allocation4 + $0x18] sm:$0xff] }
 0x6d2   : > { %v6243_v46 = vpop.permute.xlu1 %6242 }
 0x6d3   : > { %6267 = vst.msk [vmem:[#allocation4] sm:$0xff] %vm6266_vm3, %v6243_v46 }
 0x6d4   : > { %v6082_v15 = vpop.f32.mrf.mxu2 }
 0x6d5   : > { %v6177_v45 = vld [vmem:[#allocation3 + $0x42] ss:$2 sm:$0xff] }
 0x6d6   : > { %v6193_v22 = vmax.f32 %v6185_v57, %v6177_v45 }
 0x6d8   : > { %6204 = vst.msk [vmem:[#allocation2 + $0x2a] sm:$0xff] %vm6139_vm15, %v6193_v22 }
 0x6da   : > { %v6356_v37 = vld [vmem:[#allocation4] sm:$0xff]  ;;  %v6011_v33 = vpop.f32.mrf.mxu1 }
 0x6db   : > { %6464 = vmatmul.f32.vlgmr.msra.gmra.mxu3 %v6356_v37  ;;  %6635 = vst.msk [vmem:[#allocation4] sm:$0xff] %vm6139_vm15, %v6631_v53  ;;  %v6012_v16 = vadd.f32 %v12274_v2, %v6011_v33 }
 0x6dc   : > { %v6085_v60 = vpop.f32.mrf.mxu2 }
 0x6dd   : > { %v6077_v23 = vadd.f32 %v6076_v9, %v6012_v16 }
 0x6df   : > { %v6230_v58 = vld [vmem:[#allocation2 + $0x25] sm:$0xff]  ;;  %vm6102_vm7 = vcmp.gt.f32.partialorder %v6077_v23, 0.0  ;;  %v6118_v31 = vmul.f32 0.01, %v6077_v23 }
 0x6e0   : > { %v6342_v18 = vld [vmem:[#allocation2 + $0x24] sm:$0xff]  ;;  %6250 = vrot.lane.b32.xlu2 %v6230_v58, %s10232_s10 }
 0x6e1   : > { %6350 = vst.msk [vmem:[#allocation4 + $0x40] sm:$0xff] %vm6139_vm15, %v6342_v18  ;;  %v6215_v50 = vld [vmem:[#allocation2 + $0x28] sm:$0xff]  ;;  %v6134_v10 = vsel %vm6102_vm7, %v6077_v23, %v6118_v31  ;;  %v6293_v31 = vld [vmem:[#allocation2 + $0x17] sm:$0xff] }
 0x6e2   : > { %v6280_v41 = vld [vmem:[#allocation2 + $0x2a] sm:$0xff]  ;;  %6223 = vst.msk [vmem:[#allocation4 + $0x78] sm:$0xff] %vm6139_vm15, %v6215_v50 }
 0x6e3   : > { %6288 = vst.msk [vmem:[#allocation4 + $0x68] sm:$0xff] %vm6139_vm15, %v6280_v41  ;;  %6467 = vmatmul.f32.gmra.mxu3 %v6359_v47  ;;  %v6295_v62 = vld [vmem:[#allocation2 + $0x27] sm:$0xff] }
 0x6e4   : > { %6151 = vst.msk [vmem:[#allocation3 + $0x58] sm:$0xff] %vm6139_vm15, %v6134_v10  ;;  %v6088_v24 = vpop.f32.mrf.mxu2 }
 0x6e8   : > { %v6364_v5 = vld [vmem:[#allocation4 + $0x40] sm:$0xff] }
 0x6e9   : > { %9511 = vmatmul.msk.f32.gmra.mxu2 %vm6139_vm15, %v6364_v5 }
 0x6eb   : > { %v6162_v39 = vld [vmem:[#allocation3 + $0x50] ss:$2 sm:$0xff]  ;;  %v6170_v59 = vld [vmem:[#allocation3 + $0x51] ss:$2 sm:$0xff] }
 0x6ec   : > { %v6186_v25 = vmax.f32 %v6162_v39, %v6170_v59 }
 0x6f1   : > { %v6247_v32 = vpop.permute.xlu0 %6246 }
 0x6f2   : > { %6269 = vst.msk [vmem:[#allocation4 + $0x30] sm:$0xff] %vm6266_vm3, %v6247_v32 }
 0x6f9   : > { %v6362_v26 = vld [vmem:[#allocation4 + $0x30] sm:$0xff] }
 0x6fa   : > { %6470 = vmatmul.f32.gmra.mxu3 %v6362_v26  ;;  %v6294_v26 = vld [vmem:[#allocation2 + $0x1f] sm:$0xff] }
 0x714   : > { %v6249_v48 = vpop.permute.xlu1 %6248 }
 0x715   : > { %6270 = vst.msk [vmem:[#allocation4 + $0x48] sm:$0xff] %vm6266_vm3, %v6249_v48 }
 0x717   : > { %v6014_v27 = vpop.f32.mrf.mxu1 }
 0x718   : > { %v6015_v63 = vadd.f32 %v12274_v2, %v6014_v27 }
 0x71a   : > { %v6080_v6 = vadd.f32 %v6079_v54, %v6015_v63 }
 0x71c   : > { %vm6103_vm10 = vcmp.gt.f32.partialorder %v6080_v6, 0.0  ;;  %v6119_v29 = vmul.f32 0.01, %v6080_v6  ;;  %v6365_v55 = vld [vmem:[#allocation4 + $0x48] sm:$0xff] }
 0x71d   : > { %6473 = vmatmul.f32.gmra.mxu3 %v6365_v55  ;;  %v6409_v55 = vld [vmem:[%s13161_s7 + $0xe8] sm:$0xff] }
 0x71e   : > { %v6135_v0 = vsel %vm6103_vm10, %v6080_v6, %v6119_v29  ;;  %v6411_v6 = vld [vmem:[%s13161_s7 + $0xf8] sm:$0xff]  ;;  %v6410_v29 = vld [vmem:[%s13161_s7 + $0xf0] sm:$0xff]  ;;  %vm7001_vm10 = vcmask 1042434  }
 0x71f   : > { %6152 = vst.msk [vmem:[#allocation3 + $0x60] sm:$0xff] %vm6139_vm15, %v6135_v0  ;;  %6489 = vmatpush.msrb.mxu3 %v6411_v6  ;;  %v6408_v0 = vld [vmem:[%s13161_s7 + $0xe0] sm:$0xff] }
 0x721   : > { %6490 = vmatpush.msrb.mxu3 %v6410_v29 }
 0x723   : > { %6491 = vmatpush.msrb.mxu3 %v6409_v55 }
 0x725   : > { %6492 = vmatpush.msrb.mxu3 %v6408_v0 }
 0x726   : > { %v6178_v51 = vld [vmem:[#allocation3 + $0x52] ss:$2 sm:$0xff] }
 0x727   : > { %v6194_v1 = vmax.f32 %v6186_v25, %v6178_v51  ;;  %v6407_v25 = vld [vmem:[%s13161_s7 + $0xd8] sm:$0xff]  ;;  %v6406_v51 = vld [vmem:[%s13161_s7 + $0xd0] sm:$0xff] }
 0x728   : > { %6493 = vmatpush.msrb.mxu3 %v6407_v25 }
 0x729   : > { %6205 = vst.msk [vmem:[#allocation2 + $0x32] sm:$0xff] %vm6139_vm15, %v6194_v1  ;;  %v6405_v1 = vld [vmem:[%s13161_s7 + $0xc8] sm:$0xff] }
 0x72a   : > { %6494 = vmatpush.msrb.mxu3 %v6406_v51 }
 0x72c   : > { %6495 = vmatpush.msrb.mxu3 %v6405_v1 }
 0x730   : > { %v6231_v52 = vld [vmem:[#allocation2 + $0x2d] sm:$0xff] }
 0x731   : > { %v6343_v14 = vld [vmem:[#allocation2 + $0x2c] sm:$0xff]  ;;  %6252 = vrot.lane.b32.xlu0 %v6231_v52, %s10232_s10  ;;  %v6404_v52 = vld [vmem:[%s13161_s7 + $0xc0] sm:$0xff] }
 0x732   : > { %6351 = vst.msk [vmem:[#allocation4 + $0x58] sm:$0xff] %vm6139_vm15, %v6343_v14  ;;  %v6216_v30 = vld [vmem:[#allocation2 + $0x30] sm:$0xff]  ;;  %v6017_v42 = vpop.f32.mrf.mxu1  ;;  %6496 = vmatpush.msrb.mxu3 %v6404_v52 }
 0x733   : > { %v6281_v12 = vld [vmem:[#allocation2 + $0x32] sm:$0xff]  ;;  %6224 = vst.msk [vmem:[#allocation4 + $0x90] sm:$0xff] %vm6139_vm15, %v6216_v30  ;;  %v6018_v34 = vadd.f32 %v12274_v2, %v6017_v42  ;;  %v6401_v42 = vld [vmem:[%s13161_s7 + $0xa8] sm:$0xff] }
 0x734   : > { %v12447_v56 = vld [vmem:[#allocation2 + $0x2f] sm:$0xff]  ;;  %6289 = vst.msk [vmem:[#allocation4 + $0x80] sm:$0xff] %vm6139_vm15, %v6281_v12  ;;  %v6403_v30 = vld [vmem:[%s13161_s7 + $0xb8] sm:$0xff] }
 0x735   : > { %6629 = vst.msk [vmem:[#allocation2 + $0x29] sm:$0xff] %vm6139_vm15, %v13251_v13  ;;  %v6083_v36 = vadd.f32 %v6082_v15, %v6018_v34  ;;  %v6402_v12 = vld [vmem:[%s13161_s7 + $0xb0] sm:$0xff]  ;;  %6497 = vmatpush.msrb.mxu3 %v6403_v30  ;;  %v6400_v34 = vld [vmem:[%s13161_s7 + $0xa0] sm:$0xff] }
 0x736   : > { %6630 = vst.msk [vmem:[#allocation2 + $0x31] sm:$0x3] %vm6198_vm0, %v13251_v13  ;;  %v6398_v15 = vld [vmem:[%s13161_s7 + $0x90] sm:$0xff] }
 0x737   : > { %vm6104_vm12 = vcmp.gt.f32.partialorder %v6083_v36, 0.0  ;;  %v6120_v20 = vmul.f32 0.01, %v6083_v36  ;;  %6498 = vmatpush.msrb.mxu3 %v6402_v12 }
 0x739   : > { %v6367_v40 = vld [vmem:[#allocation4 + $0x58] sm:$0xff]  ;;  %v6136_v28 = vsel %vm6104_vm12, %v6083_v36, %v6120_v20  ;;  %6308 = vrot.lane.b32.xlu0 %v6292_v3, %s10232_s10  ;;  %6499 = vmatpush.msrb.mxu3 %v6401_v42  ;;  %v6397_v36 = vld [vmem:[%s13161_s7 + $0x88] sm:$0xff]  ;;  %v6396_v20 = vld [vmem:[%s13161_s7 + $0x80] sm:$0xff]  ;;  %vm7003_vm12 = vcmask 1041408  }
 0x73a   : > { %v6251_v7 = vpop.permute.xlu2 %6250  ;;  %9512 = vmatmul.msk.f32.gmra.mxu2 %vm6139_vm15, %v6367_v40  ;;  %6153 = vst.msk [vmem:[#allocation3 + $0x68] sm:$0xff] %vm6139_vm15, %v6136_v28 }
 0x73b   : > { %6271 = vst.msk [vmem:[#allocation4 + $0x60] sm:$0xff] %vm6266_vm3, %v6251_v7  ;;  %6500 = vmatpush.msrb.mxu3 %v6400_v34 }
 0x73e   : > { %v6020_v61 = vpop.f32.mrf.mxu1 }
 0x73f   : > { %v6021_v21 = vadd.f32 %v12274_v2, %v6020_v61 }
 0x741   : > { %v6086_v35 = vadd.f32 %v6085_v60, %v6021_v21  ;;  %6314 = vrot.lane.b32.xlu0 %v6295_v62, %s10232_s10  ;;  %v6163_v49 = vld [vmem:[#allocation3 + $0x60] ss:$2 sm:$0xff]  ;;  %v6171_v19 = vld [vmem:[#allocation3 + $0x61] ss:$2 sm:$0xff] }
 0x742   : > { %v6368_v13 = vld [vmem:[#allocation4 + $0x60] sm:$0xff]  ;;  %v6187_v11 = vmax.f32 %v6163_v49, %v6171_v19 }
 0x743   : > { %6476 = vmatmul.f32.gmra.mxu3 %v6368_v13  ;;  %vm6105_vm0 = vcmp.gt.f32.partialorder %v6086_v35, 0.0  ;;  %v6121_v44 = vmul.f32 0.01, %v6086_v35 }
 0x745   : > { %v6137_v17 = vsel %vm6105_vm0, %v6086_v35, %v6121_v44  ;;  %vm9130_vm0 = vcmask 916480  }
 0x746   : > { %6154 = vst.msk [vmem:[#allocation3 + $0x70] sm:$0xff] %vm6139_vm15, %v6137_v17  ;;  %v6023_v4 = vpop.f32.mrf.mxu1 }
 0x747   : > { %v6024_v8 = vadd.f32 %v12274_v2, %v6023_v4 }
 0x749   : > { %v6089_v38 = vadd.f32 %v6088_v24, %v6024_v8  ;;  %v6347_v24 = vld [vmem:[#allocation2 + $0x4c] sm:$0x7f] }
 0x74a   : > { %6355 = vst.msk [vmem:[#allocation4 + $0xb8] sm:$0x7f] %vm6155_vm14, %v6347_v24 }
 0x74b   : > { %vm6106_vm11 = vcmp.gt.f32.partialorder %v6089_v38, 0.0  ;;  %v6122_v43 = vmul.f32 0.01, %v6089_v38 }
 0x74d   : > { %v6179_v46 = vld [vmem:[#allocation3 + $0x62] ss:$2 sm:$0xff]  ;;  %v6138_v57 = vsel %vm6106_vm11, %v6089_v38, %v6122_v43  ;;  %vm9229_vm11 = vcmask 1043456  }
 0x74e   : > { %v6195_v45 = vmax.f32 %v6187_v11, %v6179_v46  ;;  %6156 = vst.msk [vmem:[#allocation3 + $0x78] sm:$0x7f] %vm6155_vm14, %v6138_v57 }
 0x750   : > { %6206 = vst.msk [vmem:[#allocation2 + $0x3a] sm:$0xff] %vm6139_vm15, %v6195_v45 }
 0x751   : > { %v6379_v19 = vld [vmem:[#allocation4 + $0xb8] sm:$0x7f] }
 0x755   : > { %v6164_v22 = vld [vmem:[#allocation3 + $0x70] ss:$2 sm:$0x7f]  ;;  %v6172_v53 = vld [vmem:[#allocation3 + $0x71] ss:$2 sm:$0x7f] }
 0x756   : > { %v6188_v37 = vmax.f32 %v6164_v22, %v6172_v53  ;;  %v6180_v33 = vld [vmem:[#allocation3 + $0x72] ss:$2 sm:$0x7f] }
 0x757   : > { %v6232_v2 = vld [vmem:[#allocation2 + $0x35] sm:$0xff] }
 0x758   : > { %v6344_v16 = vld [vmem:[#allocation2 + $0x34] sm:$0xff]  ;;  %v6196_v9 = vmax.f32 %v6188_v37, %v6180_v33  ;;  %6254 = vrot.lane.b32.xlu1 %v6232_v2, %s10232_s10 }
 0x759   : > { %6352 = vst.msk [vmem:[#allocation4 + $0x70] sm:$0xff] %vm6139_vm15, %v6344_v16  ;;  %v6217_v23 = vld [vmem:[#allocation2 + $0x38] sm:$0x7f]  ;;  %v12548_v16 = vld [vmem:[#allocation13] ss:$0 sm:$0xff] }
 0x75a   : > { %v6282_v58 = vld [vmem:[#allocation2 + $0x3a] sm:$0xff]  ;;  %6225 = vst.msk [vmem:[#allocation4 + $0xa8] sm:$0x7f] %vm6155_vm14, %v6217_v23 }
 0x75b   : > { %6207 = vst.msk [vmem:[#allocation2 + $0x42] sm:$0x7f] %vm6155_vm14, %v6196_v9  ;;  %v6297_v63 = vld [vmem:[#allocation2 + $0x37] sm:$0xff]  ;;  %v6547_v9 = vpop.f32.mrf.mxu2 }
 0x75c   : > { %6290 = vst.msk [vmem:[#allocation4 + $0x98] sm:$0xff] %vm6139_vm15, %v6282_v58 }
 0x75e   : > { %v6465_v46 = vpop.f32.mrf.mxu3 }
 0x75f   : > { %v6466_v23 = vadd.f32 %v12548_v16, %v6465_v46 }
 0x760   : > { %v6370_v18 = vld [vmem:[#allocation4 + $0x70] sm:$0xff]  ;;  %6310 = vrot.lane.b32.xlu1 %v6293_v31, %s10232_s10 }
 0x761   : > { %9513 = vmatmul.msk.f32.gmra.mxu2 %vm6139_vm15, %v6370_v18 }
 0x762   : > { %v6298_v50 = vld [vmem:[#allocation2 + $0x3f] sm:$0xff]  ;;  %v6299_v48 = vld [vmem:[#allocation2 + $0x47] sm:$0x7f] }
 0x763   : > { %v6233_v41 = vld [vmem:[#allocation2 + $0x3d] sm:$0x7f]  ;;  %6320 = vrot.lane.b32.xlu0 %v6298_v50, %s10232_s10  ;;  %v6346_v47 = vld [vmem:[#allocation2 + $0x44] sm:$0xff] }
 0x764   : > { %v6345_v10 = vld [vmem:[#allocation2 + $0x3c] sm:$0xff]  ;;  %6256 = vrot.lane.b32.xlu2 %v6233_v41, %s10232_s10  ;;  %6354 = vst.msk [vmem:[#allocation4 + $0xa0] sm:$0xff] %vm6139_vm15, %v6346_v47  ;;  %v6550_v41 = vpop.f32.mrf.mxu2 }
 0x765   : > { %6353 = vst.msk [vmem:[#allocation4 + $0x88] sm:$0xff] %vm6139_vm15, %v6345_v10  ;;  %v6283_v5 = vld [vmem:[#allocation2 + $0x42] sm:$0x7f] }
 0x766   : > { %6291 = vst.msk [vmem:[#allocation4 + $0xb0] sm:$0x7f] %vm6155_vm14, %v6283_v5  ;;  %v6468_v57 = vpop.f32.mrf.mxu3 }
 0x767   : > { %v6469_v10 = vadd.f32 %v12548_v16, %v6468_v57 }
 0x768   : > { %6316 = vrot.lane.b32.xlu1 %v12447_v56, %s10232_s10  ;;  %v6399_v56 = vld [vmem:[%s13161_s7 + $0x98] sm:$0xff] }
 0x769   : > { %6501 = vmatpush.msrb.mxu3 %v6399_v56 }
 0x76b   : > { %v6376_v27 = vld [vmem:[#allocation4 + $0xa0] sm:$0xff]  ;;  %6502 = vmatpush.msrb.mxu3 %v6398_v15 }
 0x76c   : > { %v6373_v32 = vld [vmem:[#allocation4 + $0x88] sm:$0xff]  ;;  %6312 = vrot.lane.b32.xlu2 %v6294_v26, %s10232_s10 }
 0x76d   : > { %9514 = vmatmul.msk.f32.gmra.mxu2 %vm6139_vm15, %v6373_v32  ;;  %6503 = vmatpush.msrb.mxu3 %v6397_v36 }
 0x76f   : > { %6504 = vmatpush.msrb.mxu3 %v6396_v20 }
 0x770   : > { %6322 = vrot.lane.b32.xlu1 %v6299_v48, %s10232_s10 }
 0x774   : > { %6318 = vrot.lane.b32.xlu2 %v6297_v63, %s10232_s10 }
 0x775   : > { %9515 = vmatmul.msk.f32.gmra.mxu2 %vm6139_vm15, %v6376_v27  ;;  %v6553_v27 = vpop.f32.mrf.mxu2 }
 0x77d   : > { %9516 = vmatmul.msk.f32.gmra.mxu2 %vm6139_vm15, %v6379_v19  ;;  %v6471_v45 = vpop.f32.mrf.mxu3 }
 0x77e   : > { %v6472_v63 = vadd.f32 %v12548_v16, %v6471_v45 }
 0x7a0   : > { %v6474_v22 = vpop.f32.mrf.mxu3 }
 0x7a3   : > { %v6253_v54 = vpop.permute.xlu0 %6252 }
 0x7a4   : > { %6272 = vst.msk [vmem:[#allocation4 + $0x78] sm:$0xff] %vm6266_vm3, %v6253_v54 }
 0x7ab   : > { %v6309_v39 = vpop.permute.xlu0 %6308  ;;  %v6371_v59 = vld [vmem:[#allocation4 + $0x78] sm:$0xff] }
 0x7ac   : > { %6332 = vst.msk [vmem:[#allocation4 + $0x8] sm:$0xff] %vm6266_vm3, %v6309_v39  ;;  %6479 = vmatmul.f32.gmra.mxu3 %v6371_v59  ;;  %v6475_v59 = vadd.f32 %v12548_v16, %v6474_v22 }
 0x7b3   : > { %v6315_v14 = vpop.permute.xlu0 %6314  ;;  %v6357_v44 = vld [vmem:[#allocation4 + $0x8] sm:$0xff] }
 0x7b4   : > { %6335 = vst.msk [vmem:[#allocation4 + $0x50] sm:$0xff] %vm6266_vm3, %v6315_v14 }
 0x7bb   : > { %v6366_v8 = vld [vmem:[#allocation4 + $0x50] sm:$0xff] }
 0x7bd   : > { %v6556_v39 = vpop.f32.mrf.mxu2 }
 0x7be   : > { %v6257_v62 = vpop.permute.xlu2 %6256 }
 0x7bf   : > { %6275 = vst.msk [vmem:[#allocation4 + $0xa8] sm:$0x7f] %vm6274_vm9, %v6257_v62 }
 0x7c6   : > { %v6313_v7 = vpop.permute.xlu2 %6312  ;;  %v6377_v35 = vld [vmem:[#allocation4 + $0xa8] sm:$0x7f]  ;;  %v6477_v53 = vpop.f32.mrf.mxu3 }
 0x7c7   : > { %6334 = vst.msk [vmem:[#allocation4 + $0x38] sm:$0xff] %vm6266_vm3, %v6313_v7  ;;  %v6478_v62 = vadd.f32 %v12548_v16, %v6477_v53 }
 0x7ca   : > { %v6255_v40 = vpop.permute.xlu1 %6254 }
 0x7cb   : > { %6273 = vst.msk [vmem:[#allocation4 + $0x90] sm:$0xff] %vm6266_vm3, %v6255_v40 }
 0x7ce   : > { %v6319_v3 = vpop.permute.xlu2 %6318  ;;  %v6363_v4 = vld [vmem:[#allocation4 + $0x38] sm:$0xff] }
 0x7cf   : > { %6337 = vst.msk [vmem:[#allocation4 + $0x80] sm:$0xff] %vm6266_vm3, %v6319_v3 }
 0x7d2   : > { %v6311_v28 = vpop.permute.xlu1 %6310  ;;  %v6374_v61 = vld [vmem:[#allocation4 + $0x90] sm:$0xff] }
 0x7d3   : > { %6333 = vst.msk [vmem:[#allocation4 + $0x20] sm:$0xff] %vm6266_vm3, %v6311_v28  ;;  %6482 = vmatmul.f32.gmra.mxu3 %v6374_v61 }
 0x7d5   : > { %v6321_v21 = vpop.permute.xlu0 %6320 }
 0x7d6   : > { %6338 = vst.msk [vmem:[#allocation4 + $0x98] sm:$0xff] %vm6266_vm3, %v6321_v21  ;;  %v6372_v38 = vld [vmem:[#allocation4 + $0x80] sm:$0xff] }
 0x7da   : > { %v6317_v60 = vpop.permute.xlu1 %6316  ;;  %v6360_v17 = vld [vmem:[#allocation4 + $0x20] sm:$0xff] }
 0x7db   : > { %6336 = vst.msk [vmem:[#allocation4 + $0x68] sm:$0xff] %vm6266_vm3, %v6317_v60  ;;  %6485 = vmatmul.f32.gmra.mxu3 %v6377_v35 }
 0x7dd   : > { %v6375_v43 = vld [vmem:[#allocation4 + $0x98] sm:$0xff] }
 0x7e2   : > { %v6323_v13 = vpop.permute.xlu1 %6322  ;;  %v6369_v49 = vld [vmem:[#allocation4 + $0x68] sm:$0xff] }
 0x7e3   : > { %6339 = vst.msk [vmem:[#allocation4 + $0xb0] sm:$0x7f] %vm6274_vm9, %v6323_v13  ;;  %6505 = vmatmul.f32.vlgmr.msrb.gmra.mxu3 %v6357_v44 }
 0x7e4   : > { %v6559_v42 = vpop.f32.mrf.mxu2 }
 0x7ea   : > { %v6378_v11 = vld [vmem:[#allocation4 + $0xb0] sm:$0x7f] }
 0x7eb   : > { %6508 = vmatmul.f32.gmra.mxu3 %v6360_v17 }
 0x7f0   : > { %v6562_v28 = vpop.f32.mrf.mxu2 }
 0x7f3   : > { %6511 = vmatmul.f32.gmra.mxu3 %v6363_v4 }
 0x7f8   : > { %v6565_v46 = vpop.f32.mrf.mxu2 }
 0x7fb   : > { %6514 = vmatmul.f32.gmra.mxu3 %v6366_v8 }
 0x803   : > { %6517 = vmatmul.f32.gmra.mxu3 %v6369_v49 }
 0x80b   : > { %6520 = vmatmul.f32.gmra.mxu3 %v6372_v38 }
 0x813   : > { %6523 = vmatmul.f32.gmra.mxu3 %v6375_v43 }
 0x81b   : > { %6526 = vmatmul.f32.gmra.mxu3 %v6378_v11 }
 0x82f   : > { %v6480_v37 = vpop.f32.mrf.mxu3 }
 0x830   : > { %v6481_v61 = vadd.f32 %v12548_v16, %v6480_v37 }
 0x856   : > { %v12544_v33 = vpop.f32.mrf.mxu3 }
 0x857   : > { %v6484_v38 = vadd.f32 %v12548_v16, %v12544_v33 }
 0x85e   : > { %v12546_v2 = vpop.f32.mrf.mxu3 }
 0x866   : > { %v6506_v58 = vpop.f32.mrf.mxu3 }
 0x867   : > { %v6507_v18 = vadd.f32 %v6506_v58, %v6466_v23  ;;  %v6568_v58 = vpop.f32.mrf.mxu2 }
 0x869   : > { %v6548_v31 = vadd.f32 %v6547_v9, %v6507_v18  ;;  %v6487_v9 = vadd.f32 %v12548_v16, %v12546_v2  ;;  %v6730_v2 = vld [vmem:[%s13163_s9 + $0x78] sm:$0xff]  ;;  %v6729_v16 = vld [vmem:[%s13163_s9 + $0x70] sm:$0xff] }
 0x86a   : > { %6771 = vmatpush.msrb.mxu1 %v6730_v2  ;;  %v6748_v2 = vld [vmem:[%s13163_s9 + $0x108] sm:$0xff] }
 0x86b   : > { %vm6571_vm13 = vcmp.gt.f32.partialorder %v6548_v31, 0.0  ;;  %v6579_v50 = vmul.f32 0.01, %v6548_v31 }
 0x86c   : > { %6772 = vmatpush.msrb.mxu1 %v6729_v16  ;;  %v6747_v16 = vld [vmem:[%s13163_s9 + $0x100] sm:$0xff] }
 0x86d   : > { %v6587_v47 = vsel %vm6571_vm13, %v6548_v31, %v6579_v50  ;;  %vm9253_vm13 = vcmask 0  }
 0x86e   : > { %6595 = vst.msk [vmem:[#allocation3] sm:$0xff] %vm6139_vm15, %v6587_v47  ;;  %v6509_v5 = vpop.f32.mrf.mxu3 }
 0x86f   : > { %v6510_v32 = vadd.f32 %v6509_v5, %v6469_v10 }
 0x871   : > { %v6551_v26 = vadd.f32 %v6550_v41, %v6510_v32 }
 0x873   : > { %vm6572_vm4 = vcmp.gt.f32.partialorder %v6551_v26, 0.0  ;;  %v6580_v48 = vmul.f32 0.01, %v6551_v26 }
 0x875   : > { %v6588_v54 = vsel %vm6572_vm4, %v6551_v26, %v6580_v48  ;;  %v6728_v48 = vld [vmem:[%s13163_s9 + $0x68] sm:$0xff] }
 0x876   : > { %6596 = vst.msk [vmem:[#allocation3 + $0x8] sm:$0xff] %vm6139_vm15, %v6588_v54  ;;  %v6512_v6 = vpop.f32.mrf.mxu3  ;;  %6773 = vmatpush.msrb.mxu1 %v6728_v48 }
 0x877   : > { %v6513_v29 = vadd.f32 %v6512_v6, %v6472_v63  ;;  %v6727_v6 = vld [vmem:[%s13163_s9 + $0x60] sm:$0xff] }
 0x878   : > { %6774 = vmatpush.msrb.mxu1 %v6727_v6 }
 0x879   : > { %v6554_v55 = vadd.f32 %v6553_v27, %v6513_v29 }
 0x87b   : > { %vm6573_vm6 = vcmp.gt.f32.partialorder %v6554_v55, 0.0  ;;  %v6581_v0 = vmul.f32 0.01, %v6554_v55 }
 0x87d   : > { %v6589_v25 = vsel %vm6573_vm6, %v6554_v55, %v6581_v0  ;;  %v6603_v52 = vld [vmem:[#allocation3] ss:$2 sm:$0xff]  ;;  %v6607_v14 = vld [vmem:[#allocation3 + $0x1] ss:$2 sm:$0xff]  ;;  %v6725_v0 = vld [vmem:[%s13163_s9 + $0x50] sm:$0xff] }
 0x87e   : > { %6597 = vst.msk [vmem:[#allocation3 + $0x10] sm:$0xff] %vm6139_vm15, %v6589_v25  ;;  %v6515_v51 = vpop.f32.mrf.mxu3  ;;  %v6615_v34 = vmax.f32 %v6603_v52, %v6607_v14  ;;  %v6726_v55 = vld [vmem:[%s13163_s9 + $0x58] sm:$0xff] }
 0x87f   : > { %v6516_v1 = vadd.f32 %v6515_v51, %v6475_v59  ;;  %6775 = vmatpush.msrb.mxu1 %v6726_v55 }
 0x881   : > { %v6557_v30 = vadd.f32 %v6556_v39, %v6516_v1  ;;  %v6724_v39 = vld [vmem:[%s13163_s9 + $0x48] sm:$0xff]  ;;  %6776 = vmatpush.msrb.mxu1 %v6725_v0  ;;  %v6723_v1 = vld [vmem:[%s13163_s9 + $0x40] sm:$0xff] }
 0x883   : > { %vm6574_vm1 = vcmp.gt.f32.partialorder %v6557_v30, 0.0  ;;  %v6582_v12 = vmul.f32 0.01, %v6557_v30  ;;  %6777 = vmatpush.msrb.mxu1 %v6724_v39 }
 0x885   : > { %v6611_v56 = vld [vmem:[#allocation3 + $0x2] ss:$2 sm:$0xff]  ;;  %v6590_v15 = vsel %vm6574_vm1, %v6557_v30, %v6582_v12  ;;  %6778 = vmatpush.msrb.mxu1 %v6723_v1 }
 0x886   : > { %v6619_v36 = vmax.f32 %v6615_v34, %v6611_v56  ;;  %6598 = vst.msk [vmem:[#allocation3 + $0x18] sm:$0xff] %vm6139_vm15, %v6590_v15  ;;  %v6518_v20 = vpop.f32.mrf.mxu3  ;;  %v6721_v56 = vld [vmem:[%s13163_s9 + $0x30] sm:$0xff]  ;;  %v6720_v15 = vld [vmem:[%s13163_s9 + $0x28] sm:$0xff] }
 0x887   : > { %v6519_v7 = vadd.f32 %v6518_v20, %v6478_v62 }
 0x888   : > { %6625 = vst.msk [vmem:[#allocation2 + $0xa] sm:$0xff] %vm6139_vm15, %v6619_v36  ;;  %v6719_v36 = vld [vmem:[%s13163_s9 + $0x20] sm:$0xff] }
 0x889   : > { %v6560_v40 = vadd.f32 %v6559_v42, %v6519_v7  ;;  %v6722_v42 = vld [vmem:[%s13163_s9 + $0x38] sm:$0xff] }
 0x88a   : > { %6779 = vmatpush.msrb.mxu1 %v6722_v42  ;;  %v7287_v42 = vld [vmem:[#allocation16 + $0x3b8] sm:$0xff] }
 0x88b   : > { %vm6575_vm5 = vcmp.gt.f32.partialorder %v6560_v40, 0.0  ;;  %v6583_v3 = vmul.f32 0.01, %v6560_v40 }
 0x88c   : > { %6780 = vmatpush.msrb.mxu1 %v6721_v56  ;;  %v6906_v56 = vld [vmem:[#allocation16 + $0xe8] sm:$0xff] }
 0x88d   : > { %v6591_v21 = vsel %vm6575_vm5, %v6560_v40, %v6583_v3  ;;  %v6604_v4 = vld [vmem:[#allocation3 + $0x10] ss:$2 sm:$0xff]  ;;  %v6608_v8 = vld [vmem:[#allocation3 + $0x11] ss:$2 sm:$0xff]  ;;  %6940 = vmatpush.msra.mxu2 %v6906_v56  ;;  %v6879_v56 = vld [vmem:[#allocation16 + $0x10] sm:$0xff] }
 0x88e   : > { %6599 = vst.msk [vmem:[#allocation3 + $0x20] sm:$0xff] %vm6139_vm15, %v6591_v21  ;;  %v6521_v60 = vpop.f32.mrf.mxu3  ;;  %v6616_v19 = vmax.f32 %v6604_v4, %v6608_v8  ;;  %6781 = vmatpush.msrb.mxu1 %v6720_v15  ;;  %v6745_v4 = vld [vmem:[%s13163_s9 + $0xf0] sm:$0xff]  ;;  %v6744_v8 = vld [vmem:[%s13163_s9 + $0xe8] sm:$0xff] }
 0x88f   : > { %v6522_v35 = vadd.f32 %v6521_v60, %v6481_v61  ;;  %v6639_v13 = vld [vmem:[#allocation2 + $0x5] sm:$0xff]  ;;  %v6718_v60 = vld [vmem:[%s13163_s9 + $0x18] sm:$0xff] }
 0x890   : > { %v6632_v44 = vld [vmem:[#allocation2 + $0x8] sm:$0xff]  ;;  %6647 = vrot.lane.b32.xlu2 %v6639_v13, %s10232_s10  ;;  %6782 = vmatpush.msrb.mxu1 %v6719_v36  ;;  %v6902_v36 = vld [vmem:[#allocation16 + $0xc8] sm:$0xff] }
 0x891   : > { %v6663_v17 = vld [vmem:[#allocation2 + $0xa] sm:$0xff]  ;;  %6636 = vst.msk [vmem:[#allocation4 + $0x18] sm:$0xff] %vm6139_vm15, %v6632_v44  ;;  %v6563_v24 = vadd.f32 %v6562_v28, %v6522_v35  ;;  %v6715_v44 = vld [vmem:[%s13163_s9] sm:$0xff]  ;;  %6941 = vmatpush.msra.mxu2 %v6902_v36 }
 0x892   : > { %6667 = vst.msk [vmem:[#allocation4 + $0x8] sm:$0xff] %vm6139_vm15, %v6663_v17  ;;  %v6717_v35 = vld [vmem:[%s13163_s9 + $0x10] sm:$0xff]  ;;  %6783 = vmatpush.msrb.mxu1 %v6718_v60  ;;  %v6716_v13 = vld [vmem:[%s13163_s9 + $0x8] sm:$0xff]  ;;  %v6746_v17 = vld [vmem:[%s13163_s9 + $0xf8] sm:$0xff] }
 0x893   : > { %vm6576_vm2 = vcmp.gt.f32.partialorder %v6563_v24, 0.0  ;;  %v6584_v49 = vmul.f32 0.01, %v6563_v24  ;;  %6800 = vmatpush.msra.mxu3 %v6746_v17  ;;  %v6901_v15 = vld [vmem:[#allocation16 + $0xc0] sm:$0xff]  ;;  %v6894_v60 = vld [vmem:[#allocation16 + $0x88] sm:$0xff]  ;;  %v7283_v17 = vld [vmem:[#allocation16 + $0x398] sm:$0xff] }
 0x894   : > { %6784 = vmatpush.msrb.mxu1 %v6717_v35  ;;  %v6889_v35 = vld [vmem:[#allocation16 + $0x60] sm:$0xff]  ;;  %v7015_v36 = vld [vmem:[#allocation16 + $0x138] sm:$0xff] }
 0x895   : > { %v6612_v43 = vld [vmem:[#allocation3 + $0x12] ss:$2 sm:$0xff]  ;;  %v6592_v11 = vsel %vm6576_vm2, %v6563_v24, %v6584_v49  ;;  %6801 = vmatpush.msra.mxu3 %v6745_v4  ;;  %v6743_v24 = vld [vmem:[%s13163_s9 + $0xe0] sm:$0xff] }
 0x896   : > { %v6620_v57 = vmax.f32 %v6616_v19, %v6612_v43  ;;  %6600 = vst.msk [vmem:[#allocation3 + $0x28] sm:$0xff] %vm6139_vm15, %v6592_v11  ;;  %v6524_v45 = vpop.f32.mrf.mxu3  ;;  %6785 = vmatpush.msrb.mxu1 %v6716_v13  ;;  %v6742_v49 = vld [vmem:[%s13163_s9 + $0xd8] sm:$0xff]  ;;  %v6741_v19 = vld [vmem:[%s13163_s9 + $0xd0] sm:$0xff]  ;;  %v6739_v43 = vld [vmem:[%s13163_s9 + $0xc0] sm:$0xff] }
 0x897   : > { %v6525_v22 = vadd.f32 %v6524_v45, %v6484_v38  ;;  %6802 = vmatpush.msra.mxu3 %v6744_v8  ;;  %v6740_v38 = vld [vmem:[%s13163_s9 + $0xc8] sm:$0xff]  ;;  %v6737_v45 = vld [vmem:[%s13163_s9 + $0xb0] sm:$0xff] }
 0x898   : > { %6626 = vst.msk [vmem:[#allocation2 + $0x12] sm:$0xff] %vm6139_vm15, %v6620_v57  ;;  %6786 = vmatpush.msrb.mxu1 %v6715_v44  ;;  %v6738_v57 = vld [vmem:[%s13163_s9 + $0xb8] sm:$0xff]  ;;  %v7024_v44 = vld [vmem:[#allocation16 + $0x180] sm:$0xff] }
 0x899   : > { %v6566_v53 = vadd.f32 %v6565_v46, %v6525_v22  ;;  %6803 = vmatpush.msra.mxu3 %v6743_v24  ;;  %v6736_v22 = vld [vmem:[%s13163_s9 + $0xa8] sm:$0xff]  ;;  %v6890_v13 = vld [vmem:[#allocation16 + $0x68] sm:$0xff] }
 0x89a   : > { %v6885_v4 = vld [vmem:[#allocation16 + $0x40] sm:$0xff]  ;;  %v6886_v8 = vld [vmem:[#allocation16 + $0x48] sm:$0xff] }
 0x89b   : > { %vm6577_vm8 = vcmp.gt.f32.partialorder %v6566_v53, 0.0  ;;  %v6585_v37 = vmul.f32 0.01, %v6566_v53  ;;  %6804 = vmatpush.msra.mxu3 %v6742_v49  ;;  %v7020_v24 = vld [vmem:[#allocation16 + $0x160] sm:$0xff]  ;;  %v7279_v49 = vld [vmem:[#allocation16 + $0x378] sm:$0xff] }
 0x89d   : > { %v6593_v23 = vsel %vm6577_vm8, %v6566_v53, %v6585_v37  ;;  %v6605_v10 = vld [vmem:[#allocation3 + $0x20] ss:$2 sm:$0xff]  ;;  %v6609_v47 = vld [vmem:[#allocation3 + $0x21] ss:$2 sm:$0xff]  ;;  %6805 = vmatpush.msra.mxu3 %v6741_v19  ;;  %v6881_v19 = vld [vmem:[#allocation16 + $0x20] sm:$0xff] }
 0x89e   : > { %6601 = vst.msk [vmem:[#allocation3 + $0x30] sm:$0xff] %vm6139_vm15, %v6593_v23  ;;  %v6527_v33 = vpop.f32.mrf.mxu3  ;;  %v6617_v26 = vmax.f32 %v6605_v10, %v6609_v47  ;;  %v6735_v53 = vld [vmem:[%s13163_s9 + $0xa0] sm:$0xff]  ;;  %v6734_v37 = vld [vmem:[%s13163_s9 + $0x98] sm:$0xff]  ;;  %v6732_v23 = vld [vmem:[%s13163_s9 + $0x88] sm:$0xff] }
 0x89f   : > { %v6528_v18 = vadd.f32 %v6527_v33, %v6487_v9  ;;  %v6640_v31 = vld [vmem:[#allocation2 + $0xd] sm:$0xff]  ;;  %6806 = vmatpush.msra.mxu3 %v6740_v38  ;;  %v6731_v33 = vld [vmem:[%s13163_s9 + $0x80] sm:$0xff]  ;;  %v6750_v10 = vld [vmem:[%s13163_s9 + $0x118] sm:$0xff] }
 0x8a0   : > { %v6633_v50 = vld [vmem:[#allocation2 + $0x10] sm:$0xff]  ;;  %6649 = vrot.lane.b32.xlu0 %v6640_v31, %s10232_s10  ;;  %v6752_v31 = vld [vmem:[%s13163_s9 + $0x128] sm:$0xff] }
 0x8a1   : > { %6637 = vst.msk [vmem:[#allocation4 + $0x30] sm:$0xff] %vm6139_vm15, %v6633_v50  ;;  %v6664_v41 = vld [vmem:[#allocation2 + $0x12] sm:$0xff]  ;;  %v6569_v5 = vadd.f32 %v6568_v58, %v6528_v18  ;;  %6807 = vmatpush.msra.mxu3 %v6739_v43  ;;  %v6751_v50 = vld [vmem:[%s13163_s9 + $0x120] sm:$0xff] }
 0x8a2   : > { %6668 = vst.msk [vmem:[#allocation4 + $0x20] sm:$0xff] %vm6139_vm15, %v6664_v41  ;;  %v6671_v29 = vld [vmem:[#allocation2 + $0xf] sm:$0xff]  ;;  %v6754_v58 = vld [vmem:[%s13163_s9 + $0x138] sm:$0xff] }
 0x8a3   : > { %vm6578_vm7 = vcmp.gt.f32.partialorder %v6569_v5, 0.0  ;;  %v6586_v32 = vmul.f32 0.01, %v6569_v5  ;;  %6808 = vmatpush.msra.mxu3 %v6738_v57  ;;  %v6733_v9 = vld [vmem:[%s13163_s9 + $0x90] sm:$0xff]  ;;  %6837 = vmatpush.msra.mxu1 %v6754_v58  ;;  %v6903_v58 = vld [vmem:[#allocation16 + $0xd0] sm:$0xff] }
 0x8a4   : > { %v6753_v18 = vld [vmem:[%s13163_s9 + $0x130] sm:$0xff] }
 0x8a5   : > { %v6613_v27 = vld [vmem:[#allocation3 + $0x22] ss:$2 sm:$0xff]  ;;  %v6594_v63 = vsel %vm6578_vm7, %v6569_v5, %v6586_v32  ;;  %6809 = vmatpush.msra.mxu3 %v6737_v45  ;;  %6838 = vmatpush.msra.mxu1 %v6753_v18  ;;  %v6749_v47 = vld [vmem:[%s13163_s9 + $0x110] sm:$0xff] }
 0x8a6   : > { %v6621_v54 = vmax.f32 %v6617_v26, %v6613_v27  ;;  %6602 = vst.msk [vmem:[#allocation3 + $0x38] sm:$0x7f] %vm6155_vm14, %v6594_v63  ;;  %v6882_v43 = vld [vmem:[#allocation16 + $0x28] sm:$0xff]  ;;  %v6877_v57 = vld [vmem:[#allocation16] sm:$0xff]  ;;  %v6904_v18 = vld [vmem:[#allocation16 + $0xd8] sm:$0xff] }
 0x8a7   : > { %6810 = vmatpush.msra.mxu3 %v6736_v22  ;;  %6839 = vmatpush.msra.mxu1 %v6752_v31  ;;  %v6878_v45 = vld [vmem:[#allocation16 + $0x8] sm:$0xff]  ;;  %v7012_v22 = vld [vmem:[#allocation16 + $0x120] sm:$0xff]  ;;  %v7039_v31 = vld [vmem:[#allocation16 + $0x1f8] sm:$0xff] }
 0x8a8   : > { %6627 = vst.msk [vmem:[#allocation2 + $0x1a] sm:$0xff] %vm6139_vm15, %v6621_v54  ;;  %6679 = vrot.lane.b32.xlu0 %v6671_v29, %s10232_s10  ;;  %v6698_v29 = vld [vmem:[#allocation2 + $0x2c] sm:$0x7f] }
 0x8a9   : > { %6811 = vmatpush.msra.mxu3 %v6735_v53  ;;  %6840 = vmatpush.msra.mxu1 %v6751_v50  ;;  %6702 = vst.msk [vmem:[#allocation4 + $0x58] sm:$0x7f] %vm6155_vm14, %v6698_v29  ;;  %v7271_v53 = vld [vmem:[#allocation16 + $0x338] sm:$0xff] }
 0x8aa   : > { %v7423_v50 = vld [vmem:[#allocation16 + $0x4f8] sm:$0xff] }
 0x8ab   : > { %6812 = vmatpush.msra.mxu3 %v6734_v37  ;;  %6841 = vmatpush.msra.mxu1 %v6750_v10  ;;  %v6907_v37 = vld [vmem:[#allocation16 + $0xf0] sm:$0xff]  ;;  %v6892_v29 = vld [vmem:[#allocation16 + $0x78] sm:$0xff] }
 0x8ad   : > { %v6606_v59 = vld [vmem:[#allocation3 + $0x30] ss:$2 sm:$0x7f]  ;;  %v6610_v25 = vld [vmem:[#allocation3 + $0x31] ss:$2 sm:$0x7f]  ;;  %6813 = vmatpush.msra.mxu3 %v6733_v9  ;;  %6842 = vmatpush.msra.mxu1 %v6749_v47 }
 0x8ae   : > { %v6618_v51 = vmax.f32 %v6606_v59, %v6610_v25  ;;  %v6614_v52 = vld [vmem:[#allocation3 + $0x32] ss:$2 sm:$0x7f] }
 0x8af   : > { %v6641_v14 = vld [vmem:[#allocation2 + $0x15] sm:$0xff]  ;;  %6814 = vmatpush.msra.mxu3 %v6732_v23  ;;  %6843 = vmatpush.msra.mxu1 %v6748_v2  ;;  %v7295_v59 = vld [vmem:[#allocation16 + $0x3f8] sm:$0xff]  ;;  %v7008_v23 = vld [vmem:[#allocation16 + $0x100] sm:$0xff] }
 0x8b0   : > { %v6634_v30 = vld [vmem:[#allocation2 + $0x18] sm:$0x7f]  ;;  %v6622_v12 = vmax.f32 %v6618_v51, %v6614_v52  ;;  %6651 = vrot.lane.b32.xlu1 %v6641_v14, %s10232_s10  ;;  %7367 = vmatpush.msrb.mxu0 %v7295_v59  ;;  %v6908_v9 = vld [vmem:[#allocation16 + $0xf8] sm:$0xff] }
 0x8b1   : > { %6638 = vst.msk [vmem:[#allocation4 + $0x48] sm:$0x7f] %vm6155_vm14, %v6634_v30  ;;  %v6665_v34 = vld [vmem:[#allocation2 + $0x1a] sm:$0xff]  ;;  %6815 = vmatpush.msra.mxu3 %v6731_v33  ;;  %6844 = vmatpush.msra.mxu1 %v6747_v16  ;;  %v6714_v30 = vld [vmem:[#allocation4 + $0x58] sm:$0x7f]  ;;  %v7267_v33 = vld [vmem:[#allocation16 + $0x318] sm:$0xff] }
 0x8b2   : > { %v6695_v62 = vld [vmem:[#allocation2 + $0x14] sm:$0xff]  ;;  %6669 = vst.msk [vmem:[#allocation4 + $0x38] sm:$0xff] %vm6139_vm15, %v6665_v34  ;;  %v7035_v2 = vld [vmem:[#allocation16 + $0x1d8] sm:$0xff] }
 0x8b3   : > { %6628 = vst.msk [vmem:[#allocation2 + $0x22] sm:$0x7f] %vm6155_vm14, %v6622_v12  ;;  %v6672_v20 = vld [vmem:[#allocation2 + $0x17] sm:$0xff]  ;;  %v7291_v12 = vld [vmem:[#allocation16 + $0x3d8] sm:$0xff] }
 0x8b4   : > { %6699 = vst.msk [vmem:[#allocation4 + $0x10] sm:$0xff] %vm6139_vm15, %v6695_v62  ;;  %7368 = vmatpush.msrb.mxu0 %v7291_v12  ;;  %v6905_v62 = vld [vmem:[#allocation16 + $0xe0] sm:$0xff]  ;;  %v7419_v16 = vld [vmem:[#allocation16 + $0x4d8] sm:$0xff] }
 0x8b5   : > { %6920 = vmatpush.msrb.mxu3 %v6905_v62  ;;  %v6888_v59 = vld [vmem:[#allocation16 + $0x58] sm:$0xff] }
 0x8b6   : > { %7369 = vmatpush.msrb.mxu0 %v7287_v42  ;;  %v6884_v12 = vld [vmem:[#allocation16 + $0x38] sm:$0xff] }
 0x8b7   : > { %6921 = vmatpush.msrb.mxu3 %v6901_v15  ;;  %v7019_v42 = vld [vmem:[#allocation16 + $0x158] sm:$0xff] }
 0x8b8   : > { %6681 = vrot.lane.b32.xlu1 %v6672_v20, %s10232_s10  ;;  %v7036_v20 = vld [vmem:[#allocation16 + $0x1e0] sm:$0xff]  ;;  %7370 = vmatpush.msrb.mxu0 %v7283_v17  ;;  %v6880_v15 = vld [vmem:[#allocation16 + $0x18] sm:$0xff] }
 0x8ba   : > { %v6674_v7 = vld [vmem:[#allocation2 + $0x27] sm:$0x7f]  ;;  %v6642_v40 = vld [vmem:[#allocation2 + $0x1d] sm:$0x7f]  ;;  %7371 = vmatpush.msrb.mxu0 %v7279_v49 }
 0x8bb   : > { %6685 = vrot.lane.b32.xlu0 %v6674_v7, %s10232_s10  ;;  %6653 = vrot.lane.b32.xlu2 %v6642_v40, %s10232_s10  ;;  %v6666_v3 = vld [vmem:[#allocation2 + $0x22] sm:$0x7f]  ;;  %v6897_v7 = vld [vmem:[#allocation16 + $0xa0] sm:$0xff]  ;;  %v6898_v40 = vld [vmem:[#allocation16 + $0xa8] sm:$0xff] }
 0x8bc   : > { %v6696_v28 = vld [vmem:[#allocation2 + $0x1c] sm:$0xff]  ;;  %6670 = vst.msk [vmem:[#allocation4 + $0x50] sm:$0x7f] %vm6155_vm14, %v6666_v3  ;;  %v6697_v61 = vld [vmem:[#allocation2 + $0x24] sm:$0xff]  ;;  %6922 = vmatpush.msrb.mxu3 %v6897_v7  ;;  %6942 = vmatpush.msra.mxu2 %v6898_v40 }
 0x8bd   : > { %6700 = vst.msk [vmem:[#allocation4 + $0x28] sm:$0xff] %vm6139_vm15, %v6696_v28  ;;  %v6673_v21 = vld [vmem:[#allocation2 + $0x1f] sm:$0xff]  ;;  %v6705_v51 = vld [vmem:[#allocation4 + $0x10] sm:$0xff] }
 0x8be   : > { %6701 = vst.msk [vmem:[#allocation4 + $0x40] sm:$0xff] %vm6139_vm15, %v6697_v61  ;;  %v7032_v3 = vld [vmem:[#allocation16 + $0x1c0] sm:$0xff]  ;;  %6943 = vmatpush.msra.mxu2 %v6894_v60  ;;  %v7011_v40 = vld [vmem:[#allocation16 + $0x118] sm:$0xff] }
 0x8bf   : > { %v7028_v61 = vld [vmem:[#allocation16 + $0x1a0] sm:$0xff] }
 0x8c0   : > { %6944 = vmatpush.msra.mxu2 %v6890_v13 }
 0x8c2   : > { %6945 = vmatpush.msra.mxu2 %v6886_v8 }
 0x8c3   : > { %6683 = vrot.lane.b32.xlu2 %v6673_v21, %s10232_s10  ;;  %v6893_v21 = vld [vmem:[#allocation16 + $0x80] sm:$0xff]  ;;  %s849_s10 = scalar_lea.vmem %s13175_s21, %s13300_s29 }
 0x8c4   : > { %v6708_v52 = vld [vmem:[#allocation4 + $0x28] sm:$0xff]  ;;  %6923 = vmatpush.msrb.mxu3 %v6893_v21  ;;  %6946 = vmatpush.msra.mxu2 %v6882_v43 }
 0x8c5   : > { %v6711_v14 = vld [vmem:[#allocation4 + $0x40] sm:$0xff] }
 0x8c6   : > { %6924 = vmatpush.msrb.mxu3 %v6889_v35  ;;  %6947 = vmatpush.msra.mxu2 %v6878_v45 }
 0x8c8   : > { %6925 = vmatpush.msrb.mxu3 %v6885_v4  ;;  %6980 = vmatpush.msrb.mxu2 %v6908_v9  ;;  %v7037_v9 = vld [vmem:[#allocation16 + $0x1e8] sm:$0xff] }
 0x8ca   : > { %6926 = vmatpush.msrb.mxu3 %v6881_v19  ;;  %6981 = vmatpush.msrb.mxu2 %v6904_v18  ;;  %v7034_v18 = vld [vmem:[#allocation16 + $0x1d0] sm:$0xff] }
 0x8cc   : > { %6927 = vmatpush.msrb.mxu3 %v6877_v57 }
 0x8ea   : > { %v6648_v11 = vpop.permute.xlu2 %6647 }
 0x8eb   : > { %6659 = vst.msk [vmem:[#allocation4] sm:$0xff] %vm6266_vm3, %v6648_v11  ;;  %v7016_v11 = vld [vmem:[#allocation16 + $0x140] sm:$0xff] }
 0x8f2   : > { %v6703_v46 = vld [vmem:[#allocation4] sm:$0xff] }
 0x8f3   : > { %6787 = vmatmul.f32.vlgmr.msrb.gmra.mxu1 %v6703_v46  ;;  %v7275_v46 = vld [vmem:[#allocation16 + $0x358] sm:$0xff] }
 0x8f4   : > { %7051 = vmatpush.msrb.mxu1 %v7036_v20  ;;  %7372 = vmatpush.msrb.mxu0 %v7275_v46  ;;  %v7399_v20 = vld [vmem:[#allocation16 + $0x438] sm:$0xff] }
 0x8f6   : > { %7052 = vmatpush.msrb.mxu1 %v7032_v3  ;;  %7373 = vmatpush.msrb.mxu0 %v7271_v53  ;;  %v7395_v3 = vld [vmem:[#allocation16 + $0x418] sm:$0xff] }
 0x8f8   : > { %7053 = vmatpush.msrb.mxu1 %v7028_v61  ;;  %7374 = vmatpush.msrb.mxu0 %v7267_v33 }
 0x8fa   : > { %7054 = vmatpush.msrb.mxu1 %v7024_v44  ;;  %7495 = vmatpush.msra.mxu0 %v7423_v50  ;;  %v7166_v50 = vld [vmem:[#allocation16 + $0x2f0] sm:$0xff] }
 0x8fc   : > { %7055 = vmatpush.msrb.mxu1 %v7020_v24  ;;  %7496 = vmatpush.msra.mxu0 %v7419_v16  ;;  %v7025_v16 = vld [vmem:[#allocation16 + $0x188] sm:$0xff] }
 0x8fe   : > { %7056 = vmatpush.msrb.mxu1 %v7016_v11 }
 0x900   : > { %7057 = vmatpush.msrb.mxu1 %v7012_v22 }
 0x902   : > { %7058 = vmatpush.msrb.mxu1 %v7008_v23  ;;  %v7038_v23 = vld [vmem:[#allocation16 + $0x1f0] sm:$0xff] }
 0x912   : > { %v6650_v41 = vpop.permute.xlu0 %6649 }
 0x913   : > { %6660 = vst.msk [vmem:[#allocation4 + $0x18] sm:$0xff] %vm6266_vm3, %v6650_v41  ;;  %v6899_v41 = vld [vmem:[#allocation16 + $0xb0] sm:$0xff] }
 0x915   : > { %v6654_v5 = vpop.permute.xlu2 %6653 }
 0x916   : > { %6662 = vst.msk [vmem:[#allocation4 + $0x48] sm:$0x7f] %vm6274_vm9, %v6654_v5  ;;  %v6900_v5 = vld [vmem:[#allocation16 + $0xb8] sm:$0xff] }
 0x917   : > { %6982 = vmatpush.msrb.mxu2 %v6900_v5  ;;  %v7162_v5 = vld [vmem:[#allocation16 + $0x2d0] sm:$0xff] }
 0x91a   : > { %v6680_v32 = vpop.permute.xlu0 %6679  ;;  %v6706_v26 = vld [vmem:[#allocation4 + $0x18] sm:$0xff] }
 0x91b   : > { %6691 = vst.msk [vmem:[#allocation4 + $0x8] sm:$0xff] %vm6266_vm3, %v6680_v32  ;;  %6790 = vmatmul.f32.gmra.mxu1 %v6706_v26  ;;  %v12731_v32 = vld [vmem:[#allocation14] ss:$0 sm:$0xff]  ;;  %v6895_v26 = vld [vmem:[#allocation16 + $0x90] sm:$0xff] }
 0x91d   : > { %v6684_v48 = vpop.permute.xlu2 %6683  ;;  %v6712_v0 = vld [vmem:[#allocation4 + $0x48] sm:$0x7f] }
 0x91e   : > { %6693 = vst.msk [vmem:[#allocation4 + $0x38] sm:$0xff] %vm6266_vm3, %v6684_v48  ;;  %v6896_v48 = vld [vmem:[#allocation16 + $0x98] sm:$0xff] }
 0x91f   : > { %6983 = vmatpush.msrb.mxu2 %v6896_v48  ;;  %v7543_v48 = vld [vmem:[#allocation16 + $0x5b8] sm:$0xff] }
 0x921   : > { %6984 = vmatpush.msrb.mxu2 %v6892_v29  ;;  %v7017_v29 = vld [vmem:[#allocation16 + $0x148] sm:$0xff] }
 0x922   : > { %v6652_v27 = vpop.permute.xlu1 %6651  ;;  %v6704_v63 = vld [vmem:[#allocation4 + $0x8] sm:$0xff] }
 0x923   : > { %6661 = vst.msk [vmem:[#allocation4 + $0x30] sm:$0xff] %vm6266_vm3, %v6652_v27  ;;  %6816 = vmatmul.f32.vlgmr.msra.gmra.mxu3 %v6704_v63  ;;  %v7031_v27 = vld [vmem:[#allocation16 + $0x1b8] sm:$0xff]  ;;  %6985 = vmatpush.msrb.mxu2 %v6888_v59 }
 0x924   : > { %6960 = vmatpush.msra.mxu3 %v6907_v37  ;;  %v7415_v63 = vld [vmem:[#allocation16 + $0x4b8] sm:$0xff] }
 0x925   : > { %v6710_v25 = vld [vmem:[#allocation4 + $0x38] sm:$0xff]  ;;  %7497 = vmatpush.msra.mxu0 %v7415_v63  ;;  %6986 = vmatpush.msrb.mxu2 %v6884_v12  ;;  %v7022_v63 = vld [vmem:[#allocation16 + $0x170] sm:$0xff]  ;;  %v7535_v59 = vld [vmem:[#allocation16 + $0x578] sm:$0xff] }
 0x926   : > { %6961 = vmatpush.msra.mxu3 %v6903_v58  ;;  %v7033_v58 = vld [vmem:[#allocation16 + $0x1c8] sm:$0xff]  ;;  %v7142_v12 = vld [vmem:[#allocation16 + $0x230] sm:$0xff] }
 0x927   : > { %6987 = vmatpush.msrb.mxu2 %v6880_v15  ;;  %v7523_v15 = vld [vmem:[#allocation16 + $0x518] sm:$0xff] }
 0x928   : > { %6962 = vmatpush.msra.mxu3 %v6899_v41  ;;  %v7551_v41 = vld [vmem:[#allocation16 + $0x5f8] sm:$0xff] }
 0x92a   : > { %v6682_v54 = vpop.permute.xlu1 %6681  ;;  %v6709_v6 = vld [vmem:[#allocation4 + $0x30] sm:$0xff]  ;;  %6963 = vmatpush.msra.mxu3 %v6895_v26  ;;  %v7158_v26 = vld [vmem:[#allocation16 + $0x2b0] sm:$0xff] }
 0x92b   : > { %6692 = vst.msk [vmem:[#allocation4 + $0x20] sm:$0xff] %vm6266_vm3, %v6682_v54  ;;  %6793 = vmatmul.f32.gmra.mxu1 %v6709_v6  ;;  %v6891_v6 = vld [vmem:[#allocation16 + $0x70] sm:$0xff]  ;;  %vm6999_vm3 = vcmask 1040384  }
 0x92c   : > { %6964 = vmatpush.msra.mxu3 %v6891_v6  ;;  %v7539_v6 = vld [vmem:[#allocation16 + $0x598] sm:$0xff] }
 0x92d   : > { %v6686_v55 = vpop.permute.xlu0 %6685 }
 0x92e   : > { %6694 = vst.msk [vmem:[#allocation4 + $0x50] sm:$0x7f] %vm6274_vm9, %v6686_v55  ;;  %v7027_v55 = vld [vmem:[#allocation16 + $0x198] sm:$0xff]  ;;  %vm9225_vm9 = vcmask 490496  }
 0x932   : > { %v6707_v39 = vld [vmem:[#allocation4 + $0x20] sm:$0xff] }
 0x933   : > { %6796 = vmatmul.f32.gmra.mxu1 %v6712_v0  ;;  %6819 = vmatmul.f32.gmra.mxu3 %v6707_v39  ;;  %v7411_v0 = vld [vmem:[#allocation16 + $0x498] sm:$0xff]  ;;  %v6887_v39 = vld [vmem:[#allocation16 + $0x50] sm:$0xff] }
 0x934   : > { %7498 = vmatpush.msra.mxu0 %v7411_v0  ;;  %6965 = vmatpush.msra.mxu3 %v6887_v39  ;;  %v7150_v0 = vld [vmem:[#allocation16 + $0x270] sm:$0xff] }
 0x935   : > { %v6713_v1 = vld [vmem:[#allocation4 + $0x50] sm:$0x7f] }
 0x93b   : > { %6822 = vmatmul.f32.gmra.mxu3 %v6710_v25  ;;  %9517 = vmatmul.msk.f32.vlgmr.msra.gmra.mxu1 %vm6139_vm15, %v6705_v51  ;;  %v7023_v51 = vld [vmem:[#allocation16 + $0x178] sm:$0xff] }
 0x93c   : > { %7111 = vmatpush.msra.mxu1 %v7039_v31 }
 0x93e   : > { %7112 = vmatpush.msra.mxu1 %v7035_v2  ;;  %v7547_v2 = vld [vmem:[#allocation16 + $0x5d8] sm:$0xff] }
 0x940   : > { %7113 = vmatpush.msra.mxu1 %v7031_v27  ;;  %v7021_v27 = vld [vmem:[#allocation16 + $0x168] sm:$0xff] }
 0x942   : > { %7114 = vmatpush.msra.mxu1 %v7027_v55  ;;  %v7018_v55 = vld [vmem:[#allocation16 + $0x150] sm:$0xff] }
 0x943   : > { %6825 = vmatmul.f32.gmra.mxu3 %v6713_v1  ;;  %9518 = vmatmul.msk.f32.gmra.mxu1 %vm6139_vm15, %v6708_v52  ;;  %v7407_v1 = vld [vmem:[#allocation16 + $0x478] sm:$0xff]  ;;  %v6883_v52 = vld [vmem:[#allocation16 + $0x30] sm:$0xff] }
 0x944   : > { %7115 = vmatpush.msra.mxu1 %v7023_v51  ;;  %7499 = vmatpush.msra.mxu0 %v7407_v1  ;;  %v7014_v51 = vld [vmem:[#allocation16 + $0x130] sm:$0xff] }
 0x945   : > { %6966 = vmatpush.msra.mxu3 %v6883_v52  ;;  %v7146_v1 = vld [vmem:[#allocation16 + $0x250] sm:$0xff]  ;;  %v7531_v52 = vld [vmem:[#allocation16 + $0x558] sm:$0xff] }
 0x946   : > { %7116 = vmatpush.msra.mxu1 %v7019_v42  ;;  %v7527_v42 = vld [vmem:[#allocation16 + $0x538] sm:$0xff] }
 0x947   : > { %6967 = vmatpush.msra.mxu3 %v6879_v56  ;;  %v7138_v56 = vld [vmem:[#allocation16 + $0x210] sm:$0xff] }
 0x948   : > { %7117 = vmatpush.msra.mxu1 %v7015_v36  ;;  %v7160_v36 = vld [vmem:[#allocation16 + $0x2c0] sm:$0xff] }
 0x94a   : > { %7118 = vmatpush.msra.mxu1 %v7011_v40  ;;  %v7679_v40 = vld [vmem:[#allocation16 + $0x6f8] sm:$0xff] }
 0x94b   : > { %9519 = vmatmul.msk.f32.gmra.mxu1 %vm6139_vm15, %v6711_v14 }
 0x953   : > { %9520 = vmatmul.msk.f32.gmra.mxu1 %vm6139_vm15, %v6714_v30 }
 0x970   : > { %v12723_v34 = vpop.f32.mrf.mxu1 }
 0x971   : > { %v6789_v54 = vadd.f32 %v12731_v32, %v12723_v34  ;;  %v7403_v34 = vld [vmem:[#allocation16 + $0x458] sm:$0xff] }
 0x972   : > { %7500 = vmatpush.msra.mxu0 %v7403_v34  ;;  %v7164_v34 = vld [vmem:[#allocation16 + $0x2e0] sm:$0xff] }
 0x974   : > { %7501 = vmatpush.msra.mxu0 %v7399_v20  ;;  %v7161_v20 = vld [vmem:[#allocation16 + $0x2c8] sm:$0xff] }
 0x976   : > { %7502 = vmatpush.msra.mxu0 %v7395_v3 }
 0x998   : > { %v12725_v28 = vpop.f32.mrf.mxu1 }
 0x999   : > { %v6792_v61 = vadd.f32 %v12731_v32, %v12725_v28 }
 0x9a6   : > { %v6817_v10 = vpop.f32.mrf.mxu3 }
 0x9a7   : > { %v6818_v25 = vadd.f32 %v6817_v10, %v6789_v54  ;;  %v7029_v10 = vld [vmem:[#allocation16 + $0x1a8] sm:$0xff]  ;;  %v7154_v54 = vld [vmem:[#allocation16 + $0x290] sm:$0xff] }
 0x9a8   : > { %v12727_v38 = vpop.f32.mrf.mxu1 }
 0x9a9   : > { %v6795_v17 = vadd.f32 %v12731_v32, %v12727_v38 }
 0x9b0   : > { %v12729_v47 = vpop.f32.mrf.mxu1 }
 0x9b1   : > { %v6798_v19 = vadd.f32 %v12731_v32, %v12729_v47  ;;  %v7030_v47 = vld [vmem:[#allocation16 + $0x1b0] sm:$0xff] }
 0x9b2   : > { %v7026_v32 = vld [vmem:[#allocation16 + $0x190] sm:$0xff] }
 0x9b6   : > { %v6820_v14 = vpop.f32.mrf.mxu3 }
 0x9b7   : > { %v6821_v21 = vadd.f32 %v6820_v14, %v6792_v61  ;;  %v7009_v14 = vld [vmem:[#allocation16 + $0x108] sm:$0xff] }
 0x9b8   : > { %v6846_v30 = vpop.f32.mrf.mxu1 }
 0x9b9   : > { %v6847_v62 = vadd.f32 %v6846_v30, %v6818_v25  ;;  %v7013_v25 = vld [vmem:[#allocation16 + $0x128] sm:$0xff]  ;;  %v7010_v30 = vld [vmem:[#allocation16 + $0x110] sm:$0xff] }
 0x9bb   : > { %v6858_v7 = vmax.f32 %v6847_v62, 0.0  ;;  %v7165_v62 = vld [vmem:[#allocation16 + $0x2e8] sm:$0xff] }
 0x9bd   : > { %6862 = vst.msk [vmem:[#allocation3] sm:$0xff] %vm6139_vm15, %v6858_v7  ;;  %v7293_v7 = vld [vmem:[#allocation16 + $0x3e8] sm:$0xff] }
 0x9be   : > { %v6823_v13 = vpop.f32.mrf.mxu3 }
 0x9bf   : > { %v6824_v4 = vadd.f32 %v6823_v13, %v6795_v17  ;;  %v7675_v13 = vld [vmem:[#allocation16 + $0x6d8] sm:$0xff]  ;;  %v7153_v17 = vld [vmem:[#allocation16 + $0x288] sm:$0xff] }
 0x9c0   : > { %v6849_v60 = vpop.f32.mrf.mxu1 }
 0x9c1   : > { %v6850_v35 = vadd.f32 %v6849_v60, %v6821_v21  ;;  %v7156_v21 = vld [vmem:[#allocation16 + $0x2a0] sm:$0xff]  ;;  %v7157_v60 = vld [vmem:[#allocation16 + $0x2a8] sm:$0xff] }
 0x9c3   : > { %v6859_v44 = vmax.f32 %v6850_v35, 0.0  ;;  %v7289_v35 = vld [vmem:[#allocation16 + $0x3c8] sm:$0xff] }
 0x9c5   : > { %6863 = vst.msk [vmem:[#allocation3 + $0x8] sm:$0xff] %vm6139_vm15, %v6859_v44  ;;  %v7152_v44 = vld [vmem:[#allocation16 + $0x280] sm:$0xff] }
 0x9c6   : > { %v6826_v49 = vpop.f32.mrf.mxu3 }
 0x9c7   : > { %v6827_v43 = vadd.f32 %v6826_v49, %v6798_v19  ;;  %v7281_v49 = vld [vmem:[#allocation16 + $0x388] sm:$0xff]  ;;  %v7667_v19 = vld [vmem:[#allocation16 + $0x698] sm:$0xff] }
 0x9c8   : > { %v6852_v8 = vpop.f32.mrf.mxu1 }
 0x9c9   : > { %v6853_v24 = vadd.f32 %v6852_v8, %v6824_v4  ;;  %v7285_v4 = vld [vmem:[#allocation16 + $0x3a8] sm:$0xff]  ;;  %v7671_v8 = vld [vmem:[#allocation16 + $0x6b8] sm:$0xff] }
 0x9cb   : > { %v6860_v28 = vmax.f32 %v6853_v24, 0.0  ;;  %v7148_v24 = vld [vmem:[#allocation16 + $0x260] sm:$0xff] }
 0x9cc   : > { %v6866_v46 = vld [vmem:[#allocation3] ss:$2 sm:$0xff]  ;;  %v6868_v57 = vld [vmem:[#allocation3 + $0x1] ss:$2 sm:$0xff] }
 0x9cd   : > { %6864 = vst.msk [vmem:[#allocation3 + $0x10] sm:$0xff] %vm6139_vm15, %v6860_v28  ;;  %v6872_v53 = vmax.f32 %v6866_v46, %v6868_v57  ;;  %v7149_v28 = vld [vmem:[#allocation16 + $0x268] sm:$0xff]  ;;  %v7663_v57 = vld [vmem:[#allocation16 + $0x678] sm:$0xff] }
 0x9ce   : > { %v7277_v46 = vld [vmem:[#allocation16 + $0x368] sm:$0xff] }
 0x9d0   : > { %v6855_v11 = vpop.f32.mrf.mxu1 }
 0x9d1   : > { %v6856_v45 = vadd.f32 %v6855_v11, %v6827_v43  ;;  %v7144_v43 = vld [vmem:[#allocation16 + $0x240] sm:$0xff]  ;;  %v7145_v11 = vld [vmem:[#allocation16 + $0x248] sm:$0xff] }
 0x9d3   : > { %v6861_v22 = vmax.f32 %v6856_v45, 0.0  ;;  %v7140_v45 = vld [vmem:[#allocation16 + $0x220] sm:$0xff] }
 0x9d4   : > { %v6870_v38 = vld [vmem:[#allocation3 + $0x2] ss:$2 sm:$0xff] }
 0x9d5   : > { %6865 = vst.msk [vmem:[#allocation3 + $0x18] sm:$0x7f] %vm6155_vm14, %v6861_v22  ;;  %v12745_v37 = vmax.f32 %v6872_v53, %v6870_v38  ;;  %v7141_v22 = vld [vmem:[#allocation16 + $0x228] sm:$0xff]  ;;  %v7659_v38 = vld [vmem:[#allocation16 + $0x658] sm:$0xff]  ;;  %vm9191_vm14 = vcmask 982016  }
 0x9d6   : > { %v7273_v53 = vld [vmem:[#allocation16 + $0x348] sm:$0xff] }
 0x9d7   : > { %9521 = vmatmul.msk.f32.vlgmr.msrb.gmra.mxu3 %vm6139_vm15, %v12745_v37  ;;  %9522 = vmatmul.msk.f32.vlgmr.msra.gmra.mxu2 %vm6139_vm15, %v12745_v37  ;;  %v12752_v33 = vrot.slane %v12745_v37, 1  ;;  %v12755_v31 = vrot.slane %v12745_v37, 3  ;;  %v12766_v39 = vrot.slane %v12745_v37, 4  ;;  %v12777_v3 = vrot.slane %v12745_v37, 2 }
 0x9d8   : > { %7071 = vmatpush.msrb.mxu3 %v7037_v9  ;;  %7091 = vmatpush.msra.mxu2 %v7038_v23  ;;  %v12780_v61 = vrot.slane %v12745_v37, 5  ;;  %v7136_v9 = vld [vmem:[#allocation16 + $0x200] sm:$0xff]  ;;  %v7137_v23 = vld [vmem:[#allocation16 + $0x208] sm:$0xff] }
 0x9d9   : > { %9525 = vmatmul.msk.f32.vlgmr.msrb.gmra.mxu1 %vm6139_vm15, %v12752_v33  ;;  %9536 = vmatmul.msk.f32.vlgmr.msrb.gmra.mxu0 %vm6139_vm15, %v12755_v31 }
 0x9da   : > { %7072 = vmatpush.msrb.mxu3 %v7033_v58  ;;  %7092 = vmatpush.msra.mxu2 %v7034_v18  ;;  %v7655_v58 = vld [vmem:[#allocation16 + $0x638] sm:$0xff] }
 0x9db   : > { %7219 = vmatpush.msrb.mxu1 %v7166_v50  ;;  %7623 = vmatpush.msrb.mxu0 %v7551_v41  ;;  %v7167_v18 = vld [vmem:[#allocation16 + $0x2f8] sm:$0xff]  ;;  %v7292_v50 = vld [vmem:[#allocation16 + $0x3e0] sm:$0xff]  ;;  %v7265_v41 = vld [vmem:[#allocation16 + $0x308] sm:$0xff] }
 0x9dc   : > { %7073 = vmatpush.msrb.mxu3 %v7029_v10  ;;  %7093 = vmatpush.msra.mxu2 %v7030_v47  ;;  %v7651_v10 = vld [vmem:[#allocation16 + $0x618] sm:$0xff] }
 0x9dd   : > { %7220 = vmatpush.msrb.mxu1 %v7162_v5  ;;  %7624 = vmatpush.msrb.mxu0 %v7547_v2  ;;  %v7163_v47 = vld [vmem:[#allocation16 + $0x2d8] sm:$0xff]  ;;  %v7288_v5 = vld [vmem:[#allocation16 + $0x3c0] sm:$0xff]  ;;  %v7421_v2 = vld [vmem:[#allocation16 + $0x4e8] sm:$0xff] }
 0x9de   : > { %7074 = vmatpush.msrb.mxu3 %v7025_v16  ;;  %7094 = vmatpush.msra.mxu2 %v7026_v32  ;;  %v12791_v16 = vrot.slane %v12745_v37, 6  ;;  %v7807_v32 = vld [vmem:[#allocation16 + $0x7f8] sm:$0xff] }
 0x9df   : > { %7221 = vmatpush.msrb.mxu1 %v7158_v26  ;;  %7625 = vmatpush.msrb.mxu0 %v7543_v48  ;;  %v7159_v26 = vld [vmem:[#allocation16 + $0x2b8] sm:$0xff]  ;;  %v7284_v48 = vld [vmem:[#allocation16 + $0x3a0] sm:$0xff] }
 0x9e0   : > { %9523 = vmatmul.msk.f32.vlgmr.msra.gmra.mxu3 %vm6139_vm15, %v12745_v37  ;;  %9524 = vmatmul.msk.f32.vlgmr.msrb.gmra.mxu2 %vm6139_vm15, %v12745_v37 }
 0x9e1   : > { %7075 = vmatpush.msrb.mxu3 %v7021_v27  ;;  %7095 = vmatpush.msra.mxu2 %v7022_v63  ;;  %v7417_v27 = vld [vmem:[#allocation16 + $0x4c8] sm:$0xff]  ;;  %v7803_v63 = vld [vmem:[#allocation16 + $0x7d8] sm:$0xff] }
 0x9e2   : > { %7222 = vmatpush.msrb.mxu1 %v7154_v54  ;;  %7626 = vmatpush.msrb.mxu0 %v7539_v6  ;;  %v7155_v54 = vld [vmem:[#allocation16 + $0x298] sm:$0xff]  ;;  %v7280_v6 = vld [vmem:[#allocation16 + $0x380] sm:$0xff] }
 0x9e3   : > { %7076 = vmatpush.msrb.mxu3 %v7017_v29  ;;  %7096 = vmatpush.msra.mxu2 %v7018_v55  ;;  %v7413_v29 = vld [vmem:[#allocation16 + $0x4a8] sm:$0xff]  ;;  %v7799_v55 = vld [vmem:[#allocation16 + $0x7b8] sm:$0xff] }
 0x9e4   : > { %9528 = vmatmul.msk.f32.vlgmr.msra.gmra.mxu1 %vm6139_vm15, %v12752_v33  ;;  %9540 = vmatmul.msk.f32.vlgmr.msra.gmra.mxu0 %vm6139_vm15, %v12766_v39 }
 0x9e5   : > { %7223 = vmatpush.msrb.mxu1 %v7150_v0  ;;  %7627 = vmatpush.msrb.mxu0 %v7535_v59  ;;  %v7151_v0 = vld [vmem:[#allocation16 + $0x278] sm:$0xff]  ;;  %v7276_v59 = vld [vmem:[#allocation16 + $0x360] sm:$0xff] }
 0x9e6   : > { %7077 = vmatpush.msrb.mxu3 %v7013_v25  ;;  %7097 = vmatpush.msra.mxu2 %v7014_v51  ;;  %v7409_v25 = vld [vmem:[#allocation16 + $0x488] sm:$0xff]  ;;  %v7795_v51 = vld [vmem:[#allocation16 + $0x798] sm:$0xff] }
 0x9e7   : > { %7224 = vmatpush.msrb.mxu1 %v7146_v1  ;;  %7628 = vmatpush.msrb.mxu0 %v7531_v52  ;;  %v7147_v1 = vld [vmem:[#allocation16 + $0x258] sm:$0xff]  ;;  %v7272_v52 = vld [vmem:[#allocation16 + $0x340] sm:$0xff] }
 0x9e8   : > { %7078 = vmatpush.msrb.mxu3 %v7009_v14  ;;  %7098 = vmatpush.msra.mxu2 %v7010_v30  ;;  %v7405_v14 = vld [vmem:[#allocation16 + $0x468] sm:$0xff]  ;;  %v7791_v30 = vld [vmem:[#allocation16 + $0x778] sm:$0xff] }
 0x9e9   : > { %7225 = vmatpush.msrb.mxu1 %v7142_v12  ;;  %7629 = vmatpush.msrb.mxu0 %v7527_v42  ;;  %v7143_v12 = vld [vmem:[#allocation16 + $0x238] sm:$0xff]  ;;  %v7268_v42 = vld [vmem:[#allocation16 + $0x320] sm:$0xff] }
 0x9ea   : > { %7179 = vmatpush.msra.mxu3 %v7164_v34  ;;  %7199 = vmatpush.msrb.mxu2 %v7165_v62  ;;  %v7401_v34 = vld [vmem:[#allocation16 + $0x448] sm:$0xff]  ;;  %v7787_v62 = vld [vmem:[#allocation16 + $0x758] sm:$0xff] }
 0x9eb   : > { %9526 = vmatmul.msk.f32.vlgmr.msrb.gmra.mxu3 %vm6139_vm15, %v12752_v33  ;;  %9527 = vmatmul.msk.f32.vlgmr.msra.gmra.mxu2 %vm6139_vm15, %v12752_v33  ;;  %v7269_v33 = vld [vmem:[#allocation16 + $0x328] sm:$0xff] }
 0x9ec   : > { %7226 = vmatpush.msrb.mxu1 %v7138_v56  ;;  %7630 = vmatpush.msrb.mxu0 %v7523_v15  ;;  %v7139_v56 = vld [vmem:[#allocation16 + $0x218] sm:$0xff]  ;;  %v7264_v15 = vld [vmem:[#allocation16 + $0x300] sm:$0xff] }
 0x9ed   : > { %7180 = vmatpush.msra.mxu3 %v7160_v36  ;;  %7200 = vmatpush.msrb.mxu2 %v7161_v20  ;;  %v7397_v36 = vld [vmem:[#allocation16 + $0x428] sm:$0xff]  ;;  %v7783_v20 = vld [vmem:[#allocation16 + $0x738] sm:$0xff] }
 0x9ee   : > { %7327 = vmatpush.msra.mxu1 %v7293_v7  ;;  %7751 = vmatpush.msra.mxu0 %v7679_v40  ;;  %v7294_v7 = vld [vmem:[#allocation16 + $0x3f0] sm:$0xff]  ;;  %v7420_v40 = vld [vmem:[#allocation16 + $0x4e0] sm:$0xff] }
 0x9ef   : > { %9531 = vmatmul.msk.f32.vlgmr.msrb.gmra.mxu1 %vm6139_vm15, %v12777_v3  ;;  %9544 = vmatmul.msk.f32.vlgmr.msrb.gmra.mxu0 %vm6139_vm15, %v12780_v61 }
 0x9f0   : > { %7181 = vmatpush.msra.mxu3 %v7156_v21  ;;  %7201 = vmatpush.msrb.mxu2 %v7157_v60  ;;  %v7393_v21 = vld [vmem:[#allocation16 + $0x408] sm:$0xff]  ;;  %v7779_v60 = vld [vmem:[#allocation16 + $0x718] sm:$0xff] }
 0x9f1   : > { %7328 = vmatpush.msra.mxu1 %v7289_v35  ;;  %7752 = vmatpush.msra.mxu0 %v7675_v13  ;;  %v7290_v35 = vld [vmem:[#allocation16 + $0x3d0] sm:$0xff]  ;;  %v7416_v13 = vld [vmem:[#allocation16 + $0x4c0] sm:$0xff] }
 0x9f2   : > { %7182 = vmatpush.msra.mxu3 %v7152_v44  ;;  %7202 = vmatpush.msrb.mxu2 %v7153_v17  ;;  %v7549_v44 = vld [vmem:[#allocation16 + $0x5e8] sm:$0xff]  ;;  %v12802_v17 = vrot.slane %v12745_v37, 7 }
 0x9f3   : > { %7329 = vmatpush.msra.mxu1 %v7285_v4  ;;  %7753 = vmatpush.msra.mxu0 %v7671_v8  ;;  %v7935_v4 = vld [vmem:[#allocation16 + $0x8f8] sm:$0xff]  ;;  %v7286_v8 = vld [vmem:[#allocation16 + $0x3b0] sm:$0xff]  ;;  %v7541_v37 = vld [vmem:[#allocation16 + $0x5a8] sm:$0xff] }
 0x9f4   : > { %7183 = vmatpush.msra.mxu3 %v7148_v24  ;;  %7203 = vmatpush.msrb.mxu2 %v7149_v28  ;;  %v7412_v24 = vld [vmem:[#allocation16 + $0x4a0] sm:$0xff]  ;;  %v7931_v28 = vld [vmem:[#allocation16 + $0x8d8] sm:$0xff] }
 0x9f5   : > { %7330 = vmatpush.msra.mxu1 %v7281_v49  ;;  %7754 = vmatpush.msra.mxu0 %v7667_v19  ;;  %v7282_v49 = vld [vmem:[#allocation16 + $0x390] sm:$0xff]  ;;  %v7408_v19 = vld [vmem:[#allocation16 + $0x480] sm:$0xff] }
 0x9f6   : > { %7184 = vmatpush.msra.mxu3 %v7144_v43  ;;  %7204 = vmatpush.msrb.mxu2 %v7145_v11  ;;  %v7927_v43 = vld [vmem:[#allocation16 + $0x8b8] sm:$0xff]  ;;  %v7278_v11 = vld [vmem:[#allocation16 + $0x370] sm:$0xff] }
 0x9f7   : > { %7331 = vmatpush.msra.mxu1 %v7277_v46  ;;  %7755 = vmatpush.msra.mxu0 %v7663_v57  ;;  %v7404_v46 = vld [vmem:[#allocation16 + $0x460] sm:$0xff]  ;;  %v7537_v57 = vld [vmem:[#allocation16 + $0x588] sm:$0xff] }
 0x9f8   : > { %7185 = vmatpush.msra.mxu3 %v7140_v45  ;;  %7205 = vmatpush.msrb.mxu2 %v7141_v22  ;;  %v7923_v45 = vld [vmem:[#allocation16 + $0x898] sm:$0xff]  ;;  %v7274_v22 = vld [vmem:[#allocation16 + $0x350] sm:$0xff] }
 0x9f9   : > { %7332 = vmatpush.msra.mxu1 %v7273_v53  ;;  %7756 = vmatpush.msra.mxu0 %v7659_v38  ;;  %v7400_v53 = vld [vmem:[#allocation16 + $0x440] sm:$0xff]  ;;  %v7533_v38 = vld [vmem:[#allocation16 + $0x568] sm:$0xff] }
 0x9fa   : > { %7186 = vmatpush.msra.mxu3 %v7136_v9  ;;  %7206 = vmatpush.msrb.mxu2 %v7137_v23  ;;  %v7919_v9 = vld [vmem:[#allocation16 + $0x878] sm:$0xff]  ;;  %v7270_v23 = vld [vmem:[#allocation16 + $0x330] sm:$0xff] }
 0x9fb   : > { %7333 = vmatpush.msra.mxu1 %v7269_v33  ;;  %7757 = vmatpush.msra.mxu0 %v7655_v58  ;;  %v7396_v33 = vld [vmem:[#allocation16 + $0x420] sm:$0xff]  ;;  %v7529_v58 = vld [vmem:[#allocation16 + $0x548] sm:$0xff] }
 0x9fc   : > { %9529 = vmatmul.msk.f32.vlgmr.msra.gmra.mxu3 %vm6139_vm15, %v12777_v3  ;;  %9530 = vmatmul.msk.f32.vlgmr.msrb.gmra.mxu2 %vm6139_vm15, %v12777_v3 }
 0x9fd   : > { %7239 = vmatpush.msrb.mxu3 %v7167_v18  ;;  %7307 = vmatpush.msra.mxu2 %v7292_v50  ;;  %v7915_v18 = vld [vmem:[#allocation16 + $0x858] sm:$0xff] }
 0x9fe   : > { %7334 = vmatpush.msra.mxu1 %v7265_v41  ;;  %7758 = vmatpush.msra.mxu0 %v7651_v10  ;;  %v6867_v50 = vld [vmem:[#allocation3 + $0x10] ss:$2 sm:$0x7f]  ;;  %v7266_v41 = vld [vmem:[#allocation16 + $0x310] sm:$0xff] }
 0x9ff   : > { %7240 = vmatpush.msrb.mxu3 %v7163_v47  ;;  %7308 = vmatpush.msra.mxu2 %v7288_v5  ;;  %v7392_v10 = vld [vmem:[#allocation16 + $0x400] sm:$0xff]  ;;  %v7525_v5 = vld [vmem:[#allocation16 + $0x528] sm:$0xff] }
 0xa00   : > { %9534 = vmatmul.msk.f32.vlgmr.msra.gmra.mxu1 %vm6139_vm15, %v12755_v31  ;;  %9548 = vmatmul.msk.f32.vlgmr.msra.gmra.mxu0 %vm6139_vm15, %v12791_v16  ;;  %v6869_v47 = vld [vmem:[#allocation3 + $0x11] ss:$2 sm:$0x7f] }
 0xa01   : > { %7455 = vmatpush.msrb.mxu1 %v7421_v2  ;;  %7879 = vmatpush.msrb.mxu0 %v7807_v32  ;;  %v7911_v2 = vld [vmem:[#allocation16 + $0x838] sm:$0xff]  ;;  %v7422_v32 = vld [vmem:[#allocation16 + $0x4f0] sm:$0xff] }
 0xa02   : > { %7241 = vmatpush.msrb.mxu3 %v7159_v26  ;;  %7309 = vmatpush.msra.mxu2 %v7284_v48  ;;  %v7548_v26 = vld [vmem:[#allocation16 + $0x5e0] sm:$0xff]  ;;  %v6873_v48 = vmax.f32 %v6867_v50, %v6869_v47  ;;  %v8179_v50 = vld [vmem:[#allocation16 + $0xa98] sm:$0xff]  ;;  %v7789_v47 = vld [vmem:[#allocation16 + $0x768] sm:$0xff] }
 0xa03   : > { %7456 = vmatpush.msrb.mxu1 %v7417_v27  ;;  %7880 = vmatpush.msrb.mxu0 %v7803_v63  ;;  %v7521_v27 = vld [vmem:[#allocation16 + $0x508] sm:$0xff]  ;;  %v7907_v63 = vld [vmem:[#allocation16 + $0x818] sm:$0xff] }
 0xa04   : > { %7242 = vmatpush.msrb.mxu3 %v7155_v54  ;;  %7310 = vmatpush.msra.mxu2 %v7280_v6  ;;  %v7418_v54 = vld [vmem:[#allocation16 + $0x4d0] sm:$0xff]  ;;  %v7544_v6 = vld [vmem:[#allocation16 + $0x5c0] sm:$0xff] }
 0xa05   : > { %7457 = vmatpush.msrb.mxu1 %v7413_v29  ;;  %7881 = vmatpush.msrb.mxu0 %v7799_v55  ;;  %v6871_v29 = vld [vmem:[#allocation3 + $0x12] ss:$2 sm:$0x7f] }
 0xa06   : > { %7243 = vmatpush.msrb.mxu3 %v7151_v0  ;;  %7311 = vmatpush.msra.mxu2 %v7276_v59  ;;  %v7677_v55 = vld [vmem:[#allocation16 + $0x6e8] sm:$0xff]  ;;  %v12812_v0 = vmax.f32 %v6873_v48, %v6871_v29  ;;  %v8063_v59 = vld [vmem:[#allocation16 + $0x9f8] sm:$0xff]  ;;  %v7678_v29 = vld [vmem:[#allocation16 + $0x6f0] sm:$0xff] }
 0xa07   : > { %7458 = vmatpush.msrb.mxu1 %v7409_v25  ;;  %7882 = vmatpush.msrb.mxu0 %v7795_v51  ;;  %v7414_v25 = vld [vmem:[#allocation16 + $0x4b0] sm:$0xff]  ;;  %v7540_v51 = vld [vmem:[#allocation16 + $0x5a0] sm:$0xff]  ;;  %v8171_v48 = vld [vmem:[#allocation16 + $0xa58] sm:$0xff] }
 0xa08   : > { %7244 = vmatpush.msrb.mxu3 %v7147_v1  ;;  %7312 = vmatpush.msra.mxu2 %v7272_v52  ;;  %v8059_v1 = vld [vmem:[#allocation16 + $0x9d8] sm:$0xff]  ;;  %v7410_v52 = vld [vmem:[#allocation16 + $0x490] sm:$0xff] }
 0xa09   : > { %7459 = vmatpush.msrb.mxu1 %v7405_v14  ;;  %7883 = vmatpush.msrb.mxu0 %v7791_v30  ;;  %v7536_v14 = vld [vmem:[#allocation16 + $0x580] sm:$0xff]  ;;  %v7669_v30 = vld [vmem:[#allocation16 + $0x6a8] sm:$0xff] }
 0xa0a   : > { %7245 = vmatpush.msrb.mxu3 %v7143_v12  ;;  %7313 = vmatpush.msra.mxu2 %v7268_v42  ;;  %v8055_v12 = vld [vmem:[#allocation16 + $0x9b8] sm:$0xff]  ;;  %v7406_v42 = vld [vmem:[#allocation16 + $0x470] sm:$0xff] }
 0xa0b   : > { %7460 = vmatpush.msrb.mxu1 %v7401_v34  ;;  %7884 = vmatpush.msrb.mxu0 %v7787_v62  ;;  %v7532_v34 = vld [vmem:[#allocation16 + $0x560] sm:$0xff]  ;;  %v7665_v62 = vld [vmem:[#allocation16 + $0x688] sm:$0xff] }
 0xa0c   : > { %7246 = vmatpush.msrb.mxu3 %v7139_v56  ;;  %7314 = vmatpush.msra.mxu2 %v7264_v15  ;;  %v8051_v56 = vld [vmem:[#allocation16 + $0x998] sm:$0xff]  ;;  %v7402_v15 = vld [vmem:[#allocation16 + $0x450] sm:$0xff] }
 0xa0d   : > { %7461 = vmatpush.msrb.mxu1 %v7397_v36  ;;  %7885 = vmatpush.msrb.mxu0 %v7783_v20  ;;  %v7528_v36 = vld [vmem:[#allocation16 + $0x540] sm:$0xff]  ;;  %v7661_v20 = vld [vmem:[#allocation16 + $0x668] sm:$0xff] }
 0xa0e   : > { %9532 = vmatmul.msk.f32.vlgmr.msrb.gmra.mxu3 %vm6139_vm15, %v12777_v3  ;;  %9533 = vmatmul.msk.f32.vlgmr.msra.gmra.mxu2 %vm6139_vm15, %v12755_v31  ;;  %v7545_v3 = vld [vmem:[#allocation16 + $0x5c8] sm:$0xff] }
 0xa0f   : > { %7347 = vmatpush.msra.mxu3 %v7294_v7  ;;  %7435 = vmatpush.msrb.mxu2 %v7420_v40  ;;  %v8047_v7 = vld [vmem:[#allocation16 + $0x978] sm:$0xff]  ;;  %v7398_v40 = vld [vmem:[#allocation16 + $0x430] sm:$0xff] }
 0xa10   : > { %7462 = vmatpush.msrb.mxu1 %v7393_v21  ;;  %7886 = vmatpush.msrb.mxu0 %v7779_v60  ;;  %v7524_v21 = vld [vmem:[#allocation16 + $0x520] sm:$0xff]  ;;  %v7657_v60 = vld [vmem:[#allocation16 + $0x648] sm:$0xff] }
 0xa11   : > { %7348 = vmatpush.msra.mxu3 %v7290_v35  ;;  %7436 = vmatpush.msrb.mxu2 %v7416_v13  ;;  %v8043_v35 = vld [vmem:[#allocation16 + $0x958] sm:$0xff]  ;;  %v7394_v13 = vld [vmem:[#allocation16 + $0x410] sm:$0xff] }
 0xa12   : > { %9538 = vmatmul.msk.f32.vlgmr.msrb.gmra.mxu1 %vm6139_vm15, %v12766_v39  ;;  %9552 = vmatmul.msk.f32.vlgmr.msrb.gmra.mxu0 %vm6139_vm15, %v12802_v17 }
 0xa13   : > { %7583 = vmatpush.msra.mxu1 %v7549_v44  ;;  %8007 = vmatpush.msra.mxu0 %v7935_v4  ;;  %v7520_v44 = vld [vmem:[#allocation16 + $0x500] sm:$0xff]  ;;  %v7653_v4 = vld [vmem:[#allocation16 + $0x628] sm:$0xff] }
 0xa14   : > { %7349 = vmatpush.msra.mxu3 %v7286_v8  ;;  %7437 = vmatpush.msrb.mxu2 %v7412_v24  ;;  %v8039_v8 = vld [vmem:[#allocation16 + $0x938] sm:$0xff]  ;;  %v7550_v24 = vld [vmem:[#allocation16 + $0x5f0] sm:$0xff] }
 0xa15   : > { %7584 = vmatpush.msra.mxu1 %v7545_v3  ;;  %8008 = vmatpush.msra.mxu0 %v7931_v28  ;;  %v7676_v3 = vld [vmem:[#allocation16 + $0x6e0] sm:$0xff]  ;;  %v7649_v28 = vld [vmem:[#allocation16 + $0x608] sm:$0xff] }
 0xa16   : > { %7350 = vmatpush.msra.mxu3 %v7282_v49  ;;  %7438 = vmatpush.msrb.mxu2 %v7408_v19  ;;  %v8035_v49 = vld [vmem:[#allocation16 + $0x918] sm:$0xff]  ;;  %v7546_v19 = vld [vmem:[#allocation16 + $0x5d0] sm:$0xff] }
 0xa17   : > { %7585 = vmatpush.msra.mxu1 %v7541_v37  ;;  %8009 = vmatpush.msra.mxu0 %v7927_v43  ;;  %v7672_v37 = vld [vmem:[#allocation16 + $0x6c0] sm:$0xff]  ;;  %v7805_v43 = vld [vmem:[#allocation16 + $0x7e8] sm:$0xff] }
 0xa18   : > { %7351 = vmatpush.msra.mxu3 %v7278_v11  ;;  %7439 = vmatpush.msrb.mxu2 %v7404_v46  ;;  %v12823_v11 = vrot.slane %v12812_v0, 1  ;;  %v8191_v46 = vld [vmem:[#allocation16 + $0xaf8] sm:$0xff] }
 0xa19   : > { %7586 = vmatpush.msra.mxu1 %v7537_v57  ;;  %8010 = vmatpush.msra.mxu0 %v7923_v45  ;;  %v7542_v57 = vld [vmem:[#allocation16 + $0x5b0] sm:$0xff]  ;;  %v7668_v45 = vld [vmem:[#allocation16 + $0x6a0] sm:$0xff] }
 0xa1a   : > { %7352 = vmatpush.msra.mxu3 %v7274_v22  ;;  %7440 = vmatpush.msrb.mxu2 %v7400_v53  ;;  %v8187_v22 = vld [vmem:[#allocation16 + $0xad8] sm:$0xff]  ;;  %v7538_v53 = vld [vmem:[#allocation16 + $0x590] sm:$0xff] }
 0xa1b   : > { %7587 = vmatpush.msra.mxu1 %v7533_v38  ;;  %8011 = vmatpush.msra.mxu0 %v7919_v9  ;;  %v7664_v38 = vld [vmem:[#allocation16 + $0x680] sm:$0xff]  ;;  %v7797_v9 = vld [vmem:[#allocation16 + $0x7a8] sm:$0xff] }
 0xa1c   : > { %7353 = vmatpush.msra.mxu3 %v7270_v23  ;;  %7441 = vmatpush.msrb.mxu2 %v7396_v33  ;;  %v8183_v23 = vld [vmem:[#allocation16 + $0xab8] sm:$0xff]  ;;  %v7534_v33 = vld [vmem:[#allocation16 + $0x570] sm:$0xff] }
 0xa1d   : > { %7588 = vmatpush.msra.mxu1 %v7529_v58  ;;  %8012 = vmatpush.msra.mxu0 %v7915_v18  ;;  %v7660_v58 = vld [vmem:[#allocation16 + $0x660] sm:$0xff]  ;;  %v7793_v18 = vld [vmem:[#allocation16 + $0x788] sm:$0xff] }
 0xa1e   : > { %7354 = vmatpush.msra.mxu3 %v7266_v41  ;;  %7442 = vmatpush.msrb.mxu2 %v7392_v10  ;;  %v7530_v41 = vld [vmem:[#allocation16 + $0x550] sm:$0xff]  ;;  %v7656_v10 = vld [vmem:[#allocation16 + $0x640] sm:$0xff] }
 0xa1f   : > { %7589 = vmatpush.msra.mxu1 %v7525_v5  ;;  %8013 = vmatpush.msra.mxu0 %v7911_v2  ;;  %v8175_v5 = vld [vmem:[#allocation16 + $0xa78] sm:$0xff]  ;;  %v7526_v2 = vld [vmem:[#allocation16 + $0x530] sm:$0xff] }
 0xa20   : > { %9535 = vmatmul.msk.f32.vlgmr.msra.gmra.mxu3 %vm6139_vm15, %v12755_v31  ;;  %9537 = vmatmul.msk.f32.vlgmr.msrb.gmra.mxu2 %vm6139_vm15, %v12766_v39  ;;  %v7673_v31 = vld [vmem:[#allocation16 + $0x6c8] sm:$0xff] }
 0xa21   : > { %7475 = vmatpush.msrb.mxu3 %v7422_v32  ;;  %7563 = vmatpush.msra.mxu2 %v7548_v26  ;;  %v7652_v32 = vld [vmem:[#allocation16 + $0x620] sm:$0xff]  ;;  %v7785_v26 = vld [vmem:[#allocation16 + $0x748] sm:$0xff] }
 0xa22   : > { %7590 = vmatpush.msra.mxu1 %v7521_v27  ;;  %8014 = vmatpush.msra.mxu0 %v7907_v63  ;;  %v7522_v27 = vld [vmem:[#allocation16 + $0x510] sm:$0xff]  ;;  %v7648_v63 = vld [vmem:[#allocation16 + $0x600] sm:$0xff] }
 0xa23   : > { %7476 = vmatpush.msrb.mxu3 %v7418_v54  ;;  %7564 = vmatpush.msra.mxu2 %v7544_v6  ;;  %v7781_v54 = vld [vmem:[#allocation16 + $0x728] sm:$0xff]  ;;  %v8167_v6 = vld [vmem:[#allocation16 + $0xa38] sm:$0xff] }
 0xa24   : > { %9542 = vmatmul.msk.f32.vlgmr.msra.gmra.mxu1 %vm6139_vm15, %v12780_v61  ;;  %9556 = vmatmul.msk.f32.vlgmr.msra.gmra.mxu0 %vm6139_vm15, %v12812_v0 }
 0xa25   : > { %7711 = vmatpush.msrb.mxu1 %v7677_v55  ;;  %8135 = vmatpush.msrb.mxu0 %v8063_v59  ;;  %v7804_v55 = vld [vmem:[#allocation16 + $0x7e0] sm:$0xff]  ;;  %v7777_v59 = vld [vmem:[#allocation16 + $0x708] sm:$0xff] }
 0xa26   : > { %7477 = vmatpush.msrb.mxu3 %v7414_v25  ;;  %7565 = vmatpush.msra.mxu2 %v7540_v51  ;;  %v8163_v25 = vld [vmem:[#allocation16 + $0xa18] sm:$0xff]  ;;  %v7674_v51 = vld [vmem:[#allocation16 + $0x6d0] sm:$0xff] }
 0xa27   : > { %7712 = vmatpush.msrb.mxu1 %v7673_v31  ;;  %8136 = vmatpush.msrb.mxu0 %v8059_v1  ;;  %v7800_v31 = vld [vmem:[#allocation16 + $0x7c0] sm:$0xff]  ;;  %v7933_v1 = vld [vmem:[#allocation16 + $0x8e8] sm:$0xff] }
 0xa28   : > { %7478 = vmatpush.msrb.mxu3 %v7410_v52  ;;  %7566 = vmatpush.msra.mxu2 %v7536_v14  ;;  %v12834_v52 = vrot.slane %v12812_v0, 2  ;;  %v8319_v14 = vld [vmem:[#allocation16 + $0xbf8] sm:$0xff] }
 0xa29   : > { %7713 = vmatpush.msrb.mxu1 %v7669_v30  ;;  %8137 = vmatpush.msrb.mxu0 %v8055_v12  ;;  %v7670_v30 = vld [vmem:[#allocation16 + $0x6b0] sm:$0xff]  ;;  %v7796_v12 = vld [vmem:[#allocation16 + $0x7a0] sm:$0xff] }
 0xa2a   : > { %7479 = vmatpush.msrb.mxu3 %v7406_v42  ;;  %7567 = vmatpush.msra.mxu2 %v7532_v34  ;;  %v8315_v42 = vld [vmem:[#allocation16 + $0xbd8] sm:$0xff]  ;;  %v7666_v34 = vld [vmem:[#allocation16 + $0x690] sm:$0xff] }
 0xa2b   : > { %7714 = vmatpush.msrb.mxu1 %v7665_v62  ;;  %8138 = vmatpush.msrb.mxu0 %v8051_v56  ;;  %v7792_v62 = vld [vmem:[#allocation16 + $0x780] sm:$0xff]  ;;  %v7925_v56 = vld [vmem:[#allocation16 + $0x8a8] sm:$0xff] }
 0xa2c   : > { %7480 = vmatpush.msrb.mxu3 %v7402_v15  ;;  %7568 = vmatpush.msra.mxu2 %v7528_v36  ;;  %v8311_v15 = vld [vmem:[#allocation16 + $0xbb8] sm:$0xff]  ;;  %v7662_v36 = vld [vmem:[#allocation16 + $0x670] sm:$0xff] }
 0xa2d   : > { %7715 = vmatpush.msrb.mxu1 %v7661_v20  ;;  %8139 = vmatpush.msrb.mxu0 %v8047_v7  ;;  %v7788_v20 = vld [vmem:[#allocation16 + $0x760] sm:$0xff]  ;;  %v7921_v7 = vld [vmem:[#allocation16 + $0x888] sm:$0xff] }
 0xa2e   : > { %7481 = vmatpush.msrb.mxu3 %v7398_v40  ;;  %7569 = vmatpush.msra.mxu2 %v7524_v21  ;;  %v8307_v40 = vld [vmem:[#allocation16 + $0xb98] sm:$0xff]  ;;  %v7658_v21 = vld [vmem:[#allocation16 + $0x650] sm:$0xff] }
 0xa2f   : > { %7716 = vmatpush.msrb.mxu1 %v7657_v60  ;;  %8140 = vmatpush.msrb.mxu0 %v8043_v35  ;;  %v7784_v60 = vld [vmem:[#allocation16 + $0x740] sm:$0xff]  ;;  %v7917_v35 = vld [vmem:[#allocation16 + $0x868] sm:$0xff] }
 0xa30   : > { %7482 = vmatpush.msrb.mxu3 %v7394_v13  ;;  %7570 = vmatpush.msra.mxu2 %v7520_v44  ;;  %v8303_v13 = vld [vmem:[#allocation16 + $0xb78] sm:$0xff]  ;;  %v7654_v44 = vld [vmem:[#allocation16 + $0x630] sm:$0xff] }
 0xa31   : > { %7717 = vmatpush.msrb.mxu1 %v7653_v4  ;;  %8141 = vmatpush.msrb.mxu0 %v8039_v8  ;;  %v7780_v4 = vld [vmem:[#allocation16 + $0x720] sm:$0xff]  ;;  %v7913_v8 = vld [vmem:[#allocation16 + $0x848] sm:$0xff] }
 0xa32   : > { %9539 = vmatmul.msk.f32.vlgmr.msrb.gmra.mxu3 %vm6139_vm15, %v12766_v39  ;;  %9541 = vmatmul.msk.f32.vlgmr.msra.gmra.mxu2 %vm6139_vm15, %v12780_v61  ;;  %v7801_v39 = vld [vmem:[#allocation16 + $0x7c8] sm:$0xff] }
 0xa33   : > { %7603 = vmatpush.msra.mxu3 %v7550_v24  ;;  %7691 = vmatpush.msrb.mxu2 %v7676_v3  ;;  %v8299_v24 = vld [vmem:[#allocation16 + $0xb58] sm:$0xff]  ;;  %v7650_v3 = vld [vmem:[#allocation16 + $0x610] sm:$0xff] }
 0xa34   : > { %7718 = vmatpush.msrb.mxu1 %v7649_v28  ;;  %8142 = vmatpush.msrb.mxu0 %v8035_v49  ;;  %v7776_v28 = vld [vmem:[#allocation16 + $0x700] sm:$0xff]  ;;  %v7909_v49 = vld [vmem:[#allocation16 + $0x828] sm:$0xff] }
 0xa35   : > { %7604 = vmatpush.msra.mxu3 %v7546_v19  ;;  %7692 = vmatpush.msrb.mxu2 %v7672_v37  ;;  %v8295_v19 = vld [vmem:[#allocation16 + $0xb38] sm:$0xff]  ;;  %v7806_v37 = vld [vmem:[#allocation16 + $0x7f0] sm:$0xff] }
 0xa36   : > { %9546 = vmatmul.msk.f32.vlgmr.msrb.gmra.mxu1 %vm6139_vm15, %v12791_v16  ;;  %9560 = vmatmul.msk.f32.vlgmr.msrb.gmra.mxu0 %vm6139_vm15, %v12823_v11 }
 0xa37   : > { %7839 = vmatpush.msra.mxu1 %v7805_v43  ;;  %8263 = vmatpush.msra.mxu0 %v8191_v46  ;;  %v7932_v43 = vld [vmem:[#allocation16 + $0x8e0] sm:$0xff]  ;;  %v7905_v46 = vld [vmem:[#allocation16 + $0x808] sm:$0xff] }
 0xa38   : > { %7605 = vmatpush.msra.mxu3 %v7542_v57  ;;  %7693 = vmatpush.msrb.mxu2 %v7668_v45  ;;  %v8291_v57 = vld [vmem:[#allocation16 + $0xb18] sm:$0xff]  ;;  %v7802_v45 = vld [vmem:[#allocation16 + $0x7d0] sm:$0xff] }
 0xa39   : > { %7840 = vmatpush.msra.mxu1 %v7801_v39  ;;  %8264 = vmatpush.msra.mxu0 %v8187_v22  ;;  %v7928_v39 = vld [vmem:[#allocation16 + $0x8c0] sm:$0xff]  ;;  %v8061_v22 = vld [vmem:[#allocation16 + $0x9e8] sm:$0xff] }
 0xa3a   : > { %7606 = vmatpush.msra.mxu3 %v7538_v53  ;;  %7694 = vmatpush.msrb.mxu2 %v7664_v38  ;;  %v12845_v53 = vrot.slane %v12812_v0, 3  ;;  %v8447_v38 = vld [vmem:[#allocation16 + $0xcf8] sm:$0xff] }
 0xa3b   : > { %7841 = vmatpush.msra.mxu1 %v7797_v9  ;;  %8265 = vmatpush.msra.mxu0 %v8183_v23  ;;  %v7798_v9 = vld [vmem:[#allocation16 + $0x7b0] sm:$0xff]  ;;  %v7924_v23 = vld [vmem:[#allocation16 + $0x8a0] sm:$0xff] }
 0xa3c   : > { %7607 = vmatpush.msra.mxu3 %v7534_v33  ;;  %7695 = vmatpush.msrb.mxu2 %v7660_v58  ;;  %v8443_v33 = vld [vmem:[#allocation16 + $0xcd8] sm:$0xff] }
 0xa3d   : > { %7842 = vmatpush.msra.mxu1 %v7793_v18  ;;  %8266 = vmatpush.msra.mxu0 %v8179_v50  ;;  %v7794_v50 = vld [vmem:[#allocation16 + $0x790] sm:$0xff] }
 0xa3e   : > { %7608 = vmatpush.msra.mxu3 %v7530_v41  ;;  %7696 = vmatpush.msrb.mxu2 %v7656_v10  ;;  %v7920_v41 = vld [vmem:[#allocation16 + $0x880] sm:$0xff] }
 0xa3f   : > { %7843 = vmatpush.msra.mxu1 %v7789_v47  ;;  %8267 = vmatpush.msra.mxu0 %v8175_v5  ;;  %v8053_v47 = vld [vmem:[#allocation16 + $0x9a8] sm:$0xff]  ;;  %v8439_v5 = vld [vmem:[#allocation16 + $0xcb8] sm:$0xff] }
 0xa40   : > { %7609 = vmatpush.msra.mxu3 %v7526_v2  ;;  %7697 = vmatpush.msrb.mxu2 %v7652_v32  ;;  %v7790_v2 = vld [vmem:[#allocation16 + $0x770] sm:$0xff]  ;;  %v7916_v32 = vld [vmem:[#allocation16 + $0x860] sm:$0xff] }
 0xa41   : > { %7844 = vmatpush.msra.mxu1 %v7785_v26  ;;  %8268 = vmatpush.msra.mxu0 %v8171_v48  ;;  %v8049_v48 = vld [vmem:[#allocation16 + $0x988] sm:$0xff] }
 0xa42   : > { %7610 = vmatpush.msra.mxu3 %v7522_v27  ;;  %7698 = vmatpush.msrb.mxu2 %v7648_v63  ;;  %v8435_v27 = vld [vmem:[#allocation16 + $0xc98] sm:$0xff]  ;;  %v7786_v63 = vld [vmem:[#allocation16 + $0x750] sm:$0xff] }
 0xa43   : > { %7845 = vmatpush.msra.mxu1 %v7781_v54  ;;  %8269 = vmatpush.msra.mxu0 %v8167_v6  ;;  %v7912_v54 = vld [vmem:[#allocation16 + $0x840] sm:$0xff]  ;;  %v8045_v6 = vld [vmem:[#allocation16 + $0x968] sm:$0xff] }
 0xa44   : > { %9543 = vmatmul.msk.f32.vlgmr.msra.gmra.mxu3 %vm6139_vm15, %v12780_v61  ;;  %9545 = vmatmul.msk.f32.vlgmr.msrb.gmra.mxu2 %vm6139_vm15, %v12791_v16  ;;  %v7929_v61 = vld [vmem:[#allocation16 + $0x8c8] sm:$0xff] }
 0xa45   : > { %7731 = vmatpush.msrb.mxu3 %v7678_v29  ;;  %7819 = vmatpush.msra.mxu2 %v7804_v55  ;;  %v8431_v29 = vld [vmem:[#allocation16 + $0xc78] sm:$0xff]  ;;  %v7782_v55 = vld [vmem:[#allocation16 + $0x730] sm:$0xff] }
 0xa46   : > { %7846 = vmatpush.msra.mxu1 %v7777_v59  ;;  %8270 = vmatpush.msra.mxu0 %v8163_v25  ;;  %v7908_v59 = vld [vmem:[#allocation16 + $0x820] sm:$0xff]  ;;  %v8041_v25 = vld [vmem:[#allocation16 + $0x948] sm:$0xff] }
 0xa47   : > { %7732 = vmatpush.msrb.mxu3 %v7674_v51  ;;  %7820 = vmatpush.msra.mxu2 %v7800_v31  ;;  %v8427_v51 = vld [vmem:[#allocation16 + $0xc58] sm:$0xff] }
 0xa48   : > { %9550 = vmatmul.msk.f32.vlgmr.msra.gmra.mxu1 %vm6139_vm15, %v12802_v17  ;;  %9564 = vmatmul.msk.f32.vlgmr.msra.gmra.mxu0 %vm6139_vm15, %v12834_v52 }
 0xa49   : > { %7967 = vmatpush.msrb.mxu1 %v7933_v1  ;;  %8391 = vmatpush.msrb.mxu0 %v8319_v14  ;;  %v7778_v1 = vld [vmem:[#allocation16 + $0x710] sm:$0xff]  ;;  %v7904_v14 = vld [vmem:[#allocation16 + $0x800] sm:$0xff] }
 0xa4a   : > { %7733 = vmatpush.msrb.mxu3 %v7670_v30  ;;  %7821 = vmatpush.msra.mxu2 %v7796_v12 }
 0xa4b   : > { %7968 = vmatpush.msrb.mxu1 %v7929_v61  ;;  %8392 = vmatpush.msrb.mxu0 %v8315_v42  ;;  %v8037_v61 = vld [vmem:[#allocation16 + $0x928] sm:$0xff]  ;;  %v8423_v42 = vld [vmem:[#allocation16 + $0xc38] sm:$0xff] }
 0xa4c   : > { %7734 = vmatpush.msrb.mxu3 %v7666_v34  ;;  %7822 = vmatpush.msra.mxu2 %v7792_v62 }
 0xa4d   : > { %7969 = vmatpush.msrb.mxu1 %v7925_v56  ;;  %8393 = vmatpush.msrb.mxu0 %v8311_v15  ;;  %v7934_v56 = vld [vmem:[#allocation16 + $0x8f0] sm:$0xff]  ;;  %v8060_v15 = vld [vmem:[#allocation16 + $0x9e0] sm:$0xff] }
 0xa4e   : > { %7735 = vmatpush.msrb.mxu3 %v7662_v36  ;;  %7823 = vmatpush.msra.mxu2 %v7788_v20  ;;  %v8033_v20 = vld [vmem:[#allocation16 + $0x908] sm:$0xff] }
 0xa4f   : > { %7970 = vmatpush.msrb.mxu1 %v7921_v7  ;;  %8394 = vmatpush.msrb.mxu0 %v8307_v40  ;;  %v8419_v7 = vld [vmem:[#allocation16 + $0xc18] sm:$0xff] }
 0xa50   : > { %7736 = vmatpush.msrb.mxu3 %v7658_v21  ;;  %7824 = vmatpush.msra.mxu2 %v7784_v60  ;;  %v7930_v21 = vld [vmem:[#allocation16 + $0x8d0] sm:$0xff]  ;;  %v8056_v60 = vld [vmem:[#allocation16 + $0x9c0] sm:$0xff] }
 0xa51   : > { %7971 = vmatpush.msrb.mxu1 %v7917_v35  ;;  %8395 = vmatpush.msrb.mxu0 %v8303_v13  ;;  %v8189_v35 = vld [vmem:[#allocation16 + $0xae8] sm:$0xff]  ;;  %v12861_v13 = vrot.slane %v12812_v0, 4 }
 0xa52   : > { %7737 = vmatpush.msrb.mxu3 %v7654_v44  ;;  %7825 = vmatpush.msra.mxu2 %v7780_v4  ;;  %v8575_v44 = vld [vmem:[#allocation16 + $0xdf8] sm:$0xff]  ;;  %v7926_v4 = vld [vmem:[#allocation16 + $0x8b0] sm:$0xff] }
 0xa53   : > { %7972 = vmatpush.msrb.mxu1 %v7913_v8  ;;  %8396 = vmatpush.msrb.mxu0 %v8299_v24  ;;  %v8052_v8 = vld [vmem:[#allocation16 + $0x9a0] sm:$0xff]  ;;  %v8571_v24 = vld [vmem:[#allocation16 + $0xdd8] sm:$0xff] }
 0xa54   : > { %7738 = vmatpush.msrb.mxu3 %v7650_v3  ;;  %7826 = vmatpush.msra.mxu2 %v7776_v28  ;;  %v7922_v28 = vld [vmem:[#allocation16 + $0x890] sm:$0xff] }
 0xa55   : > { %7973 = vmatpush.msrb.mxu1 %v7909_v49  ;;  %8397 = vmatpush.msrb.mxu0 %v8295_v19  ;;  %v8048_v49 = vld [vmem:[#allocation16 + $0x980] sm:$0xff]  ;;  %v8181_v19 = vld [vmem:[#allocation16 + $0xaa8] sm:$0xff] }
 0xa56   : > { %9547 = vmatmul.msk.f32.vlgmr.msrb.gmra.mxu3 %vm6139_vm15, %v12791_v16  ;;  %9549 = vmatmul.msk.f32.vlgmr.msra.gmra.mxu2 %vm6139_vm15, %v12802_v17  ;;  %v8057_v16 = vld [vmem:[#allocation16 + $0x9c8] sm:$0xff]  ;;  %v12852_v31 = vpop.f32.mrf.mxu1 }
 0xa57   : > { %7859 = vmatpush.msra.mxu3 %v7806_v37  ;;  %7947 = vmatpush.msrb.mxu2 %v7932_v43  ;;  %v8567_v37 = vld [vmem:[#allocation16 + $0xdb8] sm:$0xff]  ;;  %v6876_v43 = vld [vmem:[#allocation17] sm:$0xf] }
 0xa58   : > { %7974 = vmatpush.msrb.mxu1 %v7905_v46  ;;  %8398 = vmatpush.msrb.mxu0 %v8291_v57 }
 0xa59   : > { %7860 = vmatpush.msra.mxu3 %v7802_v45  ;;  %7948 = vmatpush.msrb.mxu2 %v7928_v39  ;;  %v7918_v45 = vld [vmem:[#allocation16 + $0x870] sm:$0xff]  ;;  %v8044_v39 = vld [vmem:[#allocation16 + $0x960] sm:$0xff] }
 0xa5a   : > { %9554 = vmatmul.msk.f32.vlgmr.msrb.gmra.mxu1 %vm6139_vm15, %v12812_v0  ;;  %9568 = vmatmul.msk.f32.vlgmr.msrb.gmra.mxu0 %vm6139_vm15, %v12845_v53  ;;  %v6929_v58 = vpop.f32.mrf.mxu3  ;;  %v6949_v18 = vpop.f32.mrf.mxu2 }
 0xa5b   : > { %8095 = vmatpush.msra.mxu1 %v8061_v22  ;;  %8519 = vmatpush.msra.mxu0 %v8447_v38  ;;  %v6996_v10 = vrot.slane %v6949_v18, 7 }
 0xa5c   : > { %7861 = vmatpush.msra.mxu3 %v7798_v9  ;;  %7949 = vmatpush.msrb.mxu2 %v7924_v23  ;;  %v8177_v23 = vld [vmem:[#allocation16 + $0xa88] sm:$0xff] }
 0xa5d   : > { %8096 = vmatpush.msra.mxu1 %v8057_v16  ;;  %8520 = vmatpush.msra.mxu0 %v8443_v33  ;;  %v7000_v26 = vsel %vm6999_vm3, %v6929_v58, %v6996_v10  ;;  %v8563_v16 = vld [vmem:[#allocation16 + $0xd98] sm:$0xff]  ;;  %v7914_v33 = vld [vmem:[#allocation16 + $0x850] sm:$0xff]  ;;  %v8040_v58 = vld [vmem:[#allocation16 + $0x940] sm:$0xff] }
 0xa5e   : > { %7862 = vmatpush.msra.mxu3 %v7794_v50  ;;  %7950 = vmatpush.msrb.mxu2 %v7920_v41  ;;  %v8173_v10 = vld [vmem:[#allocation16 + $0xa68] sm:$0xff] }
 0xa5f   : > { %8097 = vmatpush.msra.mxu1 %v8053_v47  ;;  %8521 = vmatpush.msra.mxu0 %v8439_v5  ;;  %v8559_v47 = vld [vmem:[#allocation16 + $0xd78] sm:$0xff] }
 0xa60   : > { %7863 = vmatpush.msra.mxu3 %v7790_v2  ;;  %7951 = vmatpush.msrb.mxu2 %v7916_v32  ;;  %v7910_v2 = vld [vmem:[#allocation16 + $0x830] sm:$0xff]  ;;  %v8036_v32 = vld [vmem:[#allocation16 + $0x920] sm:$0xff] }
 0xa61   : > { %8098 = vmatpush.msra.mxu1 %v8049_v48  ;;  %8522 = vmatpush.msra.mxu0 %v8435_v27  ;;  %v7120_v3 = vpop.f32.mrf.mxu1  ;;  %v8169_v48 = vld [vmem:[#allocation16 + $0xa48] sm:$0xff]  ;;  %v8555_v27 = vld [vmem:[#allocation16 + $0xd58] sm:$0xff] }
 0xa62   : > { %7864 = vmatpush.msra.mxu3 %v7786_v63  ;;  %7952 = vmatpush.msrb.mxu2 %v7912_v54  ;;  %v7129_v22 = vrot.slane %v7120_v3, 5  ;;  %v7906_v63 = vld [vmem:[#allocation16 + $0x810] sm:$0xff]  ;;  %v8032_v54 = vld [vmem:[#allocation16 + $0x900] sm:$0xff]  ;;  %v8301_v3 = vld [vmem:[#allocation16 + $0xb68] sm:$0xff] }
 0xa63   : > { %8099 = vmatpush.msra.mxu1 %v8045_v6  ;;  %8523 = vmatpush.msra.mxu0 %v8431_v29  ;;  %v6969_v30 = vpop.f32.mrf.mxu3  ;;  %v6989_v12 = vpop.f32.mrf.mxu2  ;;  %v8165_v6 = vld [vmem:[#allocation16 + $0xa28] sm:$0xff]  ;;  %v8551_v29 = vld [vmem:[#allocation16 + $0xd38] sm:$0xff] }
 0xa64   : > { %7865 = vmatpush.msra.mxu3 %v7782_v55  ;;  %7953 = vmatpush.msrb.mxu2 %v7908_v59  ;;  %v6997_v34 = vrot.slane %v6969_v30, 6  ;;  %v6998_v62 = vrot.slane %v6989_v12, 5  ;;  %v8062_v55 = vld [vmem:[#allocation16 + $0x9f0] sm:$0xff]  ;;  %v8188_v59 = vld [vmem:[#allocation16 + $0xae0] sm:$0xff]  ;;  %v12878_v30 = vrot.slane %v12812_v0, 5  ;;  %v8703_v12 = vld [vmem:[#allocation16 + $0xef8] sm:$0xff] }
 0xa65   : > { %8100 = vmatpush.msra.mxu1 %v8041_v25  ;;  %8524 = vmatpush.msra.mxu0 %v8427_v51  ;;  %v8161_v25 = vld [vmem:[#allocation16 + $0xa08] sm:$0xff]  ;;  %v8547_v51 = vld [vmem:[#allocation16 + $0xd18] sm:$0xff] }
 0xa66   : > { %7866 = vmatpush.msra.mxu3 %v7778_v1  ;;  %7954 = vmatpush.msrb.mxu2 %v7904_v14  ;;  %v7002_v36 = vsel %vm7001_vm10, %v6997_v34, %v6998_v62  ;;  %v8184_v1 = vld [vmem:[#allocation16 + $0xac0] sm:$0xff]  ;;  %v8317_v14 = vld [vmem:[#allocation16 + $0xbe8] sm:$0xff]  ;;  %v8699_v62 = vld [vmem:[#allocation16 + $0xed8] sm:$0xff] }
 0xa67   : > { %8101 = vmatpush.msra.mxu1 %v8037_v61  ;;  %8525 = vmatpush.msra.mxu0 %v8423_v42  ;;  %v7004_v40 = vsel %vm7003_vm12, %v7000_v26, %v7002_v36  ;;  %v8054_v61 = vld [vmem:[#allocation16 + $0x9b0] sm:$0xff]  ;;  %v8180_v42 = vld [vmem:[#allocation16 + $0xaa0] sm:$0xff]  ;;  %v8313_v34 = vld [vmem:[#allocation16 + $0xbc8] sm:$0xff] }
 0xa68   : > { %9551 = vmatmul.msk.f32.vlgmr.msra.gmra.mxu3 %vm6139_vm15, %v12802_v17  ;;  %9553 = vmatmul.msk.f32.vlgmr.msrb.gmra.mxu2 %vm6139_vm15, %v12812_v0  ;;  %v8185_v17 = vld [vmem:[#allocation16 + $0xac8] sm:$0xff]  ;;  %v7006_v18 = vadd.f32 %v7004_v40, %v6876_v43 }
 0xa69   : > { %7987 = vmatpush.msrb.mxu3 %v7934_v56  ;;  %8075 = vmatpush.msra.mxu2 %v8060_v15  ;;  %v8050_v56 = vld [vmem:[#allocation16 + $0x990] sm:$0xff]  ;;  %v8176_v15 = vld [vmem:[#allocation16 + $0xa80] sm:$0xff]  ;;  %v8297_v43 = vld [vmem:[#allocation16 + $0xb48] sm:$0xff] }
 0xa6a   : > { %8102 = vmatpush.msra.mxu1 %v8033_v20  ;;  %8526 = vmatpush.msra.mxu0 %v8419_v7  ;;  %v8309_v20 = vld [vmem:[#allocation16 + $0xba8] sm:$0xff]  ;;  %v8695_v7 = vld [vmem:[#allocation16 + $0xeb8] sm:$0xff] }
 0xa6b   : > { %7988 = vmatpush.msrb.mxu3 %v7930_v21  ;;  %8076 = vmatpush.msra.mxu2 %v8056_v60  ;;  %v8046_v21 = vld [vmem:[#allocation16 + $0x970] sm:$0xff]  ;;  %v8172_v60 = vld [vmem:[#allocation16 + $0xa60] sm:$0xff] }
 0xa6c   : > { %9558 = vmatmul.msk.f32.vlgmr.msra.gmra.mxu1 %vm6139_vm15, %v12823_v11  ;;  %9572 = vmatmul.msk.f32.vlgmr.msra.gmra.mxu0 %vm6139_vm15, %v12861_v13 }
 0xa6d   : > { %8223 = vmatpush.msrb.mxu1 %v8189_v35  ;;  %8647 = vmatpush.msrb.mxu0 %v8575_v44  ;;  %v8305_v44 = vld [vmem:[#allocation16 + $0xb88] sm:$0xff] }
 0xa6e   : > { %7989 = vmatpush.msrb.mxu3 %v7926_v4  ;;  %8077 = vmatpush.msra.mxu2 %v8052_v8  ;;  %v7080_v46 = vpop.f32.mrf.mxu3  ;;  %v7100_v57 = vpop.f32.mrf.mxu2  ;;  %v8691_v4 = vld [vmem:[#allocation16 + $0xe98] sm:$0xff] }
 0xa6f   : > { %8224 = vmatpush.msrb.mxu1 %v8185_v17  ;;  %8648 = vmatpush.msrb.mxu0 %v8571_v24  ;;  %v7127_v38 = vrot.slane %v7080_v46, 7  ;;  %v7128_v9 = vrot.slane %v7100_v57, 6  ;;  %v8042_v17 = vld [vmem:[#allocation16 + $0x950] sm:$0xff]  ;;  %v8168_v24 = vld [vmem:[#allocation16 + $0xa40] sm:$0xff]  ;;  %v8683_v46 = vld [vmem:[#allocation16 + $0xe58] sm:$0xff] }
 0xa70   : > { %7990 = vmatpush.msrb.mxu3 %v7922_v28  ;;  %8078 = vmatpush.msra.mxu2 %v8048_v49  ;;  %v8687_v28 = vld [vmem:[#allocation16 + $0xe78] sm:$0xff]  ;;  %v12887_v49 = vpop.f32.mrf.mxu1  ;;  %v8034_v57 = vld [vmem:[#allocation16 + $0x910] sm:$0xff] }
 0xa71   : > { %8225 = vmatpush.msrb.mxu1 %v8181_v19  ;;  %8649 = vmatpush.msrb.mxu0 %v8567_v37  ;;  %v7130_v50 = vsel %vm6999_vm3, %v12852_v31, %v7127_v38  ;;  %v7131_v41 = vsel %vm7001_vm10, %v7128_v9, %v7129_v22  ;;  %v8058_v31 = vld [vmem:[#allocation16 + $0x9d0] sm:$0xff]  ;;  %v8164_v37 = vld [vmem:[#allocation16 + $0xa20] sm:$0xff]  ;;  %v8679_v22 = vld [vmem:[#allocation16 + $0xe38] sm:$0xff] }
 0xa72   : > { %7991 = vmatpush.msrb.mxu3 %v7918_v45  ;;  %8079 = vmatpush.msra.mxu2 %v8044_v39  ;;  %v7132_v5 = vsel %vm7003_vm12, %v7130_v50, %v7131_v41  ;;  %v8038_v19 = vld [vmem:[#allocation16 + $0x930] sm:$0xff]  ;;  %v8160_v45 = vld [vmem:[#allocation16 + $0xa00] sm:$0xff]  ;;  %v8293_v39 = vld [vmem:[#allocation16 + $0xb28] sm:$0xff]  ;;  %v12894_v41 = vrot.slane %v12812_v0, 6 }
 0xa73   : > { %8226 = vmatpush.msrb.mxu1 %v8177_v23  ;;  %8650 = vmatpush.msrb.mxu0 %v8563_v16  ;;  %v12871_v26 = vadd.f32 %v7132_v5, %v7006_v18  ;;  %v8190_v38 = vld [vmem:[#allocation16 + $0xaf0] sm:$0xff]  ;;  %v8316_v9 = vld [vmem:[#allocation16 + $0xbe0] sm:$0xff]  ;;  %v8289_v23 = vld [vmem:[#allocation16 + $0xb08] sm:$0xff] }
 0xa74   : > { %7992 = vmatpush.msrb.mxu3 %v7914_v33  ;;  %8080 = vmatpush.msra.mxu2 %v8040_v58  ;;  %v8675_v16 = vld [vmem:[#allocation16 + $0xe18] sm:$0xff]  ;;  %v8186_v33 = vld [vmem:[#allocation16 + $0xad0] sm:$0xff]  ;;  %v8312_v58 = vld [vmem:[#allocation16 + $0xbc0] sm:$0xff] }
 0xa75   : > { %8227 = vmatpush.msrb.mxu1 %v8173_v10  ;;  %8651 = vmatpush.msrb.mxu0 %v8559_v47  ;;  %v8445_v50 = vld [vmem:[#allocation16 + $0xce8] sm:$0xff]  ;;  %v8182_v10 = vld [vmem:[#allocation16 + $0xab0] sm:$0xff]  ;;  %v8308_v47 = vld [vmem:[#allocation16 + $0xba0] sm:$0xff] }
 0xa76   : > { %7993 = vmatpush.msrb.mxu3 %v7910_v2  ;;  %8081 = vmatpush.msra.mxu2 %v8036_v32  ;;  %v8178_v5 = vld [vmem:[#allocation16 + $0xa90] sm:$0xff]  ;;  %v8304_v32 = vld [vmem:[#allocation16 + $0xb80] sm:$0xff] }
 0xa77   : > { %8228 = vmatpush.msrb.mxu1 %v8169_v48  ;;  %8652 = vmatpush.msrb.mxu0 %v8555_v27 }
 0xa78   : > { %7994 = vmatpush.msrb.mxu3 %v7906_v63  ;;  %8082 = vmatpush.msra.mxu2 %v8032_v54  ;;  %v8437_v63 = vld [vmem:[#allocation16 + $0xca8] sm:$0xff]  ;;  %v8174_v54 = vld [vmem:[#allocation16 + $0xa70] sm:$0xff] }
 0xa79   : > { %8229 = vmatpush.msrb.mxu1 %v8165_v6  ;;  %8653 = vmatpush.msrb.mxu0 %v8551_v29 }
 0xa7a   : > { %9555 = vmatmul.msk.f32.vlgmr.msrb.gmra.mxu3 %vm6139_vm15, %v12812_v0  ;;  %9557 = vmatmul.msk.f32.vlgmr.msra.gmra.mxu2 %vm6139_vm15, %v12823_v11  ;;  %v7256_v0 = vrot.slane %v12887_v49, 6  ;;  %v8428_v49 = vld [vmem:[#allocation16 + $0xc60] sm:$0xff] }
 0xa7b   : > { %8115 = vmatpush.msra.mxu3 %v8062_v55  ;;  %8203 = vmatpush.msrb.mxu2 %v8188_v59  ;;  %v8300_v55 = vld [vmem:[#allocation16 + $0xb60] sm:$0xff]  ;;  %v8433_v59 = vld [vmem:[#allocation16 + $0xc88] sm:$0xff] }
 0xa7c   : > { %8230 = vmatpush.msrb.mxu1 %v8161_v25  ;;  %8654 = vmatpush.msrb.mxu0 %v8547_v51  ;;  %v8170_v25 = vld [vmem:[#allocation16 + $0xa50] sm:$0xff] }
 0xa7d   : > { %8116 = vmatpush.msra.mxu3 %v8058_v31  ;;  %8204 = vmatpush.msrb.mxu2 %v8184_v1  ;;  %v7336_v18 = vpop.f32.mrf.mxu1  ;;  %v8296_v31 = vld [vmem:[#allocation16 + $0xb40] sm:$0xff] }
 0xa7e   : > { %9562 = vmatmul.msk.f32.vlgmr.msrb.gmra.mxu1 %vm6139_vm15, %v12834_v52  ;;  %9576 = vmatmul.msk.f32.vlgmr.msrb.gmra.mxu0 %vm6139_vm15, %v12878_v30  ;;  %v7383_v2 = vrot.slane %v7336_v18, 7  ;;  %v8446_v18 = vld [vmem:[#allocation16 + $0xcf0] sm:$0xff] }
 0xa7f   : > { %8351 = vmatpush.msra.mxu1 %v8317_v14  ;;  %8775 = vmatpush.msra.mxu0 %v8703_v12  ;;  %v7208_v36 = vpop.f32.mrf.mxu2  ;;  %v7188_v35 = vpop.f32.mrf.mxu3  ;;  %v8429_v14 = vld [vmem:[#allocation16 + $0xc68] sm:$0xff]  ;;  %v8166_v12 = vld [vmem:[#allocation16 + $0xa30] sm:$0xff] }
 0xa80   : > { %8117 = vmatpush.msra.mxu3 %v8054_v61  ;;  %8205 = vmatpush.msrb.mxu2 %v8180_v42  ;;  %v7255_v40 = vrot.slane %v7208_v36, 7  ;;  %v8292_v42 = vld [vmem:[#allocation16 + $0xb20] sm:$0xff]  ;;  %v8318_v36 = vld [vmem:[#allocation16 + $0xbf0] sm:$0xff] }
 0xa81   : > { %8352 = vmatpush.msra.mxu1 %v8313_v34  ;;  %8776 = vmatpush.msra.mxu0 %v8699_v62  ;;  %v8425_v34 = vld [vmem:[#allocation16 + $0xc48] sm:$0xff]  ;;  %v8162_v62 = vld [vmem:[#allocation16 + $0xa10] sm:$0xff] }
 0xa82   : > { %8118 = vmatpush.msra.mxu3 %v8050_v56  ;;  %8206 = vmatpush.msrb.mxu2 %v8176_v15  ;;  %v12885_v8 = vsel %vm6999_vm3, %v7188_v35, %v7255_v40  ;;  %v8288_v56 = vld [vmem:[#allocation16 + $0xb00] sm:$0xff]  ;;  %v8421_v15 = vld [vmem:[#allocation16 + $0xc28] sm:$0xff] }
 0xa83   : > { %8353 = vmatpush.msra.mxu1 %v8309_v20  ;;  %8777 = vmatpush.msra.mxu0 %v8695_v7  ;;  %v8444_v20 = vld [vmem:[#allocation16 + $0xce0] sm:$0xff]  ;;  %v8314_v7 = vld [vmem:[#allocation16 + $0xbd0] sm:$0xff] }
 0xa84   : > { %8119 = vmatpush.msra.mxu3 %v8046_v21  ;;  %8207 = vmatpush.msrb.mxu2 %v8172_v60  ;;  %v8440_v40 = vld [vmem:[#allocation16 + $0xcc0] sm:$0xff]  ;;  %v8573_v21 = vld [vmem:[#allocation16 + $0xde8] sm:$0xff]  ;;  %v8310_v60 = vld [vmem:[#allocation16 + $0xbb0] sm:$0xff] }
 0xa85   : > { %8354 = vmatpush.msra.mxu1 %v8305_v44  ;;  %8778 = vmatpush.msra.mxu0 %v8691_v4  ;;  %v8436_v35 = vld [vmem:[#allocation16 + $0xca0] sm:$0xff]  ;;  %v7376_v44 = vpop.f32.mrf.mxu0  ;;  %v8306_v4 = vld [vmem:[#allocation16 + $0xb90] sm:$0xff] }
 0xa86   : > { %8120 = vmatpush.msra.mxu3 %v8042_v17  ;;  %8208 = vmatpush.msrb.mxu2 %v8168_v24  ;;  %v8565_v17 = vld [vmem:[#allocation16 + $0xda8] sm:$0xff]  ;;  %v8302_v24 = vld [vmem:[#allocation16 + $0xb70] sm:$0xff] }
 0xa87   : > { %8355 = vmatpush.msra.mxu1 %v8301_v3  ;;  %8779 = vmatpush.msra.mxu0 %v8687_v28  ;;  %v7385_v28 = vrot.slane %v7376_v44, 5  ;;  %v8546_v44 = vld [vmem:[#allocation16 + $0xd10] sm:$0xff] }
 0xa88   : > { %8121 = vmatpush.msra.mxu3 %v8038_v19  ;;  %8209 = vmatpush.msrb.mxu2 %v8164_v37  ;;  %v8561_v37 = vld [vmem:[#allocation16 + $0xd88] sm:$0xff] }
 0xa89   : > { %8356 = vmatpush.msra.mxu1 %v8297_v43  ;;  %8780 = vmatpush.msra.mxu0 %v8683_v46  ;;  %v8298_v43 = vld [vmem:[#allocation16 + $0xb50] sm:$0xff]  ;;  %v8424_v46 = vld [vmem:[#allocation16 + $0xc40] sm:$0xff] }
 0xa8a   : > { %8122 = vmatpush.msra.mxu3 %v8034_v57  ;;  %8210 = vmatpush.msrb.mxu2 %v8160_v45  ;;  %v8557_v45 = vld [vmem:[#allocation16 + $0xd68] sm:$0xff] }
 0xa8b   : > { %8357 = vmatpush.msra.mxu1 %v8293_v39  ;;  %8781 = vmatpush.msra.mxu0 %v8679_v22  ;;  %v8294_v39 = vld [vmem:[#allocation16 + $0xb30] sm:$0xff] }
 0xa8c   : > { %9559 = vmatmul.msk.f32.vlgmr.msra.gmra.mxu3 %vm6139_vm15, %v12823_v11  ;;  %9561 = vmatmul.msk.f32.vlgmr.msrb.gmra.mxu2 %vm6139_vm15, %v12834_v52  ;;  %v8441_v11 = vld [vmem:[#allocation16 + $0xcc8] sm:$0xff] }
 0xa8d   : > { %8243 = vmatpush.msrb.mxu3 %v8190_v38  ;;  %8331 = vmatpush.msra.mxu2 %v8316_v9  ;;  %v8420_v38 = vld [vmem:[#allocation16 + $0xc20] sm:$0xff] }
 0xa8e   : > { %8358 = vmatpush.msra.mxu1 %v8289_v23  ;;  %8782 = vmatpush.msra.mxu0 %v8675_v16  ;;  %v8553_v23 = vld [vmem:[#allocation16 + $0xd48] sm:$0xff]  ;;  %v8290_v16 = vld [vmem:[#allocation16 + $0xb10] sm:$0xff] }
 0xa8f   : > { %8244 = vmatpush.msrb.mxu3 %v8186_v33  ;;  %8332 = vmatpush.msra.mxu2 %v8312_v58  ;;  %v8416_v33 = vld [vmem:[#allocation16 + $0xc00] sm:$0xff]  ;;  %v8549_v58 = vld [vmem:[#allocation16 + $0xd28] sm:$0xff] }
 0xa90   : > { %9566 = vmatmul.msk.f32.vlgmr.msra.gmra.mxu1 %vm6139_vm15, %v12845_v53  ;;  %9580 = vmatmul.msk.f32.vlgmr.msra.gmra.mxu0 %vm6139_vm15, %v12894_v41 }
 0xa91   : > { %8479 = vmatpush.msrb.mxu1 %v8445_v50  ;;  %8245 = vmatpush.msrb.mxu3 %v8182_v10  ;;  %v7248_v48 = vpop.f32.mrf.mxu3  ;;  %v7316_v27 = vpop.f32.mrf.mxu2  ;;  %v8572_v50 = vld [vmem:[#allocation16 + $0xde0] sm:$0xff]  ;;  %v8545_v10 = vld [vmem:[#allocation16 + $0xd08] sm:$0xff] }
 0xa92   : > { %8333 = vmatpush.msra.mxu2 %v8308_v47  ;;  %v7257_v6 = vrot.slane %v7248_v48, 5  ;;  %v12902_v29 = vsel %vm6999_vm3, %v7316_v27, %v7383_v2  ;;  %v8442_v47 = vld [vmem:[#allocation16 + $0xcd0] sm:$0xff]  ;;  %v8697_v48 = vld [vmem:[#allocation16 + $0xec8] sm:$0xff]  ;;  %v8560_v27 = vld [vmem:[#allocation16 + $0xd80] sm:$0xff] }
 0xa93   : > { %8480 = vmatpush.msrb.mxu1 %v8441_v11  ;;  %8246 = vmatpush.msrb.mxu3 %v8178_v5  ;;  %v8568_v11 = vld [vmem:[#allocation16 + $0xdc0] sm:$0xff]  ;;  %v8701_v5 = vld [vmem:[#allocation16 + $0xee8] sm:$0xff]  ;;  %v8438_v2 = vld [vmem:[#allocation16 + $0xcb0] sm:$0xff] }
 0xa94   : > { %8334 = vmatpush.msra.mxu2 %v8304_v32  ;;  %v7259_v51 = vsel %vm7001_vm10, %v7256_v0, %v7257_v6  ;;  %v8564_v32 = vld [vmem:[#allocation16 + $0xda0] sm:$0xff]  ;;  %v8693_v0 = vld [vmem:[#allocation16 + $0xea8] sm:$0xff] }
 0xa95   : > { %8481 = vmatpush.msrb.mxu1 %v8437_v63  ;;  %8247 = vmatpush.msrb.mxu3 %v8174_v54  ;;  %v7260_v1 = vsel %vm7003_vm12, %v12885_v8, %v7259_v51  ;;  %v8432_v8 = vld [vmem:[#allocation16 + $0xc80] sm:$0xff]  ;;  %v8430_v63 = vld [vmem:[#allocation16 + $0xc70] sm:$0xff]  ;;  %v8689_v6 = vld [vmem:[#allocation16 + $0xe88] sm:$0xff] }
 0xa96   : > { %8335 = vmatpush.msra.mxu2 %v8300_v55  ;;  %v7262_v61 = vadd.f32 %v7260_v1, %v12871_v26  ;;  %v8417_v26 = vld [vmem:[#allocation16 + $0xc08] sm:$0xff]  ;;  %v8556_v54 = vld [vmem:[#allocation16 + $0xd60] sm:$0xff]  ;;  %v8418_v1 = vld [vmem:[#allocation16 + $0xc10] sm:$0xff] }
 0xa97   : > { %8482 = vmatpush.msrb.mxu1 %v8433_v59  ;;  %8248 = vmatpush.msrb.mxu3 %v8170_v25  ;;  %v8552_v55 = vld [vmem:[#allocation16 + $0xd40] sm:$0xff]  ;;  %v8685_v59 = vld [vmem:[#allocation16 + $0xe68] sm:$0xff]  ;;  %v8422_v25 = vld [vmem:[#allocation16 + $0xc30] sm:$0xff] }
 0xa98   : > { %8336 = vmatpush.msra.mxu2 %v8296_v31  ;;  %v8548_v51 = vld [vmem:[#allocation16 + $0xd20] sm:$0xff]  ;;  %v8681_v31 = vld [vmem:[#allocation16 + $0xe48] sm:$0xff] }
 0xa99   : > { %8483 = vmatpush.msrb.mxu1 %v8429_v14  ;;  %8249 = vmatpush.msrb.mxu3 %v8166_v12  ;;  %v8544_v14 = vld [vmem:[#allocation16 + $0xd00] sm:$0xff]  ;;  %v8677_v12 = vld [vmem:[#allocation16 + $0xe28] sm:$0xff] }
 0xa9a   : > { %8337 = vmatpush.msra.mxu2 %v8292_v42  ;;  %v8700_v42 = vld [vmem:[#allocation16 + $0xee0] sm:$0xff] }
 0xa9b   : > { %8484 = vmatpush.msrb.mxu1 %v8425_v34  ;;  %8250 = vmatpush.msrb.mxu3 %v8162_v62  ;;  %v8673_v34 = vld [vmem:[#allocation16 + $0xe08] sm:$0xff]  ;;  %v8570_v62 = vld [vmem:[#allocation16 + $0xdd0] sm:$0xff] }
 0xa9c   : > { %8338 = vmatpush.msra.mxu2 %v8288_v56  ;;  %9563 = vmatmul.msk.f32.vlgmr.msrb.gmra.mxu3 %vm6139_vm15, %v12834_v52  ;;  %v8569_v52 = vld [vmem:[#allocation16 + $0xdc8] sm:$0xff]  ;;  %v8696_v56 = vld [vmem:[#allocation16 + $0xec0] sm:$0xff] }
 0xa9d   : > { %8485 = vmatpush.msrb.mxu1 %v8421_v15  ;;  %9565 = vmatmul.msk.f32.vlgmr.msra.gmra.mxu2 %vm6139_vm15, %v12845_v53  ;;  %v8566_v15 = vld [vmem:[#allocation16 + $0xdb0] sm:$0xff] }
 0xa9e   : > { %8371 = vmatpush.msra.mxu3 %v8318_v36  ;;  %8459 = vmatpush.msrb.mxu2 %v8444_v20  ;;  %v8692_v36 = vld [vmem:[#allocation16 + $0xea0] sm:$0xff]  ;;  %v8562_v20 = vld [vmem:[#allocation16 + $0xd90] sm:$0xff] }
 0xa9f   : > { %8486 = vmatpush.msrb.mxu1 %v8417_v26  ;;  %v8688_v26 = vld [vmem:[#allocation16 + $0xe80] sm:$0xff] }
 0xaa0   : > { %8372 = vmatpush.msra.mxu3 %v8314_v7  ;;  %8460 = vmatpush.msrb.mxu2 %v8440_v40  ;;  %v8684_v7 = vld [vmem:[#allocation16 + $0xe60] sm:$0xff]  ;;  %v8554_v40 = vld [vmem:[#allocation16 + $0xd50] sm:$0xff] }
 0xaa1   : > { %9570 = vmatmul.msk.f32.vlgmr.msrb.gmra.mxu1 %vm6139_vm15, %v12861_v13 }
 0xaa2   : > { %8607 = vmatpush.msra.mxu1 %v8573_v21  ;;  %8373 = vmatpush.msra.mxu3 %v8310_v60  ;;  %v8680_v21 = vld [vmem:[#allocation16 + $0xe40] sm:$0xff]  ;;  %v8550_v60 = vld [vmem:[#allocation16 + $0xd30] sm:$0xff] }
 0xaa3   : > { %8461 = vmatpush.msrb.mxu2 %v8436_v35  ;;  %v7356_v3 = vpop.f32.mrf.mxu3  ;;  %v8676_v35 = vld [vmem:[#allocation16 + $0xe20] sm:$0xff] }
 0xaa4   : > { %8608 = vmatpush.msra.mxu1 %v8569_v52  ;;  %8374 = vmatpush.msra.mxu3 %v8306_v4  ;;  %v7384_v19 = vrot.slane %v7356_v3, 6  ;;  %v8672_v52 = vld [vmem:[#allocation16 + $0xe00] sm:$0xff]  ;;  %v8702_v4 = vld [vmem:[#allocation16 + $0xef0] sm:$0xff] }
 0xaa5   : > { %8462 = vmatpush.msrb.mxu2 %v8432_v8  ;;  %v8698_v8 = vld [vmem:[#allocation16 + $0xed0] sm:$0xff] }
 0xaa6   : > { %8609 = vmatpush.msra.mxu1 %v8565_v17  ;;  %8375 = vmatpush.msra.mxu3 %v8302_v24  ;;  %v7387_v57 = vsel %vm7001_vm10, %v7384_v19, %v7385_v28  ;;  %v8694_v17 = vld [vmem:[#allocation16 + $0xeb0] sm:$0xff] }
 0xaa7   : > { %8463 = vmatpush.msrb.mxu2 %v8428_v49  ;;  %v7388_v22 = vsel %vm7003_vm12, %v12902_v29, %v7387_v57  ;;  %v8426_v29 = vld [vmem:[#allocation16 + $0xc50] sm:$0xff] }
 0xaa8   : > { %8610 = vmatpush.msra.mxu1 %v8561_v37  ;;  %8376 = vmatpush.msra.mxu3 %v8298_v43  ;;  %v12917_v9 = vadd.f32 %v7388_v22, %v7262_v61  ;;  %v8574_v61 = vld [vmem:[#allocation16 + $0xdf0] sm:$0xff]  ;;  %v12939_v37 = vpop.f32.mrf.mxu1  ;;  %v8860_v22 = vld [vmem:[#allocation19 + $0x1e0] sm:$0xff] }
 0xaa9   : > { %8464 = vmatpush.msrb.mxu2 %v8424_v46  ;;  %v8690_v24 = vld [vmem:[#allocation16 + $0xe90] sm:$0xff]  ;;  %v12943_v46 = vpop.f32.mrf.mxu2 }
 0xaaa   : > { %8611 = vmatpush.msra.mxu1 %v8557_v45  ;;  %8377 = vmatpush.msra.mxu3 %v8294_v39  ;;  %v8686_v3 = vld [vmem:[#allocation16 + $0xe70] sm:$0xff]  ;;  %v8828_v39 = vld [vmem:[#allocation19 + $0xe0] sm:$0xff] }
 0xaab   : > { %8465 = vmatpush.msrb.mxu2 %v8420_v38  ;;  %v8682_v28 = vld [vmem:[#allocation16 + $0xe50] sm:$0xff] }
 0xaac   : > { %8612 = vmatpush.msra.mxu1 %v8553_v23  ;;  %8378 = vmatpush.msra.mxu3 %v8290_v16  ;;  %v8678_v49 = vld [vmem:[#allocation16 + $0xe30] sm:$0xff] }
 0xaad   : > { %8466 = vmatpush.msrb.mxu2 %v8416_v33  ;;  %9567 = vmatmul.msk.f32.vlgmr.msra.gmra.mxu3 %vm6139_vm15, %v12845_v53  ;;  %v8434_v53 = vld [vmem:[#allocation16 + $0xc90] sm:$0xff] }
 0xaae   : > { %8613 = vmatpush.msra.mxu1 %v8549_v58  ;;  %9569 = vmatmul.msk.f32.vlgmr.msrb.gmra.mxu2 %vm6139_vm15, %v12861_v13  ;;  %v8674_v19 = vld [vmem:[#allocation16 + $0xe10] sm:$0xff] }
 0xaaf   : > { %8499 = vmatpush.msrb.mxu3 %v8446_v18  ;;  %8587 = vmatpush.msra.mxu2 %v8572_v50  ;;  %v8830_v57 = vld [vmem:[#allocation19 + $0xf0] sm:$0xff]  ;;  %v8824_v50 = vld [vmem:[#allocation19 + $0xc0] sm:$0xff] }
 0xab0   : > { %8614 = vmatpush.msra.mxu1 %v8545_v10  ;;  %v8862_v45 = vld [vmem:[#allocation19 + $0x1f0] sm:$0xff]  ;;  %v12947_v33 = vpop.f32.mrf.mxu1  ;;  %v8856_v10 = vld [vmem:[#allocation19 + $0x1c0] sm:$0xff] }
 0xab1   : > { %8500 = vmatpush.msrb.mxu3 %v8442_v47  ;;  %8588 = vmatpush.msra.mxu2 %v8568_v11  ;;  %v8826_v23 = vld [vmem:[#allocation19 + $0xd0] sm:$0xff] }
 0xab2   : > { %9574 = vmatmul.msk.f32.vlgmr.msra.gmra.mxu1 %vm6139_vm15, %v12878_v30  ;;  %v8858_v16 = vld [vmem:[#allocation19 + $0x1d0] sm:$0xff] }
 0xab3   : > { %8735 = vmatpush.msrb.mxu1 %v8701_v5  ;;  %8501 = vmatpush.msrb.mxu3 %v8438_v2  ;;  %v8894_v58 = vld [vmem:[#allocation19 + $0x2f0] sm:$0xff] }
 0xab4   : > { %8589 = vmatpush.msra.mxu2 %v8564_v32  ;;  %v8918_v18 = vld [vmem:[#allocation19 + $0x3b0] sm:$0xff] }
 0xab5   : > { %8736 = vmatpush.msrb.mxu1 %v8697_v48  ;;  %8502 = vmatpush.msrb.mxu3 %v8434_v53  ;;  %v12941_v43 = vpop.f32.mrf.mxu3  ;;  %v12951_v47 = vpop.f32.mrf.mxu2  ;;  %v8822_v11 = vld [vmem:[#allocation19 + $0xb0] sm:$0xff]  ;;  %v8820_v53 = vld [vmem:[#allocation19 + $0xa0] sm:$0xff] }
 0xab6   : > { %8590 = vmatpush.msra.mxu2 %v8560_v27  ;;  %9001 = vmatpush.msrb.mxu0 %v8918_v18  ;;  %v8854_v5 = vld [vmem:[#allocation19 + $0x1b0] sm:$0xff]  ;;  %v8852_v27 = vld [vmem:[#allocation19 + $0x1a0] sm:$0xff] }
 0xab7   : > { %8737 = vmatpush.msrb.mxu1 %v8693_v0  ;;  %8503 = vmatpush.msrb.mxu3 %v8430_v63  ;;  %v8892_v0 = vld [vmem:[#allocation19 + $0x2e0] sm:$0xff]  ;;  %v8874_v18 = vld [vmem:[#allocation19 + $0x250] sm:$0xff] }
 0xab8   : > { %8591 = vmatpush.msra.mxu2 %v8556_v54  ;;  %v12955_v32 = vpop.f32.mrf.mxu1  ;;  %v8916_v63 = vld [vmem:[#allocation19 + $0x3a0] sm:$0xff]  ;;  %v8818_v54 = vld [vmem:[#allocation19 + $0x90] sm:$0xff] }
 0xab9   : > { %8738 = vmatpush.msrb.mxu1 %v8689_v6  ;;  %8504 = vmatpush.msrb.mxu3 %v8426_v29  ;;  %v8850_v6 = vld [vmem:[#allocation19 + $0x190] sm:$0xff] }
 0xaba   : > { %8592 = vmatpush.msra.mxu2 %v8552_v55  ;;  %9002 = vmatpush.msrb.mxu0 %v8916_v63  ;;  %v8890_v55 = vld [vmem:[#allocation19 + $0x2d0] sm:$0xff]  ;;  %v8895_v63 = vld [vmem:[#allocation19 + $0x2f8] sm:$0xff] }
 0xabb   : > { %8739 = vmatpush.msrb.mxu1 %v8685_v59  ;;  %8505 = vmatpush.msrb.mxu3 %v8422_v25  ;;  %v8914_v59 = vld [vmem:[#allocation19 + $0x390] sm:$0xff]  ;;  %v8816_v25 = vld [vmem:[#allocation19 + $0x80] sm:$0xff] }
 0xabc   : > { %8593 = vmatpush.msra.mxu2 %v8548_v51  ;;  %9003 = vmatpush.msrb.mxu0 %v8914_v59  ;;  %v8848_v51 = vld [vmem:[#allocation19 + $0x180] sm:$0xff]  ;;  %v8861_v59 = vld [vmem:[#allocation19 + $0x1e8] sm:$0xff] }
 0xabd   : > { %8740 = vmatpush.msrb.mxu1 %v8681_v31  ;;  %8506 = vmatpush.msrb.mxu3 %v8418_v1  ;;  %v8888_v31 = vld [vmem:[#allocation19 + $0x2c0] sm:$0xff] }
 0xabe   : > { %8594 = vmatpush.msra.mxu2 %v8544_v14  ;;  %9571 = vmatmul.msk.f32.vlgmr.msrb.gmra.mxu3 %vm6139_vm15, %v12861_v13  ;;  %v8558_v13 = vld [vmem:[#allocation16 + $0xd70] sm:$0xff]  ;;  %v8912_v1 = vld [vmem:[#allocation19 + $0x380] sm:$0xff] }
 0xabf   : > { %8741 = vmatpush.msrb.mxu1 %v8677_v12  ;;  %9573 = vmatmul.msk.f32.vlgmr.msra.gmra.mxu2 %vm6139_vm15, %v12878_v30  ;;  %v8814_v14 = vld [vmem:[#allocation19 + $0x70] sm:$0xff] }
 0xac0   : > { %8627 = vmatpush.msra.mxu3 %v8574_v61  ;;  %8715 = vmatpush.msrb.mxu2 %v8700_v42  ;;  %v8846_v12 = vld [vmem:[#allocation19 + $0x170] sm:$0xff] }
 0xac1   : > { %8742 = vmatpush.msrb.mxu1 %v8673_v34  ;;  %9004 = vmatpush.msrb.mxu0 %v8912_v1  ;;  %v8886_v61 = vld [vmem:[#allocation19 + $0x2b0] sm:$0xff]  ;;  %v8868_v1 = vld [vmem:[#allocation19 + $0x220] sm:$0xff] }
 0xac2   : > { %8628 = vmatpush.msra.mxu3 %v8570_v62  ;;  %8716 = vmatpush.msrb.mxu2 %v8696_v56  ;;  %v8910_v34 = vld [vmem:[#allocation19 + $0x370] sm:$0xff]  ;;  %v8812_v62 = vld [vmem:[#allocation19 + $0x60] sm:$0xff] }
 0xac3   : > { %9578 = vmatmul.msk.f32.vlgmr.msrb.gmra.mxu1 %vm6139_vm15, %v12894_v41  ;;  %v8844_v56 = vld [vmem:[#allocation19 + $0x160] sm:$0xff]  ;;  %9005 = vmatpush.msrb.mxu0 %v8910_v34  ;;  %v8866_v34 = vld [vmem:[#allocation19 + $0x210] sm:$0xff] }
 0xac4   : > { %8629 = vmatpush.msra.mxu3 %v8566_v15  ;;  %8717 = vmatpush.msrb.mxu2 %v8692_v36 }
 0xac5   : > { %8957 = vmatpush.msra.mxu1 %v8862_v45  ;;  %v12963_v15 = vpop.f32.mrf.mxu1  ;;  %v8900_v45 = vld [vmem:[#allocation19 + $0x320] sm:$0xff] }
 0xac6   : > { %8630 = vmatpush.msra.mxu3 %v8562_v20  ;;  %8718 = vmatpush.msrb.mxu2 %v8688_v26  ;;  %v8884_v20 = vld [vmem:[#allocation19 + $0x2a0] sm:$0xff] }
 0xac7   : > { %8958 = vmatpush.msra.mxu1 %v8860_v22  ;;  %v12959_v29 = vpop.f32.mrf.mxu2  ;;  %v8908_v26 = vld [vmem:[#allocation19 + $0x360] sm:$0xff] }
 0xac8   : > { %8631 = vmatpush.msra.mxu3 %v8558_v13  ;;  %8719 = vmatpush.msrb.mxu2 %v8684_v7  ;;  %v8810_v13 = vld [vmem:[#allocation19 + $0x50] sm:$0xff] }
 0xac9   : > { %8959 = vmatpush.msra.mxu1 %v8858_v16  ;;  %v8842_v7 = vld [vmem:[#allocation19 + $0x150] sm:$0xff]  ;;  %9006 = vmatpush.msrb.mxu0 %v8908_v26  ;;  %v8889_v26 = vld [vmem:[#allocation19 + $0x2c8] sm:$0xff] }
 0xaca   : > { %8632 = vmatpush.msra.mxu3 %v8554_v40  ;;  %8720 = vmatpush.msrb.mxu2 %v8680_v21  ;;  %v8882_v40 = vld [vmem:[#allocation19 + $0x290] sm:$0xff] }
 0xacb   : > { %8960 = vmatpush.msra.mxu1 %v8856_v10  ;;  %v8906_v21 = vld [vmem:[#allocation19 + $0x350] sm:$0xff]  ;;  %v8800_v10 = vld [vmem:[#allocation19] sm:$0xff] }
 0xacc   : > { %8633 = vmatpush.msra.mxu3 %v8550_v60  ;;  %8721 = vmatpush.msrb.mxu2 %v8676_v35  ;;  %v8808_v35 = vld [vmem:[#allocation19 + $0x40] sm:$0xff]  ;;  %v8802_v16 = vld [vmem:[#allocation19 + $0x10] sm:$0xff] }
 0xacd   : > { %8961 = vmatpush.msra.mxu1 %v8854_v5  ;;  %9007 = vmatpush.msrb.mxu0 %v8906_v21  ;;  %v8872_v5 = vld [vmem:[#allocation19 + $0x240] sm:$0xff]  ;;  %v8887_v21 = vld [vmem:[#allocation19 + $0x2b8] sm:$0xff] }
 0xace   : > { %8634 = vmatpush.msra.mxu3 %v8546_v44  ;;  %8722 = vmatpush.msrb.mxu2 %v8672_v52  ;;  %v8840_v44 = vld [vmem:[#allocation19 + $0x140] sm:$0xff] }
 0xacf   : > { %9575 = vmatmul.msk.f32.vlgmr.msra.gmra.mxu3 %vm6139_vm15, %v12878_v30  ;;  %9577 = vmatmul.msk.f32.vlgmr.msrb.gmra.mxu2 %vm6139_vm15, %v12894_v41  ;;  %v12937_v30 = vpop.f32.mrf.mxu0  ;;  %v8880_v52 = vld [vmem:[#allocation19 + $0x280] sm:$0xff] }
 0xad0   : > { %8755 = vmatpush.msrb.mxu3 %v8702_v4  ;;  %8937 = vmatpush.msra.mxu2 %v8830_v57  ;;  %v8904_v4 = vld [vmem:[#allocation19 + $0x340] sm:$0xff] }
 0xad1   : > { %8962 = vmatpush.msra.mxu1 %v8852_v27  ;;  %9008 = vmatpush.msrb.mxu0 %v8904_v4  ;;  %v8876_v57 = vld [vmem:[#allocation19 + $0x260] sm:$0xff]  ;;  %v8831_v27 = vld [vmem:[#allocation19 + $0xf8] sm:$0xff] }
 0xad2   : > { %8756 = vmatpush.msrb.mxu3 %v8698_v8  ;;  %8938 = vmatpush.msra.mxu2 %v8828_v39  ;;  %v8806_v8 = vld [vmem:[#allocation19 + $0x30] sm:$0xff] }
 0xad3   : > { %8963 = vmatpush.msra.mxu1 %v8850_v6 }
 0xad4   : > { %8757 = vmatpush.msrb.mxu3 %v8694_v17  ;;  %8939 = vmatpush.msra.mxu2 %v8826_v23  ;;  %v8838_v17 = vld [vmem:[#allocation19 + $0x130] sm:$0xff] }
 0xad5   : > { %8964 = vmatpush.msra.mxu1 %v8848_v51 }
 0xad6   : > { %8758 = vmatpush.msrb.mxu3 %v8690_v24  ;;  %8940 = vmatpush.msra.mxu2 %v8824_v50  ;;  %v8878_v24 = vld [vmem:[#allocation19 + $0x270] sm:$0xff] }
 0xad7   : > { %v12945_v38 = vpop.f32.mrf.mxu0  ;;  %8965 = vmatpush.msra.mxu1 %v8846_v12  ;;  %v12971_v39 = vpop.f32.mrf.mxu1  ;;  %v8898_v50 = vld [vmem:[#allocation19 + $0x310] sm:$0xff]  ;;  %v8859_v12 = vld [vmem:[#allocation19 + $0x1d8] sm:$0xff] }
 0xad8   : > { %8759 = vmatpush.msrb.mxu3 %v8686_v3  ;;  %8941 = vmatpush.msra.mxu2 %v8822_v11  ;;  %v8902_v3 = vld [vmem:[#allocation19 + $0x330] sm:$0xff]  ;;  %v8832_v11 = vld [vmem:[#allocation19 + $0x100] sm:$0xff] }
 0xad9   : > { %8966 = vmatpush.msra.mxu1 %v8844_v56  ;;  %v12967_v60 = vpop.f32.mrf.mxu2  ;;  %9009 = vmatpush.msrb.mxu0 %v8902_v3  ;;  %v8825_v56 = vld [vmem:[#allocation19 + $0xc8] sm:$0xff] }
 0xada   : > { %8760 = vmatpush.msrb.mxu3 %v8682_v28  ;;  %8942 = vmatpush.msra.mxu2 %v8820_v53  ;;  %v8804_v28 = vld [vmem:[#allocation19 + $0x20] sm:$0xff] }
 0xadb   : > { %8967 = vmatpush.msra.mxu1 %v8842_v7  ;;  %9010 = vmatpush.msrb.mxu0 %v8900_v45  ;;  %v8896_v53 = vld [vmem:[#allocation19 + $0x300] sm:$0xff]  ;;  %v8823_v7 = vld [vmem:[#allocation19 + $0xb8] sm:$0xff] }
 0xadc   : > { %8761 = vmatpush.msrb.mxu3 %v8678_v49  ;;  %8943 = vmatpush.msra.mxu2 %v8818_v54  ;;  %v8836_v49 = vld [vmem:[#allocation19 + $0x120] sm:$0xff]  ;;  %v8870_v54 = vld [vmem:[#allocation19 + $0x230] sm:$0xff] }
 0xadd   : > { %8968 = vmatpush.msra.mxu1 %v8840_v44  ;;  %9011 = vmatpush.msrb.mxu0 %v8898_v50  ;;  %v8821_v44 = vld [vmem:[#allocation19 + $0xa8] sm:$0xff] }
 0xade   : > { %8762 = vmatpush.msrb.mxu3 %v8674_v19  ;;  %8944 = vmatpush.msra.mxu2 %v8816_v25  ;;  %v8893_v25 = vld [vmem:[#allocation19 + $0x2e8] sm:$0xff] }
 0xadf   : > { %9579 = vmatmul.msk.f32.vlgmr.msrb.gmra.mxu3 %vm6139_vm15, %v12894_v41  ;;  %v12949_v41 = vpop.f32.mrf.mxu3  ;;  %v12953_v2 = vpop.f32.mrf.mxu0  ;;  %8969 = vmatpush.msra.mxu1 %v8838_v17  ;;  %v8917_v17 = vld [vmem:[#allocation19 + $0x3a8] sm:$0xff]  ;;  %vm8934_vm15 = vcmask 785408  }
 0xae0   : > { %8977 = vmatpush.msra.mxu3 %v8894_v58  ;;  %8945 = vmatpush.msra.mxu2 %v8814_v14  ;;  %v8834_v58 = vld [vmem:[#allocation19 + $0x110] sm:$0xff]  ;;  %v8827_v14 = vld [vmem:[#allocation19 + $0xd8] sm:$0xff]  ;;  %v8881_v50 = vld [vmem:[#allocation19 + $0x288] sm:$0xff] }
 0xae1   : > { %8970 = vmatpush.msra.mxu1 %v8836_v49  ;;  %9012 = vmatpush.msrb.mxu0 %v8896_v53  ;;  %v8851_v49 = vld [vmem:[#allocation19 + $0x198] sm:$0xff] }
 0xae2   : > { %8978 = vmatpush.msra.mxu3 %v8892_v0  ;;  %8946 = vmatpush.msra.mxu2 %v8812_v62  ;;  %v8863_v0 = vld [vmem:[#allocation19 + $0x1f8] sm:$0xff] }
 0xae3   : > { %8971 = vmatpush.msra.mxu1 %v8834_v58  ;;  %9037 = vmatpush.msra.mxu0 %v8863_v0  ;;  %v8817_v58 = vld [vmem:[#allocation19 + $0x88] sm:$0xff]  ;;  %v8879_v53 = vld [vmem:[#allocation19 + $0x278] sm:$0xff] }
 0xae4   : > { %8979 = vmatpush.msra.mxu3 %v8890_v55  ;;  %8947 = vmatpush.msra.mxu2 %v8810_v13  ;;  %v8829_v55 = vld [vmem:[#allocation19 + $0xe8] sm:$0xff]  ;;  %v8864_v13 = vld [vmem:[#allocation19 + $0x200] sm:$0xff] }
 0xae5   : > { %8972 = vmatpush.msra.mxu1 %v8832_v11  ;;  %9038 = vmatpush.msra.mxu0 %v8861_v59  ;;  %v8815_v11 = vld [vmem:[#allocation19 + $0x78] sm:$0xff]  ;;  %v7512_v59 = vrot.slane %v12941_v43, 6 }
 0xae6   : > { %8980 = vmatpush.msra.mxu3 %v8888_v31  ;;  %8948 = vmatpush.msra.mxu2 %v8808_v35  ;;  %v8919_v35 = vld [vmem:[#allocation19 + $0x3b8] sm:$0xff] }
 0xae7   : > { %v12957_v48 = vpop.f32.mrf.mxu3  ;;  %v12961_v42 = vpop.f32.mrf.mxu0  ;;  %9057 = vmatpush.msrb.mxu1 %v8895_v63  ;;  %9039 = vmatpush.msra.mxu0 %v8859_v12  ;;  %v8813_v63 = vld [vmem:[#allocation19 + $0x68] sm:$0xff]  ;;  %v8811_v12 = vld [vmem:[#allocation19 + $0x58] sm:$0xff] }
 0xae8   : > { %8981 = vmatpush.msra.mxu3 %v8886_v61  ;;  %8949 = vmatpush.msra.mxu2 %v8806_v8  ;;  %v8891_v61 = vld [vmem:[#allocation19 + $0x2d8] sm:$0xff]  ;;  %v8885_v8 = vld [vmem:[#allocation19 + $0x2a8] sm:$0xff] }
 0xae9   : > { %v12979_v51 = vpop.f32.mrf.mxu1  ;;  %9058 = vmatpush.msrb.mxu1 %v8893_v25  ;;  %v8907_v43 = vld [vmem:[#allocation19 + $0x358] sm:$0xff] }
 0xaea   : > { %8982 = vmatpush.msra.mxu3 %v8884_v20  ;;  %8950 = vmatpush.msra.mxu2 %v8804_v28  ;;  %v8857_v20 = vld [vmem:[#allocation19 + $0x1c8] sm:$0xff]  ;;  %v8819_v28 = vld [vmem:[#allocation19 + $0x98] sm:$0xff] }
 0xaeb   : > { %v12975_v23 = vpop.f32.mrf.mxu2  ;;  %9059 = vmatpush.msrb.mxu1 %v8891_v61  ;;  %9040 = vmatpush.msra.mxu0 %v8857_v20  ;;  %v8843_v61 = vld [vmem:[#allocation19 + $0x158] sm:$0xff]  ;;  %v7640_v20 = vrot.slane %v12949_v41, 6  ;;  %v8905_v41 = vld [vmem:[#allocation19 + $0x348] sm:$0xff] }
 0xaec   : > { %8983 = vmatpush.msra.mxu3 %v8882_v40  ;;  %8951 = vmatpush.msra.mxu2 %v8802_v16  ;;  %v8855_v40 = vld [vmem:[#allocation19 + $0x1b8] sm:$0xff] }
 0xaed   : > { %9060 = vmatpush.msrb.mxu1 %v8889_v26  ;;  %9041 = vmatpush.msra.mxu0 %v8855_v40  ;;  %v8915_v16 = vld [vmem:[#allocation19 + $0x398] sm:$0xff]  ;;  %v8873_v40 = vld [vmem:[#allocation19 + $0x248] sm:$0xff] }
 0xaee   : > { %8984 = vmatpush.msra.mxu3 %v8880_v52  ;;  %8952 = vmatpush.msra.mxu2 %v8800_v10  ;;  %v8853_v52 = vld [vmem:[#allocation19 + $0x1a8] sm:$0xff] }
 0xaef   : > { %v12965_v36 = vpop.f32.mrf.mxu3  ;;  %v12969_v19 = vpop.f32.mrf.mxu0  ;;  %9061 = vmatpush.msrb.mxu1 %v8887_v21  ;;  %9042 = vmatpush.msra.mxu0 %v8853_v52  ;;  %v8913_v10 = vld [vmem:[#allocation19 + $0x388] sm:$0xff]  ;;  %v7641_v21 = vrot.slane %v12945_v38, 5  ;;  %v7769_v52 = vrot.slane %v12953_v2, 5 }
 0xaf0   : > { %8985 = vmatpush.msra.mxu3 %v8878_v24  ;;  %9017 = vmatpush.msrb.mxu2 %v8831_v27  ;;  %v8911_v27 = vld [vmem:[#allocation19 + $0x378] sm:$0xff] }
 0xaf1   : > { %9062 = vmatpush.msrb.mxu1 %v8885_v8  ;;  %9043 = vmatpush.msra.mxu0 %v8851_v49  ;;  %v7639_v8 = vrot.slane %v12947_v33, 7  ;;  %v7643_v38 = vsel %vm7001_vm10, %v7640_v20, %v7641_v21  ;;  %v8871_v49 = vld [vmem:[#allocation19 + $0x238] sm:$0xff] }
 0xaf2   : > { %8986 = vmatpush.msra.mxu3 %v8876_v57  ;;  %9018 = vmatpush.msrb.mxu2 %v8829_v55  ;;  %v8883_v57 = vld [vmem:[#allocation19 + $0x298] sm:$0xff]  ;;  %v8877_v55 = vld [vmem:[#allocation19 + $0x268] sm:$0xff] }
 0xaf3   : > { %9063 = vmatpush.msrb.mxu1 %v8883_v57  ;;  %v7897_v57 = vrot.slane %v12961_v42, 5  ;;  %v8903_v33 = vld [vmem:[#allocation19 + $0x338] sm:$0xff] }
 0xaf4   : > { %8987 = vmatpush.msra.mxu3 %v8874_v18  ;;  %9019 = vmatpush.msrb.mxu2 %v8827_v14  ;;  %v8849_v18 = vld [vmem:[#allocation19 + $0x188] sm:$0xff] }
 0xaf5   : > { %9044 = vmatpush.msra.mxu0 %v8849_v18  ;;  %9064 = vmatpush.msrb.mxu1 %v8881_v50  ;;  %v8909_v14 = vld [vmem:[#allocation19 + $0x368] sm:$0xff]  ;;  %v7767_v18 = vrot.slane %v12955_v32, 7 }
 0xaf6   : > { %8988 = vmatpush.msra.mxu3 %v8872_v5  ;;  %9020 = vmatpush.msrb.mxu2 %v8825_v56  ;;  %v8847_v5 = vld [vmem:[#allocation19 + $0x178] sm:$0xff]  ;;  %v7513_v56 = vrot.slane %v12937_v30, 5  ;;  %v7768_v30 = vrot.slane %v12957_v48, 6 }
 0xaf7   : > { %v12977_v6 = vpop.f32.mrf.mxu0  ;;  %9045 = vmatpush.msra.mxu0 %v8847_v5  ;;  %9065 = vmatpush.msrb.mxu1 %v8879_v53  ;;  %v8839_v48 = vld [vmem:[#allocation19 + $0x138] sm:$0xff]  ;;  %v8869_v5 = vld [vmem:[#allocation19 + $0x228] sm:$0xff] }
 0xaf8   : > { %8989 = vmatpush.msra.mxu3 %v8870_v54  ;;  %9021 = vmatpush.msrb.mxu2 %v8823_v7  ;;  %v8845_v54 = vld [vmem:[#allocation19 + $0x168] sm:$0xff]  ;;  %v7771_v50 = vsel %vm7001_vm10, %v7768_v30, %v7769_v52 }
 0xaf9   : > { %9046 = vmatpush.msra.mxu0 %v8845_v54  ;;  %9066 = vmatpush.msrb.mxu1 %v8877_v55  ;;  %v8841_v7 = vld [vmem:[#allocation19 + $0x148] sm:$0xff]  ;;  %v8867_v54 = vld [vmem:[#allocation19 + $0x218] sm:$0xff] }
 0xafa   : > { %8990 = vmatpush.msra.mxu3 %v8868_v1  ;;  %9022 = vmatpush.msrb.mxu2 %v8821_v44  ;;  %v7515_v44 = vsel %vm7001_vm10, %v7512_v59, %v7513_v56  ;;  %v8901_v53 = vld [vmem:[#allocation19 + $0x328] sm:$0xff]  ;;  %v8899_v55 = vld [vmem:[#allocation19 + $0x318] sm:$0xff]  ;;  %v7895_v59 = vrot.slane %v12963_v15, 7  ;;  %v8023_v15 = vrot.slane %v12971_v39, 7 }
 0xafb   : > { %v12987_v24 = vpop.f32.mrf.mxu1  ;;  %9047 = vmatpush.msra.mxu0 %v8843_v61 }
 0xafc   : > { %8991 = vmatpush.msra.mxu3 %v8866_v34  ;;  %9023 = vmatpush.msrb.mxu2 %v8819_v28  ;;  %v8875_v34 = vld [vmem:[#allocation19 + $0x258] sm:$0xff]  ;;  %v8026_v39 = vsel %vm6999_vm3, %v12975_v23, %v8023_v15  ;;  %v9128_v15 = vld [vmem:[#allocation22 + $0xe8] sm:$0xff] }
 0xafd   : > { %v12973_v22 = vpop.f32.mrf.mxu3  ;;  %v12983_v62 = vpop.f32.mrf.mxu2  ;;  %9067 = vmatpush.msrb.mxu1 %v8875_v34  ;;  %9048 = vmatpush.msra.mxu0 %v8841_v7  ;;  %v8807_v28 = vld [vmem:[#allocation19 + $0x38] sm:$0xff]  ;;  %v8833_v34 = vld [vmem:[#allocation19 + $0x108] sm:$0xff] }
 0xafe   : > { %8992 = vmatpush.msra.mxu3 %v8864_v13  ;;  %9024 = vmatpush.msrb.mxu2 %v8817_v58  ;;  %v8809_v13 = vld [vmem:[#allocation19 + $0x48] sm:$0xff] }
 0xaff   : > { %v12985_v4 = vpop.f32.mrf.mxu0  ;;  %9068 = vmatpush.msrb.mxu1 %v8873_v40  ;;  %9049 = vmatpush.msra.mxu0 %v8839_v48  ;;  %v8805_v58 = vld [vmem:[#allocation19 + $0x28] sm:$0xff]  ;;  %v8153_v40 = vrot.slane %v12977_v6, 5 }
 0xb00   : > { %9081 = vmatpush.msrb.mxu3 %v8919_v35  ;;  %9025 = vmatpush.msrb.mxu2 %v8815_v11  ;;  %v7511_v35 = vrot.slane %v12939_v37, 7  ;;  %v7896_v37 = vrot.slane %v12965_v36, 6  ;;  %v7642_v36 = vsel %vm6999_vm3, %v12951_v47, %v7639_v8  ;;  %v8835_v47 = vld [vmem:[#allocation19 + $0x118] sm:$0xff] }
 0xb01   : > { %9069 = vmatpush.msrb.mxu1 %v8871_v49  ;;  %v7644_v32 = vsel %vm7003_vm12, %v7642_v36, %v7643_v38  ;;  %v8279_v38 = vrot.slane %v12987_v24, 7 }
 0xb02   : > { %9082 = vmatpush.msrb.mxu3 %v8917_v17  ;;  %9026 = vmatpush.msrb.mxu2 %v8813_v63  ;;  %v7514_v17 = vsel %vm6999_vm3, %v12943_v46, %v7511_v35  ;;  %v8837_v46 = vld [vmem:[#allocation19 + $0x128] sm:$0xff]  ;;  %v8025_v63 = vrot.slane %v12969_v19, 5  ;;  %v8281_v35 = vrot.slane %v12985_v4, 5 }
 0xb03   : > { %v7516_v2 = vsel %vm7003_vm12, %v7514_v17, %v7515_v44  ;;  %9050 = vmatpush.msra.mxu0 %v8837_v46  ;;  %9070 = vmatpush.msrb.mxu1 %v8869_v5  ;;  %v8801_v19 = vld [vmem:[#allocation19 + $0x8] sm:$0xff] }
 0xb04   : > { %9083 = vmatpush.msrb.mxu3 %v8915_v16  ;;  %9027 = vmatpush.msrb.mxu2 %v8811_v12  ;;  %v7899_v12 = vsel %vm7001_vm10, %v7896_v37, %v7897_v57 }
 0xb05   : > { %9051 = vmatpush.msra.mxu0 %v8835_v47  ;;  %9071 = vmatpush.msrb.mxu1 %v8867_v54 }
 0xb06   : > { %9084 = vmatpush.msrb.mxu3 %v8913_v10  ;;  %9028 = vmatpush.msrb.mxu2 %v8809_v13  ;;  %v8024_v10 = vrot.slane %v12973_v22, 6  ;;  %v7518_v22 = vadd.f32 %v7516_v2, %v12917_v9  ;;  %v8897_v9 = vld [vmem:[#allocation19 + $0x308] sm:$0xff] }
 0xb07   : > { %v12993_v0 = vpop.f32.mrf.mxu0  ;;  %9052 = vmatpush.msra.mxu0 %v8833_v34 }
 0xb08   : > { %9085 = vmatpush.msrb.mxu3 %v8911_v27  ;;  %9029 = vmatpush.msrb.mxu2 %v8807_v28  ;;  %v8803_v27 = vld [vmem:[#allocation19 + $0x18] sm:$0xff]  ;;  %v7646_v13 = vadd.f32 %v7644_v32, %v7518_v22  ;;  %v8027_v7 = vsel %vm7001_vm10, %v8024_v10, %v8025_v63 }
 0xb0a   : > { %9086 = vmatpush.msrb.mxu3 %v8909_v14  ;;  %9030 = vmatpush.msrb.mxu2 %v8805_v58  ;;  %v7770_v14 = vsel %vm6999_vm3, %v12959_v29, %v7767_v18  ;;  %v7898_v29 = vsel %vm6999_vm3, %v12967_v60, %v7895_v59  ;;  %v8151_v60 = vrot.slane %v12979_v51, 7 }
 0xb0b   : > { %v7772_v56 = vsel %vm7003_vm12, %v7770_v14, %v7771_v50  ;;  %v7900_v21 = vsel %vm7003_vm12, %v7898_v29, %v7899_v12  ;;  %v9113_v29 = vld [vmem:[#allocation22 + $0x70] sm:$0xff] }
 0xb0c   : > { %9087 = vmatpush.msrb.mxu3 %v8907_v43  ;;  %9031 = vmatpush.msrb.mxu2 %v8803_v27  ;;  %v8865_v43 = vld [vmem:[#allocation19 + $0x208] sm:$0xff]  ;;  %v7774_v44 = vadd.f32 %v7772_v56, %v7646_v13  ;;  %v8154_v23 = vsel %vm6999_vm3, %v12983_v62, %v8151_v60  ;;  %v9114_v13 = vld [vmem:[#allocation22 + $0x78] sm:$0xff] }
 0xb0d   : > { %v12996_v25 = vpop.f32.mrf.mxu1  ;;  %9072 = vmatpush.msrb.mxu1 %v8865_v43  ;;  %v9106_v60 = vld [vmem:[#allocation22 + $0x38] sm:$0xff] }
 0xb0e   : > { %9088 = vmatpush.msrb.mxu3 %v8905_v41  ;;  %9032 = vmatpush.msrb.mxu2 %v8801_v19  ;;  %v8028_v41 = vsel %vm7003_vm12, %v8026_v39, %v8027_v7  ;;  %v7902_v8 = vadd.f32 %v7900_v21, %v7774_v44  ;;  %v9112_v7 = vld [vmem:[#allocation22 + $0x68] sm:$0xff]  ;;  %v9110_v21 = vld [vmem:[#allocation22 + $0x58] sm:$0xff]  ;;  %v9107_v44 = vld [vmem:[#allocation22 + $0x40] sm:$0xff] }
 0xb0f   : > { %v12981_v31 = vpop.f32.mrf.mxu3  ;;  %v12991_v45 = vpop.f32.mrf.mxu2  ;;  %v9127_v39 = vld [vmem:[#allocation22 + $0xe0] sm:$0xff] }
 0xb10   : > { %v13016_v16 = vpop.f32.mrf.mxu0  ;;  %9089 = vmatpush.msrb.mxu3 %v8903_v33  ;;  %v8152_v20 = vrot.slane %v12981_v31, 6  ;;  %v8030_v48 = vadd.f32 %v8028_v41, %v7902_v8  ;;  %v8282_v57 = vsel %vm6999_vm3, %v12991_v45, %v8279_v38  ;;  %v9105_v41 = vld [vmem:[#allocation22 + $0x30] sm:$0xff]  ;;  %v9103_v8 = vld [vmem:[#allocation22 + $0x20] sm:$0xff]  ;;  %v9122_v38 = vld [vmem:[#allocation22 + $0xb8] sm:$0xff] }
 0xb11   : > { %v8537_v28 = vrot.slane %v13016_v16, 5 }
 0xb12   : > { %9090 = vmatpush.msrb.mxu3 %v8901_v53  ;;  %v8155_v6 = vsel %vm7001_vm10, %v8152_v20, %v8153_v40  ;;  %v9111_v40 = vld [vmem:[#allocation22 + $0x60] sm:$0xff] }
 0xb13   : > { %v8156_v49 = vsel %vm7003_vm12, %v8154_v23, %v8155_v6  ;;  %v9125_v6 = vld [vmem:[#allocation22 + $0xd0] sm:$0xff] }
 0xb14   : > { %9091 = vmatpush.msrb.mxu3 %v8899_v55  ;;  %v8158_v58 = vadd.f32 %v8156_v49, %v8030_v48  ;;  %v9101_v23 = vld [vmem:[#allocation22 + $0x10] sm:$0xff]  ;;  %v9099_v48 = vld [vmem:[#allocation22] sm:$0xff] }
 0xb15   : > { %v9119_v49 = vld [vmem:[#allocation22 + $0xa0] sm:$0xff] }
 0xb16   : > { %9092 = vmatpush.msrb.mxu3 %v8897_v9 }
 0xb18   : > { %v8656_v30 = vpop.f32.mrf.mxu0 }
 0xb19   : > { %v8665_v33 = vrot.slane %v8656_v30, 5  ;;  %v9126_v30 = vld [vmem:[#allocation22 + $0xd8] sm:$0xff] }
 0xb1e   : > { %v13023_v11 = vpop.f32.mrf.mxu1 }
 0xb1f   : > { %v12989_v3 = vpop.f32.mrf.mxu3  ;;  %v8535_v46 = vrot.slane %v13023_v11, 7 }
 0xb20   : > { %v13002_v26 = vpop.f32.mrf.mxu2  ;;  %v8280_v31 = vrot.slane %v12989_v3, 6  ;;  %v8409_v3 = vrot.slane %v12993_v0, 5  ;;  %v8407_v0 = vrot.slane %v12996_v25, 7 }
 0xb22   : > { %v8283_v37 = vsel %vm7001_vm10, %v8280_v31, %v8281_v35  ;;  %v8410_v16 = vsel %vm6999_vm3, %v13002_v26, %v8407_v0  ;;  %v9109_v31 = vld [vmem:[#allocation22 + $0x50] sm:$0xff]  ;;  %v9108_v35 = vld [vmem:[#allocation22 + $0x48] sm:$0xff] }
 0xb23   : > { %v8284_v62 = vsel %vm7003_vm12, %v8282_v57, %v8283_v37  ;;  %v9121_v37 = vld [vmem:[#allocation22 + $0xb0] sm:$0xff]  ;;  %v9116_v57 = vld [vmem:[#allocation22 + $0x88] sm:$0xff] }
 0xb24   : > { %v8286_v25 = vadd.f32 %v8284_v62, %v8158_v58  ;;  %v9117_v0 = vld [vmem:[#allocation22 + $0x90] sm:$0xff]  ;;  %v9186_v58 = vld [vmem:[%s13171_s17 + $0x58] sm:$0xff] }
 0xb25   : > { %v9187_v62 = vld [vmem:[%s13171_s17 + $0x60] sm:$0xff] }
 0xb2f   : > { %v8616_v17 = vpop.f32.mrf.mxu1 }
 0xb30   : > { %v12998_v1 = vpop.f32.mrf.mxu3  ;;  %v8663_v50 = vrot.slane %v8616_v17, 7  ;;  %v9123_v17 = vld [vmem:[#allocation22 + $0xc0] sm:$0xff] }
 0xb31   : > { %v8468_v61 = vpop.f32.mrf.mxu2  ;;  %v8408_v52 = vrot.slane %v12998_v1, 6 }
 0xb32   : > { %v8538_v45 = vsel %vm6999_vm3, %v8468_v61, %v8535_v46  ;;  %v9185_v46 = vld [vmem:[%s13171_s17 + $0x50] sm:$0xff] }
 0xb33   : > { %v8411_v24 = vsel %vm7001_vm10, %v8408_v52, %v8409_v3  ;;  %v9104_v52 = vld [vmem:[#allocation22 + $0x28] sm:$0xff] }
 0xb34   : > { %v8412_v36 = vsel %vm7003_vm12, %v8410_v16, %v8411_v24  ;;  %v9124_v3 = vld [vmem:[#allocation22 + $0xc8] sm:$0xff]  ;;  %v9115_v24 = vld [vmem:[#allocation22 + $0x80] sm:$0xff]  ;;  %v8920_v16 = vld [vmem:[#allocation20] sm:$0x3] }
 0xb35   : > { %v8414_v27 = vadd.f32 %v8412_v36, %v8286_v25  ;;  %v8930_v36 = vperm.slane %v8920_v16, 0  ;;  %v9183_v25 = vld [vmem:[%s13171_s17 + $0x40] sm:$0xff] }
 0xb40   : > { %v8744_v5 = vpop.f32.mrf.mxu1 }
 0xb41   : > { %v13025_v42 = vpop.f32.mrf.mxu3  ;;  %v8791_v54 = vrot.slane %v8744_v5, 7 }
 0xb42   : > { %v8536_v51 = vrot.slane %v13025_v42, 6  ;;  %v8596_v1 = vpop.f32.mrf.mxu2  ;;  %v8784_v42 = vpop.f32.mrf.mxu0 }
 0xb43   : > { %v8666_v11 = vsel %vm6999_vm3, %v8596_v1, %v8663_v50  ;;  %v8793_v47 = vrot.slane %v8784_v42, 5  ;;  %v9118_v1 = vld [vmem:[#allocation22 + $0x98] sm:$0xff]  ;;  %v9182_v50 = vld [vmem:[%s13171_s17 + $0x38] sm:$0xff] }
 0xb44   : > { %v8539_v18 = vsel %vm7001_vm10, %v8536_v51, %v8537_v28  ;;  %v9100_v51 = vld [vmem:[#allocation22 + $0x8] sm:$0xff] }
 0xb45   : > { %v8540_v53 = vsel %vm7003_vm12, %v8538_v45, %v8539_v18  ;;  %v9120_v28 = vld [vmem:[#allocation22 + $0xa8] sm:$0xff]  ;;  %v9184_v18 = vld [vmem:[%s13171_s17 + $0x48] sm:$0xff] }
 0xb46   : > { %v8542_v55 = vadd.f32 %v8540_v53, %v8414_v27 }
 0xb52   : > { %v8636_v4 = vpop.f32.mrf.mxu3  ;;  %v8724_v26 = vpop.f32.mrf.mxu2 }
 0xb53   : > { %v8664_v2 = vrot.slane %v8636_v4, 6  ;;  %v8794_v14 = vsel %vm6999_vm3, %v8724_v26, %v8791_v54  ;;  %v9102_v4 = vld [vmem:[#allocation22 + $0x18] sm:$0xff] }
 0xb55   : > { %v8667_v10 = vsel %vm7001_vm10, %v8664_v2, %v8665_v33  ;;  %v9189_v2 = vld [vmem:[%s13171_s17 + $0x70] sm:$0xff]  ;;  %v9188_v33 = vld [vmem:[%s13171_s17 + $0x68] sm:$0xff] }
 0xb56   : > { %v8668_v63 = vsel %vm7003_vm12, %v8666_v11, %v8667_v10 }
 0xb57   : > { %v8670_v59 = vadd.f32 %v8668_v63, %v8542_v55  ;;  %v8931_v63 = vperm.slane %v8920_v16, 1 }
 0xb62   : > { %v8764_v32 = vpop.f32.mrf.mxu3 }
 0xb63   : > { %v8792_v22 = vrot.slane %v8764_v32, 6 }
 0xb65   : > { %v8795_v12 = vsel %vm7001_vm10, %v8792_v22, %v8793_v47 }
 0xb66   : > { %v8796_v61 = vsel %vm7003_vm12, %v8794_v14, %v8795_v12 }
 0xb67   : > { %v8798_v19 = vadd.f32 %v8796_v61, %v8670_v59 }
 0xb69   : > { %v8799_v34 = vmax.f32 %v8798_v19, 0.0 }
 0xb6b   : > { %v8925_v56 = vperm.slane %v8799_v34, 3  ;;  %v8922_v20 = vperm.slane %v8799_v34, 0  ;;  %v8923_v43 = vperm.slane %v8799_v34, 1  ;;  %v8924_v9 = vperm.slane %v8799_v34, 2  ;;  %v9181_v34 = vld [vmem:[%s13171_s17 + $0x30] sm:$0xff] }
 0xb6d   : > { %8953 = vmatmul.f32.vlgmr.msra.gmra.mxu2 %v8922_v20  ;;  %8973 = vmatmul.f32.vlgmr.msra.gmra.mxu1 %v8923_v43 }
 0xb6e   : > { %8993 = vmatmul.f32.vlgmr.msra.gmra.mxu3 %v8924_v9  ;;  %9581 = vmatmul.msk.f32.vlgmr.msrb.gmra.mxu0 %vm8934_vm15, %v8925_v56 }
 0xb6f   : > { %9134 = vmatpush.msra.mxu2 %v9114_v13  ;;  %9156 = vmatpush.msra.mxu3 %v9128_v15  ;;  %v9176_v13 = vld [vmem:[%s13171_s17 + $0x8] sm:$0xff]  ;;  %v9175_v15 = vld [vmem:[%s13171_s17] sm:$0xff] }
 0xb70   : > { %9196 = vmatpush.msrb.mxu0 %v9189_v2 }
 0xb71   : > { %9135 = vmatpush.msra.mxu2 %v9113_v29  ;;  %9157 = vmatpush.msra.mxu3 %v9127_v39  ;;  %v9223_v29 = vld [vmem:[%s13173_s19 + $0x38] sm:$0xf] }
 0xb72   : > { %9197 = vmatpush.msrb.mxu0 %v9188_v33  ;;  %9585 = vmatpush.msk.msra.mxu1 %vm9229_vm11, %v9223_v29 }
 0xb73   : > { %9136 = vmatpush.msra.mxu2 %v9112_v7  ;;  %9158 = vmatpush.msra.mxu3 %v9126_v30  ;;  %v9222_v7 = vld [vmem:[%s13173_s19 + $0x30] sm:$0xff] }
 0xb74   : > { %9198 = vmatpush.msrb.mxu0 %v9187_v62  ;;  %9242 = vmatpush.msra.mxu1 %v9222_v7 }
 0xb75   : > { %9033 = vmatmul.f32.vlgmr.msrb.gmra.mxu2 %v8922_v20  ;;  %9073 = vmatmul.f32.vlgmr.msrb.gmra.mxu1 %v8924_v9  ;;  %v9179_v20 = vld [vmem:[%s13171_s17 + $0x20] sm:$0xff]  ;;  %v9177_v9 = vld [vmem:[%s13171_s17 + $0x10] sm:$0xff] }
 0xb76   : > { %9053 = vmatmul.f32.vlgmr.msra.gmra.mxu0 %v8923_v43  ;;  %9582 = vmatmul.msk.f32.vlgmr.msrb.gmra.mxu3 %vm8934_vm15, %v8925_v56  ;;  %v9180_v56 = vld [vmem:[%s13171_s17 + $0x28] sm:$0xff]  ;;  %v9178_v43 = vld [vmem:[%s13171_s17 + $0x18] sm:$0xff] }
 0xb77   : > { %9137 = vmatpush.msra.mxu2 %v9111_v40  ;;  %9159 = vmatpush.msra.mxu3 %v9125_v6  ;;  %v9221_v40 = vld [vmem:[%s13173_s19 + $0x28] sm:$0xff]  ;;  %v9218_v6 = vld [vmem:[%s13173_s19 + $0x10] sm:$0xff] }
 0xb78   : > { %9199 = vmatpush.msrb.mxu0 %v9186_v58  ;;  %9243 = vmatpush.msra.mxu1 %v9221_v40 }
 0xb79   : > { %9138 = vmatpush.msra.mxu2 %v9110_v21  ;;  %9160 = vmatpush.msra.mxu3 %v9124_v3  ;;  %v9220_v21 = vld [vmem:[%s13173_s19 + $0x20] sm:$0xff] }
 0xb7a   : > { %9200 = vmatpush.msrb.mxu0 %v9185_v46  ;;  %9244 = vmatpush.msra.mxu1 %v9220_v21  ;;  %v9216_v3 = vld [vmem:[%s13173_s19] sm:$0xff] }
 0xb7b   : > { %9139 = vmatpush.msra.mxu2 %v9109_v31  ;;  %9161 = vmatpush.msra.mxu3 %v9123_v17  ;;  %v9219_v31 = vld [vmem:[%s13173_s19 + $0x18] sm:$0xff] }
 0xb7c   : > { %9201 = vmatpush.msrb.mxu0 %v9184_v18  ;;  %9245 = vmatpush.msra.mxu1 %v9219_v31 }
 0xb7d   : > { %9140 = vmatpush.msra.mxu2 %v9108_v35  ;;  %9162 = vmatpush.msra.mxu3 %v9122_v38  ;;  %v9129_v35 = vld [vmem:[#allocation23] sm:$0x1] }
 0xb7e   : > { %9202 = vmatpush.msrb.mxu0 %v9183_v25  ;;  %9246 = vmatpush.msra.mxu1 %v9218_v6 }
 0xb7f   : > { %9141 = vmatpush.msra.mxu2 %v9107_v44  ;;  %9163 = vmatpush.msra.mxu3 %v9121_v37 }
 0xb80   : > { %9203 = vmatpush.msrb.mxu0 %v9182_v50 }
 0xb81   : > { %9142 = vmatpush.msra.mxu2 %v9106_v60  ;;  %9164 = vmatpush.msra.mxu3 %v9120_v28 }
 0xb82   : > { %9204 = vmatpush.msrb.mxu0 %v9181_v34 }
 0xb83   : > { %9143 = vmatpush.msra.mxu2 %v9105_v41  ;;  %9165 = vmatpush.msra.mxu3 %v9119_v49 }
 0xb84   : > { %9205 = vmatpush.msrb.mxu0 %v9180_v56 }
 0xb85   : > { %9144 = vmatpush.msra.mxu2 %v9104_v52  ;;  %9166 = vmatpush.msra.mxu3 %v9118_v1  ;;  %v9217_v52 = vld [vmem:[%s13173_s19 + $0x8] sm:$0xff] }
 0xb86   : > { %9206 = vmatpush.msrb.mxu0 %v9179_v20  ;;  %9247 = vmatpush.msra.mxu1 %v9217_v52 }
 0xb87   : > { %9145 = vmatpush.msra.mxu2 %v9103_v8  ;;  %9167 = vmatpush.msra.mxu3 %v9117_v0  ;;  %v9190_v8 = vld [vmem:[#allocation25] sm:$0x1] }
 0xb88   : > { %9207 = vmatpush.msrb.mxu0 %v9178_v43  ;;  %9248 = vmatpush.msra.mxu1 %v9216_v3 }
 0xb89   : > { %9146 = vmatpush.msra.mxu2 %v9102_v4  ;;  %9168 = vmatpush.msra.mxu3 %v9116_v57 }
 0xb8a   : > { %9208 = vmatpush.msrb.mxu0 %v9177_v9 }
 0xb8b   : > { %9147 = vmatpush.msra.mxu2 %v9101_v23  ;;  %9169 = vmatpush.msra.mxu3 %v9115_v24  ;;  %v9224_v23 = vld [vmem:[#allocation5] sm:$0x1] }
 0xb8c   : > { %9209 = vmatpush.msrb.mxu0 %v9176_v13 }
 0xb8d   : > { %9148 = vmatpush.msra.mxu2 %v9100_v51 }
 0xb8e   : > { %9210 = vmatpush.msrb.mxu0 %v9175_v15 }
 0xb8f   : > { %9149 = vmatpush.msra.mxu2 %v9099_v48 }
 0xbea   : > { %v8974_v5 = vpop.f32.mrf.mxu1 }
 0xbeb   : > { %v9014_v45 = vpop.f32.mrf.mxu0 }
 0xbf0   : > { %v8954_v10 = vpop.f32.mrf.mxu2 }
 0xbf1   : > { %v8955_v42 = vadd.f32 %v8954_v10, %v8930_v36  ;;  %v8994_v27 = vpop.f32.mrf.mxu3 }
 0xbf2   : > { %v9074_v59 = vpop.f32.mrf.mxu1 }
 0xbf3   : > { %v8975_v53 = vadd.f32 %v8974_v5, %v8955_v42  ;;  %v9054_v55 = vpop.f32.mrf.mxu0 }
 0xbf5   : > { %v8995_v11 = vadd.f32 %v8994_v27, %v8975_v53 }
 0xbf7   : > { %v9015_v26 = vadd.f32 %v9014_v45, %v8995_v11 }
 0xbf8   : > { %v9034_v32 = vpop.f32.mrf.mxu2 }
 0xbf9   : > { %v9097_v47 = vmax.f32 %v9015_v26, 0.0  ;;  %v9035_v54 = vadd.f32 %v9034_v32, %v8931_v63  ;;  %v9094_v12 = vpop.f32.mrf.mxu3 }
 0xbfb   : > { %v9055_v22 = vadd.f32 %v9054_v55, %v9035_v54  ;;  %9150 = vmatmul.f32.vlgmr.msra.gmra.mxu2 %v9097_v47 }
 0xbfd   : > { %v9075_v14 = vadd.f32 %v9074_v59, %v9055_v22 }
 0xbff   : > { %v9095_v61 = vadd.f32 %v9094_v12, %v9075_v14 }
 0xc01   : > { %v9098_v19 = vmax.f32 %v9095_v61, 0.0 }
 0xc03   : > { %9583 = vmatmul.msk.f32.vlgmr.msra.gmra.mxu3 %vm9130_vm0, %v9098_v19 }
 0xc7e   : > { %v9151_v44 = vpop.f32.mrf.mxu2 }
 0xc7f   : > { %v9152_v39 = vadd.f32 %v9151_v44, %v9129_v35 }
 0xc86   : > { %v9171_v60 = vpop.f32.mrf.mxu3 }
 0xc87   : > { %v9172_v30 = vadd.f32 %v9171_v60, %v9152_v39 }
 0xc89   : > { %v9174_v41 = vmax.f32 %v9172_v30, 0.0 }
 0xc8b   : > { %9584 = vmatmul.msk.f32.vlgmr.msrb.gmra.mxu0 %vm9191_vm14, %v9174_v41 }
 0xd08   : > { %v9212_v17 = vpop.f32.mrf.mxu0 }
 0xd09   : > { %v9213_v4 = vadd.f32 %v9212_v17, %v9190_v8 }
 0xd0b   : > { %v9215_v38 = vmax.f32 %v9213_v4, 0.0 }
 0xd0d   : > { %9586 = vmatmul.msk.f32.vlgmr.msra.gmra.mxu1 %vm9225_vm9, %v9215_v38 }
 0xd8a   : > { %v9250_v37 = vpop.f32.mrf.mxu1 }
 0xd8b   : > { %v9251_v51 = vadd.f32 %v9250_v37, %v9224_v23 }
 0xd8d   : > { %9254 = vst.msk [vmem:[%s849_s10] sm:$0x1] %vm9253_vm13, %v9251_v51 }
 0xd8e PF: > { %s40_s26 = sadd.s32 1, %s10206_s26  }
 0xd8f   : > { %p37_p7 = scmp.ge.s32.totalorder %s40_s26, 4  }
 0xd91   :  { %39 = sbr.rel (!%p37_p7) target bundleno = 18 (0x12), region = 296 }
 0xd96   :  { %9272 = vsyncpa [#allocation7], 1 }
 0xd97   :  { %9274 = vsyncpa [#allocation7 + $0x1], 1 }
 0xd98   :  { %9275 = vsyncpa [#allocation9], 1 }
 0xd99   :  { %9276 = vsyncpa [#allocation12], 1 }
 0xd9a   :  { %9277 = vsyncpa [#allocation15], 1 }
 0xd9b   :  { %9278 = vsyncpa [#allocation18], 1 }
 0xd9c   :  { %9279 = vsyncpa [#allocation21], 1 }
 0xd9d   :  { %9280 = vsyncpa [#allocation24], 1 }

</bundles_post_ra>
